<compile_context>
chip_gen: v7x
topology: tpu7x:2x2x1
jax: 0.10.0
libtpu: 0.0.40
codegen_flags: <defaults>
</compile_context>

<pallas_src>
import functools

import jax
import jax.numpy as jnp
from jax.experimental import pallas as pl
from jax.experimental.pallas import tpu as pltpu

MXU_BF16 = True  # feed the MXU bf16 operands (f32 accumulation) on v5e/v6e/v7x


def _parse(spec):
    a, b = spec.split(":")
    return int(a), int(b)


def _cdiv(a, b):
    return -(-a // b)


def _row_tile(rows):
    if rows <= 512:
        return rows
    for t in (512, 256, 128, 64, 32, 16, 8):
        if rows % t == 0:
            return t
    return rows


# --------------------------------------------------------------------------------------
# Fused conv kernel: in-VMEM im2col (tap gather) + MXU matmul + bias + optional ReLU
# + per-channel sum / sum-of-squares (BN statistics) emitted from the epilogue.
# Input x block is the padded sample, phase-split as (Hq, s, Wq, s*Ci) so every tap is a
# contiguous static slice (no strided loads needed).
# --------------------------------------------------------------------------------------
def _conv_kernel(x_ref, w_ref, b_ref, o_ref, sum_ref, ssq_ref, patch_ref, *,
                 KH, KW, stride, OH, OW, Ci, Co, relu):
    s = stride
    # gather taps into the VMEM patch buffer (im2col never touches HBM)
    for dy in range(KH):
        qy, oy = divmod(dy, s)
        for dx in range(KW):
            qx, ox = divmod(dx, s)
            t = dy * KW + dx
            patch_ref[:, :, t * Ci:(t + 1) * Ci] = (
                x_ref[qy:qy + OH, oy, qx:qx + OW, ox * Ci:(ox + 1) * Ci]
            )

    w = w_ref[...]
    b = b_ref[...].astype(jnp.float32)
    psum = jnp.zeros((1, Co), jnp.float32)
    pssq = jnp.zeros((1, Co), jnp.float32)
    for oh in range(OH):
        p = patch_ref[oh]                                   # (OW, KH*KW*Ci)
        if MXU_BF16:
            p = p.astype(jnp.bfloat16)
        y = jnp.dot(p, w, preferred_element_type=jnp.float32) + b   # (OW, Co)
        psum = psum + jnp.sum(y, axis=0, keepdims=True)     # BN stats on pre-ReLU output
        pssq = pssq + jnp.sum(y * y, axis=0, keepdims=True)
        if relu:
            y = jnp.maximum(y, 0.0)
        o_ref[0, oh * OW:(oh + 1) * OW, :] = y.astype(o_ref.dtype)
    sum_ref[0] = psum
    ssq_ref[0] = pssq


def conv2d(x, w2d, b, KH, KW, stride, pad, relu=False):
    """x:(N,H,W,Ci) NHWC, w2d:(KH*KW*Ci,Co) pre-reshaped, b:(1,Co).
    Returns (out (N,OH,OW,Co), psum (N,1,Co), pssq (N,1,Co))."""
    N, H, W, Ci = x.shape
    Co = w2d.shape[1]
    s = stride
    OH = (H + 2 * pad - KH) // s + 1
    OW = (W + 2 * pad - KW) // s + 1
    Hq = max(OH + (KH - 1) // s, _cdiv(H + 2 * pad, s))
    Wq = max(OW + (KW - 1) // s, _cdiv(W + 2 * pad, s))
    xp = jnp.pad(x, ((0, 0),
                     (pad, Hq * s - H - pad),
                     (pad, Wq * s - W - pad),
                     (0, 0)))
    # phase split: row h = qy*s+oy, col w = qx*s+ox  ->  (N*Hq, s, Wq, s*Ci)
    xr = xp.reshape(N * Hq, s, Wq, s * Ci)

    kern = functools.partial(_conv_kernel, KH=KH, KW=KW, stride=s,
                             OH=OH, OW=OW, Ci=Ci, Co=Co, relu=relu)
    out, psum, pssq = pl.pallas_call(
        kern,
        grid=(N,),
        in_specs=[
            pl.BlockSpec((Hq, s, Wq, s * Ci), lambda n: (n, 0, 0, 0)),
            pl.BlockSpec(w2d.shape, lambda n: (0, 0)),
            pl.BlockSpec(b.shape, lambda n: (0, 0)),
        ],
        out_specs=[
            pl.BlockSpec((1, OH * OW, Co), lambda n: (n, 0, 0)),
            pl.BlockSpec((1, 1, Co), lambda n: (n, 0, 0)),
            pl.BlockSpec((1, 1, Co), lambda n: (n, 0, 0)),
        ],
        out_shape=[
            jax.ShapeDtypeStruct((N, OH * OW, Co), jnp.float32),
            jax.ShapeDtypeStruct((N, 1, Co), jnp.float32),
            jax.ShapeDtypeStruct((N, 1, Co), jnp.float32),
        ],
        scratch_shapes=[pltpu.VMEM((OH, OW, KH * KW * Ci), jnp.float32)],
        compiler_params=pltpu.CompilerParams(dimension_semantics=("parallel",)),
    )(xr, w2d, b)
    return out.reshape(N, OH, OW, Co), psum, pssq


# --------------------------------------------------------------------------------------
# Conditional-BN helpers:
#   1) _cond_kernel: merged gamma|beta matmul + batch-stat reduction -> per-sample
#      scale/shift (one tiny pallas_call per CondBN).
#   2) _cbn_kernel / _cbn_res_kernel: lane-dense fused normalize+affine(+res)+ReLU.
# --------------------------------------------------------------------------------------
def _cond_kernel(z_ref, wgb_ref, bgb_ref, psum_ref, pssq_ref, scale_ref, shift_ref,
                 *, C, R, eps):
    mean = jnp.sum(psum_ref[...], axis=0) / R                 # (1, C)
    ex2 = jnp.sum(pssq_ref[...], axis=0) / R
    # NOTE: E[x^2]-E[x]^2 clamped at 0 to guard f32 cancellation (+eps below).
    var = jnp.maximum(ex2 - mean * mean, 0.0)
    inv = jax.lax.rsqrt(var + eps)                            # (1, C)
    gb = jnp.dot(z_ref[...], wgb_ref[...],
                 preferred_element_type=jnp.float32) + bgb_ref[...]   # (N, 2C)
    gamma = gb[:, :C]                                         # "+1" already folded into bgb
    beta = gb[:, C:]
    scale = gamma * inv                                       # (N, C)
    shift = beta - mean * scale
    scale_ref[...] = scale
    shift_ref[...] = shift


def _cbn_kernel(x_ref, s_ref, t_ref, o_ref, *, relu):
    y = x_ref[...] * s_ref[...] + t_ref[...]
    if relu:
        y = jnp.maximum(y, 0.0)
    o_ref[...] = y.astype(o_ref.dtype)


def _cbn_res_kernel(x_ref, r_ref, s_ref, t_ref, o_ref, *, relu):
    y = x_ref[...] * s_ref[...] + t_ref[...] + r_ref[...]
    if relu:
        y = jnp.maximum(y, 0.0)
    o_ref[...] = y.astype(o_ref.dtype)


def cond_bn_relu(x4, psum, pssq, z, bn_p, residual4=None, relu=True, eps=1e-5):
    """x4:(N,OH,OW,C) conv output (pre-norm); psum/pssq:(N,1,C); z:(N,hidden)."""
    N, OH, OW, C = x4.shape
    OHW = OH * OW
    R = float(N * OHW)

    # merged conditioning matmul + stats -> per-sample scale/shift (one small kernel)
    scale, shift = pl.pallas_call(
        functools.partial(_cond_kernel, C=C, R=R, eps=eps),
        grid=(1,),
        in_specs=[
            pl.BlockSpec(z.shape, lambda i: (0, 0)),
            pl.BlockSpec(bn_p["wgb"].shape, lambda i: (0, 0)),
            pl.BlockSpec(bn_p["bgb"].shape, lambda i: (0, 0)),
            pl.BlockSpec(psum.shape, lambda i: (0, 0, 0)),
            pl.BlockSpec(pssq.shape, lambda i: (0, 0, 0)),
        ],
        out_specs=[
            pl.BlockSpec((N, C), lambda i: (0, 0)),
            pl.BlockSpec((N, C), lambda i: (0, 0)),
        ],
        out_shape=[jax.ShapeDtypeStruct((N, C), jnp.float32)] * 2,
        compiler_params=pltpu.CompilerParams(dimension_semantics=("arbitrary",)),
    )(z, bn_p["wgb"], bn_p["bgb"], psum, pssq)

    # lane-dense grouping: last dim Rc*C >= 128 (scale/shift tiled across Rc positions)
    Rc = OHW
    for d in range(1, OHW + 1):
        if OHW % d == 0 and d * C >= 128:
            Rc = d
            break
    Rr = OHW // Rc
    K = Rc * C
    x3 = x4.reshape(N, Rr, K)
    sc3 = jnp.tile(scale, (1, Rc)).reshape(N, 1, K)
    sh3 = jnp.tile(shift, (1, Rc)).reshape(N, 1, K)
    Tr = _row_tile(Rr)
    grid = (N, Rr // Tr)

    if residual4 is None:
        kern = functools.partial(_cbn_kernel, relu=relu)
        inputs = (x3, sc3, sh3)
        in_specs = [
            pl.BlockSpec((1, Tr, K), lambda n, r: (n, r, 0)),
            pl.BlockSpec((1, 1, K), lambda n, r: (n, 0, 0)),
            pl.BlockSpec((1, 1, K), lambda n, r: (n, 0, 0)),
        ]
    else:
        r3 = residual4.reshape(N, Rr, K)
        kern = functools.partial(_cbn_res_kernel, relu=relu)
        inputs = (x3, r3, sc3, sh3)
        in_specs = [
            pl.BlockSpec((1, Tr, K), lambda n, r: (n, r, 0)),
            pl.BlockSpec((1, Tr, K), lambda n, r: (n, r, 0)),
            pl.BlockSpec((1, 1, K), lambda n, r: (n, 0, 0)),
            pl.BlockSpec((1, 1, K), lambda n, r: (n, 0, 0)),
        ]

    out = pl.pallas_call(
        kern,
        grid=grid,
        in_specs=in_specs,
        out_specs=pl.BlockSpec((1, Tr, K), lambda n, r: (n, r, 0)),
        out_shape=jax.ShapeDtypeStruct((N, Rr, K), jnp.float32),
        compiler_params=pltpu.CompilerParams(
            dimension_semantics=("parallel", "parallel")),
    )(*inputs)
    return out.reshape(N, OH, OW, C)


# --------------------------------------------------------------------------------------
# Parameter construction (deterministic, synthetic) and forward pass.
# --------------------------------------------------------------------------------------
def init_params(key, arch, in_ch, hidden, num_classes):
    keys = iter(jax.random.split(key, 64))
    wdt = jnp.bfloat16 if MXU_BF16 else jnp.float32

    def dense(shape, fan_in):
        return jax.random.normal(next(keys), shape, jnp.float32) / jnp.sqrt(float(fan_in))

    def conv_w(kh, kw, ci, co):
        # pre-reshape once at init to im2col order (dy, dx, ci) and pre-cast for the MXU
        w = dense((kh, kw, ci, co), kh * kw * ci)
        return w.reshape(kh * kw * ci, co).astype(wdt)

    params = {"emb": dense((num_classes, hidden), 1.0)}       # nn.Embedding ~ N(0,1)

    ch0, s0 = _parse(arch[0])
    params["head"] = {
        "w": conv_w(7, 7, in_ch, ch0),
        "b": jnp.zeros((1, ch0), jnp.float32),
        "stride": s0,
    }

    def bn_params(ch):
        w_w = dense((hidden, ch), hidden)
        w_b = jnp.zeros((ch,), jnp.float32)
        b_w = dense((hidden, ch), hidden)
        b_b = jnp.zeros((ch,), jnp.float32)
        # merged gamma|beta linear; gamma's "+1" folded into the bias
        wgb = jnp.concatenate([w_w, b_w], axis=1)                       # (hidden, 2C)
        bgb = jnp.concatenate([1.0 + w_b, b_b]).reshape(1, 2 * ch)      # (1, 2C)
        return {"wgb": wgb, "bgb": bgb}

    blocks = []
    prev = ch0
    for spec in arch[1:]:
        ch, s = _parse(spec)
        blk = {
            "c1_w": conv_w(3, 3, prev, ch), "c1_b": jnp.zeros((1, ch), jnp.float32),
            "c2_w": conv_w(3, 3, ch, ch), "c2_b": jnp.zeros((1, ch), jnp.float32),
            "bn1": bn_params(ch),
            "bn2": bn_params(ch),
            "stride": s,
        }
        if s != 1 or prev != ch:
            blk["sc_w"] = conv_w(1, 1, prev, ch)
            blk["sc_b"] = jnp.zeros((1, ch), jnp.float32)
        blocks.append(blk)
        prev = ch
    params["blocks"] = blocks
    return params


def class_cond_resnet_bone(params, x_nchw, y):
    """forward(x, y): x NCHW float, y int class ids. Returns NCHW features."""
    x = jnp.transpose(x_nchw, (0, 2, 3, 1)).astype(jnp.float32)   # -> NHWC
    z = jnp.take(params["emb"], y, axis=0)                        # embedding lookup (glue gather)

    hp = params["head"]
    h, _, _ = conv2d(x, hp["w"], hp["b"], 7, 7, hp["stride"], 3, relu=True)

    for blk in params["blocks"]:
        s = blk["stride"]
        br, s1, q1 = conv2d(h, blk["c1_w"], blk["c1_b"], 3, 3, s, 1, relu=False)
        br = cond_bn_relu(br, s1, q1, z, blk["bn1"], residual4=None, relu=True)
        b2, s2, q2 = conv2d(br, blk["c2_w"], blk["c2_b"], 3, 3, 1, 1, relu=False)
        if "sc_w" in blk:
            sc, _, _ = conv2d(h, blk["sc_w"], blk["sc_b"], 1, 1, s, 0, relu=False)
        else:
            sc = h
        # CondBN2 + residual add + ReLU fused in one lane-dense kernel
        h = cond_bn_relu(b2, s2, q2, z, blk["bn2"], residual4=sc, relu=True)

    return jnp.transpose(h, (0, 3, 1, 2))                          # back to NCHW


if __name__ == "__main__":
    key = jax.random.PRNGKey(0)
    kp, kx, ky = jax.random.split(key, 3)

    arch = ["8:2", "8:1", "16:2"]
    in_ch, hidden, num_classes = 4, 32, 10

    params = init_params(kp, arch, in_ch, hidden, num_classes)
    x = jax.random.normal(kx, (2, in_ch, 16, 16), jnp.float32)     # NCHW, PyTorch-style
    y = jax.random.randint(ky, (2,), 0, num_classes)

    fwd = jax.jit(lambda xx, yy: class_cond_resnet_bone(params, xx, yy))
    out = jax.block_until_ready(fwd(x, y))
    assert out.shape == (2, 16, 4, 4), out.shape
    assert bool(jnp.all(jnp.isfinite(out)))
    print("KERNEL_OK")
</pallas_src>

<mosaic_0001>
module attributes {stable_mosaic.version = 11 : i64} {
  func.func @_conv_kernel(%arg0: i32, %arg1: memref<11x2x11x8xf32, #tpu.memory_space<vmem>>, %arg2: memref<196x8xbf16, #tpu.memory_space<vmem>>, %arg3: memref<1x8xf32, #tpu.memory_space<vmem>>, %arg4: memref<1x64x8xf32, #tpu.memory_space<vmem>>, %arg5: memref<1x1x8xf32, #tpu.memory_space<vmem>>, %arg6: memref<1x1x8xf32, #tpu.memory_space<vmem>>, %arg7: memref<8x8x196xf32, #tpu.memory_space<vmem>>) attributes {dimension_semantics = [#tpu.dimension_semantics<parallel>], iteration_bounds = array<i64: 2>, scalar_prefetch = 0 : i64, scratch_operands = 1 : i64, tpu.core_type = #tpu.core_type<tc>, window_params = [{transform_indices = @transform_0, window_bounds = array<i64: 11, 2, 11, 8>}, {pipeline_mode = #tpu.pipeline_mode<synchronous>, transform_indices = @transform_1, window_bounds = array<i64: 196, 8>}, {pipeline_mode = #tpu.pipeline_mode<synchronous>, transform_indices = @transform_2, window_bounds = array<i64: 1, 8>}, {transform_indices = @transform_3, window_bounds = array<i64: 1, 64, 8>}, {transform_indices = @transform_4, window_bounds = array<i64: 1, 1, 8>}, {transform_indices = @transform_5, window_bounds = array<i64: 1, 1, 8>}]} {
    %c0 = arith.constant 0 : index
    %c0_0 = arith.constant 0 : index
    %c0_1 = arith.constant 0 : index
    %c0_2 = arith.constant 0 : index
    %0 = vector.load %arg1[%c0, %c0_0, %c0_1, %c0_2] : memref<11x2x11x8xf32, #tpu.memory_space<vmem>>, vector<8x1x8x4xf32>
    %1 = vector.shape_cast %0 : vector<8x1x8x4xf32> to vector<8x8x4xf32>
    %c0_3 = arith.constant 0 : index
    %c0_4 = arith.constant 0 : index
    %c0_5 = arith.constant 0 : index
    %2 = vector.load %arg7[%c0_3, %c0_4, %c0_5] : memref<8x8x196xf32, #tpu.memory_space<vmem>>, vector<8x8x4xf32>
    tpu.vector_store %arg7[%c0_3, %c0_4, %c0_5], %1 {strides = array<i32>} : memref<8x8x196xf32, #tpu.memory_space<vmem>>, vector<8x8x4xf32>,
    %c0_6 = arith.constant 0 : index
    %c0_7 = arith.constant 0 : index
    %c0_8 = arith.constant 0 : index
    %c4 = arith.constant 4 : index
    %3 = vector.load %arg1[%c0_6, %c0_7, %c0_8, %c4] : memref<11x2x11x8xf32, #tpu.memory_space<vmem>>, vector<8x1x8x4xf32>
    %4 = vector.shape_cast %3 : vector<8x1x8x4xf32> to vector<8x8x4xf32>
    %c0_9 = arith.constant 0 : index
    %c0_10 = arith.constant 0 : index
    %c4_11 = arith.constant 4 : index
    %5 = vector.load %arg7[%c0_9, %c0_10, %c4_11] : memref<8x8x196xf32, #tpu.memory_space<vmem>>, vector<8x8x4xf32>
    tpu.vector_store %arg7[%c0_9, %c0_10, %c4_11], %4 {strides = array<i32>} : memref<8x8x196xf32, #tpu.memory_space<vmem>>, vector<8x8x4xf32>,
    %c0_12 = arith.constant 0 : index
    %c0_13 = arith.constant 0 : index
    %c1 = arith.constant 1 : index
    %c0_14 = arith.constant 0 : index
    %6 = vector.load %arg1[%c0_12, %c0_13, %c1, %c0_14] : memref<11x2x11x8xf32, #tpu.memory_space<vmem>>, vector<8x1x8x4xf32>
    %7 = vector.shape_cast %6 : vector<8x1x8x4xf32> to vector<8x8x4xf32>
    %c0_15 = arith.constant 0 : index
    %c0_16 = arith.constant 0 : index
    %c8 = arith.constant 8 : index
    %8 = vector.load %arg7[%c0_15, %c0_16, %c8] : memref<8x8x196xf32, #tpu.memory_space<vmem>>, vector<8x8x4xf32>
    tpu.vector_store %arg7[%c0_15, %c0_16, %c8], %7 {strides = array<i32>} : memref<8x8x196xf32, #tpu.memory_space<vmem>>, vector<8x8x4xf32>,
    %c0_17 = arith.constant 0 : index
    %c0_18 = arith.constant 0 : index
    %c1_19 = arith.constant 1 : index
    %c4_20 = arith.constant 4 : index
    %9 = vector.load %arg1[%c0_17, %c0_18, %c1_19, %c4_20] : memref<11x2x11x8xf32, #tpu.memory_space<vmem>>, vector<8x1x8x4xf32>
    %10 = vector.shape_cast %9 : vector<8x1x8x4xf32> to vector<8x8x4xf32>
    %c0_21 = arith.constant 0 : index
    %c0_22 = arith.constant 0 : index
    %c12 = arith.constant 12 : index
    %11 = vector.load %arg7[%c0_21, %c0_22, %c12] : memref<8x8x196xf32, #tpu.memory_space<vmem>>, vector<8x8x4xf32>
    tpu.vector_store %arg7[%c0_21, %c0_22, %c12], %10 {strides = array<i32>} : memref<8x8x196xf32, #tpu.memory_space<vmem>>, vector<8x8x4xf32>,
    %c0_23 = arith.constant 0 : index
    %c0_24 = arith.constant 0 : index
    %c2 = arith.constant 2 : index
    %c0_25 = arith.constant 0 : index
    %12 = vector.load %arg1[%c0_23, %c0_24, %c2, %c0_25] : memref<11x2x11x8xf32, #tpu.memory_space<vmem>>, vector<8x1x8x4xf32>
    %13 = vector.shape_cast %12 : vector<8x1x8x4xf32> to vector<8x8x4xf32>
    %c0_26 = arith.constant 0 : index
    %c0_27 = arith.constant 0 : index
    %c16 = arith.constant 16 : index
    %14 = vector.load %arg7[%c0_26, %c0_27, %c16] : memref<8x8x196xf32, #tpu.memory_space<vmem>>, vector<8x8x4xf32>
    tpu.vector_store %arg7[%c0_26, %c0_27, %c16], %13 {strides = array<i32>} : memref<8x8x196xf32, #tpu.memory_space<vmem>>, vector<8x8x4xf32>,
    %c0_28 = arith.constant 0 : index
    %c0_29 = arith.constant 0 : index
    %c2_30 = arith.constant 2 : index
    %c4_31 = arith.constant 4 : index
    %15 = vector.load %arg1[%c0_28, %c0_29, %c2_30, %c4_31] : memref<11x2x11x8xf32, #tpu.memory_space<vmem>>, vector<8x1x8x4xf32>
    %16 = vector.shape_cast %15 : vector<8x1x8x4xf32> to vector<8x8x4xf32>
    %c0_32 = arith.constant 0 : index
    %c0_33 = arith.constant 0 : index
    %c20 = arith.constant 20 : index
    %17 = vector.load %arg7[%c0_32, %c0_33, %c20] : memref<8x8x196xf32, #tpu.memory_space<vmem>>, vector<8x8x4xf32>
    tpu.vector_store %arg7[%c0_32, %c0_33, %c20], %16 {strides = array<i32>} : memref<8x8x196xf32, #tpu.memory_space<vmem>>, vector<8x8x4xf32>,
    %c0_34 = arith.constant 0 : index
    %c0_35 = arith.constant 0 : index
    %c3 = arith.constant 3 : index
    %c0_36 = arith.constant 0 : index
    %18 = vector.load %arg1[%c0_34, %c0_35, %c3, %c0_36] : memref<11x2x11x8xf32, #tpu.memory_space<vmem>>, vector<8x1x8x4xf32>
    %19 = vector.shape_cast %18 : vector<8x1x8x4xf32> to vector<8x8x4xf32>
    %c0_37 = arith.constant 0 : index
    %c0_38 = arith.constant 0 : index
    %c24 = arith.constant 24 : index
    %20 = vector.load %arg7[%c0_37, %c0_38, %c24] : memref<8x8x196xf32, #tpu.memory_space<vmem>>, vector<8x8x4xf32>
    tpu.vector_store %arg7[%c0_37, %c0_38, %c24], %19 {strides = array<i32>} : memref<8x8x196xf32, #tpu.memory_space<vmem>>, vector<8x8x4xf32>,
    %c0_39 = arith.constant 0 : index
    %c1_40 = arith.constant 1 : index
    %c0_41 = arith.constant 0 : index
    %c0_42 = arith.constant 0 : index
    %21 = vector.load %arg1[%c0_39, %c1_40, %c0_41, %c0_42] : memref<11x2x11x8xf32, #tpu.memory_space<vmem>>, vector<8x1x8x4xf32>
    %22 = vector.shape_cast %21 : vector<8x1x8x4xf32> to vector<8x8x4xf32>
    %c0_43 = arith.constant 0 : index
    %c0_44 = arith.constant 0 : index
    %c28 = arith.constant 28 : index
    %23 = vector.load %arg7[%c0_43, %c0_44, %c28] : memref<8x8x196xf32, #tpu.memory_space<vmem>>, vector<8x8x4xf32>
    tpu.vector_store %arg7[%c0_43, %c0_44, %c28], %22 {strides = array<i32>} : memref<8x8x196xf32, #tpu.memory_space<vmem>>, vector<8x8x4xf32>,
    %c0_45 = arith.constant 0 : index
    %c1_46 = arith.constant 1 : index
    %c0_47 = arith.constant 0 : index
    %c4_48 = arith.constant 4 : index
    %24 = vector.load %arg1[%c0_45, %c1_46, %c0_47, %c4_48] : memref<11x2x11x8xf32, #tpu.memory_space<vmem>>, vector<8x1x8x4xf32>
    %25 = vector.shape_cast %24 : vector<8x1x8x4xf32> to vector<8x8x4xf32>
    %c0_49 = arith.constant 0 : index
    %c0_50 = arith.constant 0 : index
    %c32 = arith.constant 32 : index
    %26 = vector.load %arg7[%c0_49, %c0_50, %c32] : memref<8x8x196xf32, #tpu.memory_space<vmem>>, vector<8x8x4xf32>
    tpu.vector_store %arg7[%c0_49, %c0_50, %c32], %25 {strides = array<i32>} : memref<8x8x196xf32, #tpu.memory_space<vmem>>, vector<8x8x4xf32>,
    %c0_51 = arith.constant 0 : index
    %c1_52 = arith.constant 1 : index
    %c1_53 = arith.constant 1 : index
    %c0_54 = arith.constant 0 : index
    %27 = vector.load %arg1[%c0_51, %c1_52, %c1_53, %c0_54] : memref<11x2x11x8xf32, #tpu.memory_space<vmem>>, vector<8x1x8x4xf32>
    %28 = vector.shape_cast %27 : vector<8x1x8x4xf32> to vector<8x8x4xf32>
    %c0_55 = arith.constant 0 : index
    %c0_56 = arith.constant 0 : index
    %c36 = arith.constant 36 : index
    %29 = vector.load %arg7[%c0_55, %c0_56, %c36] : memref<8x8x196xf32, #tpu.memory_space<vmem>>, vector<8x8x4xf32>
    tpu.vector_store %arg7[%c0_55, %c0_56, %c36], %28 {strides = array<i32>} : memref<8x8x196xf32, #tpu.memory_space<vmem>>, vector<8x8x4xf32>,
    %c0_57 = arith.constant 0 : index
    %c1_58 = arith.constant 1 : index
    %c1_59 = arith.constant 1 : index
    %c4_60 = arith.constant 4 : index
    %30 = vector.load %arg1[%c0_57, %c1_58, %c1_59, %c4_60] : memref<11x2x11x8xf32, #tpu.memory_space<vmem>>, vector<8x1x8x4xf32>
    %31 = vector.shape_cast %30 : vector<8x1x8x4xf32> to vector<8x8x4xf32>
    %c0_61 = arith.constant 0 : index
    %c0_62 = arith.constant 0 : index
    %c40 = arith.constant 40 : index
    %32 = vector.load %arg7[%c0_61, %c0_62, %c40] : memref<8x8x196xf32, #tpu.memory_space<vmem>>, vector<8x8x4xf32>
    tpu.vector_store %arg7[%c0_61, %c0_62, %c40], %31 {strides = array<i32>} : memref<8x8x196xf32, #tpu.memory_space<vmem>>, vector<8x8x4xf32>,
    %c0_63 = arith.constant 0 : index
    %c1_64 = arith.constant 1 : index
    %c2_65 = arith.constant 2 : index
    %c0_66 = arith.constant 0 : index
    %33 = vector.load %arg1[%c0_63, %c1_64, %c2_65, %c0_66] : memref<11x2x11x8xf32, #tpu.memory_space<vmem>>, vector<8x1x8x4xf32>
    %34 = vector.shape_cast %33 : vector<8x1x8x4xf32> to vector<8x8x4xf32>
    %c0_67 = arith.constant 0 : index
    %c0_68 = arith.constant 0 : index
    %c44 = arith.constant 44 : index
    %35 = vector.load %arg7[%c0_67, %c0_68, %c44] : memref<8x8x196xf32, #tpu.memory_space<vmem>>, vector<8x8x4xf32>
    tpu.vector_store %arg7[%c0_67, %c0_68, %c44], %34 {strides = array<i32>} : memref<8x8x196xf32, #tpu.memory_space<vmem>>, vector<8x8x4xf32>,
    %c0_69 = arith.constant 0 : index
    %c1_70 = arith.constant 1 : index
    %c2_71 = arith.constant 2 : index
    %c4_72 = arith.constant 4 : index
    %36 = vector.load %arg1[%c0_69, %c1_70, %c2_71, %c4_72] : memref<11x2x11x8xf32, #tpu.memory_space<vmem>>, vector<8x1x8x4xf32>
    %37 = vector.shape_cast %36 : vector<8x1x8x4xf32> to vector<8x8x4xf32>
    %c0_73 = arith.constant 0 : index
    %c0_74 = arith.constant 0 : index
    %c48 = arith.constant 48 : index
    %38 = vector.load %arg7[%c0_73, %c0_74, %c48] : memref<8x8x196xf32, #tpu.memory_space<vmem>>, vector<8x8x4xf32>
    tpu.vector_store %arg7[%c0_73, %c0_74, %c48], %37 {strides = array<i32>} : memref<8x8x196xf32, #tpu.memory_space<vmem>>, vector<8x8x4xf32>,
    %c0_75 = arith.constant 0 : index
    %c1_76 = arith.constant 1 : index
    %c3_77 = arith.constant 3 : index
    %c0_78 = arith.constant 0 : index
    %39 = vector.load %arg1[%c0_75, %c1_76, %c3_77, %c0_78] : memref<11x2x11x8xf32, #tpu.memory_space<vmem>>, vector<8x1x8x4xf32>
    %40 = vector.shape_cast %39 : vector<8x1x8x4xf32> to vector<8x8x4xf32>
    %c0_79 = arith.constant 0 : index
    %c0_80 = arith.constant 0 : index
    %c52 = arith.constant 52 : index
    %41 = vector.load %arg7[%c0_79, %c0_80, %c52] : memref<8x8x196xf32, #tpu.memory_space<vmem>>, vector<8x8x4xf32>
    tpu.vector_store %arg7[%c0_79, %c0_80, %c52], %40 {strides = array<i32>} : memref<8x8x196xf32, #tpu.memory_space<vmem>>, vector<8x8x4xf32>,
    %c1_81 = arith.constant 1 : index
    %c0_82 = arith.constant 0 : index
    %c0_83 = arith.constant 0 : index
    %c0_84 = arith.constant 0 : index
    %42 = vector.load %arg1[%c1_81, %c0_82, %c0_83, %c0_84] : memref<11x2x11x8xf32, #tpu.memory_space<vmem>>, vector<8x1x8x4xf32>
    %43 = vector.shape_cast %42 : vector<8x1x8x4xf32> to vector<8x8x4xf32>
    %c0_85 = arith.constant 0 : index
    %c0_86 = arith.constant 0 : index
    %c56 = arith.constant 56 : index
    %44 = vector.load %arg7[%c0_85, %c0_86, %c56] : memref<8x8x196xf32, #tpu.memory_space<vmem>>, vector<8x8x4xf32>
    tpu.vector_store %arg7[%c0_85, %c0_86, %c56], %43 {strides = array<i32>} : memref<8x8x196xf32, #tpu.memory_space<vmem>>, vector<8x8x4xf32>,
    %c1_87 = arith.constant 1 : index
    %c0_88 = arith.constant 0 : index
    %c0_89 = arith.constant 0 : index
    %c4_90 = arith.constant 4 : index
    %45 = vector.load %arg1[%c1_87, %c0_88, %c0_89, %c4_90] : memref<11x2x11x8xf32, #tpu.memory_space<vmem>>, vector<8x1x8x4xf32>
    %46 = vector.shape_cast %45 : vector<8x1x8x4xf32> to vector<8x8x4xf32>
    %c0_91 = arith.constant 0 : index
    %c0_92 = arith.constant 0 : index
    %c60 = arith.constant 60 : index
    %47 = vector.load %arg7[%c0_91, %c0_92, %c60] : memref<8x8x196xf32, #tpu.memory_space<vmem>>, vector<8x8x4xf32>
    tpu.vector_store %arg7[%c0_91, %c0_92, %c60], %46 {strides = array<i32>} : memref<8x8x196xf32, #tpu.memory_space<vmem>>, vector<8x8x4xf32>,
    %c1_93 = arith.constant 1 : index
    %c0_94 = arith.constant 0 : index
    %c1_95 = arith.constant 1 : index
    %c0_96 = arith.constant 0 : index
    %48 = vector.load %arg1[%c1_93, %c0_94, %c1_95, %c0_96] : memref<11x2x11x8xf32, #tpu.memory_space<vmem>>, vector<8x1x8x4xf32>
    %49 = vector.shape_cast %48 : vector<8x1x8x4xf32> to vector<8x8x4xf32>
    %c0_97 = arith.constant 0 : index
    %c0_98 = arith.constant 0 : index
    %c64 = arith.constant 64 : index
    %50 = vector.load %arg7[%c0_97, %c0_98, %c64] : memref<8x8x196xf32, #tpu.memory_space<vmem>>, vector<8x8x4xf32>
    tpu.vector_store %arg7[%c0_97, %c0_98, %c64], %49 {strides = array<i32>} : memref<8x8x196xf32, #tpu.memory_space<vmem>>, vector<8x8x4xf32>,
    %c1_99 = arith.constant 1 : index
    %c0_100 = arith.constant 0 : index
    %c1_101 = arith.constant 1 : index
    %c4_102 = arith.constant 4 : index
    %51 = vector.load %arg1[%c1_99, %c0_100, %c1_101, %c4_102] : memref<11x2x11x8xf32, #tpu.memory_space<vmem>>, vector<8x1x8x4xf32>
    %52 = vector.shape_cast %51 : vector<8x1x8x4xf32> to vector<8x8x4xf32>
    %c0_103 = arith.constant 0 : index
    %c0_104 = arith.constant 0 : index
    %c68 = arith.constant 68 : index
    %53 = vector.load %arg7[%c0_103, %c0_104, %c68] : memref<8x8x196xf32, #tpu.memory_space<vmem>>, vector<8x8x4xf32>
    tpu.vector_store %arg7[%c0_103, %c0_104, %c68], %52 {strides = array<i32>} : memref<8x8x196xf32, #tpu.memory_space<vmem>>, vector<8x8x4xf32>,
    %c1_105 = arith.constant 1 : index
    %c0_106 = arith.constant 0 : index
    %c2_107 = arith.constant 2 : index
    %c0_108 = arith.constant 0 : index
    %54 = vector.load %arg1[%c1_105, %c0_106, %c2_107, %c0_108] : memref<11x2x11x8xf32, #tpu.memory_space<vmem>>, vector<8x1x8x4xf32>
    %55 = vector.shape_cast %54 : vector<8x1x8x4xf32> to vector<8x8x4xf32>
    %c0_109 = arith.constant 0 : index
    %c0_110 = arith.constant 0 : index
    %c72 = arith.constant 72 : index
    %56 = vector.load %arg7[%c0_109, %c0_110, %c72] : memref<8x8x196xf32, #tpu.memory_space<vmem>>, vector<8x8x4xf32>
    tpu.vector_store %arg7[%c0_109, %c0_110, %c72], %55 {strides = array<i32>} : memref<8x8x196xf32, #tpu.memory_space<vmem>>, vector<8x8x4xf32>,
    %c1_111 = arith.constant 1 : index
    %c0_112 = arith.constant 0 : index
    %c2_113 = arith.constant 2 : index
    %c4_114 = arith.constant 4 : index
    %57 = vector.load %arg1[%c1_111, %c0_112, %c2_113, %c4_114] : memref<11x2x11x8xf32, #tpu.memory_space<vmem>>, vector<8x1x8x4xf32>
    %58 = vector.shape_cast %57 : vector<8x1x8x4xf32> to vector<8x8x4xf32>
    %c0_115 = arith.constant 0 : index
    %c0_116 = arith.constant 0 : index
    %c76 = arith.constant 76 : index
    %59 = vector.load %arg7[%c0_115, %c0_116, %c76] : memref<8x8x196xf32, #tpu.memory_space<vmem>>, vector<8x8x4xf32>
    tpu.vector_store %arg7[%c0_115, %c0_116, %c76], %58 {strides = array<i32>} : memref<8x8x196xf32, #tpu.memory_space<vmem>>, vector<8x8x4xf32>,
    %c1_117 = arith.constant 1 : index
    %c0_118 = arith.constant 0 : index
    %c3_119 = arith.constant 3 : index
    %c0_120 = arith.constant 0 : index
    %60 = vector.load %arg1[%c1_117, %c0_118, %c3_119, %c0_120] : memref<11x2x11x8xf32, #tpu.memory_space<vmem>>, vector<8x1x8x4xf32>
    %61 = vector.shape_cast %60 : vector<8x1x8x4xf32> to vector<8x8x4xf32>
    %c0_121 = arith.constant 0 : index
    %c0_122 = arith.constant 0 : index
    %c80 = arith.constant 80 : index
    %62 = vector.load %arg7[%c0_121, %c0_122, %c80] : memref<8x8x196xf32, #tpu.memory_space<vmem>>, vector<8x8x4xf32>
    tpu.vector_store %arg7[%c0_121, %c0_122, %c80], %61 {strides = array<i32>} : memref<8x8x196xf32, #tpu.memory_space<vmem>>, vector<8x8x4xf32>,
    %c1_123 = arith.constant 1 : index
    %c1_124 = arith.constant 1 : index
    %c0_125 = arith.constant 0 : index
    %c0_126 = arith.constant 0 : index
    %63 = vector.load %arg1[%c1_123, %c1_124, %c0_125, %c0_126] : memref<11x2x11x8xf32, #tpu.memory_space<vmem>>, vector<8x1x8x4xf32>
    %64 = vector.shape_cast %63 : vector<8x1x8x4xf32> to vector<8x8x4xf32>
    %c0_127 = arith.constant 0 : index
    %c0_128 = arith.constant 0 : index
    %c84 = arith.constant 84 : index
    %65 = vector.load %arg7[%c0_127, %c0_128, %c84] : memref<8x8x196xf32, #tpu.memory_space<vmem>>, vector<8x8x4xf32>
    tpu.vector_store %arg7[%c0_127, %c0_128, %c84], %64 {strides = array<i32>} : memref<8x8x196xf32, #tpu.memory_space<vmem>>, vector<8x8x4xf32>,
    %c1_129 = arith.constant 1 : index
    %c1_130 = arith.constant 1 : index
    %c0_131 = arith.constant 0 : index
    %c4_132 = arith.constant 4 : index
    %66 = vector.load %arg1[%c1_129, %c1_130, %c0_131, %c4_132] : memref<11x2x11x8xf32, #tpu.memory_space<vmem>>, vector<8x1x8x4xf32>
    %67 = vector.shape_cast %66 : vector<8x1x8x4xf32> to vector<8x8x4xf32>
    %c0_133 = arith.constant 0 : index
    %c0_134 = arith.constant 0 : index
    %c88 = arith.constant 88 : index
    %68 = vector.load %arg7[%c0_133, %c0_134, %c88] : memref<8x8x196xf32, #tpu.memory_space<vmem>>, vector<8x8x4xf32>
    tpu.vector_store %arg7[%c0_133, %c0_134, %c88], %67 {strides = array<i32>} : memref<8x8x196xf32, #tpu.memory_space<vmem>>, vector<8x8x4xf32>,
    %c1_135 = arith.constant 1 : index
    %c1_136 = arith.constant 1 : index
    %c1_137 = arith.constant 1 : index
    %c0_138 = arith.constant 0 : index
    %69 = vector.load %arg1[%c1_135, %c1_136, %c1_137, %c0_138] : memref<11x2x11x8xf32, #tpu.memory_space<vmem>>, vector<8x1x8x4xf32>
    %70 = vector.shape_cast %69 : vector<8x1x8x4xf32> to vector<8x8x4xf32>
    %c0_139 = arith.constant 0 : index
    %c0_140 = arith.constant 0 : index
    %c92 = arith.constant 92 : index
    %71 = vector.load %arg7[%c0_139, %c0_140, %c92] : memref<8x8x196xf32, #tpu.memory_space<vmem>>, vector<8x8x4xf32>
    tpu.vector_store %arg7[%c0_139, %c0_140, %c92], %70 {strides = array<i32>} : memref<8x8x196xf32, #tpu.memory_space<vmem>>, vector<8x8x4xf32>,
    %c1_141 = arith.constant 1 : index
    %c1_142 = arith.constant 1 : index
    %c1_143 = arith.constant 1 : index
    %c4_144 = arith.constant 4 : index
    %72 = vector.load %arg1[%c1_141, %c1_142, %c1_143, %c4_144] : memref<11x2x11x8xf32, #tpu.memory_space<vmem>>, vector<8x1x8x4xf32>
    %73 = vector.shape_cast %72 : vector<8x1x8x4xf32> to vector<8x8x4xf32>
    %c0_145 = arith.constant 0 : index
    %c0_146 = arith.constant 0 : index
    %c96 = arith.constant 96 : index
    %74 = vector.load %arg7[%c0_145, %c0_146, %c96] : memref<8x8x196xf32, #tpu.memory_space<vmem>>, vector<8x8x4xf32>
    tpu.vector_store %arg7[%c0_145, %c0_146, %c96], %73 {strides = array<i32>} : memref<8x8x196xf32, #tpu.memory_space<vmem>>, vector<8x8x4xf32>,
    %c1_147 = arith.constant 1 : index
    %c1_148 = arith.constant 1 : index
    %c2_149 = arith.constant 2 : index
    %c0_150 = arith.constant 0 : index
    %75 = vector.load %arg1[%c1_147, %c1_148, %c2_149, %c0_150] : memref<11x2x11x8xf32, #tpu.memory_space<vmem>>, vector<8x1x8x4xf32>
    %76 = vector.shape_cast %75 : vector<8x1x8x4xf32> to vector<8x8x4xf32>
    %c0_151 = arith.constant 0 : index
    %c0_152 = arith.constant 0 : index
    %c100 = arith.constant 100 : index
    %77 = vector.load %arg7[%c0_151, %c0_152, %c100] : memref<8x8x196xf32, #tpu.memory_space<vmem>>, vector<8x8x4xf32>
    tpu.vector_store %arg7[%c0_151, %c0_152, %c100], %76 {strides = array<i32>} : memref<8x8x196xf32, #tpu.memory_space<vmem>>, vector<8x8x4xf32>,
    %c1_153 = arith.constant 1 : index
    %c1_154 = arith.constant 1 : index
    %c2_155 = arith.constant 2 : index
    %c4_156 = arith.constant 4 : index
    %78 = vector.load %arg1[%c1_153, %c1_154, %c2_155, %c4_156] : memref<11x2x11x8xf32, #tpu.memory_space<vmem>>, vector<8x1x8x4xf32>
    %79 = vector.shape_cast %78 : vector<8x1x8x4xf32> to vector<8x8x4xf32>
    %c0_157 = arith.constant 0 : index
    %c0_158 = arith.constant 0 : index
    %c104 = arith.constant 104 : index
    %80 = vector.load %arg7[%c0_157, %c0_158, %c104] : memref<8x8x196xf32, #tpu.memory_space<vmem>>, vector<8x8x4xf32>
    tpu.vector_store %arg7[%c0_157, %c0_158, %c104], %79 {strides = array<i32>} : memref<8x8x196xf32, #tpu.memory_space<vmem>>, vector<8x8x4xf32>,
    %c1_159 = arith.constant 1 : index
    %c1_160 = arith.constant 1 : index
    %c3_161 = arith.constant 3 : index
    %c0_162 = arith.constant 0 : index
    %81 = vector.load %arg1[%c1_159, %c1_160, %c3_161, %c0_162] : memref<11x2x11x8xf32, #tpu.memory_space<vmem>>, vector<8x1x8x4xf32>
    %82 = vector.shape_cast %81 : vector<8x1x8x4xf32> to vector<8x8x4xf32>
    %c0_163 = arith.constant 0 : index
    %c0_164 = arith.constant 0 : index
    %c108 = arith.constant 108 : index
    %83 = vector.load %arg7[%c0_163, %c0_164, %c108] : memref<8x8x196xf32, #tpu.memory_space<vmem>>, vector<8x8x4xf32>
    tpu.vector_store %arg7[%c0_163, %c0_164, %c108], %82 {strides = array<i32>} : memref<8x8x196xf32, #tpu.memory_space<vmem>>, vector<8x8x4xf32>,
    %c2_165 = arith.constant 2 : index
    %c0_166 = arith.constant 0 : index
    %c0_167 = arith.constant 0 : index
    %c0_168 = arith.constant 0 : index
    %84 = vector.load %arg1[%c2_165, %c0_166, %c0_167, %c0_168] : memref<11x2x11x8xf32, #tpu.memory_space<vmem>>, vector<8x1x8x4xf32>
    %85 = vector.shape_cast %84 : vector<8x1x8x4xf32> to vector<8x8x4xf32>
    %c0_169 = arith.constant 0 : index
    %c0_170 = arith.constant 0 : index
    %c112 = arith.constant 112 : index
    %86 = vector.load %arg7[%c0_169, %c0_170, %c112] : memref<8x8x196xf32, #tpu.memory_space<vmem>>, vector<8x8x4xf32>
    tpu.vector_store %arg7[%c0_169, %c0_170, %c112], %85 {strides = array<i32>} : memref<8x8x196xf32, #tpu.memory_space<vmem>>, vector<8x8x4xf32>,
    %c2_171 = arith.constant 2 : index
    %c0_172 = arith.constant 0 : index
    %c0_173 = arith.constant 0 : index
    %c4_174 = arith.constant 4 : index
    %87 = vector.load %arg1[%c2_171, %c0_172, %c0_173, %c4_174] : memref<11x2x11x8xf32, #tpu.memory_space<vmem>>, vector<8x1x8x4xf32>
    %88 = vector.shape_cast %87 : vector<8x1x8x4xf32> to vector<8x8x4xf32>
    %c0_175 = arith.constant 0 : index
    %c0_176 = arith.constant 0 : index
    %c116 = arith.constant 116 : index
    %89 = vector.load %arg7[%c0_175, %c0_176, %c116] : memref<8x8x196xf32, #tpu.memory_space<vmem>>, vector<8x8x4xf32>
    tpu.vector_store %arg7[%c0_175, %c0_176, %c116], %88 {strides = array<i32>} : memref<8x8x196xf32, #tpu.memory_space<vmem>>, vector<8x8x4xf32>,
    %c2_177 = arith.constant 2 : index
    %c0_178 = arith.constant 0 : index
    %c1_179 = arith.constant 1 : index
    %c0_180 = arith.constant 0 : index
    %90 = vector.load %arg1[%c2_177, %c0_178, %c1_179, %c0_180] : memref<11x2x11x8xf32, #tpu.memory_space<vmem>>, vector<8x1x8x4xf32>
    %91 = vector.shape_cast %90 : vector<8x1x8x4xf32> to vector<8x8x4xf32>
    %c0_181 = arith.constant 0 : index
    %c0_182 = arith.constant 0 : index
    %c120 = arith.constant 120 : index
    %92 = vector.load %arg7[%c0_181, %c0_182, %c120] : memref<8x8x196xf32, #tpu.memory_space<vmem>>, vector<8x8x4xf32>
    tpu.vector_store %arg7[%c0_181, %c0_182, %c120], %91 {strides = array<i32>} : memref<8x8x196xf32, #tpu.memory_space<vmem>>, vector<8x8x4xf32>,
    %c2_183 = arith.constant 2 : index
    %c0_184 = arith.constant 0 : index
    %c1_185 = arith.constant 1 : index
    %c4_186 = arith.constant 4 : index
    %93 = vector.load %arg1[%c2_183, %c0_184, %c1_185, %c4_186] : memref<11x2x11x8xf32, #tpu.memory_space<vmem>>, vector<8x1x8x4xf32>
    %94 = vector.shape_cast %93 : vector<8x1x8x4xf32> to vector<8x8x4xf32>
    %c0_187 = arith.constant 0 : index
    %c0_188 = arith.constant 0 : index
    %c124 = arith.constant 124 : index
    %95 = vector.load %arg7[%c0_187, %c0_188, %c124] : memref<8x8x196xf32, #tpu.memory_space<vmem>>, vector<8x8x4xf32>
    tpu.vector_store %arg7[%c0_187, %c0_188, %c124], %94 {strides = array<i32>} : memref<8x8x196xf32, #tpu.memory_space<vmem>>, vector<8x8x4xf32>,
    %c2_189 = arith.constant 2 : index
    %c0_190 = arith.constant 0 : index
    %c2_191 = arith.constant 2 : index
    %c0_192 = arith.constant 0 : index
    %96 = vector.load %arg1[%c2_189, %c0_190, %c2_191, %c0_192] : memref<11x2x11x8xf32, #tpu.memory_space<vmem>>, vector<8x1x8x4xf32>
    %97 = vector.shape_cast %96 : vector<8x1x8x4xf32> to vector<8x8x4xf32>
    %c0_193 = arith.constant 0 : index
    %c0_194 = arith.constant 0 : index
    %c128 = arith.constant 128 : index
    %98 = vector.load %arg7[%c0_193, %c0_194, %c128] : memref<8x8x196xf32, #tpu.memory_space<vmem>>, vector<8x8x4xf32>
    tpu.vector_store %arg7[%c0_193, %c0_194, %c128], %97 {strides = array<i32>} : memref<8x8x196xf32, #tpu.memory_space<vmem>>, vector<8x8x4xf32>,
    %c2_195 = arith.constant 2 : index
    %c0_196 = arith.constant 0 : index
    %c2_197 = arith.constant 2 : index
    %c4_198 = arith.constant 4 : index
    %99 = vector.load %arg1[%c2_195, %c0_196, %c2_197, %c4_198] : memref<11x2x11x8xf32, #tpu.memory_space<vmem>>, vector<8x1x8x4xf32>
    %100 = vector.shape_cast %99 : vector<8x1x8x4xf32> to vector<8x8x4xf32>
    %c0_199 = arith.constant 0 : index
    %c0_200 = arith.constant 0 : index
    %c132 = arith.constant 132 : index
    %101 = vector.load %arg7[%c0_199, %c0_200, %c132] : memref<8x8x196xf32, #tpu.memory_space<vmem>>, vector<8x8x4xf32>
    tpu.vector_store %arg7[%c0_199, %c0_200, %c132], %100 {strides = array<i32>} : memref<8x8x196xf32, #tpu.memory_space<vmem>>, vector<8x8x4xf32>,
    %c2_201 = arith.constant 2 : index
    %c0_202 = arith.constant 0 : index
    %c3_203 = arith.constant 3 : index
    %c0_204 = arith.constant 0 : index
    %102 = vector.load %arg1[%c2_201, %c0_202, %c3_203, %c0_204] : memref<11x2x11x8xf32, #tpu.memory_space<vmem>>, vector<8x1x8x4xf32>
    %103 = vector.shape_cast %102 : vector<8x1x8x4xf32> to vector<8x8x4xf32>
    %c0_205 = arith.constant 0 : index
    %c0_206 = arith.constant 0 : index
    %c136 = arith.constant 136 : index
    %104 = vector.load %arg7[%c0_205, %c0_206, %c136] : memref<8x8x196xf32, #tpu.memory_space<vmem>>, vector<8x8x4xf32>
    tpu.vector_store %arg7[%c0_205, %c0_206, %c136], %103 {strides = array<i32>} : memref<8x8x196xf32, #tpu.memory_space<vmem>>, vector<8x8x4xf32>,
    %c2_207 = arith.constant 2 : index
    %c1_208 = arith.constant 1 : index
    %c0_209 = arith.constant 0 : index
    %c0_210 = arith.constant 0 : index
    %105 = vector.load %arg1[%c2_207, %c1_208, %c0_209, %c0_210] : memref<11x2x11x8xf32, #tpu.memory_space<vmem>>, vector<8x1x8x4xf32>
    %106 = vector.shape_cast %105 : vector<8x1x8x4xf32> to vector<8x8x4xf32>
    %c0_211 = arith.constant 0 : index
    %c0_212 = arith.constant 0 : index
    %c140 = arith.constant 140 : index
    %107 = vector.load %arg7[%c0_211, %c0_212, %c140] : memref<8x8x196xf32, #tpu.memory_space<vmem>>, vector<8x8x4xf32>
    tpu.vector_store %arg7[%c0_211, %c0_212, %c140], %106 {strides = array<i32>} : memref<8x8x196xf32, #tpu.memory_space<vmem>>, vector<8x8x4xf32>,
    %c2_213 = arith.constant 2 : index
    %c1_214 = arith.constant 1 : index
    %c0_215 = arith.constant 0 : index
    %c4_216 = arith.constant 4 : index
    %108 = vector.load %arg1[%c2_213, %c1_214, %c0_215, %c4_216] : memref<11x2x11x8xf32, #tpu.memory_space<vmem>>, vector<8x1x8x4xf32>
    %109 = vector.shape_cast %108 : vector<8x1x8x4xf32> to vector<8x8x4xf32>
    %c0_217 = arith.constant 0 : index
    %c0_218 = arith.constant 0 : index
    %c144 = arith.constant 144 : index
    %110 = vector.load %arg7[%c0_217, %c0_218, %c144] : memref<8x8x196xf32, #tpu.memory_space<vmem>>, vector<8x8x4xf32>
    tpu.vector_store %arg7[%c0_217, %c0_218, %c144], %109 {strides = array<i32>} : memref<8x8x196xf32, #tpu.memory_space<vmem>>, vector<8x8x4xf32>,
    %c2_219 = arith.constant 2 : index
    %c1_220 = arith.constant 1 : index
    %c1_221 = arith.constant 1 : index
    %c0_222 = arith.constant 0 : index
    %111 = vector.load %arg1[%c2_219, %c1_220, %c1_221, %c0_222] : memref<11x2x11x8xf32, #tpu.memory_space<vmem>>, vector<8x1x8x4xf32>
    %112 = vector.shape_cast %111 : vector<8x1x8x4xf32> to vector<8x8x4xf32>
    %c0_223 = arith.constant 0 : index
    %c0_224 = arith.constant 0 : index
    %c148 = arith.constant 148 : index
    %113 = vector.load %arg7[%c0_223, %c0_224, %c148] : memref<8x8x196xf32, #tpu.memory_space<vmem>>, vector<8x8x4xf32>
    tpu.vector_store %arg7[%c0_223, %c0_224, %c148], %112 {strides = array<i32>} : memref<8x8x196xf32, #tpu.memory_space<vmem>>, vector<8x8x4xf32>,
    %c2_225 = arith.constant 2 : index
    %c1_226 = arith.constant 1 : index
    %c1_227 = arith.constant 1 : index
    %c4_228 = arith.constant 4 : index
    %114 = vector.load %arg1[%c2_225, %c1_226, %c1_227, %c4_228] : memref<11x2x11x8xf32, #tpu.memory_space<vmem>>, vector<8x1x8x4xf32>
    %115 = vector.shape_cast %114 : vector<8x1x8x4xf32> to vector<8x8x4xf32>
    %c0_229 = arith.constant 0 : index
    %c0_230 = arith.constant 0 : index
    %c152 = arith.constant 152 : index
    %116 = vector.load %arg7[%c0_229, %c0_230, %c152] : memref<8x8x196xf32, #tpu.memory_space<vmem>>, vector<8x8x4xf32>
    tpu.vector_store %arg7[%c0_229, %c0_230, %c152], %115 {strides = array<i32>} : memref<8x8x196xf32, #tpu.memory_space<vmem>>, vector<8x8x4xf32>,
    %c2_231 = arith.constant 2 : index
    %c1_232 = arith.constant 1 : index
    %c2_233 = arith.constant 2 : index
    %c0_234 = arith.constant 0 : index
    %117 = vector.load %arg1[%c2_231, %c1_232, %c2_233, %c0_234] : memref<11x2x11x8xf32, #tpu.memory_space<vmem>>, vector<8x1x8x4xf32>
    %118 = vector.shape_cast %117 : vector<8x1x8x4xf32> to vector<8x8x4xf32>
    %c0_235 = arith.constant 0 : index
    %c0_236 = arith.constant 0 : index
    %c156 = arith.constant 156 : index
    %119 = vector.load %arg7[%c0_235, %c0_236, %c156] : memref<8x8x196xf32, #tpu.memory_space<vmem>>, vector<8x8x4xf32>
    tpu.vector_store %arg7[%c0_235, %c0_236, %c156], %118 {strides = array<i32>} : memref<8x8x196xf32, #tpu.memory_space<vmem>>, vector<8x8x4xf32>,
    %c2_237 = arith.constant 2 : index
    %c1_238 = arith.constant 1 : index
    %c2_239 = arith.constant 2 : index
    %c4_240 = arith.constant 4 : index
    %120 = vector.load %arg1[%c2_237, %c1_238, %c2_239, %c4_240] : memref<11x2x11x8xf32, #tpu.memory_space<vmem>>, vector<8x1x8x4xf32>
    %121 = vector.shape_cast %120 : vector<8x1x8x4xf32> to vector<8x8x4xf32>
    %c0_241 = arith.constant 0 : index
    %c0_242 = arith.constant 0 : index
    %c160 = arith.constant 160 : index
    %122 = vector.load %arg7[%c0_241, %c0_242, %c160] : memref<8x8x196xf32, #tpu.memory_space<vmem>>, vector<8x8x4xf32>
    tpu.vector_store %arg7[%c0_241, %c0_242, %c160], %121 {strides = array<i32>} : memref<8x8x196xf32, #tpu.memory_space<vmem>>, vector<8x8x4xf32>,
    %c2_243 = arith.constant 2 : index
    %c1_244 = arith.constant 1 : index
    %c3_245 = arith.constant 3 : index
    %c0_246 = arith.constant 0 : index
    %123 = vector.load %arg1[%c2_243, %c1_244, %c3_245, %c0_246] : memref<11x2x11x8xf32, #tpu.memory_space<vmem>>, vector<8x1x8x4xf32>
    %124 = vector.shape_cast %123 : vector<8x1x8x4xf32> to vector<8x8x4xf32>
    %c0_247 = arith.constant 0 : index
    %c0_248 = arith.constant 0 : index
    %c164 = arith.constant 164 : index
    %125 = vector.load %arg7[%c0_247, %c0_248, %c164] : memref<8x8x196xf32, #tpu.memory_space<vmem>>, vector<8x8x4xf32>
    tpu.vector_store %arg7[%c0_247, %c0_248, %c164], %124 {strides = array<i32>} : memref<8x8x196xf32, #tpu.memory_space<vmem>>, vector<8x8x4xf32>,
    %c3_249 = arith.constant 3 : index
    %c0_250 = arith.constant 0 : index
    %c0_251 = arith.constant 0 : index
    %c0_252 = arith.constant 0 : index
    %126 = vector.load %arg1[%c3_249, %c0_250, %c0_251, %c0_252] : memref<11x2x11x8xf32, #tpu.memory_space<vmem>>, vector<8x1x8x4xf32>
    %127 = vector.shape_cast %126 : vector<8x1x8x4xf32> to vector<8x8x4xf32>
    %c0_253 = arith.constant 0 : index
    %c0_254 = arith.constant 0 : index
    %c168 = arith.constant 168 : index
    %128 = vector.load %arg7[%c0_253, %c0_254, %c168] : memref<8x8x196xf32, #tpu.memory_space<vmem>>, vector<8x8x4xf32>
    tpu.vector_store %arg7[%c0_253, %c0_254, %c168], %127 {strides = array<i32>} : memref<8x8x196xf32, #tpu.memory_space<vmem>>, vector<8x8x4xf32>,
    %c3_255 = arith.constant 3 : index
    %c0_256 = arith.constant 0 : index
    %c0_257 = arith.constant 0 : index
    %c4_258 = arith.constant 4 : index
    %129 = vector.load %arg1[%c3_255, %c0_256, %c0_257, %c4_258] : memref<11x2x11x8xf32, #tpu.memory_space<vmem>>, vector<8x1x8x4xf32>
    %130 = vector.shape_cast %129 : vector<8x1x8x4xf32> to vector<8x8x4xf32>
    %c0_259 = arith.constant 0 : index
    %c0_260 = arith.constant 0 : index
    %c172 = arith.constant 172 : index
    %131 = vector.load %arg7[%c0_259, %c0_260, %c172] : memref<8x8x196xf32, #tpu.memory_space<vmem>>, vector<8x8x4xf32>
    tpu.vector_store %arg7[%c0_259, %c0_260, %c172], %130 {strides = array<i32>} : memref<8x8x196xf32, #tpu.memory_space<vmem>>, vector<8x8x4xf32>,
    %c3_261 = arith.constant 3 : index
    %c0_262 = arith.constant 0 : index
    %c1_263 = arith.constant 1 : index
    %c0_264 = arith.constant 0 : index
    %132 = vector.load %arg1[%c3_261, %c0_262, %c1_263, %c0_264] : memref<11x2x11x8xf32, #tpu.memory_space<vmem>>, vector<8x1x8x4xf32>
    %133 = vector.shape_cast %132 : vector<8x1x8x4xf32> to vector<8x8x4xf32>
    %c0_265 = arith.constant 0 : index
    %c0_266 = arith.constant 0 : index
    %c176 = arith.constant 176 : index
    %134 = vector.load %arg7[%c0_265, %c0_266, %c176] : memref<8x8x196xf32, #tpu.memory_space<vmem>>, vector<8x8x4xf32>
    tpu.vector_store %arg7[%c0_265, %c0_266, %c176], %133 {strides = array<i32>} : memref<8x8x196xf32, #tpu.memory_space<vmem>>, vector<8x8x4xf32>,
    %c3_267 = arith.constant 3 : index
    %c0_268 = arith.constant 0 : index
    %c1_269 = arith.constant 1 : index
    %c4_270 = arith.constant 4 : index
    %135 = vector.load %arg1[%c3_267, %c0_268, %c1_269, %c4_270] : memref<11x2x11x8xf32, #tpu.memory_space<vmem>>, vector<8x1x8x4xf32>
    %136 = vector.shape_cast %135 : vector<8x1x8x4xf32> to vector<8x8x4xf32>
    %c0_271 = arith.constant 0 : index
    %c0_272 = arith.constant 0 : index
    %c180 = arith.constant 180 : index
    %137 = vector.load %arg7[%c0_271, %c0_272, %c180] : memref<8x8x196xf32, #tpu.memory_space<vmem>>, vector<8x8x4xf32>
    tpu.vector_store %arg7[%c0_271, %c0_272, %c180], %136 {strides = array<i32>} : memref<8x8x196xf32, #tpu.memory_space<vmem>>, vector<8x8x4xf32>,
    %c3_273 = arith.constant 3 : index
    %c0_274 = arith.constant 0 : index
    %c2_275 = arith.constant 2 : index
    %c0_276 = arith.constant 0 : index
    %138 = vector.load %arg1[%c3_273, %c0_274, %c2_275, %c0_276] : memref<11x2x11x8xf32, #tpu.memory_space<vmem>>, vector<8x1x8x4xf32>
    %139 = vector.shape_cast %138 : vector<8x1x8x4xf32> to vector<8x8x4xf32>
    %c0_277 = arith.constant 0 : index
    %c0_278 = arith.constant 0 : index
    %c184 = arith.constant 184 : index
    %140 = vector.load %arg7[%c0_277, %c0_278, %c184] : memref<8x8x196xf32, #tpu.memory_space<vmem>>, vector<8x8x4xf32>
    tpu.vector_store %arg7[%c0_277, %c0_278, %c184], %139 {strides = array<i32>} : memref<8x8x196xf32, #tpu.memory_space<vmem>>, vector<8x8x4xf32>,
    %c3_279 = arith.constant 3 : index
    %c0_280 = arith.constant 0 : index
    %c2_281 = arith.constant 2 : index
    %c4_282 = arith.constant 4 : index
    %141 = vector.load %arg1[%c3_279, %c0_280, %c2_281, %c4_282] : memref<11x2x11x8xf32, #tpu.memory_space<vmem>>, vector<8x1x8x4xf32>
    %142 = vector.shape_cast %141 : vector<8x1x8x4xf32> to vector<8x8x4xf32>
    %c0_283 = arith.constant 0 : index
    %c0_284 = arith.constant 0 : index
    %c188 = arith.constant 188 : index
    %143 = vector.load %arg7[%c0_283, %c0_284, %c188] : memref<8x8x196xf32, #tpu.memory_space<vmem>>, vector<8x8x4xf32>
    tpu.vector_store %arg7[%c0_283, %c0_284, %c188], %142 {strides = array<i32>} : memref<8x8x196xf32, #tpu.memory_space<vmem>>, vector<8x8x4xf32>,
    %c3_285 = arith.constant 3 : index
    %c0_286 = arith.constant 0 : index
    %c3_287 = arith.constant 3 : index
    %c0_288 = arith.constant 0 : index
    %144 = vector.load %arg1[%c3_285, %c0_286, %c3_287, %c0_288] : memref<11x2x11x8xf32, #tpu.memory_space<vmem>>, vector<8x1x8x4xf32>
    %145 = vector.shape_cast %144 : vector<8x1x8x4xf32> to vector<8x8x4xf32>
    %c0_289 = arith.constant 0 : index
    %c0_290 = arith.constant 0 : index
    %c192 = arith.constant 192 : index
    %146 = vector.load %arg7[%c0_289, %c0_290, %c192] : memref<8x8x196xf32, #tpu.memory_space<vmem>>, vector<8x8x4xf32>
    tpu.vector_store %arg7[%c0_289, %c0_290, %c192], %145 {strides = array<i32>} : memref<8x8x196xf32, #tpu.memory_space<vmem>>, vector<8x8x4xf32>,
    %c0_291 = arith.constant 0 : index
    %c0_292 = arith.constant 0 : index
    %147 = vector.load %arg2[%c0_291, %c0_292] : memref<196x8xbf16, #tpu.memory_space<vmem>>, vector<196x8xbf16>
    %c0_293 = arith.constant 0 : index
    %c0_294 = arith.constant 0 : index
    %148 = vector.load %arg3[%c0_293, %c0_294] : memref<1x8xf32, #tpu.memory_space<vmem>>, vector<1x8xf32>
    %cst = arith.constant 0.000000e+00 : f32
    %149 = vector.broadcast %cst : f32 to vector<1x8xf32>
    %cst_295 = arith.constant 0.000000e+00 : f32
    %150 = vector.broadcast %cst_295 : f32 to vector<1x8xf32>
    %c0_296 = arith.constant 0 : index
    %c0_297 = arith.constant 0 : index
    %c0_298 = arith.constant 0 : index
    %151 = vector.load %arg7[%c0_296, %c0_297, %c0_298] : memref<8x8x196xf32, #tpu.memory_space<vmem>>, vector<1x8x196xf32>
    %152 = vector.shape_cast %151 : vector<1x8x196xf32> to vector<8x196xf32>
    %153 = arith.truncf %152 : vector<8x196xf32> to vector<8x196xbf16>
    %cst_299 = arith.constant dense<0.000000e+00> : vector<8x8xf32>
    %154 = tpu.matmul %153, %147, %cst_299 {dimension_numbers = #tpu.dot_dimension_numbers<[1], [0], [0], [1], [0, 0, 1, 1], [], []>} : vector<8x196xbf16>, vector<196x8xbf16>, vector<8x8xf32> -> vector<8x8xf32>
    %155 = vector.broadcast %148 : vector<1x8xf32> to vector<8x8xf32>
    %156 = arith.addf %154, %155 : vector<8x8xf32>
    %cst_300 = arith.constant dense<0.000000e+00> : vector<8xf32>
    %157 = vector.multi_reduction <add>, %156, %cst_300 [0] : vector<8x8xf32> to vector<8xf32>
    %158 = vector.shape_cast %157 : vector<8xf32> to vector<1x8xf32>
    %159 = arith.addf %149, %158 : vector<1x8xf32>
    %160 = arith.mulf %156, %156 : vector<8x8xf32>
    %cst_301 = arith.constant dense<0.000000e+00> : vector<8xf32>
    %161 = vector.multi_reduction <add>, %160, %cst_301 [0] : vector<8x8xf32> to vector<8xf32>
    %162 = vector.shape_cast %161 : vector<8xf32> to vector<1x8xf32>
    %163 = arith.addf %150, %162 : vector<1x8xf32>
    %cst_302 = arith.constant 0.000000e+00 : f32
    %164 = vector.broadcast %cst_302 : f32 to vector<8x8xf32>
    %165 = arith.maximumf %156, %164 : vector<8x8xf32>
    %c0_303 = arith.constant 0 : index
    %c0_304 = arith.constant 0 : index
    %c0_305 = arith.constant 0 : index
    %166 = vector.load %arg4[%c0_303, %c0_304, %c0_305] : memref<1x64x8xf32, #tpu.memory_space<vmem>>, vector<1x8x8xf32>
    %167 = vector.shape_cast %166 : vector<1x8x8xf32> to vector<8x8xf32>
    %168 = vector.shape_cast %165 : vector<8x8xf32> to vector<1x8x8xf32>
    tpu.vector_store %arg4[%c0_303, %c0_304, %c0_305], %168 {strides = array<i32>} : memref<1x64x8xf32, #tpu.memory_space<vmem>>, vector<1x8x8xf32>,
    %c1_306 = arith.constant 1 : index
    %c0_307 = arith.constant 0 : index
    %c0_308 = arith.constant 0 : index
    %169 = vector.load %arg7[%c1_306, %c0_307, %c0_308] : memref<8x8x196xf32, #tpu.memory_space<vmem>>, vector<1x8x196xf32>
    %170 = vector.shape_cast %169 : vector<1x8x196xf32> to vector<8x196xf32>
    %171 = arith.truncf %170 : vector<8x196xf32> to vector<8x196xbf16>
    %cst_309 = arith.constant dense<0.000000e+00> : vector<8x8xf32>
    %172 = tpu.matmul %171, %147, %cst_309 {dimension_numbers = #tpu.dot_dimension_numbers<[1], [0], [0], [1], [0, 0, 1, 1], [], []>} : vector<8x196xbf16>, vector<196x8xbf16>, vector<8x8xf32> -> vector<8x8xf32>
    %173 = vector.broadcast %148 : vector<1x8xf32> to vector<8x8xf32>
    %174 = arith.addf %172, %173 : vector<8x8xf32>
    %cst_310 = arith.constant dense<0.000000e+00> : vector<8xf32>
    %175 = vector.multi_reduction <add>, %174, %cst_310 [0] : vector<8x8xf32> to vector<8xf32>
    %176 = vector.shape_cast %175 : vector<8xf32> to vector<1x8xf32>
    %177 = arith.addf %159, %176 : vector<1x8xf32>
    %178 = arith.mulf %174, %174 : vector<8x8xf32>
    %cst_311 = arith.constant dense<0.000000e+00> : vector<8xf32>
    %179 = vector.multi_reduction <add>, %178, %cst_311 [0] : vector<8x8xf32> to vector<8xf32>
    %180 = vector.shape_cast %179 : vector<8xf32> to vector<1x8xf32>
    %181 = arith.addf %163, %180 : vector<1x8xf32>
    %cst_312 = arith.constant 0.000000e+00 : f32
    %182 = vector.broadcast %cst_312 : f32 to vector<8x8xf32>
    %183 = arith.maximumf %174, %182 : vector<8x8xf32>
    %c0_313 = arith.constant 0 : index
    %c8_314 = arith.constant 8 : index
    %c0_315 = arith.constant 0 : index
    %184 = vector.load %arg4[%c0_313, %c8_314, %c0_315] : memref<1x64x8xf32, #tpu.memory_space<vmem>>, vector<1x8x8xf32>
    %185 = vector.shape_cast %184 : vector<1x8x8xf32> to vector<8x8xf32>
    %186 = vector.shape_cast %183 : vector<8x8xf32> to vector<1x8x8xf32>
    tpu.vector_store %arg4[%c0_313, %c8_314, %c0_315], %186 {strides = array<i32>} : memref<1x64x8xf32, #tpu.memory_space<vmem>>, vector<1x8x8xf32>,
    %c2_316 = arith.constant 2 : index
    %c0_317 = arith.constant 0 : index
    %c0_318 = arith.constant 0 : index
    %187 = vector.load %arg7[%c2_316, %c0_317, %c0_318] : memref<8x8x196xf32, #tpu.memory_space<vmem>>, vector<1x8x196xf32>
    %188 = vector.shape_cast %187 : vector<1x8x196xf32> to vector<8x196xf32>
    %189 = arith.truncf %188 : vector<8x196xf32> to vector<8x196xbf16>
    %cst_319 = arith.constant dense<0.000000e+00> : vector<8x8xf32>
    %190 = tpu.matmul %189, %147, %cst_319 {dimension_numbers = #tpu.dot_dimension_numbers<[1], [0], [0], [1], [0, 0, 1, 1], [], []>} : vector<8x196xbf16>, vector<196x8xbf16>, vector<8x8xf32> -> vector<8x8xf32>
    %191 = vector.broadcast %148 : vector<1x8xf32> to vector<8x8xf32>
    %192 = arith.addf %190, %191 : vector<8x8xf32>
    %cst_320 = arith.constant dense<0.000000e+00> : vector<8xf32>
    %193 = vector.multi_reduction <add>, %192, %cst_320 [0] : vector<8x8xf32> to vector<8xf32>
    %194 = vector.shape_cast %193 : vector<8xf32> to vector<1x8xf32>
    %195 = arith.addf %177, %194 : vector<1x8xf32>
    %196 = arith.mulf %192, %192 : vector<8x8xf32>
    %cst_321 = arith.constant dense<0.000000e+00> : vector<8xf32>
    %197 = vector.multi_reduction <add>, %196, %cst_321 [0] : vector<8x8xf32> to vector<8xf32>
    %198 = vector.shape_cast %197 : vector<8xf32> to vector<1x8xf32>
    %199 = arith.addf %181, %198 : vector<1x8xf32>
    %cst_322 = arith.constant 0.000000e+00 : f32
    %200 = vector.broadcast %cst_322 : f32 to vector<8x8xf32>
    %201 = arith.maximumf %192, %200 : vector<8x8xf32>
    %c0_323 = arith.constant 0 : index
    %c16_324 = arith.constant 16 : index
    %c0_325 = arith.constant 0 : index
    %202 = vector.load %arg4[%c0_323, %c16_324, %c0_325] : memref<1x64x8xf32, #tpu.memory_space<vmem>>, vector<1x8x8xf32>
    %203 = vector.shape_cast %202 : vector<1x8x8xf32> to vector<8x8xf32>
    %204 = vector.shape_cast %201 : vector<8x8xf32> to vector<1x8x8xf32>
    tpu.vector_store %arg4[%c0_323, %c16_324, %c0_325], %204 {strides = array<i32>} : memref<1x64x8xf32, #tpu.memory_space<vmem>>, vector<1x8x8xf32>,
    %c3_326 = arith.constant 3 : index
    %c0_327 = arith.constant 0 : index
    %c0_328 = arith.constant 0 : index
    %205 = vector.load %arg7[%c3_326, %c0_327, %c0_328] : memref<8x8x196xf32, #tpu.memory_space<vmem>>, vector<1x8x196xf32>
    %206 = vector.shape_cast %205 : vector<1x8x196xf32> to vector<8x196xf32>
    %207 = arith.truncf %206 : vector<8x196xf32> to vector<8x196xbf16>
    %cst_329 = arith.constant dense<0.000000e+00> : vector<8x8xf32>
    %208 = tpu.matmul %207, %147, %cst_329 {dimension_numbers = #tpu.dot_dimension_numbers<[1], [0], [0], [1], [0, 0, 1, 1], [], []>} : vector<8x196xbf16>, vector<196x8xbf16>, vector<8x8xf32> -> vector<8x8xf32>
    %209 = vector.broadcast %148 : vector<1x8xf32> to vector<8x8xf32>
    %210 = arith.addf %208, %209 : vector<8x8xf32>
    %cst_330 = arith.constant dense<0.000000e+00> : vector<8xf32>
    %211 = vector.multi_reduction <add>, %210, %cst_330 [0] : vector<8x8xf32> to vector<8xf32>
    %212 = vector.shape_cast %211 : vector<8xf32> to vector<1x8xf32>
    %213 = arith.addf %195, %212 : vector<1x8xf32>
    %214 = arith.mulf %210, %210 : vector<8x8xf32>
    %cst_331 = arith.constant dense<0.000000e+00> : vector<8xf32>
    %215 = vector.multi_reduction <add>, %214, %cst_331 [0] : vector<8x8xf32> to vector<8xf32>
    %216 = vector.shape_cast %215 : vector<8xf32> to vector<1x8xf32>
    %217 = arith.addf %199, %216 : vector<1x8xf32>
    %cst_332 = arith.constant 0.000000e+00 : f32
    %218 = vector.broadcast %cst_332 : f32 to vector<8x8xf32>
    %219 = arith.maximumf %210, %218 : vector<8x8xf32>
    %c0_333 = arith.constant 0 : index
    %c24_334 = arith.constant 24 : index
    %c0_335 = arith.constant 0 : index
    %220 = vector.load %arg4[%c0_333, %c24_334, %c0_335] : memref<1x64x8xf32, #tpu.memory_space<vmem>>, vector<1x8x8xf32>
    %221 = vector.shape_cast %220 : vector<1x8x8xf32> to vector<8x8xf32>
    %222 = vector.shape_cast %219 : vector<8x8xf32> to vector<1x8x8xf32>
    tpu.vector_store %arg4[%c0_333, %c24_334, %c0_335], %222 {strides = array<i32>} : memref<1x64x8xf32, #tpu.memory_space<vmem>>, vector<1x8x8xf32>,
    %c4_336 = arith.constant 4 : index
    %c0_337 = arith.constant 0 : index
    %c0_338 = arith.constant 0 : index
    %223 = vector.load %arg7[%c4_336, %c0_337, %c0_338] : memref<8x8x196xf32, #tpu.memory_space<vmem>>, vector<1x8x196xf32>
    %224 = vector.shape_cast %223 : vector<1x8x196xf32> to vector<8x196xf32>
    %225 = arith.truncf %224 : vector<8x196xf32> to vector<8x196xbf16>
    %cst_339 = arith.constant dense<0.000000e+00> : vector<8x8xf32>
    %226 = tpu.matmul %225, %147, %cst_339 {dimension_numbers = #tpu.dot_dimension_numbers<[1], [0], [0], [1], [0, 0, 1, 1], [], []>} : vector<8x196xbf16>, vector<196x8xbf16>, vector<8x8xf32> -> vector<8x8xf32>
    %227 = vector.broadcast %148 : vector<1x8xf32> to vector<8x8xf32>
    %228 = arith.addf %226, %227 : vector<8x8xf32>
    %cst_340 = arith.constant dense<0.000000e+00> : vector<8xf32>
    %229 = vector.multi_reduction <add>, %228, %cst_340 [0] : vector<8x8xf32> to vector<8xf32>
    %230 = vector.shape_cast %229 : vector<8xf32> to vector<1x8xf32>
    %231 = arith.addf %213, %230 : vector<1x8xf32>
    %232 = arith.mulf %228, %228 : vector<8x8xf32>
    %cst_341 = arith.constant dense<0.000000e+00> : vector<8xf32>
    %233 = vector.multi_reduction <add>, %232, %cst_341 [0] : vector<8x8xf32> to vector<8xf32>
    %234 = vector.shape_cast %233 : vector<8xf32> to vector<1x8xf32>
    %235 = arith.addf %217, %234 : vector<1x8xf32>
    %cst_342 = arith.constant 0.000000e+00 : f32
    %236 = vector.broadcast %cst_342 : f32 to vector<8x8xf32>
    %237 = arith.maximumf %228, %236 : vector<8x8xf32>
    %c0_343 = arith.constant 0 : index
    %c32_344 = arith.constant 32 : index
    %c0_345 = arith.constant 0 : index
    %238 = vector.load %arg4[%c0_343, %c32_344, %c0_345] : memref<1x64x8xf32, #tpu.memory_space<vmem>>, vector<1x8x8xf32>
    %239 = vector.shape_cast %238 : vector<1x8x8xf32> to vector<8x8xf32>
    %240 = vector.shape_cast %237 : vector<8x8xf32> to vector<1x8x8xf32>
    tpu.vector_store %arg4[%c0_343, %c32_344, %c0_345], %240 {strides = array<i32>} : memref<1x64x8xf32, #tpu.memory_space<vmem>>, vector<1x8x8xf32>,
    %c5 = arith.constant 5 : index
    %c0_346 = arith.constant 0 : index
    %c0_347 = arith.constant 0 : index
    %241 = vector.load %arg7[%c5, %c0_346, %c0_347] : memref<8x8x196xf32, #tpu.memory_space<vmem>>, vector<1x8x196xf32>
    %242 = vector.shape_cast %241 : vector<1x8x196xf32> to vector<8x196xf32>
    %243 = arith.truncf %242 : vector<8x196xf32> to vector<8x196xbf16>
    %cst_348 = arith.constant dense<0.000000e+00> : vector<8x8xf32>
    %244 = tpu.matmul %243, %147, %cst_348 {dimension_numbers = #tpu.dot_dimension_numbers<[1], [0], [0], [1], [0, 0, 1, 1], [], []>} : vector<8x196xbf16>, vector<196x8xbf16>, vector<8x8xf32> -> vector<8x8xf32>
    %245 = vector.broadcast %148 : vector<1x8xf32> to vector<8x8xf32>
    %246 = arith.addf %244, %245 : vector<8x8xf32>
    %cst_349 = arith.constant dense<0.000000e+00> : vector<8xf32>
    %247 = vector.multi_reduction <add>, %246, %cst_349 [0] : vector<8x8xf32> to vector<8xf32>
    %248 = vector.shape_cast %247 : vector<8xf32> to vector<1x8xf32>
    %249 = arith.addf %231, %248 : vector<1x8xf32>
    %250 = arith.mulf %246, %246 : vector<8x8xf32>
    %cst_350 = arith.constant dense<0.000000e+00> : vector<8xf32>
    %251 = vector.multi_reduction <add>, %250, %cst_350 [0] : vector<8x8xf32> to vector<8xf32>
    %252 = vector.shape_cast %251 : vector<8xf32> to vector<1x8xf32>
    %253 = arith.addf %235, %252 : vector<1x8xf32>
    %cst_351 = arith.constant 0.000000e+00 : f32
    %254 = vector.broadcast %cst_351 : f32 to vector<8x8xf32>
    %255 = arith.maximumf %246, %254 : vector<8x8xf32>
    %c0_352 = arith.constant 0 : index
    %c40_353 = arith.constant 40 : index
    %c0_354 = arith.constant 0 : index
    %256 = vector.load %arg4[%c0_352, %c40_353, %c0_354] : memref<1x64x8xf32, #tpu.memory_space<vmem>>, vector<1x8x8xf32>
    %257 = vector.shape_cast %256 : vector<1x8x8xf32> to vector<8x8xf32>
    %258 = vector.shape_cast %255 : vector<8x8xf32> to vector<1x8x8xf32>
    tpu.vector_store %arg4[%c0_352, %c40_353, %c0_354], %258 {strides = array<i32>} : memref<1x64x8xf32, #tpu.memory_space<vmem>>, vector<1x8x8xf32>,
    %c6 = arith.constant 6 : index
    %c0_355 = arith.constant 0 : index
    %c0_356 = arith.constant 0 : index
    %259 = vector.load %arg7[%c6, %c0_355, %c0_356] : memref<8x8x196xf32, #tpu.memory_space<vmem>>, vector<1x8x196xf32>
    %260 = vector.shape_cast %259 : vector<1x8x196xf32> to vector<8x196xf32>
    %261 = arith.truncf %260 : vector<8x196xf32> to vector<8x196xbf16>
    %cst_357 = arith.constant dense<0.000000e+00> : vector<8x8xf32>
    %262 = tpu.matmul %261, %147, %cst_357 {dimension_numbers = #tpu.dot_dimension_numbers<[1], [0], [0], [1], [0, 0, 1, 1], [], []>} : vector<8x196xbf16>, vector<196x8xbf16>, vector<8x8xf32> -> vector<8x8xf32>
    %263 = vector.broadcast %148 : vector<1x8xf32> to vector<8x8xf32>
    %264 = arith.addf %262, %263 : vector<8x8xf32>
    %cst_358 = arith.constant dense<0.000000e+00> : vector<8xf32>
    %265 = vector.multi_reduction <add>, %264, %cst_358 [0] : vector<8x8xf32> to vector<8xf32>
    %266 = vector.shape_cast %265 : vector<8xf32> to vector<1x8xf32>
    %267 = arith.addf %249, %266 : vector<1x8xf32>
    %268 = arith.mulf %264, %264 : vector<8x8xf32>
    %cst_359 = arith.constant dense<0.000000e+00> : vector<8xf32>
    %269 = vector.multi_reduction <add>, %268, %cst_359 [0] : vector<8x8xf32> to vector<8xf32>
    %270 = vector.shape_cast %269 : vector<8xf32> to vector<1x8xf32>
    %271 = arith.addf %253, %270 : vector<1x8xf32>
    %cst_360 = arith.constant 0.000000e+00 : f32
    %272 = vector.broadcast %cst_360 : f32 to vector<8x8xf32>
    %273 = arith.maximumf %264, %272 : vector<8x8xf32>
    %c0_361 = arith.constant 0 : index
    %c48_362 = arith.constant 48 : index
    %c0_363 = arith.constant 0 : index
    %274 = vector.load %arg4[%c0_361, %c48_362, %c0_363] : memref<1x64x8xf32, #tpu.memory_space<vmem>>, vector<1x8x8xf32>
    %275 = vector.shape_cast %274 : vector<1x8x8xf32> to vector<8x8xf32>
    %276 = vector.shape_cast %273 : vector<8x8xf32> to vector<1x8x8xf32>
    tpu.vector_store %arg4[%c0_361, %c48_362, %c0_363], %276 {strides = array<i32>} : memref<1x64x8xf32, #tpu.memory_space<vmem>>, vector<1x8x8xf32>,
    %c7 = arith.constant 7 : index
    %c0_364 = arith.constant 0 : index
    %c0_365 = arith.constant 0 : index
    %277 = vector.load %arg7[%c7, %c0_364, %c0_365] : memref<8x8x196xf32, #tpu.memory_space<vmem>>, vector<1x8x196xf32>
    %278 = vector.shape_cast %277 : vector<1x8x196xf32> to vector<8x196xf32>
    %279 = arith.truncf %278 : vector<8x196xf32> to vector<8x196xbf16>
    %cst_366 = arith.constant dense<0.000000e+00> : vector<8x8xf32>
    %280 = tpu.matmul %279, %147, %cst_366 {dimension_numbers = #tpu.dot_dimension_numbers<[1], [0], [0], [1], [0, 0, 1, 1], [], []>} : vector<8x196xbf16>, vector<196x8xbf16>, vector<8x8xf32> -> vector<8x8xf32>
    %281 = vector.broadcast %148 : vector<1x8xf32> to vector<8x8xf32>
    %282 = arith.addf %280, %281 : vector<8x8xf32>
    %cst_367 = arith.constant dense<0.000000e+00> : vector<8xf32>
    %283 = vector.multi_reduction <add>, %282, %cst_367 [0] : vector<8x8xf32> to vector<8xf32>
    %284 = vector.shape_cast %283 : vector<8xf32> to vector<1x8xf32>
    %285 = arith.addf %267, %284 : vector<1x8xf32>
    %286 = arith.mulf %282, %282 : vector<8x8xf32>
    %cst_368 = arith.constant dense<0.000000e+00> : vector<8xf32>
    %287 = vector.multi_reduction <add>, %286, %cst_368 [0] : vector<8x8xf32> to vector<8xf32>
    %288 = vector.shape_cast %287 : vector<8xf32> to vector<1x8xf32>
    %289 = arith.addf %271, %288 : vector<1x8xf32>
    %cst_369 = arith.constant 0.000000e+00 : f32
    %290 = vector.broadcast %cst_369 : f32 to vector<8x8xf32>
    %291 = arith.maximumf %282, %290 : vector<8x8xf32>
    %c0_370 = arith.constant 0 : index
    %c56_371 = arith.constant 56 : index
    %c0_372 = arith.constant 0 : index
    %292 = vector.load %arg4[%c0_370, %c56_371, %c0_372] : memref<1x64x8xf32, #tpu.memory_space<vmem>>, vector<1x8x8xf32>
    %293 = vector.shape_cast %292 : vector<1x8x8xf32> to vector<8x8xf32>
    %294 = vector.shape_cast %291 : vector<8x8xf32> to vector<1x8x8xf32>
    tpu.vector_store %arg4[%c0_370, %c56_371, %c0_372], %294 {strides = array<i32>} : memref<1x64x8xf32, #tpu.memory_space<vmem>>, vector<1x8x8xf32>,
    %c0_373 = arith.constant 0 : index
    %c0_374 = arith.constant 0 : index
    %c0_375 = arith.constant 0 : index
    %295 = vector.load %arg5[%c0_373, %c0_374, %c0_375] : memref<1x1x8xf32, #tpu.memory_space<vmem>>, vector<1x1x8xf32>
    %296 = vector.shape_cast %295 : vector<1x1x8xf32> to vector<1x8xf32>
    %297 = vector.shape_cast %285 : vector<1x8xf32> to vector<1x1x8xf32>
    tpu.vector_store %arg5[%c0_373, %c0_374, %c0_375], %297 {strides = array<i32>} : memref<1x1x8xf32, #tpu.memory_space<vmem>>, vector<1x1x8xf32>,
    %c0_376 = arith.constant 0 : index
    %c0_377 = arith.constant 0 : index
    %c0_378 = arith.constant 0 : index
    %298 = vector.load %arg6[%c0_376, %c0_377, %c0_378] : memref<1x1x8xf32, #tpu.memory_space<vmem>>, vector<1x1x8xf32>
    %299 = vector.shape_cast %298 : vector<1x1x8xf32> to vector<1x8xf32>
    %300 = vector.shape_cast %289 : vector<1x8xf32> to vector<1x1x8xf32>
    tpu.vector_store %arg6[%c0_376, %c0_377, %c0_378], %300 {strides = array<i32>} : memref<1x1x8xf32, #tpu.memory_space<vmem>>, vector<1x1x8xf32>,
    return
  }
  func.func @transform_0(%arg0: i32) -> (i32, i32, i32, i32) {
    %c0_i32 = arith.constant 0 : i32
    %c0_i32_0 = arith.constant 0 : i32
    %c0_i32_1 = arith.constant 0 : i32
    %c0_i32_2 = arith.constant 0 : i32
    return %arg0, %c0_i32, %c0_i32_0, %c0_i32_1 : i32, i32, i32, i32
  }
  func.func @transform_1(%arg0: i32) -> (i32, i32) {
    %c0_i32 = arith.constant 0 : i32
    %c0_i32_0 = arith.constant 0 : i32
    %c0_i32_1 = arith.constant 0 : i32
    return %c0_i32, %c0_i32_0 : i32, i32
  }
  func.func @transform_2(%arg0: i32) -> (i32, i32) {
    %c0_i32 = arith.constant 0 : i32
    %c0_i32_0 = arith.constant 0 : i32
    %c0_i32_1 = arith.constant 0 : i32
    return %c0_i32, %c0_i32_0 : i32, i32
  }
  func.func @transform_3(%arg0: i32) -> (i32, i32, i32) {
    %c0_i32 = arith.constant 0 : i32
    %c0_i32_0 = arith.constant 0 : i32
    %c0_i32_1 = arith.constant 0 : i32
    return %arg0, %c0_i32, %c0_i32_0 : i32, i32, i32
  }
  func.func @transform_4(%arg0: i32) -> (i32, i32, i32) {
    %c0_i32 = arith.constant 0 : i32
    %c0_i32_0 = arith.constant 0 : i32
    %c0_i32_1 = arith.constant 0 : i32
    return %arg0, %c0_i32, %c0_i32_0 : i32, i32, i32
  }
  func.func @transform_5(%arg0: i32) -> (i32, i32, i32) {
    %c0_i32 = arith.constant 0 : i32
    %c0_i32_0 = arith.constant 0 : i32
    %c0_i32_1 = arith.constant 0 : i32
    return %arg0, %c0_i32, %c0_i32_0 : i32, i32, i32
  }
}

module attributes {stable_mosaic.version = 11 : i64} {
  func.func @_conv_kernel(%arg0: i32, %arg1: memref<10x1x10x8xf32, #tpu.memory_space<vmem>>, %arg2: memref<72x8xbf16, #tpu.memory_space<vmem>>, %arg3: memref<1x8xf32, #tpu.memory_space<vmem>>, %arg4: memref<1x64x8xf32, #tpu.memory_space<vmem>>, %arg5: memref<1x1x8xf32, #tpu.memory_space<vmem>>, %arg6: memref<1x1x8xf32, #tpu.memory_space<vmem>>, %arg7: memref<8x8x72xf32, #tpu.memory_space<vmem>>) attributes {dimension_semantics = [#tpu.dimension_semantics<parallel>], iteration_bounds = array<i64: 2>, scalar_prefetch = 0 : i64, scratch_operands = 1 : i64, tpu.core_type = #tpu.core_type<tc>, window_params = [{transform_indices = @transform_0, window_bounds = array<i64: 10, 1, 10, 8>}, {pipeline_mode = #tpu.pipeline_mode<synchronous>, transform_indices = @transform_1, window_bounds = array<i64: 72, 8>}, {pipeline_mode = #tpu.pipeline_mode<synchronous>, transform_indices = @transform_2, window_bounds = array<i64: 1, 8>}, {transform_indices = @transform_3, window_bounds = array<i64: 1, 64, 8>}, {transform_indices = @transform_4, window_bounds = array<i64: 1, 1, 8>}, {transform_indices = @transform_5, window_bounds = array<i64: 1, 1, 8>}]} {
    %c0 = arith.constant 0 : index
    %c0_0 = arith.constant 0 : index
    %c0_1 = arith.constant 0 : index
    %c0_2 = arith.constant 0 : index
    %0 = vector.load %arg1[%c0, %c0_0, %c0_1, %c0_2] : memref<10x1x10x8xf32, #tpu.memory_space<vmem>>, vector<8x1x8x8xf32>
    %1 = vector.shape_cast %0 : vector<8x1x8x8xf32> to vector<8x8x8xf32>
    %c0_3 = arith.constant 0 : index
    %c0_4 = arith.constant 0 : index
    %c0_5 = arith.constant 0 : index
    %2 = vector.load %arg7[%c0_3, %c0_4, %c0_5] : memref<8x8x72xf32, #tpu.memory_space<vmem>>, vector<8x8x8xf32>
    tpu.vector_store %arg7[%c0_3, %c0_4, %c0_5], %1 {strides = array<i32>} : memref<8x8x72xf32, #tpu.memory_space<vmem>>, vector<8x8x8xf32>,
    %c0_6 = arith.constant 0 : index
    %c0_7 = arith.constant 0 : index
    %c1 = arith.constant 1 : index
    %c0_8 = arith.constant 0 : index
    %3 = vector.load %arg1[%c0_6, %c0_7, %c1, %c0_8] : memref<10x1x10x8xf32, #tpu.memory_space<vmem>>, vector<8x1x8x8xf32>
    %4 = vector.shape_cast %3 : vector<8x1x8x8xf32> to vector<8x8x8xf32>
    %c0_9 = arith.constant 0 : index
    %c0_10 = arith.constant 0 : index
    %c8 = arith.constant 8 : index
    %5 = vector.load %arg7[%c0_9, %c0_10, %c8] : memref<8x8x72xf32, #tpu.memory_space<vmem>>, vector<8x8x8xf32>
    tpu.vector_store %arg7[%c0_9, %c0_10, %c8], %4 {strides = array<i32>} : memref<8x8x72xf32, #tpu.memory_space<vmem>>, vector<8x8x8xf32>,
    %c0_11 = arith.constant 0 : index
    %c0_12 = arith.constant 0 : index
    %c2 = arith.constant 2 : index
    %c0_13 = arith.constant 0 : index
    %6 = vector.load %arg1[%c0_11, %c0_12, %c2, %c0_13] : memref<10x1x10x8xf32, #tpu.memory_space<vmem>>, vector<8x1x8x8xf32>
    %7 = vector.shape_cast %6 : vector<8x1x8x8xf32> to vector<8x8x8xf32>
    %c0_14 = arith.constant 0 : index
    %c0_15 = arith.constant 0 : index
    %c16 = arith.constant 16 : index
    %8 = vector.load %arg7[%c0_14, %c0_15, %c16] : memref<8x8x72xf32, #tpu.memory_space<vmem>>, vector<8x8x8xf32>
    tpu.vector_store %arg7[%c0_14, %c0_15, %c16], %7 {strides = array<i32>} : memref<8x8x72xf32, #tpu.memory_space<vmem>>, vector<8x8x8xf32>,
    %c1_16 = arith.constant 1 : index
    %c0_17 = arith.constant 0 : index
    %c0_18 = arith.constant 0 : index
    %c0_19 = arith.constant 0 : index
    %9 = vector.load %arg1[%c1_16, %c0_17, %c0_18, %c0_19] : memref<10x1x10x8xf32, #tpu.memory_space<vmem>>, vector<8x1x8x8xf32>
    %10 = vector.shape_cast %9 : vector<8x1x8x8xf32> to vector<8x8x8xf32>
    %c0_20 = arith.constant 0 : index
    %c0_21 = arith.constant 0 : index
    %c24 = arith.constant 24 : index
    %11 = vector.load %arg7[%c0_20, %c0_21, %c24] : memref<8x8x72xf32, #tpu.memory_space<vmem>>, vector<8x8x8xf32>
    tpu.vector_store %arg7[%c0_20, %c0_21, %c24], %10 {strides = array<i32>} : memref<8x8x72xf32, #tpu.memory_space<vmem>>, vector<8x8x8xf32>,
    %c1_22 = arith.constant 1 : index
    %c0_23 = arith.constant 0 : index
    %c1_24 = arith.constant 1 : index
    %c0_25 = arith.constant 0 : index
    %12 = vector.load %arg1[%c1_22, %c0_23, %c1_24, %c0_25] : memref<10x1x10x8xf32, #tpu.memory_space<vmem>>, vector<8x1x8x8xf32>
    %13 = vector.shape_cast %12 : vector<8x1x8x8xf32> to vector<8x8x8xf32>
    %c0_26 = arith.constant 0 : index
    %c0_27 = arith.constant 0 : index
    %c32 = arith.constant 32 : index
    %14 = vector.load %arg7[%c0_26, %c0_27, %c32] : memref<8x8x72xf32, #tpu.memory_space<vmem>>, vector<8x8x8xf32>
    tpu.vector_store %arg7[%c0_26, %c0_27, %c32], %13 {strides = array<i32>} : memref<8x8x72xf32, #tpu.memory_space<vmem>>, vector<8x8x8xf32>,
    %c1_28 = arith.constant 1 : index
    %c0_29 = arith.constant 0 : index
    %c2_30 = arith.constant 2 : index
    %c0_31 = arith.constant 0 : index
    %15 = vector.load %arg1[%c1_28, %c0_29, %c2_30, %c0_31] : memref<10x1x10x8xf32, #tpu.memory_space<vmem>>, vector<8x1x8x8xf32>
    %16 = vector.shape_cast %15 : vector<8x1x8x8xf32> to vector<8x8x8xf32>
    %c0_32 = arith.constant 0 : index
    %c0_33 = arith.constant 0 : index
    %c40 = arith.constant 40 : index
    %17 = vector.load %arg7[%c0_32, %c0_33, %c40] : memref<8x8x72xf32, #tpu.memory_space<vmem>>, vector<8x8x8xf32>
    tpu.vector_store %arg7[%c0_32, %c0_33, %c40], %16 {strides = array<i32>} : memref<8x8x72xf32, #tpu.memory_space<vmem>>, vector<8x8x8xf32>,
    %c2_34 = arith.constant 2 : index
    %c0_35 = arith.constant 0 : index
    %c0_36 = arith.constant 0 : index
    %c0_37 = arith.constant 0 : index
    %18 = vector.load %arg1[%c2_34, %c0_35, %c0_36, %c0_37] : memref<10x1x10x8xf32, #tpu.memory_space<vmem>>, vector<8x1x8x8xf32>
    %19 = vector.shape_cast %18 : vector<8x1x8x8xf32> to vector<8x8x8xf32>
    %c0_38 = arith.constant 0 : index
    %c0_39 = arith.constant 0 : index
    %c48 = arith.constant 48 : index
    %20 = vector.load %arg7[%c0_38, %c0_39, %c48] : memref<8x8x72xf32, #tpu.memory_space<vmem>>, vector<8x8x8xf32>
    tpu.vector_store %arg7[%c0_38, %c0_39, %c48], %19 {strides = array<i32>} : memref<8x8x72xf32, #tpu.memory_space<vmem>>, vector<8x8x8xf32>,
    %c2_40 = arith.constant 2 : index
    %c0_41 = arith.constant 0 : index
    %c1_42 = arith.constant 1 : index
    %c0_43 = arith.constant 0 : index
    %21 = vector.load %arg1[%c2_40, %c0_41, %c1_42, %c0_43] : memref<10x1x10x8xf32, #tpu.memory_space<vmem>>, vector<8x1x8x8xf32>
    %22 = vector.shape_cast %21 : vector<8x1x8x8xf32> to vector<8x8x8xf32>
    %c0_44 = arith.constant 0 : index
    %c0_45 = arith.constant 0 : index
    %c56 = arith.constant 56 : index
    %23 = vector.load %arg7[%c0_44, %c0_45, %c56] : memref<8x8x72xf32, #tpu.memory_space<vmem>>, vector<8x8x8xf32>
    tpu.vector_store %arg7[%c0_44, %c0_45, %c56], %22 {strides = array<i32>} : memref<8x8x72xf32, #tpu.memory_space<vmem>>, vector<8x8x8xf32>,
    %c2_46 = arith.constant 2 : index
    %c0_47 = arith.constant 0 : index
    %c2_48 = arith.constant 2 : index
    %c0_49 = arith.constant 0 : index
    %24 = vector.load %arg1[%c2_46, %c0_47, %c2_48, %c0_49] : memref<10x1x10x8xf32, #tpu.memory_space<vmem>>, vector<8x1x8x8xf32>
    %25 = vector.shape_cast %24 : vector<8x1x8x8xf32> to vector<8x8x8xf32>
    %c0_50 = arith.constant 0 : index
    %c0_51 = arith.constant 0 : index
    %c64 = arith.constant 64 : index
    %26 = vector.load %arg7[%c0_50, %c0_51, %c64] : memref<8x8x72xf32, #tpu.memory_space<vmem>>, vector<8x8x8xf32>
    tpu.vector_store %arg7[%c0_50, %c0_51, %c64], %25 {strides = array<i32>} : memref<8x8x72xf32, #tpu.memory_space<vmem>>, vector<8x8x8xf32>,
    %c0_52 = arith.constant 0 : index
    %c0_53 = arith.constant 0 : index
    %27 = vector.load %arg2[%c0_52, %c0_53] : memref<72x8xbf16, #tpu.memory_space<vmem>>, vector<72x8xbf16>
    %c0_54 = arith.constant 0 : index
    %c0_55 = arith.constant 0 : index
    %28 = vector.load %arg3[%c0_54, %c0_55] : memref<1x8xf32, #tpu.memory_space<vmem>>, vector<1x8xf32>
    %cst = arith.constant 0.000000e+00 : f32
    %29 = vector.broadcast %cst : f32 to vector<1x8xf32>
    %cst_56 = arith.constant 0.000000e+00 : f32
    %30 = vector.broadcast %cst_56 : f32 to vector<1x8xf32>
    %c0_57 = arith.constant 0 : index
    %c0_58 = arith.constant 0 : index
    %c0_59 = arith.constant 0 : index
    %31 = vector.load %arg7[%c0_57, %c0_58, %c0_59] : memref<8x8x72xf32, #tpu.memory_space<vmem>>, vector<1x8x72xf32>
    %32 = vector.shape_cast %31 : vector<1x8x72xf32> to vector<8x72xf32>
    %33 = arith.truncf %32 : vector<8x72xf32> to vector<8x72xbf16>
    %cst_60 = arith.constant dense<0.000000e+00> : vector<8x8xf32>
    %34 = tpu.matmul %33, %27, %cst_60 {dimension_numbers = #tpu.dot_dimension_numbers<[1], [0], [0], [1], [0, 0, 1, 1], [], []>} : vector<8x72xbf16>, vector<72x8xbf16>, vector<8x8xf32> -> vector<8x8xf32>
    %35 = vector.broadcast %28 : vector<1x8xf32> to vector<8x8xf32>
    %36 = arith.addf %34, %35 : vector<8x8xf32>
    %cst_61 = arith.constant dense<0.000000e+00> : vector<8xf32>
    %37 = vector.multi_reduction <add>, %36, %cst_61 [0] : vector<8x8xf32> to vector<8xf32>
    %38 = vector.shape_cast %37 : vector<8xf32> to vector<1x8xf32>
    %39 = arith.addf %29, %38 : vector<1x8xf32>
    %40 = arith.mulf %36, %36 : vector<8x8xf32>
    %cst_62 = arith.constant dense<0.000000e+00> : vector<8xf32>
    %41 = vector.multi_reduction <add>, %40, %cst_62 [0] : vector<8x8xf32> to vector<8xf32>
    %42 = vector.shape_cast %41 : vector<8xf32> to vector<1x8xf32>
    %43 = arith.addf %30, %42 : vector<1x8xf32>
    %c0_63 = arith.constant 0 : index
    %c0_64 = arith.constant 0 : index
    %c0_65 = arith.constant 0 : index
    %44 = vector.load %arg4[%c0_63, %c0_64, %c0_65] : memref<1x64x8xf32, #tpu.memory_space<vmem>>, vector<1x8x8xf32>
    %45 = vector.shape_cast %44 : vector<1x8x8xf32> to vector<8x8xf32>
    %46 = vector.shape_cast %36 : vector<8x8xf32> to vector<1x8x8xf32>
    tpu.vector_store %arg4[%c0_63, %c0_64, %c0_65], %46 {strides = array<i32>} : memref<1x64x8xf32, #tpu.memory_space<vmem>>, vector<1x8x8xf32>,
    %c1_66 = arith.constant 1 : index
    %c0_67 = arith.constant 0 : index
    %c0_68 = arith.constant 0 : index
    %47 = vector.load %arg7[%c1_66, %c0_67, %c0_68] : memref<8x8x72xf32, #tpu.memory_space<vmem>>, vector<1x8x72xf32>
    %48 = vector.shape_cast %47 : vector<1x8x72xf32> to vector<8x72xf32>
    %49 = arith.truncf %48 : vector<8x72xf32> to vector<8x72xbf16>
    %cst_69 = arith.constant dense<0.000000e+00> : vector<8x8xf32>
    %50 = tpu.matmul %49, %27, %cst_69 {dimension_numbers = #tpu.dot_dimension_numbers<[1], [0], [0], [1], [0, 0, 1, 1], [], []>} : vector<8x72xbf16>, vector<72x8xbf16>, vector<8x8xf32> -> vector<8x8xf32>
    %51 = vector.broadcast %28 : vector<1x8xf32> to vector<8x8xf32>
    %52 = arith.addf %50, %51 : vector<8x8xf32>
    %cst_70 = arith.constant dense<0.000000e+00> : vector<8xf32>
    %53 = vector.multi_reduction <add>, %52, %cst_70 [0] : vector<8x8xf32> to vector<8xf32>
    %54 = vector.shape_cast %53 : vector<8xf32> to vector<1x8xf32>
    %55 = arith.addf %39, %54 : vector<1x8xf32>
    %56 = arith.mulf %52, %52 : vector<8x8xf32>
    %cst_71 = arith.constant dense<0.000000e+00> : vector<8xf32>
    %57 = vector.multi_reduction <add>, %56, %cst_71 [0] : vector<8x8xf32> to vector<8xf32>
    %58 = vector.shape_cast %57 : vector<8xf32> to vector<1x8xf32>
    %59 = arith.addf %43, %58 : vector<1x8xf32>
    %c0_72 = arith.constant 0 : index
    %c8_73 = arith.constant 8 : index
    %c0_74 = arith.constant 0 : index
    %60 = vector.load %arg4[%c0_72, %c8_73, %c0_74] : memref<1x64x8xf32, #tpu.memory_space<vmem>>, vector<1x8x8xf32>
    %61 = vector.shape_cast %60 : vector<1x8x8xf32> to vector<8x8xf32>
    %62 = vector.shape_cast %52 : vector<8x8xf32> to vector<1x8x8xf32>
    tpu.vector_store %arg4[%c0_72, %c8_73, %c0_74], %62 {strides = array<i32>} : memref<1x64x8xf32, #tpu.memory_space<vmem>>, vector<1x8x8xf32>,
    %c2_75 = arith.constant 2 : index
    %c0_76 = arith.constant 0 : index
    %c0_77 = arith.constant 0 : index
    %63 = vector.load %arg7[%c2_75, %c0_76, %c0_77] : memref<8x8x72xf32, #tpu.memory_space<vmem>>, vector<1x8x72xf32>
    %64 = vector.shape_cast %63 : vector<1x8x72xf32> to vector<8x72xf32>
    %65 = arith.truncf %64 : vector<8x72xf32> to vector<8x72xbf16>
    %cst_78 = arith.constant dense<0.000000e+00> : vector<8x8xf32>
    %66 = tpu.matmul %65, %27, %cst_78 {dimension_numbers = #tpu.dot_dimension_numbers<[1], [0], [0], [1], [0, 0, 1, 1], [], []>} : vector<8x72xbf16>, vector<72x8xbf16>, vector<8x8xf32> -> vector<8x8xf32>
    %67 = vector.broadcast %28 : vector<1x8xf32> to vector<8x8xf32>
    %68 = arith.addf %66, %67 : vector<8x8xf32>
    %cst_79 = arith.constant dense<0.000000e+00> : vector<8xf32>
    %69 = vector.multi_reduction <add>, %68, %cst_79 [0] : vector<8x8xf32> to vector<8xf32>
    %70 = vector.shape_cast %69 : vector<8xf32> to vector<1x8xf32>
    %71 = arith.addf %55, %70 : vector<1x8xf32>
    %72 = arith.mulf %68, %68 : vector<8x8xf32>
    %cst_80 = arith.constant dense<0.000000e+00> : vector<8xf32>
    %73 = vector.multi_reduction <add>, %72, %cst_80 [0] : vector<8x8xf32> to vector<8xf32>
    %74 = vector.shape_cast %73 : vector<8xf32> to vector<1x8xf32>
    %75 = arith.addf %59, %74 : vector<1x8xf32>
    %c0_81 = arith.constant 0 : index
    %c16_82 = arith.constant 16 : index
    %c0_83 = arith.constant 0 : index
    %76 = vector.load %arg4[%c0_81, %c16_82, %c0_83] : memref<1x64x8xf32, #tpu.memory_space<vmem>>, vector<1x8x8xf32>
    %77 = vector.shape_cast %76 : vector<1x8x8xf32> to vector<8x8xf32>
    %78 = vector.shape_cast %68 : vector<8x8xf32> to vector<1x8x8xf32>
    tpu.vector_store %arg4[%c0_81, %c16_82, %c0_83], %78 {strides = array<i32>} : memref<1x64x8xf32, #tpu.memory_space<vmem>>, vector<1x8x8xf32>,
    %c3 = arith.constant 3 : index
    %c0_84 = arith.constant 0 : index
    %c0_85 = arith.constant 0 : index
    %79 = vector.load %arg7[%c3, %c0_84, %c0_85] : memref<8x8x72xf32, #tpu.memory_space<vmem>>, vector<1x8x72xf32>
    %80 = vector.shape_cast %79 : vector<1x8x72xf32> to vector<8x72xf32>
    %81 = arith.truncf %80 : vector<8x72xf32> to vector<8x72xbf16>
    %cst_86 = arith.constant dense<0.000000e+00> : vector<8x8xf32>
    %82 = tpu.matmul %81, %27, %cst_86 {dimension_numbers = #tpu.dot_dimension_numbers<[1], [0], [0], [1], [0, 0, 1, 1], [], []>} : vector<8x72xbf16>, vector<72x8xbf16>, vector<8x8xf32> -> vector<8x8xf32>
    %83 = vector.broadcast %28 : vector<1x8xf32> to vector<8x8xf32>
    %84 = arith.addf %82, %83 : vector<8x8xf32>
    %cst_87 = arith.constant dense<0.000000e+00> : vector<8xf32>
    %85 = vector.multi_reduction <add>, %84, %cst_87 [0] : vector<8x8xf32> to vector<8xf32>
    %86 = vector.shape_cast %85 : vector<8xf32> to vector<1x8xf32>
    %87 = arith.addf %71, %86 : vector<1x8xf32>
    %88 = arith.mulf %84, %84 : vector<8x8xf32>
    %cst_88 = arith.constant dense<0.000000e+00> : vector<8xf32>
    %89 = vector.multi_reduction <add>, %88, %cst_88 [0] : vector<8x8xf32> to vector<8xf32>
    %90 = vector.shape_cast %89 : vector<8xf32> to vector<1x8xf32>
    %91 = arith.addf %75, %90 : vector<1x8xf32>
    %c0_89 = arith.constant 0 : index
    %c24_90 = arith.constant 24 : index
    %c0_91 = arith.constant 0 : index
    %92 = vector.load %arg4[%c0_89, %c24_90, %c0_91] : memref<1x64x8xf32, #tpu.memory_space<vmem>>, vector<1x8x8xf32>
    %93 = vector.shape_cast %92 : vector<1x8x8xf32> to vector<8x8xf32>
    %94 = vector.shape_cast %84 : vector<8x8xf32> to vector<1x8x8xf32>
    tpu.vector_store %arg4[%c0_89, %c24_90, %c0_91], %94 {strides = array<i32>} : memref<1x64x8xf32, #tpu.memory_space<vmem>>, vector<1x8x8xf32>,
    %c4 = arith.constant 4 : index
    %c0_92 = arith.constant 0 : index
    %c0_93 = arith.constant 0 : index
    %95 = vector.load %arg7[%c4, %c0_92, %c0_93] : memref<8x8x72xf32, #tpu.memory_space<vmem>>, vector<1x8x72xf32>
    %96 = vector.shape_cast %95 : vector<1x8x72xf32> to vector<8x72xf32>
    %97 = arith.truncf %96 : vector<8x72xf32> to vector<8x72xbf16>
    %cst_94 = arith.constant dense<0.000000e+00> : vector<8x8xf32>
    %98 = tpu.matmul %97, %27, %cst_94 {dimension_numbers = #tpu.dot_dimension_numbers<[1], [0], [0], [1], [0, 0, 1, 1], [], []>} : vector<8x72xbf16>, vector<72x8xbf16>, vector<8x8xf32> -> vector<8x8xf32>
    %99 = vector.broadcast %28 : vector<1x8xf32> to vector<8x8xf32>
    %100 = arith.addf %98, %99 : vector<8x8xf32>
    %cst_95 = arith.constant dense<0.000000e+00> : vector<8xf32>
    %101 = vector.multi_reduction <add>, %100, %cst_95 [0] : vector<8x8xf32> to vector<8xf32>
    %102 = vector.shape_cast %101 : vector<8xf32> to vector<1x8xf32>
    %103 = arith.addf %87, %102 : vector<1x8xf32>
    %104 = arith.mulf %100, %100 : vector<8x8xf32>
    %cst_96 = arith.constant dense<0.000000e+00> : vector<8xf32>
    %105 = vector.multi_reduction <add>, %104, %cst_96 [0] : vector<8x8xf32> to vector<8xf32>
    %106 = vector.shape_cast %105 : vector<8xf32> to vector<1x8xf32>
    %107 = arith.addf %91, %106 : vector<1x8xf32>
    %c0_97 = arith.constant 0 : index
    %c32_98 = arith.constant 32 : index
    %c0_99 = arith.constant 0 : index
    %108 = vector.load %arg4[%c0_97, %c32_98, %c0_99] : memref<1x64x8xf32, #tpu.memory_space<vmem>>, vector<1x8x8xf32>
    %109 = vector.shape_cast %108 : vector<1x8x8xf32> to vector<8x8xf32>
    %110 = vector.shape_cast %100 : vector<8x8xf32> to vector<1x8x8xf32>
    tpu.vector_store %arg4[%c0_97, %c32_98, %c0_99], %110 {strides = array<i32>} : memref<1x64x8xf32, #tpu.memory_space<vmem>>, vector<1x8x8xf32>,
    %c5 = arith.constant 5 : index
    %c0_100 = arith.constant 0 : index
    %c0_101 = arith.constant 0 : index
    %111 = vector.load %arg7[%c5, %c0_100, %c0_101] : memref<8x8x72xf32, #tpu.memory_space<vmem>>, vector<1x8x72xf32>
    %112 = vector.shape_cast %111 : vector<1x8x72xf32> to vector<8x72xf32>
    %113 = arith.truncf %112 : vector<8x72xf32> to vector<8x72xbf16>
    %cst_102 = arith.constant dense<0.000000e+00> : vector<8x8xf32>
    %114 = tpu.matmul %113, %27, %cst_102 {dimension_numbers = #tpu.dot_dimension_numbers<[1], [0], [0], [1], [0, 0, 1, 1], [], []>} : vector<8x72xbf16>, vector<72x8xbf16>, vector<8x8xf32> -> vector<8x8xf32>
    %115 = vector.broadcast %28 : vector<1x8xf32> to vector<8x8xf32>
    %116 = arith.addf %114, %115 : vector<8x8xf32>
    %cst_103 = arith.constant dense<0.000000e+00> : vector<8xf32>
    %117 = vector.multi_reduction <add>, %116, %cst_103 [0] : vector<8x8xf32> to vector<8xf32>
    %118 = vector.shape_cast %117 : vector<8xf32> to vector<1x8xf32>
    %119 = arith.addf %103, %118 : vector<1x8xf32>
    %120 = arith.mulf %116, %116 : vector<8x8xf32>
    %cst_104 = arith.constant dense<0.000000e+00> : vector<8xf32>
    %121 = vector.multi_reduction <add>, %120, %cst_104 [0] : vector<8x8xf32> to vector<8xf32>
    %122 = vector.shape_cast %121 : vector<8xf32> to vector<1x8xf32>
    %123 = arith.addf %107, %122 : vector<1x8xf32>
    %c0_105 = arith.constant 0 : index
    %c40_106 = arith.constant 40 : index
    %c0_107 = arith.constant 0 : index
    %124 = vector.load %arg4[%c0_105, %c40_106, %c0_107] : memref<1x64x8xf32, #tpu.memory_space<vmem>>, vector<1x8x8xf32>
    %125 = vector.shape_cast %124 : vector<1x8x8xf32> to vector<8x8xf32>
    %126 = vector.shape_cast %116 : vector<8x8xf32> to vector<1x8x8xf32>
    tpu.vector_store %arg4[%c0_105, %c40_106, %c0_107], %126 {strides = array<i32>} : memref<1x64x8xf32, #tpu.memory_space<vmem>>, vector<1x8x8xf32>,
    %c6 = arith.constant 6 : index
    %c0_108 = arith.constant 0 : index
    %c0_109 = arith.constant 0 : index
    %127 = vector.load %arg7[%c6, %c0_108, %c0_109] : memref<8x8x72xf32, #tpu.memory_space<vmem>>, vector<1x8x72xf32>
    %128 = vector.shape_cast %127 : vector<1x8x72xf32> to vector<8x72xf32>
    %129 = arith.truncf %128 : vector<8x72xf32> to vector<8x72xbf16>
    %cst_110 = arith.constant dense<0.000000e+00> : vector<8x8xf32>
    %130 = tpu.matmul %129, %27, %cst_110 {dimension_numbers = #tpu.dot_dimension_numbers<[1], [0], [0], [1], [0, 0, 1, 1], [], []>} : vector<8x72xbf16>, vector<72x8xbf16>, vector<8x8xf32> -> vector<8x8xf32>
    %131 = vector.broadcast %28 : vector<1x8xf32> to vector<8x8xf32>
    %132 = arith.addf %130, %131 : vector<8x8xf32>
    %cst_111 = arith.constant dense<0.000000e+00> : vector<8xf32>
    %133 = vector.multi_reduction <add>, %132, %cst_111 [0] : vector<8x8xf32> to vector<8xf32>
    %134 = vector.shape_cast %133 : vector<8xf32> to vector<1x8xf32>
    %135 = arith.addf %119, %134 : vector<1x8xf32>
    %136 = arith.mulf %132, %132 : vector<8x8xf32>
    %cst_112 = arith.constant dense<0.000000e+00> : vector<8xf32>
    %137 = vector.multi_reduction <add>, %136, %cst_112 [0] : vector<8x8xf32> to vector<8xf32>
    %138 = vector.shape_cast %137 : vector<8xf32> to vector<1x8xf32>
    %139 = arith.addf %123, %138 : vector<1x8xf32>
    %c0_113 = arith.constant 0 : index
    %c48_114 = arith.constant 48 : index
    %c0_115 = arith.constant 0 : index
    %140 = vector.load %arg4[%c0_113, %c48_114, %c0_115] : memref<1x64x8xf32, #tpu.memory_space<vmem>>, vector<1x8x8xf32>
    %141 = vector.shape_cast %140 : vector<1x8x8xf32> to vector<8x8xf32>
    %142 = vector.shape_cast %132 : vector<8x8xf32> to vector<1x8x8xf32>
    tpu.vector_store %arg4[%c0_113, %c48_114, %c0_115], %142 {strides = array<i32>} : memref<1x64x8xf32, #tpu.memory_space<vmem>>, vector<1x8x8xf32>,
    %c7 = arith.constant 7 : index
    %c0_116 = arith.constant 0 : index
    %c0_117 = arith.constant 0 : index
    %143 = vector.load %arg7[%c7, %c0_116, %c0_117] : memref<8x8x72xf32, #tpu.memory_space<vmem>>, vector<1x8x72xf32>
    %144 = vector.shape_cast %143 : vector<1x8x72xf32> to vector<8x72xf32>
    %145 = arith.truncf %144 : vector<8x72xf32> to vector<8x72xbf16>
    %cst_118 = arith.constant dense<0.000000e+00> : vector<8x8xf32>
    %146 = tpu.matmul %145, %27, %cst_118 {dimension_numbers = #tpu.dot_dimension_numbers<[1], [0], [0], [1], [0, 0, 1, 1], [], []>} : vector<8x72xbf16>, vector<72x8xbf16>, vector<8x8xf32> -> vector<8x8xf32>
    %147 = vector.broadcast %28 : vector<1x8xf32> to vector<8x8xf32>
    %148 = arith.addf %146, %147 : vector<8x8xf32>
    %cst_119 = arith.constant dense<0.000000e+00> : vector<8xf32>
    %149 = vector.multi_reduction <add>, %148, %cst_119 [0] : vector<8x8xf32> to vector<8xf32>
    %150 = vector.shape_cast %149 : vector<8xf32> to vector<1x8xf32>
    %151 = arith.addf %135, %150 : vector<1x8xf32>
    %152 = arith.mulf %148, %148 : vector<8x8xf32>
    %cst_120 = arith.constant dense<0.000000e+00> : vector<8xf32>
    %153 = vector.multi_reduction <add>, %152, %cst_120 [0] : vector<8x8xf32> to vector<8xf32>
    %154 = vector.shape_cast %153 : vector<8xf32> to vector<1x8xf32>
    %155 = arith.addf %139, %154 : vector<1x8xf32>
    %c0_121 = arith.constant 0 : index
    %c56_122 = arith.constant 56 : index
    %c0_123 = arith.constant 0 : index
    %156 = vector.load %arg4[%c0_121, %c56_122, %c0_123] : memref<1x64x8xf32, #tpu.memory_space<vmem>>, vector<1x8x8xf32>
    %157 = vector.shape_cast %156 : vector<1x8x8xf32> to vector<8x8xf32>
    %158 = vector.shape_cast %148 : vector<8x8xf32> to vector<1x8x8xf32>
    tpu.vector_store %arg4[%c0_121, %c56_122, %c0_123], %158 {strides = array<i32>} : memref<1x64x8xf32, #tpu.memory_space<vmem>>, vector<1x8x8xf32>,
    %c0_124 = arith.constant 0 : index
    %c0_125 = arith.constant 0 : index
    %c0_126 = arith.constant 0 : index
    %159 = vector.load %arg5[%c0_124, %c0_125, %c0_126] : memref<1x1x8xf32, #tpu.memory_space<vmem>>, vector<1x1x8xf32>
    %160 = vector.shape_cast %159 : vector<1x1x8xf32> to vector<1x8xf32>
    %161 = vector.shape_cast %151 : vector<1x8xf32> to vector<1x1x8xf32>
    tpu.vector_store %arg5[%c0_124, %c0_125, %c0_126], %161 {strides = array<i32>} : memref<1x1x8xf32, #tpu.memory_space<vmem>>, vector<1x1x8xf32>,
    %c0_127 = arith.constant 0 : index
    %c0_128 = arith.constant 0 : index
    %c0_129 = arith.constant 0 : index
    %162 = vector.load %arg6[%c0_127, %c0_128, %c0_129] : memref<1x1x8xf32, #tpu.memory_space<vmem>>, vector<1x1x8xf32>
    %163 = vector.shape_cast %162 : vector<1x1x8xf32> to vector<1x8xf32>
    %164 = vector.shape_cast %155 : vector<1x8xf32> to vector<1x1x8xf32>
    tpu.vector_store %arg6[%c0_127, %c0_128, %c0_129], %164 {strides = array<i32>} : memref<1x1x8xf32, #tpu.memory_space<vmem>>, vector<1x1x8xf32>,
    return
  }
  func.func @transform_0(%arg0: i32) -> (i32, i32, i32, i32) {
    %c0_i32 = arith.constant 0 : i32
    %c0_i32_0 = arith.constant 0 : i32
    %c0_i32_1 = arith.constant 0 : i32
    %c0_i32_2 = arith.constant 0 : i32
    return %arg0, %c0_i32, %c0_i32_0, %c0_i32_1 : i32, i32, i32, i32
  }
  func.func @transform_1(%arg0: i32) -> (i32, i32) {
    %c0_i32 = arith.constant 0 : i32
    %c0_i32_0 = arith.constant 0 : i32
    %c0_i32_1 = arith.constant 0 : i32
    return %c0_i32, %c0_i32_0 : i32, i32
  }
  func.func @transform_2(%arg0: i32) -> (i32, i32) {
    %c0_i32 = arith.constant 0 : i32
    %c0_i32_0 = arith.constant 0 : i32
    %c0_i32_1 = arith.constant 0 : i32
    return %c0_i32, %c0_i32_0 : i32, i32
  }
  func.func @transform_3(%arg0: i32) -> (i32, i32, i32) {
    %c0_i32 = arith.constant 0 : i32
    %c0_i32_0 = arith.constant 0 : i32
    %c0_i32_1 = arith.constant 0 : i32
    return %arg0, %c0_i32, %c0_i32_0 : i32, i32, i32
  }
  func.func @transform_4(%arg0: i32) -> (i32, i32, i32) {
    %c0_i32 = arith.constant 0 : i32
    %c0_i32_0 = arith.constant 0 : i32
    %c0_i32_1 = arith.constant 0 : i32
    return %arg0, %c0_i32, %c0_i32_0 : i32, i32, i32
  }
  func.func @transform_5(%arg0: i32) -> (i32, i32, i32) {
    %c0_i32 = arith.constant 0 : i32
    %c0_i32_0 = arith.constant 0 : i32
    %c0_i32_1 = arith.constant 0 : i32
    return %arg0, %c0_i32, %c0_i32_0 : i32, i32, i32
  }
}

module attributes {stable_mosaic.version = 11 : i64} {
  func.func @_cond_kernel(%arg0: i32, %arg1: memref<2x32xf32, #tpu.memory_space<vmem>>, %arg2: memref<32x16xf32, #tpu.memory_space<vmem>>, %arg3: memref<1x16xf32, #tpu.memory_space<vmem>>, %arg4: memref<2x1x8xf32, #tpu.memory_space<vmem>>, %arg5: memref<2x1x8xf32, #tpu.memory_space<vmem>>, %arg6: memref<2x8xf32, #tpu.memory_space<vmem>>, %arg7: memref<2x8xf32, #tpu.memory_space<vmem>>) attributes {dimension_semantics = [#tpu.dimension_semantics<arbitrary>], iteration_bounds = array<i64: 1>, scalar_prefetch = 0 : i64, scratch_operands = 0 : i64, tpu.core_type = #tpu.core_type<tc>, window_params = [{pipeline_mode = #tpu.pipeline_mode<synchronous>, transform_indices = @transform_0, window_bounds = array<i64: 2, 32>}, {pipeline_mode = #tpu.pipeline_mode<synchronous>, transform_indices = @transform_1, window_bounds = array<i64: 32, 16>}, {pipeline_mode = #tpu.pipeline_mode<synchronous>, transform_indices = @transform_2, window_bounds = array<i64: 1, 16>}, {pipeline_mode = #tpu.pipeline_mode<synchronous>, transform_indices = @transform_3, window_bounds = array<i64: 2, 1, 8>}, {pipeline_mode = #tpu.pipeline_mode<synchronous>, transform_indices = @transform_4, window_bounds = array<i64: 2, 1, 8>}, {pipeline_mode = #tpu.pipeline_mode<synchronous>, transform_indices = @transform_5, window_bounds = array<i64: 2, 8>}, {pipeline_mode = #tpu.pipeline_mode<synchronous>, transform_indices = @transform_6, window_bounds = array<i64: 2, 8>}]} {
    %c0 = arith.constant 0 : index
    %c0_0 = arith.constant 0 : index
    %c0_1 = arith.constant 0 : index
    %0 = vector.load %arg4[%c0, %c0_0, %c0_1] : memref<2x1x8xf32, #tpu.memory_space<vmem>>, vector<2x1x8xf32>
    %cst = arith.constant dense<0.000000e+00> : vector<1x8xf32>
    %1 = vector.multi_reduction <add>, %0, %cst [0] : vector<2x1x8xf32> to vector<1x8xf32>
    %cst_2 = arith.constant 1.280000e+02 : f32
    %2 = vector.broadcast %cst_2 : f32 to vector<1x8xf32>
    %3 = arith.divf %1, %2 : vector<1x8xf32>
    %c0_3 = arith.constant 0 : index
    %c0_4 = arith.constant 0 : index
    %c0_5 = arith.constant 0 : index
    %4 = vector.load %arg5[%c0_3, %c0_4, %c0_5] : memref<2x1x8xf32, #tpu.memory_space<vmem>>, vector<2x1x8xf32>
    %cst_6 = arith.constant dense<0.000000e+00> : vector<1x8xf32>
    %5 = vector.multi_reduction <add>, %4, %cst_6 [0] : vector<2x1x8xf32> to vector<1x8xf32>
    %cst_7 = arith.constant 1.280000e+02 : f32
    %6 = vector.broadcast %cst_7 : f32 to vector<1x8xf32>
    %7 = arith.divf %5, %6 : vector<1x8xf32>
    %8 = arith.mulf %3, %3 : vector<1x8xf32>
    %9 = arith.subf %7, %8 : vector<1x8xf32>
    %cst_8 = arith.constant 0.000000e+00 : f32
    %10 = vector.broadcast %cst_8 : f32 to vector<1x8xf32>
    %11 = arith.maximumf %9, %10 : vector<1x8xf32>
    %cst_9 = arith.constant 9.99999974E-6 : f32
    %12 = vector.broadcast %cst_9 : f32 to vector<1x8xf32>
    %13 = arith.addf %11, %12 : vector<1x8xf32>
    %14 = math.rsqrt %13 : vector<1x8xf32>
    %c0_10 = arith.constant 0 : index
    %c0_11 = arith.constant 0 : index
    %15 = vector.load %arg1[%c0_10, %c0_11] : memref<2x32xf32, #tpu.memory_space<vmem>>, vector<2x32xf32>
    %c0_12 = arith.constant 0 : index
    %c0_13 = arith.constant 0 : index
    %16 = vector.load %arg2[%c0_12, %c0_13] : memref<32x16xf32, #tpu.memory_space<vmem>>, vector<32x16xf32>
    %cst_14 = arith.constant dense<0.000000e+00> : vector<2x16xf32>
    %17 = tpu.matmul %15, %16, %cst_14 {dimension_numbers = #tpu.dot_dimension_numbers<[1], [0], [0], [1], [0, 0, 1, 1], [], []>} : vector<2x32xf32>, vector<32x16xf32>, vector<2x16xf32> -> vector<2x16xf32>
    %c0_15 = arith.constant 0 : index
    %c0_16 = arith.constant 0 : index
    %18 = vector.load %arg3[%c0_15, %c0_16] : memref<1x16xf32, #tpu.memory_space<vmem>>, vector<1x16xf32>
    %19 = vector.broadcast %18 : vector<1x16xf32> to vector<2x16xf32>
    %20 = arith.addf %17, %19 : vector<2x16xf32>
    %21 = vector.extract_strided_slice %20 {offsets = [0, 0], sizes = [2, 8], strides = [1, 1]} : vector<2x16xf32> to vector<2x8xf32>
    %22 = vector.extract_strided_slice %20 {offsets = [0, 8], sizes = [2, 8], strides = [1, 1]} : vector<2x16xf32> to vector<2x8xf32>
    %23 = vector.broadcast %14 : vector<1x8xf32> to vector<2x8xf32>
    %24 = arith.mulf %21, %23 : vector<2x8xf32>
    %25 = vector.broadcast %3 : vector<1x8xf32> to vector<2x8xf32>
    %26 = arith.mulf %25, %24 : vector<2x8xf32>
    %27 = arith.subf %22, %26 : vector<2x8xf32>
    %c0_17 = arith.constant 0 : index
    %c0_18 = arith.constant 0 : index
    %28 = vector.load %arg6[%c0_17, %c0_18] : memref<2x8xf32, #tpu.memory_space<vmem>>, vector<2x8xf32>
    tpu.vector_store %arg6[%c0_17, %c0_18], %24 {strides = array<i32>} : memref<2x8xf32, #tpu.memory_space<vmem>>, vector<2x8xf32>,
    %c0_19 = arith.constant 0 : index
    %c0_20 = arith.constant 0 : index
    %29 = vector.load %arg7[%c0_19, %c0_20] : memref<2x8xf32, #tpu.memory_space<vmem>>, vector<2x8xf32>
    tpu.vector_store %arg7[%c0_19, %c0_20], %27 {strides = array<i32>} : memref<2x8xf32, #tpu.memory_space<vmem>>, vector<2x8xf32>,
    return
  }
  func.func @transform_0(%arg0: i32) -> (i32, i32) {
    %c0_i32 = arith.constant 0 : i32
    %c0_i32_0 = arith.constant 0 : i32
    %c0_i32_1 = arith.constant 0 : i32
    return %c0_i32, %c0_i32_0 : i32, i32
  }
  func.func @transform_1(%arg0: i32) -> (i32, i32) {
    %c0_i32 = arith.constant 0 : i32
    %c0_i32_0 = arith.constant 0 : i32
    %c0_i32_1 = arith.constant 0 : i32
    return %c0_i32, %c0_i32_0 : i32, i32
  }
  func.func @transform_2(%arg0: i32) -> (i32, i32) {
    %c0_i32 = arith.constant 0 : i32
    %c0_i32_0 = arith.constant 0 : i32
    %c0_i32_1 = arith.constant 0 : i32
    return %c0_i32, %c0_i32_0 : i32, i32
  }
  func.func @transform_3(%arg0: i32) -> (i32, i32, i32) {
    %c0_i32 = arith.constant 0 : i32
    %c0_i32_0 = arith.constant 0 : i32
    %c0_i32_1 = arith.constant 0 : i32
    %c0_i32_2 = arith.constant 0 : i32
    return %c0_i32, %c0_i32_0, %c0_i32_1 : i32, i32, i32
  }
  func.func @transform_4(%arg0: i32) -> (i32, i32, i32) {
    %c0_i32 = arith.constant 0 : i32
    %c0_i32_0 = arith.constant 0 : i32
    %c0_i32_1 = arith.constant 0 : i32
    %c0_i32_2 = arith.constant 0 : i32
    return %c0_i32, %c0_i32_0, %c0_i32_1 : i32, i32, i32
  }
  func.func @transform_5(%arg0: i32) -> (i32, i32) {
    %c0_i32 = arith.constant 0 : i32
    %c0_i32_0 = arith.constant 0 : i32
    %c0_i32_1 = arith.constant 0 : i32
    return %c0_i32, %c0_i32_0 : i32, i32
  }
  func.func @transform_6(%arg0: i32) -> (i32, i32) {
    %c0_i32 = arith.constant 0 : i32
    %c0_i32_0 = arith.constant 0 : i32
    %c0_i32_1 = arith.constant 0 : i32
    return %c0_i32, %c0_i32_0 : i32, i32
  }
}

module attributes {stable_mosaic.version = 11 : i64} {
  func.func @_cbn_kernel(%arg0: i32, %arg1: i32, %arg2: memref<1x4x128xf32, #tpu.memory_space<vmem>>, %arg3: memref<1x1x128xf32, #tpu.memory_space<vmem>>, %arg4: memref<1x1x128xf32, #tpu.memory_space<vmem>>, %arg5: memref<1x4x128xf32, #tpu.memory_space<vmem>>) attributes {dimension_semantics = [#tpu.dimension_semantics<parallel>, #tpu.dimension_semantics<parallel>], iteration_bounds = array<i64: 2, 1>, scalar_prefetch = 0 : i64, scratch_operands = 0 : i64, tpu.core_type = #tpu.core_type<tc>, window_params = [{transform_indices = @transform_0, window_bounds = array<i64: 1, 4, 128>}, {transform_indices = @transform_1, window_bounds = array<i64: 1, 1, 128>}, {transform_indices = @transform_2, window_bounds = array<i64: 1, 1, 128>}, {transform_indices = @transform_3, window_bounds = array<i64: 1, 4, 128>}]} {
    %c0 = arith.constant 0 : index
    %c0_0 = arith.constant 0 : index
    %c0_1 = arith.constant 0 : index
    %0 = vector.load %arg2[%c0, %c0_0, %c0_1] : memref<1x4x128xf32, #tpu.memory_space<vmem>>, vector<1x4x128xf32>
    %c0_2 = arith.constant 0 : index
    %c0_3 = arith.constant 0 : index
    %c0_4 = arith.constant 0 : index
    %1 = vector.load %arg3[%c0_2, %c0_3, %c0_4] : memref<1x1x128xf32, #tpu.memory_space<vmem>>, vector<1x1x128xf32>
    %2 = vector.broadcast %1 : vector<1x1x128xf32> to vector<1x4x128xf32>
    %3 = arith.mulf %0, %2 : vector<1x4x128xf32>
    %c0_5 = arith.constant 0 : index
    %c0_6 = arith.constant 0 : index
    %c0_7 = arith.constant 0 : index
    %4 = vector.load %arg4[%c0_5, %c0_6, %c0_7] : memref<1x1x128xf32, #tpu.memory_space<vmem>>, vector<1x1x128xf32>
    %5 = vector.broadcast %4 : vector<1x1x128xf32> to vector<1x4x128xf32>
    %6 = arith.addf %3, %5 : vector<1x4x128xf32>
    %cst = arith.constant 0.000000e+00 : f32
    %7 = vector.broadcast %cst : f32 to vector<1x4x128xf32>
    %8 = arith.maximumf %6, %7 : vector<1x4x128xf32>
    %c0_8 = arith.constant 0 : index
    %c0_9 = arith.constant 0 : index
    %c0_10 = arith.constant 0 : index
    %9 = vector.load %arg5[%c0_8, %c0_9, %c0_10] : memref<1x4x128xf32, #tpu.memory_space<vmem>>, vector<1x4x128xf32>
    tpu.vector_store %arg5[%c0_8, %c0_9, %c0_10], %8 {strides = array<i32>} : memref<1x4x128xf32, #tpu.memory_space<vmem>>, vector<1x4x128xf32>,
    return
  }
  func.func @transform_0(%arg0: i32, %arg1: i32) -> (i32, i32, i32) {
    %c0_i32 = arith.constant 0 : i32
    %c0_i32_0 = arith.constant 0 : i32
    return %arg0, %arg1, %c0_i32 : i32, i32, i32
  }
  func.func @transform_1(%arg0: i32, %arg1: i32) -> (i32, i32, i32) {
    %c0_i32 = arith.constant 0 : i32
    %c0_i32_0 = arith.constant 0 : i32
    %c0_i32_1 = arith.constant 0 : i32
    return %arg0, %c0_i32, %c0_i32_0 : i32, i32, i32
  }
  func.func @transform_2(%arg0: i32, %arg1: i32) -> (i32, i32, i32) {
    %c0_i32 = arith.constant 0 : i32
    %c0_i32_0 = arith.constant 0 : i32
    %c0_i32_1 = arith.constant 0 : i32
    return %arg0, %c0_i32, %c0_i32_0 : i32, i32, i32
  }
  func.func @transform_3(%arg0: i32, %arg1: i32) -> (i32, i32, i32) {
    %c0_i32 = arith.constant 0 : i32
    %c0_i32_0 = arith.constant 0 : i32
    return %arg0, %arg1, %c0_i32 : i32, i32, i32
  }
}

module attributes {stable_mosaic.version = 11 : i64} {
  func.func @_conv_kernel(%arg0: i32, %arg1: memref<5x2x5x16xf32, #tpu.memory_space<vmem>>, %arg2: memref<72x16xbf16, #tpu.memory_space<vmem>>, %arg3: memref<1x16xf32, #tpu.memory_space<vmem>>, %arg4: memref<1x16x16xf32, #tpu.memory_space<vmem>>, %arg5: memref<1x1x16xf32, #tpu.memory_space<vmem>>, %arg6: memref<1x1x16xf32, #tpu.memory_space<vmem>>, %arg7: memref<4x4x72xf32, #tpu.memory_space<vmem>>) attributes {dimension_semantics = [#tpu.dimension_semantics<parallel>], iteration_bounds = array<i64: 2>, scalar_prefetch = 0 : i64, scratch_operands = 1 : i64, tpu.core_type = #tpu.core_type<tc>, window_params = [{transform_indices = @transform_0, window_bounds = array<i64: 5, 2, 5, 16>}, {pipeline_mode = #tpu.pipeline_mode<synchronous>, transform_indices = @transform_1, window_bounds = array<i64: 72, 16>}, {pipeline_mode = #tpu.pipeline_mode<synchronous>, transform_indices = @transform_2, window_bounds = array<i64: 1, 16>}, {transform_indices = @transform_3, window_bounds = array<i64: 1, 16, 16>}, {transform_indices = @transform_4, window_bounds = array<i64: 1, 1, 16>}, {transform_indices = @transform_5, window_bounds = array<i64: 1, 1, 16>}]} {
    %c0 = arith.constant 0 : index
    %c0_0 = arith.constant 0 : index
    %c0_1 = arith.constant 0 : index
    %c0_2 = arith.constant 0 : index
    %0 = vector.load %arg1[%c0, %c0_0, %c0_1, %c0_2] : memref<5x2x5x16xf32, #tpu.memory_space<vmem>>, vector<4x1x4x8xf32>
    %1 = vector.shape_cast %0 : vector<4x1x4x8xf32> to vector<4x4x8xf32>
    %c0_3 = arith.constant 0 : index
    %c0_4 = arith.constant 0 : index
    %c0_5 = arith.constant 0 : index
    %2 = vector.load %arg7[%c0_3, %c0_4, %c0_5] : memref<4x4x72xf32, #tpu.memory_space<vmem>>, vector<4x4x8xf32>
    tpu.vector_store %arg7[%c0_3, %c0_4, %c0_5], %1 {strides = array<i32>} : memref<4x4x72xf32, #tpu.memory_space<vmem>>, vector<4x4x8xf32>,
    %c0_6 = arith.constant 0 : index
    %c0_7 = arith.constant 0 : index
    %c0_8 = arith.constant 0 : index
    %c8 = arith.constant 8 : index
    %3 = vector.load %arg1[%c0_6, %c0_7, %c0_8, %c8] : memref<5x2x5x16xf32, #tpu.memory_space<vmem>>, vector<4x1x4x8xf32>
    %4 = vector.shape_cast %3 : vector<4x1x4x8xf32> to vector<4x4x8xf32>
    %c0_9 = arith.constant 0 : index
    %c0_10 = arith.constant 0 : index
    %c8_11 = arith.constant 8 : index
    %5 = vector.load %arg7[%c0_9, %c0_10, %c8_11] : memref<4x4x72xf32, #tpu.memory_space<vmem>>, vector<4x4x8xf32>
    tpu.vector_store %arg7[%c0_9, %c0_10, %c8_11], %4 {strides = array<i32>} : memref<4x4x72xf32, #tpu.memory_space<vmem>>, vector<4x4x8xf32>,
    %c0_12 = arith.constant 0 : index
    %c0_13 = arith.constant 0 : index
    %c1 = arith.constant 1 : index
    %c0_14 = arith.constant 0 : index
    %6 = vector.load %arg1[%c0_12, %c0_13, %c1, %c0_14] : memref<5x2x5x16xf32, #tpu.memory_space<vmem>>, vector<4x1x4x8xf32>
    %7 = vector.shape_cast %6 : vector<4x1x4x8xf32> to vector<4x4x8xf32>
    %c0_15 = arith.constant 0 : index
    %c0_16 = arith.constant 0 : index
    %c16 = arith.constant 16 : index
    %8 = vector.load %arg7[%c0_15, %c0_16, %c16] : memref<4x4x72xf32, #tpu.memory_space<vmem>>, vector<4x4x8xf32>
    tpu.vector_store %arg7[%c0_15, %c0_16, %c16], %7 {strides = array<i32>} : memref<4x4x72xf32, #tpu.memory_space<vmem>>, vector<4x4x8xf32>,
    %c0_17 = arith.constant 0 : index
    %c1_18 = arith.constant 1 : index
    %c0_19 = arith.constant 0 : index
    %c0_20 = arith.constant 0 : index
    %9 = vector.load %arg1[%c0_17, %c1_18, %c0_19, %c0_20] : memref<5x2x5x16xf32, #tpu.memory_space<vmem>>, vector<4x1x4x8xf32>
    %10 = vector.shape_cast %9 : vector<4x1x4x8xf32> to vector<4x4x8xf32>
    %c0_21 = arith.constant 0 : index
    %c0_22 = arith.constant 0 : index
    %c24 = arith.constant 24 : index
    %11 = vector.load %arg7[%c0_21, %c0_22, %c24] : memref<4x4x72xf32, #tpu.memory_space<vmem>>, vector<4x4x8xf32>
    tpu.vector_store %arg7[%c0_21, %c0_22, %c24], %10 {strides = array<i32>} : memref<4x4x72xf32, #tpu.memory_space<vmem>>, vector<4x4x8xf32>,
    %c0_23 = arith.constant 0 : index
    %c1_24 = arith.constant 1 : index
    %c0_25 = arith.constant 0 : index
    %c8_26 = arith.constant 8 : index
    %12 = vector.load %arg1[%c0_23, %c1_24, %c0_25, %c8_26] : memref<5x2x5x16xf32, #tpu.memory_space<vmem>>, vector<4x1x4x8xf32>
    %13 = vector.shape_cast %12 : vector<4x1x4x8xf32> to vector<4x4x8xf32>
    %c0_27 = arith.constant 0 : index
    %c0_28 = arith.constant 0 : index
    %c32 = arith.constant 32 : index
    %14 = vector.load %arg7[%c0_27, %c0_28, %c32] : memref<4x4x72xf32, #tpu.memory_space<vmem>>, vector<4x4x8xf32>
    tpu.vector_store %arg7[%c0_27, %c0_28, %c32], %13 {strides = array<i32>} : memref<4x4x72xf32, #tpu.memory_space<vmem>>, vector<4x4x8xf32>,
    %c0_29 = arith.constant 0 : index
    %c1_30 = arith.constant 1 : index
    %c1_31 = arith.constant 1 : index
    %c0_32 = arith.constant 0 : index
    %15 = vector.load %arg1[%c0_29, %c1_30, %c1_31, %c0_32] : memref<5x2x5x16xf32, #tpu.memory_space<vmem>>, vector<4x1x4x8xf32>
    %16 = vector.shape_cast %15 : vector<4x1x4x8xf32> to vector<4x4x8xf32>
    %c0_33 = arith.constant 0 : index
    %c0_34 = arith.constant 0 : index
    %c40 = arith.constant 40 : index
    %17 = vector.load %arg7[%c0_33, %c0_34, %c40] : memref<4x4x72xf32, #tpu.memory_space<vmem>>, vector<4x4x8xf32>
    tpu.vector_store %arg7[%c0_33, %c0_34, %c40], %16 {strides = array<i32>} : memref<4x4x72xf32, #tpu.memory_space<vmem>>, vector<4x4x8xf32>,
    %c1_35 = arith.constant 1 : index
    %c0_36 = arith.constant 0 : index
    %c0_37 = arith.constant 0 : index
    %c0_38 = arith.constant 0 : index
    %18 = vector.load %arg1[%c1_35, %c0_36, %c0_37, %c0_38] : memref<5x2x5x16xf32, #tpu.memory_space<vmem>>, vector<4x1x4x8xf32>
    %19 = vector.shape_cast %18 : vector<4x1x4x8xf32> to vector<4x4x8xf32>
    %c0_39 = arith.constant 0 : index
    %c0_40 = arith.constant 0 : index
    %c48 = arith.constant 48 : index
    %20 = vector.load %arg7[%c0_39, %c0_40, %c48] : memref<4x4x72xf32, #tpu.memory_space<vmem>>, vector<4x4x8xf32>
    tpu.vector_store %arg7[%c0_39, %c0_40, %c48], %19 {strides = array<i32>} : memref<4x4x72xf32, #tpu.memory_space<vmem>>, vector<4x4x8xf32>,
    %c1_41 = arith.constant 1 : index
    %c0_42 = arith.constant 0 : index
    %c0_43 = arith.constant 0 : index
    %c8_44 = arith.constant 8 : index
    %21 = vector.load %arg1[%c1_41, %c0_42, %c0_43, %c8_44] : memref<5x2x5x16xf32, #tpu.memory_space<vmem>>, vector<4x1x4x8xf32>
    %22 = vector.shape_cast %21 : vector<4x1x4x8xf32> to vector<4x4x8xf32>
    %c0_45 = arith.constant 0 : index
    %c0_46 = arith.constant 0 : index
    %c56 = arith.constant 56 : index
    %23 = vector.load %arg7[%c0_45, %c0_46, %c56] : memref<4x4x72xf32, #tpu.memory_space<vmem>>, vector<4x4x8xf32>
    tpu.vector_store %arg7[%c0_45, %c0_46, %c56], %22 {strides = array<i32>} : memref<4x4x72xf32, #tpu.memory_space<vmem>>, vector<4x4x8xf32>,
    %c1_47 = arith.constant 1 : index
    %c0_48 = arith.constant 0 : index
    %c1_49 = arith.constant 1 : index
    %c0_50 = arith.constant 0 : index
    %24 = vector.load %arg1[%c1_47, %c0_48, %c1_49, %c0_50] : memref<5x2x5x16xf32, #tpu.memory_space<vmem>>, vector<4x1x4x8xf32>
    %25 = vector.shape_cast %24 : vector<4x1x4x8xf32> to vector<4x4x8xf32>
    %c0_51 = arith.constant 0 : index
    %c0_52 = arith.constant 0 : index
    %c64 = arith.constant 64 : index
    %26 = vector.load %arg7[%c0_51, %c0_52, %c64] : memref<4x4x72xf32, #tpu.memory_space<vmem>>, vector<4x4x8xf32>
    tpu.vector_store %arg7[%c0_51, %c0_52, %c64], %25 {strides = array<i32>} : memref<4x4x72xf32, #tpu.memory_space<vmem>>, vector<4x4x8xf32>,
    %c0_53 = arith.constant 0 : index
    %c0_54 = arith.constant 0 : index
    %27 = vector.load %arg2[%c0_53, %c0_54] : memref<72x16xbf16, #tpu.memory_space<vmem>>, vector<72x16xbf16>
    %c0_55 = arith.constant 0 : index
    %c0_56 = arith.constant 0 : index
    %28 = vector.load %arg3[%c0_55, %c0_56] : memref<1x16xf32, #tpu.memory_space<vmem>>, vector<1x16xf32>
    %cst = arith.constant 0.000000e+00 : f32
    %29 = vector.broadcast %cst : f32 to vector<1x16xf32>
    %cst_57 = arith.constant 0.000000e+00 : f32
    %30 = vector.broadcast %cst_57 : f32 to vector<1x16xf32>
    %c0_58 = arith.constant 0 : index
    %c0_59 = arith.constant 0 : index
    %c0_60 = arith.constant 0 : index
    %31 = vector.load %arg7[%c0_58, %c0_59, %c0_60] : memref<4x4x72xf32, #tpu.memory_space<vmem>>, vector<1x4x72xf32>
    %32 = vector.shape_cast %31 : vector<1x4x72xf32> to vector<4x72xf32>
    %33 = arith.truncf %32 : vector<4x72xf32> to vector<4x72xbf16>
    %cst_61 = arith.constant dense<0.000000e+00> : vector<4x16xf32>
    %34 = tpu.matmul %33, %27, %cst_61 {dimension_numbers = #tpu.dot_dimension_numbers<[1], [0], [0], [1], [0, 0, 1, 1], [], []>} : vector<4x72xbf16>, vector<72x16xbf16>, vector<4x16xf32> -> vector<4x16xf32>
    %35 = vector.broadcast %28 : vector<1x16xf32> to vector<4x16xf32>
    %36 = arith.addf %34, %35 : vector<4x16xf32>
    %cst_62 = arith.constant dense<0.000000e+00> : vector<16xf32>
    %37 = vector.multi_reduction <add>, %36, %cst_62 [0] : vector<4x16xf32> to vector<16xf32>
    %38 = vector.shape_cast %37 : vector<16xf32> to vector<1x16xf32>
    %39 = arith.addf %29, %38 : vector<1x16xf32>
    %40 = arith.mulf %36, %36 : vector<4x16xf32>
    %cst_63 = arith.constant dense<0.000000e+00> : vector<16xf32>
    %41 = vector.multi_reduction <add>, %40, %cst_63 [0] : vector<4x16xf32> to vector<16xf32>
    %42 = vector.shape_cast %41 : vector<16xf32> to vector<1x16xf32>
    %43 = arith.addf %30, %42 : vector<1x16xf32>
    %c0_64 = arith.constant 0 : index
    %c0_65 = arith.constant 0 : index
    %c0_66 = arith.constant 0 : index
    %44 = vector.load %arg4[%c0_64, %c0_65, %c0_66] : memref<1x16x16xf32, #tpu.memory_space<vmem>>, vector<1x4x16xf32>
    %45 = vector.shape_cast %44 : vector<1x4x16xf32> to vector<4x16xf32>
    %46 = vector.shape_cast %36 : vector<4x16xf32> to vector<1x4x16xf32>
    tpu.vector_store %arg4[%c0_64, %c0_65, %c0_66], %46 {strides = array<i32>} : memref<1x16x16xf32, #tpu.memory_space<vmem>>, vector<1x4x16xf32>,
    %c1_67 = arith.constant 1 : index
    %c0_68 = arith.constant 0 : index
    %c0_69 = arith.constant 0 : index
    %47 = vector.load %arg7[%c1_67, %c0_68, %c0_69] : memref<4x4x72xf32, #tpu.memory_space<vmem>>, vector<1x4x72xf32>
    %48 = vector.shape_cast %47 : vector<1x4x72xf32> to vector<4x72xf32>
    %49 = arith.truncf %48 : vector<4x72xf32> to vector<4x72xbf16>
    %cst_70 = arith.constant dense<0.000000e+00> : vector<4x16xf32>
    %50 = tpu.matmul %49, %27, %cst_70 {dimension_numbers = #tpu.dot_dimension_numbers<[1], [0], [0], [1], [0, 0, 1, 1], [], []>} : vector<4x72xbf16>, vector<72x16xbf16>, vector<4x16xf32> -> vector<4x16xf32>
    %51 = vector.broadcast %28 : vector<1x16xf32> to vector<4x16xf32>
    %52 = arith.addf %50, %51 : vector<4x16xf32>
    %cst_71 = arith.constant dense<0.000000e+00> : vector<16xf32>
    %53 = vector.multi_reduction <add>, %52, %cst_71 [0] : vector<4x16xf32> to vector<16xf32>
    %54 = vector.shape_cast %53 : vector<16xf32> to vector<1x16xf32>
    %55 = arith.addf %39, %54 : vector<1x16xf32>
    %56 = arith.mulf %52, %52 : vector<4x16xf32>
    %cst_72 = arith.constant dense<0.000000e+00> : vector<16xf32>
    %57 = vector.multi_reduction <add>, %56, %cst_72 [0] : vector<4x16xf32> to vector<16xf32>
    %58 = vector.shape_cast %57 : vector<16xf32> to vector<1x16xf32>
    %59 = arith.addf %43, %58 : vector<1x16xf32>
    %c0_73 = arith.constant 0 : index
    %c4 = arith.constant 4 : index
    %c0_74 = arith.constant 0 : index
    %60 = vector.load %arg4[%c0_73, %c4, %c0_74] : memref<1x16x16xf32, #tpu.memory_space<vmem>>, vector<1x4x16xf32>
    %61 = vector.shape_cast %60 : vector<1x4x16xf32> to vector<4x16xf32>
    %62 = vector.shape_cast %52 : vector<4x16xf32> to vector<1x4x16xf32>
    tpu.vector_store %arg4[%c0_73, %c4, %c0_74], %62 {strides = array<i32>} : memref<1x16x16xf32, #tpu.memory_space<vmem>>, vector<1x4x16xf32>,
    %c2 = arith.constant 2 : index
    %c0_75 = arith.constant 0 : index
    %c0_76 = arith.constant 0 : index
    %63 = vector.load %arg7[%c2, %c0_75, %c0_76] : memref<4x4x72xf32, #tpu.memory_space<vmem>>, vector<1x4x72xf32>
    %64 = vector.shape_cast %63 : vector<1x4x72xf32> to vector<4x72xf32>
    %65 = arith.truncf %64 : vector<4x72xf32> to vector<4x72xbf16>
    %cst_77 = arith.constant dense<0.000000e+00> : vector<4x16xf32>
    %66 = tpu.matmul %65, %27, %cst_77 {dimension_numbers = #tpu.dot_dimension_numbers<[1], [0], [0], [1], [0, 0, 1, 1], [], []>} : vector<4x72xbf16>, vector<72x16xbf16>, vector<4x16xf32> -> vector<4x16xf32>
    %67 = vector.broadcast %28 : vector<1x16xf32> to vector<4x16xf32>
    %68 = arith.addf %66, %67 : vector<4x16xf32>
    %cst_78 = arith.constant dense<0.000000e+00> : vector<16xf32>
    %69 = vector.multi_reduction <add>, %68, %cst_78 [0] : vector<4x16xf32> to vector<16xf32>
    %70 = vector.shape_cast %69 : vector<16xf32> to vector<1x16xf32>
    %71 = arith.addf %55, %70 : vector<1x16xf32>
    %72 = arith.mulf %68, %68 : vector<4x16xf32>
    %cst_79 = arith.constant dense<0.000000e+00> : vector<16xf32>
    %73 = vector.multi_reduction <add>, %72, %cst_79 [0] : vector<4x16xf32> to vector<16xf32>
    %74 = vector.shape_cast %73 : vector<16xf32> to vector<1x16xf32>
    %75 = arith.addf %59, %74 : vector<1x16xf32>
    %c0_80 = arith.constant 0 : index
    %c8_81 = arith.constant 8 : index
    %c0_82 = arith.constant 0 : index
    %76 = vector.load %arg4[%c0_80, %c8_81, %c0_82] : memref<1x16x16xf32, #tpu.memory_space<vmem>>, vector<1x4x16xf32>
    %77 = vector.shape_cast %76 : vector<1x4x16xf32> to vector<4x16xf32>
    %78 = vector.shape_cast %68 : vector<4x16xf32> to vector<1x4x16xf32>
    tpu.vector_store %arg4[%c0_80, %c8_81, %c0_82], %78 {strides = array<i32>} : memref<1x16x16xf32, #tpu.memory_space<vmem>>, vector<1x4x16xf32>,
    %c3 = arith.constant 3 : index
    %c0_83 = arith.constant 0 : index
    %c0_84 = arith.constant 0 : index
    %79 = vector.load %arg7[%c3, %c0_83, %c0_84] : memref<4x4x72xf32, #tpu.memory_space<vmem>>, vector<1x4x72xf32>
    %80 = vector.shape_cast %79 : vector<1x4x72xf32> to vector<4x72xf32>
    %81 = arith.truncf %80 : vector<4x72xf32> to vector<4x72xbf16>
    %cst_85 = arith.constant dense<0.000000e+00> : vector<4x16xf32>
    %82 = tpu.matmul %81, %27, %cst_85 {dimension_numbers = #tpu.dot_dimension_numbers<[1], [0], [0], [1], [0, 0, 1, 1], [], []>} : vector<4x72xbf16>, vector<72x16xbf16>, vector<4x16xf32> -> vector<4x16xf32>
    %83 = vector.broadcast %28 : vector<1x16xf32> to vector<4x16xf32>
    %84 = arith.addf %82, %83 : vector<4x16xf32>
    %cst_86 = arith.constant dense<0.000000e+00> : vector<16xf32>
    %85 = vector.multi_reduction <add>, %84, %cst_86 [0] : vector<4x16xf32> to vector<16xf32>
    %86 = vector.shape_cast %85 : vector<16xf32> to vector<1x16xf32>
    %87 = arith.addf %71, %86 : vector<1x16xf32>
    %88 = arith.mulf %84, %84 : vector<4x16xf32>
    %cst_87 = arith.constant dense<0.000000e+00> : vector<16xf32>
    %89 = vector.multi_reduction <add>, %88, %cst_87 [0] : vector<4x16xf32> to vector<16xf32>
    %90 = vector.shape_cast %89 : vector<16xf32> to vector<1x16xf32>
    %91 = arith.addf %75, %90 : vector<1x16xf32>
    %c0_88 = arith.constant 0 : index
    %c12 = arith.constant 12 : index
    %c0_89 = arith.constant 0 : index
    %92 = vector.load %arg4[%c0_88, %c12, %c0_89] : memref<1x16x16xf32, #tpu.memory_space<vmem>>, vector<1x4x16xf32>
    %93 = vector.shape_cast %92 : vector<1x4x16xf32> to vector<4x16xf32>
    %94 = vector.shape_cast %84 : vector<4x16xf32> to vector<1x4x16xf32>
    tpu.vector_store %arg4[%c0_88, %c12, %c0_89], %94 {strides = array<i32>} : memref<1x16x16xf32, #tpu.memory_space<vmem>>, vector<1x4x16xf32>,
    %c0_90 = arith.constant 0 : index
    %c0_91 = arith.constant 0 : index
    %c0_92 = arith.constant 0 : index
    %95 = vector.load %arg5[%c0_90, %c0_91, %c0_92] : memref<1x1x16xf32, #tpu.memory_space<vmem>>, vector<1x1x16xf32>
    %96 = vector.shape_cast %95 : vector<1x1x16xf32> to vector<1x16xf32>
    %97 = vector.shape_cast %87 : vector<1x16xf32> to vector<1x1x16xf32>
    tpu.vector_store %arg5[%c0_90, %c0_91, %c0_92], %97 {strides = array<i32>} : memref<1x1x16xf32, #tpu.memory_space<vmem>>, vector<1x1x16xf32>,
    %c0_93 = arith.constant 0 : index
    %c0_94 = arith.constant 0 : index
    %c0_95 = arith.constant 0 : index
    %98 = vector.load %arg6[%c0_93, %c0_94, %c0_95] : memref<1x1x16xf32, #tpu.memory_space<vmem>>, vector<1x1x16xf32>
    %99 = vector.shape_cast %98 : vector<1x1x16xf32> to vector<1x16xf32>
    %100 = vector.shape_cast %91 : vector<1x16xf32> to vector<1x1x16xf32>
    tpu.vector_store %arg6[%c0_93, %c0_94, %c0_95], %100 {strides = array<i32>} : memref<1x1x16xf32, #tpu.memory_space<vmem>>, vector<1x1x16xf32>,
    return
  }
  func.func @transform_0(%arg0: i32) -> (i32, i32, i32, i32) {
    %c0_i32 = arith.constant 0 : i32
    %c0_i32_0 = arith.constant 0 : i32
    %c0_i32_1 = arith.constant 0 : i32
    %c0_i32_2 = arith.constant 0 : i32
    return %arg0, %c0_i32, %c0_i32_0, %c0_i32_1 : i32, i32, i32, i32
  }
  func.func @transform_1(%arg0: i32) -> (i32, i32) {
    %c0_i32 = arith.constant 0 : i32
    %c0_i32_0 = arith.constant 0 : i32
    %c0_i32_1 = arith.constant 0 : i32
    return %c0_i32, %c0_i32_0 : i32, i32
  }
  func.func @transform_2(%arg0: i32) -> (i32, i32) {
    %c0_i32 = arith.constant 0 : i32
    %c0_i32_0 = arith.constant 0 : i32
    %c0_i32_1 = arith.constant 0 : i32
    return %c0_i32, %c0_i32_0 : i32, i32
  }
  func.func @transform_3(%arg0: i32) -> (i32, i32, i32) {
    %c0_i32 = arith.constant 0 : i32
    %c0_i32_0 = arith.constant 0 : i32
    %c0_i32_1 = arith.constant 0 : i32
    return %arg0, %c0_i32, %c0_i32_0 : i32, i32, i32
  }
  func.func @transform_4(%arg0: i32) -> (i32, i32, i32) {
    %c0_i32 = arith.constant 0 : i32
    %c0_i32_0 = arith.constant 0 : i32
    %c0_i32_1 = arith.constant 0 : i32
    return %arg0, %c0_i32, %c0_i32_0 : i32, i32, i32
  }
  func.func @transform_5(%arg0: i32) -> (i32, i32, i32) {
    %c0_i32 = arith.constant 0 : i32
    %c0_i32_0 = arith.constant 0 : i32
    %c0_i32_1 = arith.constant 0 : i32
    return %arg0, %c0_i32, %c0_i32_0 : i32, i32, i32
  }
}

module attributes {stable_mosaic.version = 11 : i64} {
  func.func @_cbn_res_kernel(%arg0: i32, %arg1: i32, %arg2: memref<1x4x128xf32, #tpu.memory_space<vmem>>, %arg3: memref<1x4x128xf32, #tpu.memory_space<vmem>>, %arg4: memref<1x1x128xf32, #tpu.memory_space<vmem>>, %arg5: memref<1x1x128xf32, #tpu.memory_space<vmem>>, %arg6: memref<1x4x128xf32, #tpu.memory_space<vmem>>) attributes {dimension_semantics = [#tpu.dimension_semantics<parallel>, #tpu.dimension_semantics<parallel>], iteration_bounds = array<i64: 2, 1>, scalar_prefetch = 0 : i64, scratch_operands = 0 : i64, tpu.core_type = #tpu.core_type<tc>, window_params = [{transform_indices = @transform_0, window_bounds = array<i64: 1, 4, 128>}, {transform_indices = @transform_1, window_bounds = array<i64: 1, 4, 128>}, {transform_indices = @transform_2, window_bounds = array<i64: 1, 1, 128>}, {transform_indices = @transform_3, window_bounds = array<i64: 1, 1, 128>}, {transform_indices = @transform_4, window_bounds = array<i64: 1, 4, 128>}]} {
    %c0 = arith.constant 0 : index
    %c0_0 = arith.constant 0 : index
    %c0_1 = arith.constant 0 : index
    %0 = vector.load %arg2[%c0, %c0_0, %c0_1] : memref<1x4x128xf32, #tpu.memory_space<vmem>>, vector<1x4x128xf32>
    %c0_2 = arith.constant 0 : index
    %c0_3 = arith.constant 0 : index
    %c0_4 = arith.constant 0 : index
    %1 = vector.load %arg4[%c0_2, %c0_3, %c0_4] : memref<1x1x128xf32, #tpu.memory_space<vmem>>, vector<1x1x128xf32>
    %2 = vector.broadcast %1 : vector<1x1x128xf32> to vector<1x4x128xf32>
    %3 = arith.mulf %0, %2 : vector<1x4x128xf32>
    %c0_5 = arith.constant 0 : index
    %c0_6 = arith.constant 0 : index
    %c0_7 = arith.constant 0 : index
    %4 = vector.load %arg5[%c0_5, %c0_6, %c0_7] : memref<1x1x128xf32, #tpu.memory_space<vmem>>, vector<1x1x128xf32>
    %5 = vector.broadcast %4 : vector<1x1x128xf32> to vector<1x4x128xf32>
    %6 = arith.addf %3, %5 : vector<1x4x128xf32>
    %c0_8 = arith.constant 0 : index
    %c0_9 = arith.constant 0 : index
    %c0_10 = arith.constant 0 : index
    %7 = vector.load %arg3[%c0_8, %c0_9, %c0_10] : memref<1x4x128xf32, #tpu.memory_space<vmem>>, vector<1x4x128xf32>
    %8 = arith.addf %6, %7 : vector<1x4x128xf32>
    %cst = arith.constant 0.000000e+00 : f32
    %9 = vector.broadcast %cst : f32 to vector<1x4x128xf32>
    %10 = arith.maximumf %8, %9 : vector<1x4x128xf32>
    %c0_11 = arith.constant 0 : index
    %c0_12 = arith.constant 0 : index
    %c0_13 = arith.constant 0 : index
    %11 = vector.load %arg6[%c0_11, %c0_12, %c0_13] : memref<1x4x128xf32, #tpu.memory_space<vmem>>, vector<1x4x128xf32>
    tpu.vector_store %arg6[%c0_11, %c0_12, %c0_13], %10 {strides = array<i32>} : memref<1x4x128xf32, #tpu.memory_space<vmem>>, vector<1x4x128xf32>,
    return
  }
  func.func @transform_0(%arg0: i32, %arg1: i32) -> (i32, i32, i32) {
    %c0_i32 = arith.constant 0 : i32
    %c0_i32_0 = arith.constant 0 : i32
    return %arg0, %arg1, %c0_i32 : i32, i32, i32
  }
  func.func @transform_1(%arg0: i32, %arg1: i32) -> (i32, i32, i32) {
    %c0_i32 = arith.constant 0 : i32
    %c0_i32_0 = arith.constant 0 : i32
    return %arg0, %arg1, %c0_i32 : i32, i32, i32
  }
  func.func @transform_2(%arg0: i32, %arg1: i32) -> (i32, i32, i32) {
    %c0_i32 = arith.constant 0 : i32
    %c0_i32_0 = arith.constant 0 : i32
    %c0_i32_1 = arith.constant 0 : i32
    return %arg0, %c0_i32, %c0_i32_0 : i32, i32, i32
  }
  func.func @transform_3(%arg0: i32, %arg1: i32) -> (i32, i32, i32) {
    %c0_i32 = arith.constant 0 : i32
    %c0_i32_0 = arith.constant 0 : i32
    %c0_i32_1 = arith.constant 0 : i32
    return %arg0, %c0_i32, %c0_i32_0 : i32, i32, i32
  }
  func.func @transform_4(%arg0: i32, %arg1: i32) -> (i32, i32, i32) {
    %c0_i32 = arith.constant 0 : i32
    %c0_i32_0 = arith.constant 0 : i32
    return %arg0, %arg1, %c0_i32 : i32, i32, i32
  }
}

module attributes {stable_mosaic.version = 11 : i64} {
  func.func @_cond_kernel(%arg0: i32, %arg1: memref<2x32xf32, #tpu.memory_space<vmem>>, %arg2: memref<32x32xf32, #tpu.memory_space<vmem>>, %arg3: memref<1x32xf32, #tpu.memory_space<vmem>>, %arg4: memref<2x1x16xf32, #tpu.memory_space<vmem>>, %arg5: memref<2x1x16xf32, #tpu.memory_space<vmem>>, %arg6: memref<2x16xf32, #tpu.memory_space<vmem>>, %arg7: memref<2x16xf32, #tpu.memory_space<vmem>>) attributes {dimension_semantics = [#tpu.dimension_semantics<arbitrary>], iteration_bounds = array<i64: 1>, scalar_prefetch = 0 : i64, scratch_operands = 0 : i64, tpu.core_type = #tpu.core_type<tc>, window_params = [{pipeline_mode = #tpu.pipeline_mode<synchronous>, transform_indices = @transform_0, window_bounds = array<i64: 2, 32>}, {pipeline_mode = #tpu.pipeline_mode<synchronous>, transform_indices = @transform_1, window_bounds = array<i64: 32, 32>}, {pipeline_mode = #tpu.pipeline_mode<synchronous>, transform_indices = @transform_2, window_bounds = array<i64: 1, 32>}, {pipeline_mode = #tpu.pipeline_mode<synchronous>, transform_indices = @transform_3, window_bounds = array<i64: 2, 1, 16>}, {pipeline_mode = #tpu.pipeline_mode<synchronous>, transform_indices = @transform_4, window_bounds = array<i64: 2, 1, 16>}, {pipeline_mode = #tpu.pipeline_mode<synchronous>, transform_indices = @transform_5, window_bounds = array<i64: 2, 16>}, {pipeline_mode = #tpu.pipeline_mode<synchronous>, transform_indices = @transform_6, window_bounds = array<i64: 2, 16>}]} {
    %c0 = arith.constant 0 : index
    %c0_0 = arith.constant 0 : index
    %c0_1 = arith.constant 0 : index
    %0 = vector.load %arg4[%c0, %c0_0, %c0_1] : memref<2x1x16xf32, #tpu.memory_space<vmem>>, vector<2x1x16xf32>
    %cst = arith.constant dense<0.000000e+00> : vector<1x16xf32>
    %1 = vector.multi_reduction <add>, %0, %cst [0] : vector<2x1x16xf32> to vector<1x16xf32>
    %cst_2 = arith.constant 3.200000e+01 : f32
    %2 = vector.broadcast %cst_2 : f32 to vector<1x16xf32>
    %3 = arith.divf %1, %2 : vector<1x16xf32>
    %c0_3 = arith.constant 0 : index
    %c0_4 = arith.constant 0 : index
    %c0_5 = arith.constant 0 : index
    %4 = vector.load %arg5[%c0_3, %c0_4, %c0_5] : memref<2x1x16xf32, #tpu.memory_space<vmem>>, vector<2x1x16xf32>
    %cst_6 = arith.constant dense<0.000000e+00> : vector<1x16xf32>
    %5 = vector.multi_reduction <add>, %4, %cst_6 [0] : vector<2x1x16xf32> to vector<1x16xf32>
    %cst_7 = arith.constant 3.200000e+01 : f32
    %6 = vector.broadcast %cst_7 : f32 to vector<1x16xf32>
    %7 = arith.divf %5, %6 : vector<1x16xf32>
    %8 = arith.mulf %3, %3 : vector<1x16xf32>
    %9 = arith.subf %7, %8 : vector<1x16xf32>
    %cst_8 = arith.constant 0.000000e+00 : f32
    %10 = vector.broadcast %cst_8 : f32 to vector<1x16xf32>
    %11 = arith.maximumf %9, %10 : vector<1x16xf32>
    %cst_9 = arith.constant 9.99999974E-6 : f32
    %12 = vector.broadcast %cst_9 : f32 to vector<1x16xf32>
    %13 = arith.addf %11, %12 : vector<1x16xf32>
    %14 = math.rsqrt %13 : vector<1x16xf32>
    %c0_10 = arith.constant 0 : index
    %c0_11 = arith.constant 0 : index
    %15 = vector.load %arg1[%c0_10, %c0_11] : memref<2x32xf32, #tpu.memory_space<vmem>>, vector<2x32xf32>
    %c0_12 = arith.constant 0 : index
    %c0_13 = arith.constant 0 : index
    %16 = vector.load %arg2[%c0_12, %c0_13] : memref<32x32xf32, #tpu.memory_space<vmem>>, vector<32x32xf32>
    %cst_14 = arith.constant dense<0.000000e+00> : vector<2x32xf32>
    %17 = tpu.matmul %15, %16, %cst_14 {dimension_numbers = #tpu.dot_dimension_numbers<[1], [0], [0], [1], [0, 0, 1, 1], [], []>} : vector<2x32xf32>, vector<32x32xf32>, vector<2x32xf32> -> vector<2x32xf32>
    %c0_15 = arith.constant 0 : index
    %c0_16 = arith.constant 0 : index
    %18 = vector.load %arg3[%c0_15, %c0_16] : memref<1x32xf32, #tpu.memory_space<vmem>>, vector<1x32xf32>
    %19 = vector.broadcast %18 : vector<1x32xf32> to vector<2x32xf32>
    %20 = arith.addf %17, %19 : vector<2x32xf32>
    %21 = vector.extract_strided_slice %20 {offsets = [0, 0], sizes = [2, 16], strides = [1, 1]} : vector<2x32xf32> to vector<2x16xf32>
    %22 = vector.extract_strided_slice %20 {offsets = [0, 16], sizes = [2, 16], strides = [1, 1]} : vector<2x32xf32> to vector<2x16xf32>
    %23 = vector.broadcast %14 : vector<1x16xf32> to vector<2x16xf32>
    %24 = arith.mulf %21, %23 : vector<2x16xf32>
    %25 = vector.broadcast %3 : vector<1x16xf32> to vector<2x16xf32>
    %26 = arith.mulf %25, %24 : vector<2x16xf32>
    %27 = arith.subf %22, %26 : vector<2x16xf32>
    %c0_17 = arith.constant 0 : index
    %c0_18 = arith.constant 0 : index
    %28 = vector.load %arg6[%c0_17, %c0_18] : memref<2x16xf32, #tpu.memory_space<vmem>>, vector<2x16xf32>
    tpu.vector_store %arg6[%c0_17, %c0_18], %24 {strides = array<i32>} : memref<2x16xf32, #tpu.memory_space<vmem>>, vector<2x16xf32>,
    %c0_19 = arith.constant 0 : index
    %c0_20 = arith.constant 0 : index
    %29 = vector.load %arg7[%c0_19, %c0_20] : memref<2x16xf32, #tpu.memory_space<vmem>>, vector<2x16xf32>
    tpu.vector_store %arg7[%c0_19, %c0_20], %27 {strides = array<i32>} : memref<2x16xf32, #tpu.memory_space<vmem>>, vector<2x16xf32>,
    return
  }
  func.func @transform_0(%arg0: i32) -> (i32, i32) {
    %c0_i32 = arith.constant 0 : i32
    %c0_i32_0 = arith.constant 0 : i32
    %c0_i32_1 = arith.constant 0 : i32
    return %c0_i32, %c0_i32_0 : i32, i32
  }
  func.func @transform_1(%arg0: i32) -> (i32, i32) {
    %c0_i32 = arith.constant 0 : i32
    %c0_i32_0 = arith.constant 0 : i32
    %c0_i32_1 = arith.constant 0 : i32
    return %c0_i32, %c0_i32_0 : i32, i32
  }
  func.func @transform_2(%arg0: i32) -> (i32, i32) {
    %c0_i32 = arith.constant 0 : i32
    %c0_i32_0 = arith.constant 0 : i32
    %c0_i32_1 = arith.constant 0 : i32
    return %c0_i32, %c0_i32_0 : i32, i32
  }
  func.func @transform_3(%arg0: i32) -> (i32, i32, i32) {
    %c0_i32 = arith.constant 0 : i32
    %c0_i32_0 = arith.constant 0 : i32
    %c0_i32_1 = arith.constant 0 : i32
    %c0_i32_2 = arith.constant 0 : i32
    return %c0_i32, %c0_i32_0, %c0_i32_1 : i32, i32, i32
  }
  func.func @transform_4(%arg0: i32) -> (i32, i32, i32) {
    %c0_i32 = arith.constant 0 : i32
    %c0_i32_0 = arith.constant 0 : i32
    %c0_i32_1 = arith.constant 0 : i32
    %c0_i32_2 = arith.constant 0 : i32
    return %c0_i32, %c0_i32_0, %c0_i32_1 : i32, i32, i32
  }
  func.func @transform_5(%arg0: i32) -> (i32, i32) {
    %c0_i32 = arith.constant 0 : i32
    %c0_i32_0 = arith.constant 0 : i32
    %c0_i32_1 = arith.constant 0 : i32
    return %c0_i32, %c0_i32_0 : i32, i32
  }
  func.func @transform_6(%arg0: i32) -> (i32, i32) {
    %c0_i32 = arith.constant 0 : i32
    %c0_i32_0 = arith.constant 0 : i32
    %c0_i32_1 = arith.constant 0 : i32
    return %c0_i32, %c0_i32_0 : i32, i32
  }
}

module attributes {stable_mosaic.version = 11 : i64} {
  func.func @_cbn_kernel(%arg0: i32, %arg1: i32, %arg2: memref<1x2x128xf32, #tpu.memory_space<vmem>>, %arg3: memref<1x1x128xf32, #tpu.memory_space<vmem>>, %arg4: memref<1x1x128xf32, #tpu.memory_space<vmem>>, %arg5: memref<1x2x128xf32, #tpu.memory_space<vmem>>) attributes {dimension_semantics = [#tpu.dimension_semantics<parallel>, #tpu.dimension_semantics<parallel>], iteration_bounds = array<i64: 2, 1>, scalar_prefetch = 0 : i64, scratch_operands = 0 : i64, tpu.core_type = #tpu.core_type<tc>, window_params = [{transform_indices = @transform_0, window_bounds = array<i64: 1, 2, 128>}, {transform_indices = @transform_1, window_bounds = array<i64: 1, 1, 128>}, {transform_indices = @transform_2, window_bounds = array<i64: 1, 1, 128>}, {transform_indices = @transform_3, window_bounds = array<i64: 1, 2, 128>}]} {
    %c0 = arith.constant 0 : index
    %c0_0 = arith.constant 0 : index
    %c0_1 = arith.constant 0 : index
    %0 = vector.load %arg2[%c0, %c0_0, %c0_1] : memref<1x2x128xf32, #tpu.memory_space<vmem>>, vector<1x2x128xf32>
    %c0_2 = arith.constant 0 : index
    %c0_3 = arith.constant 0 : index
    %c0_4 = arith.constant 0 : index
    %1 = vector.load %arg3[%c0_2, %c0_3, %c0_4] : memref<1x1x128xf32, #tpu.memory_space<vmem>>, vector<1x1x128xf32>
    %2 = vector.broadcast %1 : vector<1x1x128xf32> to vector<1x2x128xf32>
    %3 = arith.mulf %0, %2 : vector<1x2x128xf32>
    %c0_5 = arith.constant 0 : index
    %c0_6 = arith.constant 0 : index
    %c0_7 = arith.constant 0 : index
    %4 = vector.load %arg4[%c0_5, %c0_6, %c0_7] : memref<1x1x128xf32, #tpu.memory_space<vmem>>, vector<1x1x128xf32>
    %5 = vector.broadcast %4 : vector<1x1x128xf32> to vector<1x2x128xf32>
    %6 = arith.addf %3, %5 : vector<1x2x128xf32>
    %cst = arith.constant 0.000000e+00 : f32
    %7 = vector.broadcast %cst : f32 to vector<1x2x128xf32>
    %8 = arith.maximumf %6, %7 : vector<1x2x128xf32>
    %c0_8 = arith.constant 0 : index
    %c0_9 = arith.constant 0 : index
    %c0_10 = arith.constant 0 : index
    %9 = vector.load %arg5[%c0_8, %c0_9, %c0_10] : memref<1x2x128xf32, #tpu.memory_space<vmem>>, vector<1x2x128xf32>
    tpu.vector_store %arg5[%c0_8, %c0_9, %c0_10], %8 {strides = array<i32>} : memref<1x2x128xf32, #tpu.memory_space<vmem>>, vector<1x2x128xf32>,
    return
  }
  func.func @transform_0(%arg0: i32, %arg1: i32) -> (i32, i32, i32) {
    %c0_i32 = arith.constant 0 : i32
    %c0_i32_0 = arith.constant 0 : i32
    return %arg0, %arg1, %c0_i32 : i32, i32, i32
  }
  func.func @transform_1(%arg0: i32, %arg1: i32) -> (i32, i32, i32) {
    %c0_i32 = arith.constant 0 : i32
    %c0_i32_0 = arith.constant 0 : i32
    %c0_i32_1 = arith.constant 0 : i32
    return %arg0, %c0_i32, %c0_i32_0 : i32, i32, i32
  }
  func.func @transform_2(%arg0: i32, %arg1: i32) -> (i32, i32, i32) {
    %c0_i32 = arith.constant 0 : i32
    %c0_i32_0 = arith.constant 0 : i32
    %c0_i32_1 = arith.constant 0 : i32
    return %arg0, %c0_i32, %c0_i32_0 : i32, i32, i32
  }
  func.func @transform_3(%arg0: i32, %arg1: i32) -> (i32, i32, i32) {
    %c0_i32 = arith.constant 0 : i32
    %c0_i32_0 = arith.constant 0 : i32
    return %arg0, %arg1, %c0_i32 : i32, i32, i32
  }
}

module attributes {stable_mosaic.version = 11 : i64} {
  func.func @_conv_kernel(%arg0: i32, %arg1: memref<6x1x6x16xf32, #tpu.memory_space<vmem>>, %arg2: memref<144x16xbf16, #tpu.memory_space<vmem>>, %arg3: memref<1x16xf32, #tpu.memory_space<vmem>>, %arg4: memref<1x16x16xf32, #tpu.memory_space<vmem>>, %arg5: memref<1x1x16xf32, #tpu.memory_space<vmem>>, %arg6: memref<1x1x16xf32, #tpu.memory_space<vmem>>, %arg7: memref<4x4x144xf32, #tpu.memory_space<vmem>>) attributes {dimension_semantics = [#tpu.dimension_semantics<parallel>], iteration_bounds = array<i64: 2>, scalar_prefetch = 0 : i64, scratch_operands = 1 : i64, tpu.core_type = #tpu.core_type<tc>, window_params = [{transform_indices = @transform_0, window_bounds = array<i64: 6, 1, 6, 16>}, {pipeline_mode = #tpu.pipeline_mode<synchronous>, transform_indices = @transform_1, window_bounds = array<i64: 144, 16>}, {pipeline_mode = #tpu.pipeline_mode<synchronous>, transform_indices = @transform_2, window_bounds = array<i64: 1, 16>}, {transform_indices = @transform_3, window_bounds = array<i64: 1, 16, 16>}, {transform_indices = @transform_4, window_bounds = array<i64: 1, 1, 16>}, {transform_indices = @transform_5, window_bounds = array<i64: 1, 1, 16>}]} {
    %c0 = arith.constant 0 : index
    %c0_0 = arith.constant 0 : index
    %c0_1 = arith.constant 0 : index
    %c0_2 = arith.constant 0 : index
    %0 = vector.load %arg1[%c0, %c0_0, %c0_1, %c0_2] : memref<6x1x6x16xf32, #tpu.memory_space<vmem>>, vector<4x1x4x16xf32>
    %1 = vector.shape_cast %0 : vector<4x1x4x16xf32> to vector<4x4x16xf32>
    %c0_3 = arith.constant 0 : index
    %c0_4 = arith.constant 0 : index
    %c0_5 = arith.constant 0 : index
    %2 = vector.load %arg7[%c0_3, %c0_4, %c0_5] : memref<4x4x144xf32, #tpu.memory_space<vmem>>, vector<4x4x16xf32>
    tpu.vector_store %arg7[%c0_3, %c0_4, %c0_5], %1 {strides = array<i32>} : memref<4x4x144xf32, #tpu.memory_space<vmem>>, vector<4x4x16xf32>,
    %c0_6 = arith.constant 0 : index
    %c0_7 = arith.constant 0 : index
    %c1 = arith.constant 1 : index
    %c0_8 = arith.constant 0 : index
    %3 = vector.load %arg1[%c0_6, %c0_7, %c1, %c0_8] : memref<6x1x6x16xf32, #tpu.memory_space<vmem>>, vector<4x1x4x16xf32>
    %4 = vector.shape_cast %3 : vector<4x1x4x16xf32> to vector<4x4x16xf32>
    %c0_9 = arith.constant 0 : index
    %c0_10 = arith.constant 0 : index
    %c16 = arith.constant 16 : index
    %5 = vector.load %arg7[%c0_9, %c0_10, %c16] : memref<4x4x144xf32, #tpu.memory_space<vmem>>, vector<4x4x16xf32>
    tpu.vector_store %arg7[%c0_9, %c0_10, %c16], %4 {strides = array<i32>} : memref<4x4x144xf32, #tpu.memory_space<vmem>>, vector<4x4x16xf32>,
    %c0_11 = arith.constant 0 : index
    %c0_12 = arith.constant 0 : index
    %c2 = arith.constant 2 : index
    %c0_13 = arith.constant 0 : index
    %6 = vector.load %arg1[%c0_11, %c0_12, %c2, %c0_13] : memref<6x1x6x16xf32, #tpu.memory_space<vmem>>, vector<4x1x4x16xf32>
    %7 = vector.shape_cast %6 : vector<4x1x4x16xf32> to vector<4x4x16xf32>
    %c0_14 = arith.constant 0 : index
    %c0_15 = arith.constant 0 : index
    %c32 = arith.constant 32 : index
    %8 = vector.load %arg7[%c0_14, %c0_15, %c32] : memref<4x4x144xf32, #tpu.memory_space<vmem>>, vector<4x4x16xf32>
    tpu.vector_store %arg7[%c0_14, %c0_15, %c32], %7 {strides = array<i32>} : memref<4x4x144xf32, #tpu.memory_space<vmem>>, vector<4x4x16xf32>,
    %c1_16 = arith.constant 1 : index
    %c0_17 = arith.constant 0 : index
    %c0_18 = arith.constant 0 : index
    %c0_19 = arith.constant 0 : index
    %9 = vector.load %arg1[%c1_16, %c0_17, %c0_18, %c0_19] : memref<6x1x6x16xf32, #tpu.memory_space<vmem>>, vector<4x1x4x16xf32>
    %10 = vector.shape_cast %9 : vector<4x1x4x16xf32> to vector<4x4x16xf32>
    %c0_20 = arith.constant 0 : index
    %c0_21 = arith.constant 0 : index
    %c48 = arith.constant 48 : index
    %11 = vector.load %arg7[%c0_20, %c0_21, %c48] : memref<4x4x144xf32, #tpu.memory_space<vmem>>, vector<4x4x16xf32>
    tpu.vector_store %arg7[%c0_20, %c0_21, %c48], %10 {strides = array<i32>} : memref<4x4x144xf32, #tpu.memory_space<vmem>>, vector<4x4x16xf32>,
    %c1_22 = arith.constant 1 : index
    %c0_23 = arith.constant 0 : index
    %c1_24 = arith.constant 1 : index
    %c0_25 = arith.constant 0 : index
    %12 = vector.load %arg1[%c1_22, %c0_23, %c1_24, %c0_25] : memref<6x1x6x16xf32, #tpu.memory_space<vmem>>, vector<4x1x4x16xf32>
    %13 = vector.shape_cast %12 : vector<4x1x4x16xf32> to vector<4x4x16xf32>
    %c0_26 = arith.constant 0 : index
    %c0_27 = arith.constant 0 : index
    %c64 = arith.constant 64 : index
    %14 = vector.load %arg7[%c0_26, %c0_27, %c64] : memref<4x4x144xf32, #tpu.memory_space<vmem>>, vector<4x4x16xf32>
    tpu.vector_store %arg7[%c0_26, %c0_27, %c64], %13 {strides = array<i32>} : memref<4x4x144xf32, #tpu.memory_space<vmem>>, vector<4x4x16xf32>,
    %c1_28 = arith.constant 1 : index
    %c0_29 = arith.constant 0 : index
    %c2_30 = arith.constant 2 : index
    %c0_31 = arith.constant 0 : index
    %15 = vector.load %arg1[%c1_28, %c0_29, %c2_30, %c0_31] : memref<6x1x6x16xf32, #tpu.memory_space<vmem>>, vector<4x1x4x16xf32>
    %16 = vector.shape_cast %15 : vector<4x1x4x16xf32> to vector<4x4x16xf32>
    %c0_32 = arith.constant 0 : index
    %c0_33 = arith.constant 0 : index
    %c80 = arith.constant 80 : index
    %17 = vector.load %arg7[%c0_32, %c0_33, %c80] : memref<4x4x144xf32, #tpu.memory_space<vmem>>, vector<4x4x16xf32>
    tpu.vector_store %arg7[%c0_32, %c0_33, %c80], %16 {strides = array<i32>} : memref<4x4x144xf32, #tpu.memory_space<vmem>>, vector<4x4x16xf32>,
    %c2_34 = arith.constant 2 : index
    %c0_35 = arith.constant 0 : index
    %c0_36 = arith.constant 0 : index
    %c0_37 = arith.constant 0 : index
    %18 = vector.load %arg1[%c2_34, %c0_35, %c0_36, %c0_37] : memref<6x1x6x16xf32, #tpu.memory_space<vmem>>, vector<4x1x4x16xf32>
    %19 = vector.shape_cast %18 : vector<4x1x4x16xf32> to vector<4x4x16xf32>
    %c0_38 = arith.constant 0 : index
    %c0_39 = arith.constant 0 : index
    %c96 = arith.constant 96 : index
    %20 = vector.load %arg7[%c0_38, %c0_39, %c96] : memref<4x4x144xf32, #tpu.memory_space<vmem>>, vector<4x4x16xf32>
    tpu.vector_store %arg7[%c0_38, %c0_39, %c96], %19 {strides = array<i32>} : memref<4x4x144xf32, #tpu.memory_space<vmem>>, vector<4x4x16xf32>,
    %c2_40 = arith.constant 2 : index
    %c0_41 = arith.constant 0 : index
    %c1_42 = arith.constant 1 : index
    %c0_43 = arith.constant 0 : index
    %21 = vector.load %arg1[%c2_40, %c0_41, %c1_42, %c0_43] : memref<6x1x6x16xf32, #tpu.memory_space<vmem>>, vector<4x1x4x16xf32>
    %22 = vector.shape_cast %21 : vector<4x1x4x16xf32> to vector<4x4x16xf32>
    %c0_44 = arith.constant 0 : index
    %c0_45 = arith.constant 0 : index
    %c112 = arith.constant 112 : index
    %23 = vector.load %arg7[%c0_44, %c0_45, %c112] : memref<4x4x144xf32, #tpu.memory_space<vmem>>, vector<4x4x16xf32>
    tpu.vector_store %arg7[%c0_44, %c0_45, %c112], %22 {strides = array<i32>} : memref<4x4x144xf32, #tpu.memory_space<vmem>>, vector<4x4x16xf32>,
    %c2_46 = arith.constant 2 : index
    %c0_47 = arith.constant 0 : index
    %c2_48 = arith.constant 2 : index
    %c0_49 = arith.constant 0 : index
    %24 = vector.load %arg1[%c2_46, %c0_47, %c2_48, %c0_49] : memref<6x1x6x16xf32, #tpu.memory_space<vmem>>, vector<4x1x4x16xf32>
    %25 = vector.shape_cast %24 : vector<4x1x4x16xf32> to vector<4x4x16xf32>
    %c0_50 = arith.constant 0 : index
    %c0_51 = arith.constant 0 : index
    %c128 = arith.constant 128 : index
    %26 = vector.load %arg7[%c0_50, %c0_51, %c128] : memref<4x4x144xf32, #tpu.memory_space<vmem>>, vector<4x4x16xf32>
    tpu.vector_store %arg7[%c0_50, %c0_51, %c128], %25 {strides = array<i32>} : memref<4x4x144xf32, #tpu.memory_space<vmem>>, vector<4x4x16xf32>,
    %c0_52 = arith.constant 0 : index
    %c0_53 = arith.constant 0 : index
    %27 = vector.load %arg2[%c0_52, %c0_53] : memref<144x16xbf16, #tpu.memory_space<vmem>>, vector<144x16xbf16>
    %c0_54 = arith.constant 0 : index
    %c0_55 = arith.constant 0 : index
    %28 = vector.load %arg3[%c0_54, %c0_55] : memref<1x16xf32, #tpu.memory_space<vmem>>, vector<1x16xf32>
    %cst = arith.constant 0.000000e+00 : f32
    %29 = vector.broadcast %cst : f32 to vector<1x16xf32>
    %cst_56 = arith.constant 0.000000e+00 : f32
    %30 = vector.broadcast %cst_56 : f32 to vector<1x16xf32>
    %c0_57 = arith.constant 0 : index
    %c0_58 = arith.constant 0 : index
    %c0_59 = arith.constant 0 : index
    %31 = vector.load %arg7[%c0_57, %c0_58, %c0_59] : memref<4x4x144xf32, #tpu.memory_space<vmem>>, vector<1x4x144xf32>
    %32 = vector.shape_cast %31 : vector<1x4x144xf32> to vector<4x144xf32>
    %33 = arith.truncf %32 : vector<4x144xf32> to vector<4x144xbf16>
    %cst_60 = arith.constant dense<0.000000e+00> : vector<4x16xf32>
    %34 = tpu.matmul %33, %27, %cst_60 {dimension_numbers = #tpu.dot_dimension_numbers<[1], [0], [0], [1], [0, 0, 1, 1], [], []>} : vector<4x144xbf16>, vector<144x16xbf16>, vector<4x16xf32> -> vector<4x16xf32>
    %35 = vector.broadcast %28 : vector<1x16xf32> to vector<4x16xf32>
    %36 = arith.addf %34, %35 : vector<4x16xf32>
    %cst_61 = arith.constant dense<0.000000e+00> : vector<16xf32>
    %37 = vector.multi_reduction <add>, %36, %cst_61 [0] : vector<4x16xf32> to vector<16xf32>
    %38 = vector.shape_cast %37 : vector<16xf32> to vector<1x16xf32>
    %39 = arith.addf %29, %38 : vector<1x16xf32>
    %40 = arith.mulf %36, %36 : vector<4x16xf32>
    %cst_62 = arith.constant dense<0.000000e+00> : vector<16xf32>
    %41 = vector.multi_reduction <add>, %40, %cst_62 [0] : vector<4x16xf32> to vector<16xf32>
    %42 = vector.shape_cast %41 : vector<16xf32> to vector<1x16xf32>
    %43 = arith.addf %30, %42 : vector<1x16xf32>
    %c0_63 = arith.constant 0 : index
    %c0_64 = arith.constant 0 : index
    %c0_65 = arith.constant 0 : index
    %44 = vector.load %arg4[%c0_63, %c0_64, %c0_65] : memref<1x16x16xf32, #tpu.memory_space<vmem>>, vector<1x4x16xf32>
    %45 = vector.shape_cast %44 : vector<1x4x16xf32> to vector<4x16xf32>
    %46 = vector.shape_cast %36 : vector<4x16xf32> to vector<1x4x16xf32>
    tpu.vector_store %arg4[%c0_63, %c0_64, %c0_65], %46 {strides = array<i32>} : memref<1x16x16xf32, #tpu.memory_space<vmem>>, vector<1x4x16xf32>,
    %c1_66 = arith.constant 1 : index
    %c0_67 = arith.constant 0 : index
    %c0_68 = arith.constant 0 : index
    %47 = vector.load %arg7[%c1_66, %c0_67, %c0_68] : memref<4x4x144xf32, #tpu.memory_space<vmem>>, vector<1x4x144xf32>
    %48 = vector.shape_cast %47 : vector<1x4x144xf32> to vector<4x144xf32>
    %49 = arith.truncf %48 : vector<4x144xf32> to vector<4x144xbf16>
    %cst_69 = arith.constant dense<0.000000e+00> : vector<4x16xf32>
    %50 = tpu.matmul %49, %27, %cst_69 {dimension_numbers = #tpu.dot_dimension_numbers<[1], [0], [0], [1], [0, 0, 1, 1], [], []>} : vector<4x144xbf16>, vector<144x16xbf16>, vector<4x16xf32> -> vector<4x16xf32>
    %51 = vector.broadcast %28 : vector<1x16xf32> to vector<4x16xf32>
    %52 = arith.addf %50, %51 : vector<4x16xf32>
    %cst_70 = arith.constant dense<0.000000e+00> : vector<16xf32>
    %53 = vector.multi_reduction <add>, %52, %cst_70 [0] : vector<4x16xf32> to vector<16xf32>
    %54 = vector.shape_cast %53 : vector<16xf32> to vector<1x16xf32>
    %55 = arith.addf %39, %54 : vector<1x16xf32>
    %56 = arith.mulf %52, %52 : vector<4x16xf32>
    %cst_71 = arith.constant dense<0.000000e+00> : vector<16xf32>
    %57 = vector.multi_reduction <add>, %56, %cst_71 [0] : vector<4x16xf32> to vector<16xf32>
    %58 = vector.shape_cast %57 : vector<16xf32> to vector<1x16xf32>
    %59 = arith.addf %43, %58 : vector<1x16xf32>
    %c0_72 = arith.constant 0 : index
    %c4 = arith.constant 4 : index
    %c0_73 = arith.constant 0 : index
    %60 = vector.load %arg4[%c0_72, %c4, %c0_73] : memref<1x16x16xf32, #tpu.memory_space<vmem>>, vector<1x4x16xf32>
    %61 = vector.shape_cast %60 : vector<1x4x16xf32> to vector<4x16xf32>
    %62 = vector.shape_cast %52 : vector<4x16xf32> to vector<1x4x16xf32>
    tpu.vector_store %arg4[%c0_72, %c4, %c0_73], %62 {strides = array<i32>} : memref<1x16x16xf32, #tpu.memory_space<vmem>>, vector<1x4x16xf32>,
    %c2_74 = arith.constant 2 : index
    %c0_75 = arith.constant 0 : index
    %c0_76 = arith.constant 0 : index
    %63 = vector.load %arg7[%c2_74, %c0_75, %c0_76] : memref<4x4x144xf32, #tpu.memory_space<vmem>>, vector<1x4x144xf32>
    %64 = vector.shape_cast %63 : vector<1x4x144xf32> to vector<4x144xf32>
    %65 = arith.truncf %64 : vector<4x144xf32> to vector<4x144xbf16>
    %cst_77 = arith.constant dense<0.000000e+00> : vector<4x16xf32>
    %66 = tpu.matmul %65, %27, %cst_77 {dimension_numbers = #tpu.dot_dimension_numbers<[1], [0], [0], [1], [0, 0, 1, 1], [], []>} : vector<4x144xbf16>, vector<144x16xbf16>, vector<4x16xf32> -> vector<4x16xf32>
    %67 = vector.broadcast %28 : vector<1x16xf32> to vector<4x16xf32>
    %68 = arith.addf %66, %67 : vector<4x16xf32>
    %cst_78 = arith.constant dense<0.000000e+00> : vector<16xf32>
    %69 = vector.multi_reduction <add>, %68, %cst_78 [0] : vector<4x16xf32> to vector<16xf32>
    %70 = vector.shape_cast %69 : vector<16xf32> to vector<1x16xf32>
    %71 = arith.addf %55, %70 : vector<1x16xf32>
    %72 = arith.mulf %68, %68 : vector<4x16xf32>
    %cst_79 = arith.constant dense<0.000000e+00> : vector<16xf32>
    %73 = vector.multi_reduction <add>, %72, %cst_79 [0] : vector<4x16xf32> to vector<16xf32>
    %74 = vector.shape_cast %73 : vector<16xf32> to vector<1x16xf32>
    %75 = arith.addf %59, %74 : vector<1x16xf32>
    %c0_80 = arith.constant 0 : index
    %c8 = arith.constant 8 : index
    %c0_81 = arith.constant 0 : index
    %76 = vector.load %arg4[%c0_80, %c8, %c0_81] : memref<1x16x16xf32, #tpu.memory_space<vmem>>, vector<1x4x16xf32>
    %77 = vector.shape_cast %76 : vector<1x4x16xf32> to vector<4x16xf32>
    %78 = vector.shape_cast %68 : vector<4x16xf32> to vector<1x4x16xf32>
    tpu.vector_store %arg4[%c0_80, %c8, %c0_81], %78 {strides = array<i32>} : memref<1x16x16xf32, #tpu.memory_space<vmem>>, vector<1x4x16xf32>,
    %c3 = arith.constant 3 : index
    %c0_82 = arith.constant 0 : index
    %c0_83 = arith.constant 0 : index
    %79 = vector.load %arg7[%c3, %c0_82, %c0_83] : memref<4x4x144xf32, #tpu.memory_space<vmem>>, vector<1x4x144xf32>
    %80 = vector.shape_cast %79 : vector<1x4x144xf32> to vector<4x144xf32>
    %81 = arith.truncf %80 : vector<4x144xf32> to vector<4x144xbf16>
    %cst_84 = arith.constant dense<0.000000e+00> : vector<4x16xf32>
    %82 = tpu.matmul %81, %27, %cst_84 {dimension_numbers = #tpu.dot_dimension_numbers<[1], [0], [0], [1], [0, 0, 1, 1], [], []>} : vector<4x144xbf16>, vector<144x16xbf16>, vector<4x16xf32> -> vector<4x16xf32>
    %83 = vector.broadcast %28 : vector<1x16xf32> to vector<4x16xf32>
    %84 = arith.addf %82, %83 : vector<4x16xf32>
    %cst_85 = arith.constant dense<0.000000e+00> : vector<16xf32>
    %85 = vector.multi_reduction <add>, %84, %cst_85 [0] : vector<4x16xf32> to vector<16xf32>
    %86 = vector.shape_cast %85 : vector<16xf32> to vector<1x16xf32>
    %87 = arith.addf %71, %86 : vector<1x16xf32>
    %88 = arith.mulf %84, %84 : vector<4x16xf32>
    %cst_86 = arith.constant dense<0.000000e+00> : vector<16xf32>
    %89 = vector.multi_reduction <add>, %88, %cst_86 [0] : vector<4x16xf32> to vector<16xf32>
    %90 = vector.shape_cast %89 : vector<16xf32> to vector<1x16xf32>
    %91 = arith.addf %75, %90 : vector<1x16xf32>
    %c0_87 = arith.constant 0 : index
    %c12 = arith.constant 12 : index
    %c0_88 = arith.constant 0 : index
    %92 = vector.load %arg4[%c0_87, %c12, %c0_88] : memref<1x16x16xf32, #tpu.memory_space<vmem>>, vector<1x4x16xf32>
    %93 = vector.shape_cast %92 : vector<1x4x16xf32> to vector<4x16xf32>
    %94 = vector.shape_cast %84 : vector<4x16xf32> to vector<1x4x16xf32>
    tpu.vector_store %arg4[%c0_87, %c12, %c0_88], %94 {strides = array<i32>} : memref<1x16x16xf32, #tpu.memory_space<vmem>>, vector<1x4x16xf32>,
    %c0_89 = arith.constant 0 : index
    %c0_90 = arith.constant 0 : index
    %c0_91 = arith.constant 0 : index
    %95 = vector.load %arg5[%c0_89, %c0_90, %c0_91] : memref<1x1x16xf32, #tpu.memory_space<vmem>>, vector<1x1x16xf32>
    %96 = vector.shape_cast %95 : vector<1x1x16xf32> to vector<1x16xf32>
    %97 = vector.shape_cast %87 : vector<1x16xf32> to vector<1x1x16xf32>
    tpu.vector_store %arg5[%c0_89, %c0_90, %c0_91], %97 {strides = array<i32>} : memref<1x1x16xf32, #tpu.memory_space<vmem>>, vector<1x1x16xf32>,
    %c0_92 = arith.constant 0 : index
    %c0_93 = arith.constant 0 : index
    %c0_94 = arith.constant 0 : index
    %98 = vector.load %arg6[%c0_92, %c0_93, %c0_94] : memref<1x1x16xf32, #tpu.memory_space<vmem>>, vector<1x1x16xf32>
    %99 = vector.shape_cast %98 : vector<1x1x16xf32> to vector<1x16xf32>
    %100 = vector.shape_cast %91 : vector<1x16xf32> to vector<1x1x16xf32>
    tpu.vector_store %arg6[%c0_92, %c0_93, %c0_94], %100 {strides = array<i32>} : memref<1x1x16xf32, #tpu.memory_space<vmem>>, vector<1x1x16xf32>,
    return
  }
  func.func @transform_0(%arg0: i32) -> (i32, i32, i32, i32) {
    %c0_i32 = arith.constant 0 : i32
    %c0_i32_0 = arith.constant 0 : i32
    %c0_i32_1 = arith.constant 0 : i32
    %c0_i32_2 = arith.constant 0 : i32
    return %arg0, %c0_i32, %c0_i32_0, %c0_i32_1 : i32, i32, i32, i32
  }
  func.func @transform_1(%arg0: i32) -> (i32, i32) {
    %c0_i32 = arith.constant 0 : i32
    %c0_i32_0 = arith.constant 0 : i32
    %c0_i32_1 = arith.constant 0 : i32
    return %c0_i32, %c0_i32_0 : i32, i32
  }
  func.func @transform_2(%arg0: i32) -> (i32, i32) {
    %c0_i32 = arith.constant 0 : i32
    %c0_i32_0 = arith.constant 0 : i32
    %c0_i32_1 = arith.constant 0 : i32
    return %c0_i32, %c0_i32_0 : i32, i32
  }
  func.func @transform_3(%arg0: i32) -> (i32, i32, i32) {
    %c0_i32 = arith.constant 0 : i32
    %c0_i32_0 = arith.constant 0 : i32
    %c0_i32_1 = arith.constant 0 : i32
    return %arg0, %c0_i32, %c0_i32_0 : i32, i32, i32
  }
  func.func @transform_4(%arg0: i32) -> (i32, i32, i32) {
    %c0_i32 = arith.constant 0 : i32
    %c0_i32_0 = arith.constant 0 : i32
    %c0_i32_1 = arith.constant 0 : i32
    return %arg0, %c0_i32, %c0_i32_0 : i32, i32, i32
  }
  func.func @transform_5(%arg0: i32) -> (i32, i32, i32) {
    %c0_i32 = arith.constant 0 : i32
    %c0_i32_0 = arith.constant 0 : i32
    %c0_i32_1 = arith.constant 0 : i32
    return %arg0, %c0_i32, %c0_i32_0 : i32, i32, i32
  }
}

module attributes {stable_mosaic.version = 11 : i64} {
  func.func @_conv_kernel(%arg0: i32, %arg1: memref<4x2x4x16xf32, #tpu.memory_space<vmem>>, %arg2: memref<8x16xbf16, #tpu.memory_space<vmem>>, %arg3: memref<1x16xf32, #tpu.memory_space<vmem>>, %arg4: memref<1x16x16xf32, #tpu.memory_space<vmem>>, %arg5: memref<1x1x16xf32, #tpu.memory_space<vmem>>, %arg6: memref<1x1x16xf32, #tpu.memory_space<vmem>>, %arg7: memref<4x4x8xf32, #tpu.memory_space<vmem>>) attributes {dimension_semantics = [#tpu.dimension_semantics<parallel>], iteration_bounds = array<i64: 2>, scalar_prefetch = 0 : i64, scratch_operands = 1 : i64, tpu.core_type = #tpu.core_type<tc>, window_params = [{transform_indices = @transform_0, window_bounds = array<i64: 4, 2, 4, 16>}, {pipeline_mode = #tpu.pipeline_mode<synchronous>, transform_indices = @transform_1, window_bounds = array<i64: 8, 16>}, {pipeline_mode = #tpu.pipeline_mode<synchronous>, transform_indices = @transform_2, window_bounds = array<i64: 1, 16>}, {transform_indices = @transform_3, window_bounds = array<i64: 1, 16, 16>}, {transform_indices = @transform_4, window_bounds = array<i64: 1, 1, 16>}, {transform_indices = @transform_5, window_bounds = array<i64: 1, 1, 16>}]} {
    %c0 = arith.constant 0 : index
    %c0_0 = arith.constant 0 : index
    %c0_1 = arith.constant 0 : index
    %c0_2 = arith.constant 0 : index
    %0 = vector.load %arg1[%c0, %c0_0, %c0_1, %c0_2] : memref<4x2x4x16xf32, #tpu.memory_space<vmem>>, vector<4x1x4x8xf32>
    %1 = vector.shape_cast %0 : vector<4x1x4x8xf32> to vector<4x4x8xf32>
    %c0_3 = arith.constant 0 : index
    %c0_4 = arith.constant 0 : index
    %c0_5 = arith.constant 0 : index
    %2 = vector.load %arg7[%c0_3, %c0_4, %c0_5] : memref<4x4x8xf32, #tpu.memory_space<vmem>>, vector<4x4x8xf32>
    tpu.vector_store %arg7[%c0_3, %c0_4, %c0_5], %1 {strides = array<i32>} : memref<4x4x8xf32, #tpu.memory_space<vmem>>, vector<4x4x8xf32>,
    %c0_6 = arith.constant 0 : index
    %c0_7 = arith.constant 0 : index
    %3 = vector.load %arg2[%c0_6, %c0_7] : memref<8x16xbf16, #tpu.memory_space<vmem>>, vector<8x16xbf16>
    %c0_8 = arith.constant 0 : index
    %c0_9 = arith.constant 0 : index
    %4 = vector.load %arg3[%c0_8, %c0_9] : memref<1x16xf32, #tpu.memory_space<vmem>>, vector<1x16xf32>
    %cst = arith.constant 0.000000e+00 : f32
    %5 = vector.broadcast %cst : f32 to vector<1x16xf32>
    %cst_10 = arith.constant 0.000000e+00 : f32
    %6 = vector.broadcast %cst_10 : f32 to vector<1x16xf32>
    %c0_11 = arith.constant 0 : index
    %c0_12 = arith.constant 0 : index
    %c0_13 = arith.constant 0 : index
    %7 = vector.load %arg7[%c0_11, %c0_12, %c0_13] : memref<4x4x8xf32, #tpu.memory_space<vmem>>, vector<1x4x8xf32>
    %8 = vector.shape_cast %7 : vector<1x4x8xf32> to vector<4x8xf32>
    %9 = arith.truncf %8 : vector<4x8xf32> to vector<4x8xbf16>
    %cst_14 = arith.constant dense<0.000000e+00> : vector<4x16xf32>
    %10 = tpu.matmul %9, %3, %cst_14 {dimension_numbers = #tpu.dot_dimension_numbers<[1], [0], [0], [1], [0, 0, 1, 1], [], []>} : vector<4x8xbf16>, vector<8x16xbf16>, vector<4x16xf32> -> vector<4x16xf32>
    %11 = vector.broadcast %4 : vector<1x16xf32> to vector<4x16xf32>
    %12 = arith.addf %10, %11 : vector<4x16xf32>
    %cst_15 = arith.constant dense<0.000000e+00> : vector<16xf32>
    %13 = vector.multi_reduction <add>, %12, %cst_15 [0] : vector<4x16xf32> to vector<16xf32>
    %14 = vector.shape_cast %13 : vector<16xf32> to vector<1x16xf32>
    %15 = arith.addf %5, %14 : vector<1x16xf32>
    %16 = arith.mulf %12, %12 : vector<4x16xf32>
    %cst_16 = arith.constant dense<0.000000e+00> : vector<16xf32>
    %17 = vector.multi_reduction <add>, %16, %cst_16 [0] : vector<4x16xf32> to vector<16xf32>
    %18 = vector.shape_cast %17 : vector<16xf32> to vector<1x16xf32>
    %19 = arith.addf %6, %18 : vector<1x16xf32>
    %c0_17 = arith.constant 0 : index
    %c0_18 = arith.constant 0 : index
    %c0_19 = arith.constant 0 : index
    %20 = vector.load %arg4[%c0_17, %c0_18, %c0_19] : memref<1x16x16xf32, #tpu.memory_space<vmem>>, vector<1x4x16xf32>
    %21 = vector.shape_cast %20 : vector<1x4x16xf32> to vector<4x16xf32>
    %22 = vector.shape_cast %12 : vector<4x16xf32> to vector<1x4x16xf32>
    tpu.vector_store %arg4[%c0_17, %c0_18, %c0_19], %22 {strides = array<i32>} : memref<1x16x16xf32, #tpu.memory_space<vmem>>, vector<1x4x16xf32>,
    %c1 = arith.constant 1 : index
    %c0_20 = arith.constant 0 : index
    %c0_21 = arith.constant 0 : index
    %23 = vector.load %arg7[%c1, %c0_20, %c0_21] : memref<4x4x8xf32, #tpu.memory_space<vmem>>, vector<1x4x8xf32>
    %24 = vector.shape_cast %23 : vector<1x4x8xf32> to vector<4x8xf32>
    %25 = arith.truncf %24 : vector<4x8xf32> to vector<4x8xbf16>
    %cst_22 = arith.constant dense<0.000000e+00> : vector<4x16xf32>
    %26 = tpu.matmul %25, %3, %cst_22 {dimension_numbers = #tpu.dot_dimension_numbers<[1], [0], [0], [1], [0, 0, 1, 1], [], []>} : vector<4x8xbf16>, vector<8x16xbf16>, vector<4x16xf32> -> vector<4x16xf32>
    %27 = vector.broadcast %4 : vector<1x16xf32> to vector<4x16xf32>
    %28 = arith.addf %26, %27 : vector<4x16xf32>
    %cst_23 = arith.constant dense<0.000000e+00> : vector<16xf32>
    %29 = vector.multi_reduction <add>, %28, %cst_23 [0] : vector<4x16xf32> to vector<16xf32>
    %30 = vector.shape_cast %29 : vector<16xf32> to vector<1x16xf32>
    %31 = arith.addf %15, %30 : vector<1x16xf32>
    %32 = arith.mulf %28, %28 : vector<4x16xf32>
    %cst_24 = arith.constant dense<0.000000e+00> : vector<16xf32>
    %33 = vector.multi_reduction <add>, %32, %cst_24 [0] : vector<4x16xf32> to vector<16xf32>
    %34 = vector.shape_cast %33 : vector<16xf32> to vector<1x16xf32>
    %35 = arith.addf %19, %34 : vector<1x16xf32>
    %c0_25 = arith.constant 0 : index
    %c4 = arith.constant 4 : index
    %c0_26 = arith.constant 0 : index
    %36 = vector.load %arg4[%c0_25, %c4, %c0_26] : memref<1x16x16xf32, #tpu.memory_space<vmem>>, vector<1x4x16xf32>
    %37 = vector.shape_cast %36 : vector<1x4x16xf32> to vector<4x16xf32>
    %38 = vector.shape_cast %28 : vector<4x16xf32> to vector<1x4x16xf32>
    tpu.vector_store %arg4[%c0_25, %c4, %c0_26], %38 {strides = array<i32>} : memref<1x16x16xf32, #tpu.memory_space<vmem>>, vector<1x4x16xf32>,
    %c2 = arith.constant 2 : index
    %c0_27 = arith.constant 0 : index
    %c0_28 = arith.constant 0 : index
    %39 = vector.load %arg7[%c2, %c0_27, %c0_28] : memref<4x4x8xf32, #tpu.memory_space<vmem>>, vector<1x4x8xf32>
    %40 = vector.shape_cast %39 : vector<1x4x8xf32> to vector<4x8xf32>
    %41 = arith.truncf %40 : vector<4x8xf32> to vector<4x8xbf16>
    %cst_29 = arith.constant dense<0.000000e+00> : vector<4x16xf32>
    %42 = tpu.matmul %41, %3, %cst_29 {dimension_numbers = #tpu.dot_dimension_numbers<[1], [0], [0], [1], [0, 0, 1, 1], [], []>} : vector<4x8xbf16>, vector<8x16xbf16>, vector<4x16xf32> -> vector<4x16xf32>
    %43 = vector.broadcast %4 : vector<1x16xf32> to vector<4x16xf32>
    %44 = arith.addf %42, %43 : vector<4x16xf32>
    %cst_30 = arith.constant dense<0.000000e+00> : vector<16xf32>
    %45 = vector.multi_reduction <add>, %44, %cst_30 [0] : vector<4x16xf32> to vector<16xf32>
    %46 = vector.shape_cast %45 : vector<16xf32> to vector<1x16xf32>
    %47 = arith.addf %31, %46 : vector<1x16xf32>
    %48 = arith.mulf %44, %44 : vector<4x16xf32>
    %cst_31 = arith.constant dense<0.000000e+00> : vector<16xf32>
    %49 = vector.multi_reduction <add>, %48, %cst_31 [0] : vector<4x16xf32> to vector<16xf32>
    %50 = vector.shape_cast %49 : vector<16xf32> to vector<1x16xf32>
    %51 = arith.addf %35, %50 : vector<1x16xf32>
    %c0_32 = arith.constant 0 : index
    %c8 = arith.constant 8 : index
    %c0_33 = arith.constant 0 : index
    %52 = vector.load %arg4[%c0_32, %c8, %c0_33] : memref<1x16x16xf32, #tpu.memory_space<vmem>>, vector<1x4x16xf32>
    %53 = vector.shape_cast %52 : vector<1x4x16xf32> to vector<4x16xf32>
    %54 = vector.shape_cast %44 : vector<4x16xf32> to vector<1x4x16xf32>
    tpu.vector_store %arg4[%c0_32, %c8, %c0_33], %54 {strides = array<i32>} : memref<1x16x16xf32, #tpu.memory_space<vmem>>, vector<1x4x16xf32>,
    %c3 = arith.constant 3 : index
    %c0_34 = arith.constant 0 : index
    %c0_35 = arith.constant 0 : index
    %55 = vector.load %arg7[%c3, %c0_34, %c0_35] : memref<4x4x8xf32, #tpu.memory_space<vmem>>, vector<1x4x8xf32>
    %56 = vector.shape_cast %55 : vector<1x4x8xf32> to vector<4x8xf32>
    %57 = arith.truncf %56 : vector<4x8xf32> to vector<4x8xbf16>
    %cst_36 = arith.constant dense<0.000000e+00> : vector<4x16xf32>
    %58 = tpu.matmul %57, %3, %cst_36 {dimension_numbers = #tpu.dot_dimension_numbers<[1], [0], [0], [1], [0, 0, 1, 1], [], []>} : vector<4x8xbf16>, vector<8x16xbf16>, vector<4x16xf32> -> vector<4x16xf32>
    %59 = vector.broadcast %4 : vector<1x16xf32> to vector<4x16xf32>
    %60 = arith.addf %58, %59 : vector<4x16xf32>
    %cst_37 = arith.constant dense<0.000000e+00> : vector<16xf32>
    %61 = vector.multi_reduction <add>, %60, %cst_37 [0] : vector<4x16xf32> to vector<16xf32>
    %62 = vector.shape_cast %61 : vector<16xf32> to vector<1x16xf32>
    %63 = arith.addf %47, %62 : vector<1x16xf32>
    %64 = arith.mulf %60, %60 : vector<4x16xf32>
    %cst_38 = arith.constant dense<0.000000e+00> : vector<16xf32>
    %65 = vector.multi_reduction <add>, %64, %cst_38 [0] : vector<4x16xf32> to vector<16xf32>
    %66 = vector.shape_cast %65 : vector<16xf32> to vector<1x16xf32>
    %67 = arith.addf %51, %66 : vector<1x16xf32>
    %c0_39 = arith.constant 0 : index
    %c12 = arith.constant 12 : index
    %c0_40 = arith.constant 0 : index
    %68 = vector.load %arg4[%c0_39, %c12, %c0_40] : memref<1x16x16xf32, #tpu.memory_space<vmem>>, vector<1x4x16xf32>
    %69 = vector.shape_cast %68 : vector<1x4x16xf32> to vector<4x16xf32>
    %70 = vector.shape_cast %60 : vector<4x16xf32> to vector<1x4x16xf32>
    tpu.vector_store %arg4[%c0_39, %c12, %c0_40], %70 {strides = array<i32>} : memref<1x16x16xf32, #tpu.memory_space<vmem>>, vector<1x4x16xf32>,
    %c0_41 = arith.constant 0 : index
    %c0_42 = arith.constant 0 : index
    %c0_43 = arith.constant 0 : index
    %71 = vector.load %arg5[%c0_41, %c0_42, %c0_43] : memref<1x1x16xf32, #tpu.memory_space<vmem>>, vector<1x1x16xf32>
    %72 = vector.shape_cast %71 : vector<1x1x16xf32> to vector<1x16xf32>
    %73 = vector.shape_cast %63 : vector<1x16xf32> to vector<1x1x16xf32>
    tpu.vector_store %arg5[%c0_41, %c0_42, %c0_43], %73 {strides = array<i32>} : memref<1x1x16xf32, #tpu.memory_space<vmem>>, vector<1x1x16xf32>,
    %c0_44 = arith.constant 0 : index
    %c0_45 = arith.constant 0 : index
    %c0_46 = arith.constant 0 : index
    %74 = vector.load %arg6[%c0_44, %c0_45, %c0_46] : memref<1x1x16xf32, #tpu.memory_space<vmem>>, vector<1x1x16xf32>
    %75 = vector.shape_cast %74 : vector<1x1x16xf32> to vector<1x16xf32>
    %76 = vector.shape_cast %67 : vector<1x16xf32> to vector<1x1x16xf32>
    tpu.vector_store %arg6[%c0_44, %c0_45, %c0_46], %76 {strides = array<i32>} : memref<1x1x16xf32, #tpu.memory_space<vmem>>, vector<1x1x16xf32>,
    return
  }
  func.func @transform_0(%arg0: i32) -> (i32, i32, i32, i32) {
    %c0_i32 = arith.constant 0 : i32
    %c0_i32_0 = arith.constant 0 : i32
    %c0_i32_1 = arith.constant 0 : i32
    %c0_i32_2 = arith.constant 0 : i32
    return %arg0, %c0_i32, %c0_i32_0, %c0_i32_1 : i32, i32, i32, i32
  }
  func.func @transform_1(%arg0: i32) -> (i32, i32) {
    %c0_i32 = arith.constant 0 : i32
    %c0_i32_0 = arith.constant 0 : i32
    %c0_i32_1 = arith.constant 0 : i32
    return %c0_i32, %c0_i32_0 : i32, i32
  }
  func.func @transform_2(%arg0: i32) -> (i32, i32) {
    %c0_i32 = arith.constant 0 : i32
    %c0_i32_0 = arith.constant 0 : i32
    %c0_i32_1 = arith.constant 0 : i32
    return %c0_i32, %c0_i32_0 : i32, i32
  }
  func.func @transform_3(%arg0: i32) -> (i32, i32, i32) {
    %c0_i32 = arith.constant 0 : i32
    %c0_i32_0 = arith.constant 0 : i32
    %c0_i32_1 = arith.constant 0 : i32
    return %arg0, %c0_i32, %c0_i32_0 : i32, i32, i32
  }
  func.func @transform_4(%arg0: i32) -> (i32, i32, i32) {
    %c0_i32 = arith.constant 0 : i32
    %c0_i32_0 = arith.constant 0 : i32
    %c0_i32_1 = arith.constant 0 : i32
    return %arg0, %c0_i32, %c0_i32_0 : i32, i32, i32
  }
  func.func @transform_5(%arg0: i32) -> (i32, i32, i32) {
    %c0_i32 = arith.constant 0 : i32
    %c0_i32_0 = arith.constant 0 : i32
    %c0_i32_1 = arith.constant 0 : i32
    return %arg0, %c0_i32, %c0_i32_0 : i32, i32, i32
  }
}

module attributes {stable_mosaic.version = 11 : i64} {
  func.func @_cbn_res_kernel(%arg0: i32, %arg1: i32, %arg2: memref<1x2x128xf32, #tpu.memory_space<vmem>>, %arg3: memref<1x2x128xf32, #tpu.memory_space<vmem>>, %arg4: memref<1x1x128xf32, #tpu.memory_space<vmem>>, %arg5: memref<1x1x128xf32, #tpu.memory_space<vmem>>, %arg6: memref<1x2x128xf32, #tpu.memory_space<vmem>>) attributes {dimension_semantics = [#tpu.dimension_semantics<parallel>, #tpu.dimension_semantics<parallel>], iteration_bounds = array<i64: 2, 1>, scalar_prefetch = 0 : i64, scratch_operands = 0 : i64, tpu.core_type = #tpu.core_type<tc>, window_params = [{transform_indices = @transform_0, window_bounds = array<i64: 1, 2, 128>}, {transform_indices = @transform_1, window_bounds = array<i64: 1, 2, 128>}, {transform_indices = @transform_2, window_bounds = array<i64: 1, 1, 128>}, {transform_indices = @transform_3, window_bounds = array<i64: 1, 1, 128>}, {transform_indices = @transform_4, window_bounds = array<i64: 1, 2, 128>}]} {
    %c0 = arith.constant 0 : index
    %c0_0 = arith.constant 0 : index
    %c0_1 = arith.constant 0 : index
    %0 = vector.load %arg2[%c0, %c0_0, %c0_1] : memref<1x2x128xf32, #tpu.memory_space<vmem>>, vector<1x2x128xf32>
    %c0_2 = arith.constant 0 : index
    %c0_3 = arith.constant 0 : index
    %c0_4 = arith.constant 0 : index
    %1 = vector.load %arg4[%c0_2, %c0_3, %c0_4] : memref<1x1x128xf32, #tpu.memory_space<vmem>>, vector<1x1x128xf32>
    %2 = vector.broadcast %1 : vector<1x1x128xf32> to vector<1x2x128xf32>
    %3 = arith.mulf %0, %2 : vector<1x2x128xf32>
    %c0_5 = arith.constant 0 : index
    %c0_6 = arith.constant 0 : index
    %c0_7 = arith.constant 0 : index
    %4 = vector.load %arg5[%c0_5, %c0_6, %c0_7] : memref<1x1x128xf32, #tpu.memory_space<vmem>>, vector<1x1x128xf32>
    %5 = vector.broadcast %4 : vector<1x1x128xf32> to vector<1x2x128xf32>
    %6 = arith.addf %3, %5 : vector<1x2x128xf32>
    %c0_8 = arith.constant 0 : index
    %c0_9 = arith.constant 0 : index
    %c0_10 = arith.constant 0 : index
    %7 = vector.load %arg3[%c0_8, %c0_9, %c0_10] : memref<1x2x128xf32, #tpu.memory_space<vmem>>, vector<1x2x128xf32>
    %8 = arith.addf %6, %7 : vector<1x2x128xf32>
    %cst = arith.constant 0.000000e+00 : f32
    %9 = vector.broadcast %cst : f32 to vector<1x2x128xf32>
    %10 = arith.maximumf %8, %9 : vector<1x2x128xf32>
    %c0_11 = arith.constant 0 : index
    %c0_12 = arith.constant 0 : index
    %c0_13 = arith.constant 0 : index
    %11 = vector.load %arg6[%c0_11, %c0_12, %c0_13] : memref<1x2x128xf32, #tpu.memory_space<vmem>>, vector<1x2x128xf32>
    tpu.vector_store %arg6[%c0_11, %c0_12, %c0_13], %10 {strides = array<i32>} : memref<1x2x128xf32, #tpu.memory_space<vmem>>, vector<1x2x128xf32>,
    return
  }
  func.func @transform_0(%arg0: i32, %arg1: i32) -> (i32, i32, i32) {
    %c0_i32 = arith.constant 0 : i32
    %c0_i32_0 = arith.constant 0 : i32
    return %arg0, %arg1, %c0_i32 : i32, i32, i32
  }
  func.func @transform_1(%arg0: i32, %arg1: i32) -> (i32, i32, i32) {
    %c0_i32 = arith.constant 0 : i32
    %c0_i32_0 = arith.constant 0 : i32
    return %arg0, %arg1, %c0_i32 : i32, i32, i32
  }
  func.func @transform_2(%arg0: i32, %arg1: i32) -> (i32, i32, i32) {
    %c0_i32 = arith.constant 0 : i32
    %c0_i32_0 = arith.constant 0 : i32
    %c0_i32_1 = arith.constant 0 : i32
    return %arg0, %c0_i32, %c0_i32_0 : i32, i32, i32
  }
  func.func @transform_3(%arg0: i32, %arg1: i32) -> (i32, i32, i32) {
    %c0_i32 = arith.constant 0 : i32
    %c0_i32_0 = arith.constant 0 : i32
    %c0_i32_1 = arith.constant 0 : i32
    return %arg0, %c0_i32, %c0_i32_0 : i32, i32, i32
  }
  func.func @transform_4(%arg0: i32, %arg1: i32) -> (i32, i32, i32) {
    %c0_i32 = arith.constant 0 : i32
    %c0_i32_0 = arith.constant 0 : i32
    return %arg0, %arg1, %c0_i32 : i32, i32, i32
  }
}

</mosaic_0001>

<bundles_post_ra>
// kernel: _lambda_.17
= control target key start
LH: loop header
LB: loop body
LE: loop exit
PB: predicated region body
PF: predicated region fallthrough
CT: control target
= control target key end

     0   :  { %s415_s12 = smov 0   ;;  %s417_s13 = smov 0   ;;  %s442_s0 = inlined_call_operand.vmem [shape: f32[2,4,128], index: 0, kind: input, shape index: {}]   ;;  %s443_s1 = inlined_call_operand.vmem [shape: f32[2,1,128], index: 1, kind: input, shape index: {}]   ;;  %s444_s2 = inlined_call_operand.vmem [shape: f32[2,1,128], index: 2, kind: input, shape index: {}]   ;;  %s445_s3 = inlined_call_operand.vmem [shape: f32[2,4,128], index: 3, kind: output, shape index: {}]  }
   0x1   :  { %s419_s14 = smov 0  }
   0x2 LB: > { %s25_s15 = sadd.s32 1, %s389_s13  ;;  %p340_p0 = scmp.ge.s32.totalorder %s393_s14, 1  ;;  %s393_s14 = sphi %s419_s14, %s13_s14   ;;  %s389_s13 = sphi %s417_s13, %s447_s13   ;;  %s385_s12 = sphi %s415_s12, %s446_s12  }
   0x3   : > { %p27_p1 = scmp.ge.s32.totalorder %s25_s15, 2  ;;  %p171_p2 = scmp.lt.s32.totalorder %s393_s14, 3 }
   0x5   : > { %s449_s15 = smov (%p27_p1, %s25_s15), 0  ;;  %p172_p3 = pnand %p340_p0, %p171_p2 }
   0x6   : > { %p205_p4 = scmp.lt.s32.totalorder (!%p172_p3), %s385_s12, 1 }
   0x7   : > { %175 = sbr.rel (%p172_p3) target bundleno = 25 (0x19), region = 32 }
   0xe   : > { %s451_s12 = smov (!%p205_p4, %s385_s12), 1 }
   0xf   : > { %s341_s16 = sshll.u32 %s451_s12, 2  ;;  %s214_s19 = scalar_lea.vmem %s443_s1, %s451_s12 }
  0x10   : > { %s211_s22 = scalar_lea.vmem %s442_s0, %s341_s16  ;;  %s217_s25 = scalar_lea.vmem %s444_s2, %s451_s12  ;;  %v343_v0 = vld [vmem:[%s214_s19] ss:$0 sm:$0xff] }
  0x11   : > { %v225_v1 = vld [vmem:[%s211_s22] sm:$0xf]  ;;  %s224_s28 = scalar_lea.vmem %s445_s3, %s341_s16 }
  0x12   : > { %v344_v2 = vld [vmem:[%s217_s25] ss:$0 sm:$0xff]  ;;  %v233_v3 = vmul.f32 %v343_v0, %v225_v1 }
  0x14   : > { %v241_v4 = vadd.f32 %v344_v2, %v233_v3 }
  0x16   : > { %v242_v5 = vmax.f32 %v241_v4, 0.0 }
  0x18   : > { %243 = vst [vmem:[%s224_s28] sm:$0xf] %v242_v5 }
  0x19 PF: > { %s13_s14 = sadd.s32 1, %s393_s14   ;;  %s446_s12 = smov %s389_s13 }
  0x1a   : > { %p10_p5 = scmp.ge.s32.totalorder %s13_s14, 4   ;;  %s447_s13 = smov %s449_s15 }
  0x1c   :  { %12 = sbr.rel (!%p10_p5) target bundleno = 2 (0x2), region = 68 }

// kernel: _lambda_.16
= control target key start
LH: loop header
LB: loop body
LE: loop exit
PB: predicated region body
PF: predicated region fallthrough
CT: control target
= control target key end

     0   :  { %v188_v0 = vmov 0.0|0.0   ;;  %vm189_vm0 = vmmov 0   ;;  %v190_v4 = vmov 0.0   ;;  %vm53_vm1 = vcmask 261120   ;;  %s191_s15 = smov 8   ;;  %s192_s16 = smov 120   ;;  %s264_s1 = inlined_call_operand.vmem [shape: f32[32,16], index: 1, kind: input, shape index: {}]   ;;  %s265_s0 = inlined_call_operand.vmem [shape: f32[2,32], index: 0, kind: input, shape index: {}]   ;;  %s266_s3 = inlined_call_operand.vmem [shape: f32[2,1,8], index: 3, kind: input, shape index: {}]   ;;  %s267_s4 = inlined_call_operand.vmem [shape: f32[2,1,8], index: 4, kind: input, shape index: {}]   ;;  %s268_s2 = inlined_call_operand.vmem [shape: f32[1,16], index: 2, kind: input, shape index: {}]   ;;  %s269_s5 = inlined_call_operand.vmem [shape: f32[2,8], index: 5, kind: output, shape index: {0}]   ;;  %s270_s6 = inlined_call_operand.vmem [shape: f32[2,8], index: 6, kind: output, shape index: {1}]  }
   0x1   :  { %175 = vmatprep.subr.bf16.mxu0 %v188_v0  ;;  %v42_v1 = vld [vmem:[%s264_s1] sm:$0xff]  ;;  %v43_v2 = vld [vmem:[%s264_s1 + $0x8] sm:$0xff]  ;;  %v44_v3 = vld [vmem:[%s264_s1 + $0x10] sm:$0xff]  ;;  %172 = vmatprep.mubr.msk.f32.mxu0 %vm189_vm0, %v190_v4  ;;  %vm24_vm2 = vcmask 57344   ;;  %v127_v25 = vlaneseq  ;;  %vm142_vm3 = vcmask 58368  }
   0x2   :  { %v176_v5 = vpack.c.bf16 %v43_v2, %v42_v1  ;;  %v45_v6 = vld [vmem:[%s264_s1 + $0x18] sm:$0xff]  ;;  %v41_v8 = vld [vmem:[%s265_s0] sm:$0x3] }
   0x3   :  { %v179_v7 = vpack.c.bf16 %v45_v6, %v44_v3  ;;  %v22_v9 = vld [vmem:[%s266_s3] sm:$0x1]  ;;  %v23_v10 = vld [vmem:[%s266_s3 + $0x1] sm:$0x1]  ;;  %v128_v26 = vshrl.u32 %v127_v25, 7 }
   0x4   :  { %177 = vmatpush3.bf16.msra.mxu0 %v176_v5  ;;  %v25_v11 = vsel %vm24_vm2, %v22_v9, 0.0  ;;  %v26_v12 = vsel %vm24_vm2, %v23_v10, 0.0  ;;  %v30_v13 = vld [vmem:[%s267_s4] sm:$0x1]  ;;  %v31_v14 = vld [vmem:[%s267_s4 + $0x1] sm:$0x1] }
   0x5   :  { %178 = vmatprep.subr.bf16.mxu0 %v188_v0  ;;  %v27_v15 = vadd.f32 %v26_v12, %v25_v11  ;;  %v32_v16 = vsel %vm24_vm2, %v30_v13, 0.0  ;;  %v33_v17 = vsel %vm24_vm2, %v31_v14, 0.0  ;;  %v129_v27 = vsub.s32 0, %v128_v26  ;;  %v157_v29 = vld [vmem:[%s268_s2] ss:$0 sm:$0xff] }
   0x6   :  { %v34_v19 = vadd.f32 %v33_v17, %v32_v16 }
   0x7   :  { %v29_v18 = vmul.f32 0.0078125, %v27_v15 }
   0x8   :  { %180 = vmatpush3.bf16.msra.mxu0 %v179_v7  ;;  %v35_v20 = vmul.f32 0.0078125, %v34_v19 }
   0x9   :  { %v36_v21 = vmul.f32 %v29_v18, %v29_v18  ;;  %v135_v34 = vrot.slane %v29_v18, %v129_v27 }
   0xb   :  { %173 = vmatmul.mubr.msk.f32.vlgmr.msra.gmra.mrb[0].mxu0 %vm53_vm1, %v41_v8  ;;  %v37_v22 = vsub.f32 %v35_v20, %v36_v21 }
   0xd   :  { %v38_v23 = vmax.f32 %v37_v22, 0.0 }
   0xf   :  { %v39_v24 = vadd.f32 1e-05, %v38_v23 }
  0x11   :  { %186 = vrsqrt.f32 %v39_v24 }
  0x1b   :  { %v187_v28 = vpop.eup %186 }
  0x1c   :  { %v130_v30 = vrot.slane %v187_v28, %v129_v27 }
  0xde   :  { %v123_v31 = vpop.f32.mrb[0].mxu0 }
  0xdf   :  { %v124_v32 = vadd.f32 %v157_v29, %v123_v31  ;;  %v174_v33 = vpop.f32.mrb[1].mxu0 }
  0xe1   :  { %v131_v35 = vmul.f32 %v130_v30, %v124_v32 }
  0xe3   :  { %v136_v36 = vmul.f32 %v135_v34, %v131_v35  ;;  %143 = vst.msk [vmem:[%s269_s5] sm:$0x3] %vm142_vm3, %v131_v35 }
  0xe5   :  { %138 = vrot.lane.b32.xlu0 %v136_v36, %s191_s15 }
 0x157   :  { %v139_v37 = vpop.permute.xlu0 %138 }
 0x158   :  { %v141_v38 = vsub.f32 %v124_v32, %v139_v37 }
 0x15a   :  { %145 = vrot.lane.b32.xlu0 %v141_v38, %s192_s16 }
 0x1cc   :  { %v146_v39 = vpop.permute.xlu0 %145 }
 0x1cd   :  { %148 = vst.msk [vmem:[%s270_s6] sm:$0x3] %vm142_vm3, %v146_v39 }

// kernel: _lambda_.15
= control target key start
LH: loop header
LB: loop body
LE: loop exit
PB: predicated region body
PF: predicated region fallthrough
CT: control target
= control target key end

     0   :  { %s1632_s18 = smov 0   ;;  %s2034_s0 = inlined_call_operand.vmem [shape: f32[20,1,10,8], index: 0, kind: input, shape index: {}]   ;;  %s2035_s1 = inlined_call_operand.vmem [shape: bf16[72,8], index: 1, kind: input, shape index: {}]   ;;  %s2036_s2 = inlined_call_operand.vmem [shape: f32[1,8], index: 2, kind: input, shape index: {}]   ;;  %s2037_s3 = inlined_call_operand.vmem [shape: f32[2,64,8], index: 3, kind: output, shape index: {0}]   ;;  %s2038_s4 = inlined_call_operand.vmem [shape: f32[2,1,8], index: 4, kind: output, shape index: {1}]   ;;  %s2039_s5 = inlined_call_operand.vmem [shape: f32[2,1,8], index: 5, kind: output, shape index: {2}]  }
   0x1 LB: > { %s1638_s19 = sadd.s32 4294967295, %s1590_s18   ;;  %p1330_p0 = scmp.ge.s32.totalorder %s1590_s18, 1  ;;  %s1590_s18 = sphi %s1632_s18, %s16_s18  }
   0x2   : > { %p194_p1 = scmp.lt.s32.totalorder %s1590_s18, 3 }
   0x4   : > { %p195_p2 = pnand %p1330_p0, %p194_p1 }
   0x5   : > { %s229_s20 = smul.u32 (!%p195_p2), 10, %s1638_s19  ;;  %vm256_vm0 = vcmask (!%p195_p2), 64512   ;;  %s1592_s25 = smov (!%p195_p2), 8   ;;  %v1593_v5 = vmov (!%p195_p2), 0.0   ;;  %v1694_v13 = vld [vmem:[%s2035_s1] sm:$0xff] (!%p195_p2)   ;;  %v1703_v15 = vld [vmem:[%s2035_s1 + $0x8] sm:$0xff] (!%p195_p2)  }
   0x6   : > { %198 = sbr.rel (%p195_p2) target bundleno = 499 (0x1f3), region = 32  ;;  %1449 = vmatprep.subr.bf16.mxu0 (!%p195_p2), %v1593_v5  ;;  %1463 = vmatprep.subr.bf16.mxu1 (!%p195_p2), %v1593_v5  ;;  %s1594_s26 = smov (!%p195_p2), 24   ;;  %v1715_v17 = vld [vmem:[%s2035_s1 + $0x10] sm:$0xff] (!%p195_p2)   ;;  %v1726_v18 = vld [vmem:[%s2035_s1 + $0x18] sm:$0xff] (!%p195_p2)   ;;  %v1583_v19 = vld [vmem:[%s2035_s1 + $0x20] ss:$0 sps:$4 sm:$0xff] (!%p195_p2)  }
   0x7   : > { %p230_p3 = scmp.lt.s32.totalorder (!%p195_p2), %s229_s20, 19  ;;  %s1595_s27 = smov (!%p195_p2), 16   ;;  %1450 = vmatpush3.bf16.msra.mxu0 (!%p195_p2), %v1694_v13  ;;  %1464 = vmatpush3.bf16.msra.mxu1 (!%p195_p2), %v1694_v13  ;;  %vm708_vm1 = vcmask (!%p195_p2), 1043456   ;;  %vm1600_vm2 = vmmov (!%p195_p2), 0   ;;  %vm305_vm3 = vcmask (!%p195_p2), 130112   ;;  %vm354_vm4 = vcmask (!%p195_p2), 195712  }
   0x8   : > { %s1596_s28 = smov (!%p195_p2), 32   ;;  %s1597_s6 = smov (!%p195_p2), 40   ;;  %1451 = vmatprep.subr.bf16.mxu0 (!%p195_p2), %v1593_v5  ;;  %1465 = vmatprep.subr.bf16.mxu1 (!%p195_p2), %v1593_v5  ;;  %v1746_v22 = vsel (!%p195_p2), %vm708_vm1, %v1583_v19, 0  ;;  %vm404_vm5 = vcmask (!%p195_p2), 261312   ;;  %vm453_vm6 = vcmask (!%p195_p2), 326912   ;;  %vm502_vm7 = vcmask (!%p195_p2), 392512  }
   0x9   : > { %s1598_s9 = smov (!%p195_p2), 48   ;;  %s1599_s12 = smov (!%p195_p2), 56   ;;  %1459 = vmatprep.mubr.msk.bf16.mxu0 (!%p195_p2), %vm1600_vm2, %v1593_v5  ;;  %1473 = vmatprep.mubr.msk.bf16.mxu1 (!%p195_p2), %vm1600_vm2, %v1593_v5  ;;  %vm552_vm8 = vcmask (!%p195_p2), 458112   ;;  %vm601_vm9 = vcmask (!%p195_p2), 523712   ;;  %vm650_vm10 = vcmask (!%p195_p2), 589312   ;;  %vm704_vm11 = vcmask (!%p195_p2), 588800  }
   0xa   : > { %s1601_s17 = smov (!%p195_p2), 64   ;;  %p236_p4 = scmp.lt.s32.totalorder (!%p195_p2), %s1638_s19, 1  ;;  %vm1218_vm12 = vcmask (!%p195_p2), 57344  }
   0xb   : > { %1452 = vmatpush3.bf16.msra.mxu0 (!%p195_p2), %v1703_v15  ;;  %1466 = vmatpush3.bf16.msra.mxu1 (!%p195_p2), %v1703_v15 }
   0xc   : > { %1453 = vmatprep.subr.bf16.mxu0 (!%p195_p2), %v1593_v5  ;;  %1467 = vmatprep.subr.bf16.mxu1 (!%p195_p2), %v1593_v5 }
   0xd   : > { %s2041_s20 = smov (!%p230_p3, %s229_s20), 19  ;;  %s2043_s19 = smov (!%p236_p4, %s1638_s19), 1 }
   0xe   : > { %s1399_s21 = sshll.u32 %s2041_s20, 4  ;;  %s1400_s20 = sshll.u32 %s2043_s19, 6 }
   0xf   : > { %s1646_s24 = scalar_lea.vmem %s2034_s0, %s1399_s21  ;;  %1454 = vmatpush3.bf16.msra.mxu0 %v1715_v17  ;;  %1468 = vmatpush3.bf16.msra.mxu1 %v1715_v17 }
  0x10   : > { %v266_v0 = vld [vmem:[%s1646_s24 + $0x11] sm:$0xff]  ;;  %v265_v1 = vld [vmem:[%s1646_s24 + $0x1] sm:$0xff]  ;;  %1455 = vmatprep.subr.bf16.mxu0 %v1593_v5  ;;  %1469 = vmatprep.subr.bf16.mxu1 %v1593_v5 }
  0x11   : > { %v1335_v2 = vld [vmem:[%s1646_s24 + $0x10] sm:$0xff]  ;;  %283 = vrot.lane.b32.xlu1 %v266_v0, %s1592_s25  ;;  %281 = vrot.lane.b32.xlu0 %v265_v1, %s1592_s25  ;;  %v314_v3 = vld [vmem:[%s1646_s24 + $0x2] sm:$0xff] }
  0x12   : > { %258 = vst.msk [vmem:[#allocation2 + $0x8] sm:$0xff] %vm256_vm0, %v1335_v2  ;;  %v1336_v4 = vld [vmem:[%s1646_s24 + $0x20] sm:$0xff]  ;;  %v1659_v6 = vld [vmem:[%s1646_s24 + $0x30] sm:$0xff] }
  0x13   : > { %259 = vst.msk [vmem:[#allocation2 + $0x10] sm:$0xff] %vm256_vm0, %v1336_v4  ;;  %v1663_v7 = vld [vmem:[%s1646_s24 + $0x40] sm:$0xff]  ;;  %260 = vst.msk [vmem:[#allocation2 + $0x18] sm:$0xff] %vm256_vm0, %v1659_v6  ;;  %v1670_v8 = vld [vmem:[%s1646_s24 + $0x50] sm:$0xff]  ;;  %1456 = vmatpush3.bf16.msra.mxu0 %v1726_v18  ;;  %1470 = vmatpush3.bf16.msra.mxu1 %v1726_v18 }
  0x14   : > { %261 = vst.msk [vmem:[#allocation2 + $0x20] sm:$0xff] %vm256_vm0, %v1663_v7  ;;  %v315_v9 = vld [vmem:[%s1646_s24 + $0x12] sm:$0xff]  ;;  %v1676_v10 = vld [vmem:[%s1646_s24 + $0x60] sm:$0xff]  ;;  %262 = vst.msk [vmem:[#allocation2 + $0x28] sm:$0xff] %vm256_vm0, %v1670_v8  ;;  %1457 = vmatprep.subr.bf16.mxu0 %v1593_v5  ;;  %1471 = vmatprep.subr.bf16.mxu1 %v1593_v5 }
  0x15   : > { %380 = vrot.lane.b32.xlu1 %v1335_v2, %s1594_s26  ;;  %330 = vrot.lane.b32.xlu0 %v314_v3, %s1595_s27  ;;  %v1681_v11 = vld [vmem:[%s1646_s24 + $0x70] sm:$0xff]  ;;  %263 = vst.msk [vmem:[#allocation2 + $0x30] sm:$0xff] %vm256_vm0, %v1676_v10  ;;  %v248_v12 = vld [vmem:[%s1646_s24] sm:$0xff] }
  0x16   : > { %264 = vst.msk [vmem:[#allocation2 + $0x38] sm:$0xff] %vm256_vm0, %v1681_v11  ;;  %257 = vst.msk [vmem:[#allocation2] sm:$0xff] %vm256_vm0, %v248_v12  ;;  %v1344_v14 = vld [vmem:[%s1646_s24 + $0x21] sm:$0xff]  ;;  %v1376_v20 = vld [vmem:[%s1646_s24 + $0x32] sm:$0xff] }
  0x17   : > { %v1352_v16 = vld [vmem:[%s1646_s24 + $0x22] sm:$0xff]  ;;  %v1368_v21 = vld [vmem:[%s1646_s24 + $0x31] sm:$0xff]  ;;  %1458 = vmatpush3.bf16.msra.mxu0 %v1746_v22  ;;  %1472 = vmatpush3.bf16.msra.mxu1 %v1746_v22 }
  0x18   : > { %1477 = vmatprep.subr.bf16.mxu0 %v1593_v5  ;;  %1491 = vmatprep.subr.bf16.mxu1 %v1593_v5  ;;  %v1346_v23 = vld [vmem:[%s1646_s24 + $0x41] sm:$0xff]  ;;  %v1378_v25 = vld [vmem:[%s1646_s24 + $0x52] sm:$0xff] }
  0x19   : > { %429 = vrot.lane.b32.xlu1 %v266_v0, %s1596_s28  ;;  %332 = vrot.lane.b32.xlu0 %v315_v9, %s1595_s27  ;;  %v1354_v24 = vld [vmem:[%s1646_s24 + $0x42] sm:$0xff]  ;;  %v1370_v26 = vld [vmem:[%s1646_s24 + $0x51] sm:$0xff] }
  0x1a   : > { %v1348_v27 = vld [vmem:[%s1646_s24 + $0x61] sm:$0xff]  ;;  %v1380_v29 = vld [vmem:[%s1646_s24 + $0x72] sm:$0xff] }
  0x1b   : > { %v1356_v28 = vld [vmem:[%s1646_s24 + $0x62] sm:$0xff]  ;;  %v1372_v30 = vld [vmem:[%s1646_s24 + $0x71] sm:$0xff] }
  0x1c   : > { %v1342_v31 = vld [vmem:[%s1646_s24 + $0x80] sm:$0xff]  ;;  %v1366_v36 = vld [vmem:[%s1646_s24 + $0x90] sm:$0xff] }
  0x1d   : > { %478 = vrot.lane.b32.xlu1 %v315_v9, %s1597_s6  ;;  %382 = vrot.lane.b32.xlu0 %v1336_v4, %s1594_s26  ;;  %v1350_v32 = vld [vmem:[%s1646_s24 + $0x81] sm:$0xff]  ;;  %v1374_v39 = vld [vmem:[%s1646_s24 + $0x91] sm:$0xff] }
  0x1e   : > { %v1358_v33 = vld [vmem:[%s1646_s24 + $0x82] sm:$0xff]  ;;  %v1382_v40 = vld [vmem:[%s1646_s24 + $0x92] sm:$0xff] }
  0x21   : > { %528 = vrot.lane.b32.xlu1 %v1336_v4, %s1598_s9  ;;  %431 = vrot.lane.b32.xlu0 %v1344_v14, %s1596_s28 }
  0x25   : > { %577 = vrot.lane.b32.xlu1 %v1344_v14, %s1599_s12  ;;  %480 = vrot.lane.b32.xlu0 %v1352_v16, %s1597_s6 }
  0x29   : > { %626 = vrot.lane.b32.xlu1 %v1352_v16, %s1601_s17  ;;  %530 = vrot.lane.b32.xlu0 %v1659_v6, %s1598_s9 }
  0x2d   : > { %628 = vrot.lane.b32.xlu1 %v1376_v20, %s1601_s17  ;;  %579 = vrot.lane.b32.xlu0 %v1368_v21, %s1599_s12 }
  0x31   : > { %334 = vrot.lane.b32.xlu1 %v1352_v16, %s1595_s27  ;;  %285 = vrot.lane.b32.xlu0 %v1344_v14, %s1592_s25 }
  0x35   : > { %384 = vrot.lane.b32.xlu1 %v1659_v6, %s1594_s26  ;;  %287 = vrot.lane.b32.xlu0 %v1368_v21, %s1592_s25 }
  0x39   : > { %433 = vrot.lane.b32.xlu1 %v1368_v21, %s1596_s28  ;;  %336 = vrot.lane.b32.xlu0 %v1376_v20, %s1595_s27 }
  0x3d   : > { %482 = vrot.lane.b32.xlu1 %v1376_v20, %s1597_s6  ;;  %386 = vrot.lane.b32.xlu0 %v1663_v7, %s1594_s26 }
  0x41   : > { %532 = vrot.lane.b32.xlu1 %v1663_v7, %s1598_s9  ;;  %435 = vrot.lane.b32.xlu0 %v1346_v23, %s1596_s28 }
  0x45   : > { %581 = vrot.lane.b32.xlu1 %v1346_v23, %s1599_s12  ;;  %484 = vrot.lane.b32.xlu0 %v1354_v24, %s1597_s6 }
  0x49   : > { %630 = vrot.lane.b32.xlu1 %v1354_v24, %s1601_s17  ;;  %534 = vrot.lane.b32.xlu0 %v1670_v8, %s1598_s9 }
  0x4d   : > { %632 = vrot.lane.b32.xlu1 %v1378_v25, %s1601_s17  ;;  %583 = vrot.lane.b32.xlu0 %v1370_v26, %s1599_s12 }
  0x51   : > { %338 = vrot.lane.b32.xlu1 %v1354_v24, %s1595_s27  ;;  %289 = vrot.lane.b32.xlu0 %v1346_v23, %s1592_s25 }
  0x55   : > { %388 = vrot.lane.b32.xlu1 %v1670_v8, %s1594_s26  ;;  %291 = vrot.lane.b32.xlu0 %v1370_v26, %s1592_s25 }
  0x59   : > { %437 = vrot.lane.b32.xlu1 %v1370_v26, %s1596_s28  ;;  %340 = vrot.lane.b32.xlu0 %v1378_v25, %s1595_s27 }
  0x5d   : > { %486 = vrot.lane.b32.xlu1 %v1378_v25, %s1597_s6  ;;  %390 = vrot.lane.b32.xlu0 %v1676_v10, %s1594_s26 }
  0x61   : > { %536 = vrot.lane.b32.xlu1 %v1676_v10, %s1598_s9  ;;  %439 = vrot.lane.b32.xlu0 %v1348_v27, %s1596_s28 }
  0x65   : > { %585 = vrot.lane.b32.xlu1 %v1348_v27, %s1599_s12  ;;  %488 = vrot.lane.b32.xlu0 %v1356_v28, %s1597_s6 }
  0x69   : > { %634 = vrot.lane.b32.xlu1 %v1356_v28, %s1601_s17  ;;  %538 = vrot.lane.b32.xlu0 %v1681_v11, %s1598_s9 }
  0x6d   : > { %636 = vrot.lane.b32.xlu1 %v1380_v29, %s1601_s17  ;;  %587 = vrot.lane.b32.xlu0 %v1372_v30, %s1599_s12 }
  0x71   : > { %342 = vrot.lane.b32.xlu1 %v1356_v28, %s1595_s27  ;;  %293 = vrot.lane.b32.xlu0 %v1348_v27, %s1592_s25 }
  0x75   : > { %392 = vrot.lane.b32.xlu1 %v1681_v11, %s1594_s26  ;;  %295 = vrot.lane.b32.xlu0 %v1372_v30, %s1592_s25  ;;  %s1981_s25 = scalar_lea.vmem %s2037_s3, %s1400_s20 }
  0x79   : > { %441 = vrot.lane.b32.xlu1 %v1372_v30, %s1596_s28  ;;  %344 = vrot.lane.b32.xlu0 %v1380_v29, %s1595_s27 }
  0x7d   : > { %490 = vrot.lane.b32.xlu1 %v1380_v29, %s1597_s6  ;;  %394 = vrot.lane.b32.xlu0 %v1342_v31, %s1594_s26 }
  0x81   : > { %540 = vrot.lane.b32.xlu1 %v1342_v31, %s1598_s9  ;;  %443 = vrot.lane.b32.xlu0 %v1350_v32, %s1596_s28  ;;  %s243_s28 = scalar_lea.vmem %s2038_s4, %s2043_s19 }
  0x83   : > { %v284_v34 = vpop.permute.xlu1 %283  ;;  %v282_v35 = vpop.permute.xlu0 %281 }
  0x84   : > { %307 = vst.msk [vmem:[#allocation2 + $0x8] sm:$0xff] %vm305_vm3, %v284_v34  ;;  %306 = vst.msk [vmem:[#allocation2] sm:$0xff] %vm305_vm3, %v282_v35 }
  0x85   : > { %589 = vrot.lane.b32.xlu1 %v1350_v32, %s1599_s12  ;;  %492 = vrot.lane.b32.xlu0 %v1358_v33, %s1597_s6  ;;  %s246_s6 = scalar_lea.vmem %s2039_s5, %s2043_s19 }
  0x87   : > { %v381_v37 = vpop.permute.xlu1 %380  ;;  %v331_v38 = vpop.permute.xlu0 %330 }
  0x88   : > { %355 = vst.msk [vmem:[#allocation2] sm:$0xff] %vm354_vm4, %v331_v38 }
  0x89   : > { %638 = vrot.lane.b32.xlu1 %v1358_v33, %s1601_s17  ;;  %542 = vrot.lane.b32.xlu0 %v1366_v36, %s1598_s9  ;;  %405 = vst.msk [vmem:[#allocation2] sm:$0xff] %vm404_vm5, %v381_v37 }
  0x8b   : > { %v430_v41 = vpop.permute.xlu1 %429  ;;  %v333_v42 = vpop.permute.xlu0 %332 }
  0x8c   : > { %454 = vst.msk [vmem:[#allocation2] sm:$0xff] %vm453_vm6, %v430_v41 }
  0x8d   : > { %356 = vst.msk [vmem:[#allocation2 + $0x8] sm:$0xff] %vm354_vm4, %v333_v42  ;;  %591 = vrot.lane.b32.xlu0 %v1374_v39, %s1599_s12  ;;  %640 = vrot.lane.b32.xlu1 %v1382_v40, %s1601_s17 }
  0x8f   : > { %v479_v43 = vpop.permute.xlu1 %478  ;;  %v383_v44 = vpop.permute.xlu0 %382 }
  0x90   : > { %503 = vst.msk [vmem:[#allocation2] sm:$0xff] %vm502_vm7, %v479_v43 }
  0x91   : > { %406 = vst.msk [vmem:[#allocation2 + $0x8] sm:$0xff] %vm404_vm5, %v383_v44 }
  0x93   : > { %v529_v45 = vpop.permute.xlu1 %528  ;;  %v432_v46 = vpop.permute.xlu0 %431 }
  0x94   : > { %553 = vst.msk [vmem:[#allocation2] sm:$0xff] %vm552_vm8, %v529_v45 }
  0x95   : > { %455 = vst.msk [vmem:[#allocation2 + $0x8] sm:$0xff] %vm453_vm6, %v432_v46 }
  0x97   : > { %v578_v47 = vpop.permute.xlu1 %577  ;;  %v481_v48 = vpop.permute.xlu0 %480 }
  0x98   : > { %602 = vst.msk [vmem:[#allocation2] sm:$0xff] %vm601_vm9, %v578_v47 }
  0x99   : > { %504 = vst.msk [vmem:[#allocation2 + $0x8] sm:$0xff] %vm502_vm7, %v481_v48 }
  0x9b   : > { %v627_v49 = vpop.permute.xlu1 %626  ;;  %v531_v50 = vpop.permute.xlu0 %530 }
  0x9c   : > { %651 = vst.msk [vmem:[#allocation2] sm:$0xff] %vm650_vm10, %v627_v49 }
  0x9d   : > { %554 = vst.msk [vmem:[#allocation2 + $0x8] sm:$0xff] %vm552_vm8, %v531_v50 }
  0x9f   : > { %v629_v51 = vpop.permute.xlu1 %628  ;;  %v580_v52 = vpop.permute.xlu0 %579 }
  0xa0   : > { %603 = vst.msk [vmem:[#allocation2 + $0x8] sm:$0xff] %vm601_vm9, %v580_v52 }
  0xa1   : > { %652 = vst.msk [vmem:[#allocation2 + $0x8] sm:$0xff] %vm650_vm10, %v629_v51 }
  0xa3   : > { %v335_v53 = vpop.permute.xlu1 %334  ;;  %v286_v54 = vpop.permute.xlu0 %285  ;;  %v669_v55 = vld [vmem:[#allocation2] sm:$0xff] }
  0xa4   : > { %308 = vst.msk [vmem:[#allocation2 + $0x10] sm:$0xff] %vm305_vm3, %v286_v54  ;;  %v670_v56 = vpack.c.bf16 %v669_v55, %v669_v55 }
  0xa5   : > { %357 = vst.msk [vmem:[#allocation2 + $0x10] sm:$0xff] %vm354_vm4, %v335_v53 }
  0xa6   : > { %1460 = vmatmul.mubr.msk.bf16.vlgmr.msra.gmra.mrb[0].mxu0 %vm704_vm11, %v670_v56 }
  0xa7   : > { %v385_v57 = vpop.permute.xlu1 %384  ;;  %v288_v58 = vpop.permute.xlu0 %287  ;;  %1478 = vmatpush3.bf16.msra.mxu0 %v1694_v13  ;;  %1487 = vmatprep.mubr.msk.bf16.mxu0 %vm1600_vm2, %v1593_v5 }
  0xa8   : > { %407 = vst.msk [vmem:[#allocation2 + $0x10] sm:$0xff] %vm404_vm5, %v385_v57  ;;  %v771_v59 = vld [vmem:[#allocation2 + $0x8] sm:$0xff]  ;;  %1479 = vmatprep.subr.bf16.mxu0 %v1593_v5 }
  0xa9   : > { %309 = vst.msk [vmem:[#allocation2 + $0x18] sm:$0xff] %vm305_vm3, %v288_v58  ;;  %v772_v60 = vpack.c.bf16 %v771_v59, %v771_v59 }
  0xab   : > { %v434_v61 = vpop.permute.xlu1 %433  ;;  %v337_v62 = vpop.permute.xlu0 %336  ;;  %1474 = vmatmul.mubr.msk.bf16.vlgmr.msra.gmra.mrb[0].mxu1 %vm704_vm11, %v772_v60  ;;  %1480 = vmatpush3.bf16.msra.mxu0 %v1703_v15 }
  0xac   : > { %456 = vst.msk [vmem:[#allocation2 + $0x10] sm:$0xff] %vm453_vm6, %v434_v61  ;;  %1492 = vmatpush3.bf16.msra.mxu1 %v1694_v13  ;;  %1481 = vmatprep.subr.bf16.mxu0 %v1593_v5 }
  0xad   : > { %358 = vst.msk [vmem:[#allocation2 + $0x18] sm:$0xff] %vm354_vm4, %v337_v62  ;;  %1493 = vmatprep.subr.bf16.mxu1 %v1593_v5  ;;  %1501 = vmatprep.mubr.msk.bf16.mxu1 %vm1600_vm2, %v1593_v5 }
  0xaf   : > { %v483_v63 = vpop.permute.xlu1 %482  ;;  %v387_v0 = vpop.permute.xlu0 %386  ;;  %1482 = vmatpush3.bf16.msra.mxu0 %v1715_v17 }
  0xb0   : > { %505 = vst.msk [vmem:[#allocation2 + $0x10] sm:$0xff] %vm502_vm7, %v483_v63  ;;  %1494 = vmatpush3.bf16.msra.mxu1 %v1703_v15  ;;  %1483 = vmatprep.subr.bf16.mxu0 %v1593_v5 }
  0xb1   : > { %408 = vst.msk [vmem:[#allocation2 + $0x18] sm:$0xff] %vm404_vm5, %v387_v0  ;;  %1495 = vmatprep.subr.bf16.mxu1 %v1593_v5 }
  0xb3   : > { %v533_v1 = vpop.permute.xlu1 %532  ;;  %v436_v2 = vpop.permute.xlu0 %435  ;;  %1484 = vmatpush3.bf16.msra.mxu0 %v1726_v18 }
  0xb4   : > { %555 = vst.msk [vmem:[#allocation2 + $0x10] sm:$0xff] %vm552_vm8, %v533_v1  ;;  %1496 = vmatpush3.bf16.msra.mxu1 %v1715_v17  ;;  %1485 = vmatprep.subr.bf16.mxu0 %v1593_v5 }
  0xb5   : > { %457 = vst.msk [vmem:[#allocation2 + $0x18] sm:$0xff] %vm453_vm6, %v436_v2  ;;  %1497 = vmatprep.subr.bf16.mxu1 %v1593_v5 }
  0xb7   : > { %v582_v3 = vpop.permute.xlu1 %581  ;;  %v485_v4 = vpop.permute.xlu0 %484  ;;  %1486 = vmatpush3.bf16.msra.mxu0 %v1746_v22 }
  0xb8   : > { %604 = vst.msk [vmem:[#allocation2 + $0x10] sm:$0xff] %vm601_vm9, %v582_v3  ;;  %1498 = vmatpush3.bf16.msra.mxu1 %v1726_v18  ;;  %1505 = vmatprep.subr.bf16.mxu0 %v1593_v5 }
  0xb9   : > { %506 = vst.msk [vmem:[#allocation2 + $0x18] sm:$0xff] %vm502_vm7, %v485_v4  ;;  %1499 = vmatprep.subr.bf16.mxu1 %v1593_v5 }
  0xbb   : > { %v631_v6 = vpop.permute.xlu1 %630  ;;  %v535_v7 = vpop.permute.xlu0 %534 }
  0xbc   : > { %653 = vst.msk [vmem:[#allocation2 + $0x10] sm:$0xff] %vm650_vm10, %v631_v6  ;;  %1500 = vmatpush3.bf16.msra.mxu1 %v1746_v22 }
  0xbd   : > { %556 = vst.msk [vmem:[#allocation2 + $0x18] sm:$0xff] %vm552_vm8, %v535_v7  ;;  %1519 = vmatprep.subr.bf16.mxu1 %v1593_v5 }
  0xbf   : > { %v633_v8 = vpop.permute.xlu1 %632  ;;  %v584_v9 = vpop.permute.xlu0 %583 }
  0xc0   : > { %605 = vst.msk [vmem:[#allocation2 + $0x18] sm:$0xff] %vm601_vm9, %v584_v9 }
  0xc1   : > { %654 = vst.msk [vmem:[#allocation2 + $0x18] sm:$0xff] %vm650_vm10, %v633_v8 }
  0xc3   : > { %v339_v10 = vpop.permute.xlu1 %338  ;;  %v290_v11 = vpop.permute.xlu0 %289  ;;  %v835_v12 = vld [vmem:[#allocation2 + $0x10] sm:$0xff] }
  0xc4   : > { %310 = vst.msk [vmem:[#allocation2 + $0x20] sm:$0xff] %vm305_vm3, %v290_v11  ;;  %v836_v14 = vpack.c.bf16 %v835_v12, %v835_v12 }
  0xc5   : > { %359 = vst.msk [vmem:[#allocation2 + $0x20] sm:$0xff] %vm354_vm4, %v339_v10 }
  0xc6   : > { %1488 = vmatmul.mubr.msk.bf16.vlgmr.msra.gmra.mrb[4].mxu0 %vm704_vm11, %v836_v14 }
  0xc7   : > { %v389_v16 = vpop.permute.xlu1 %388  ;;  %v292_v19 = vpop.permute.xlu0 %291  ;;  %1506 = vmatpush3.bf16.msra.mxu0 %v1694_v13  ;;  %1515 = vmatprep.mubr.msk.bf16.mxu0 %vm1600_vm2, %v1593_v5 }
  0xc8   : > { %409 = vst.msk [vmem:[#allocation2 + $0x20] sm:$0xff] %vm404_vm5, %v389_v16  ;;  %v899_v20 = vld [vmem:[#allocation2 + $0x18] sm:$0xff]  ;;  %1507 = vmatprep.subr.bf16.mxu0 %v1593_v5 }
  0xc9   : > { %311 = vst.msk [vmem:[#allocation2 + $0x28] sm:$0xff] %vm305_vm3, %v292_v19  ;;  %v900_v21 = vpack.c.bf16 %v899_v20, %v899_v20 }
  0xcb   : > { %v438_v23 = vpop.permute.xlu1 %437  ;;  %v341_v24 = vpop.permute.xlu0 %340  ;;  %1502 = vmatmul.mubr.msk.bf16.vlgmr.msra.gmra.mrb[4].mxu1 %vm704_vm11, %v900_v21  ;;  %1508 = vmatpush3.bf16.msra.mxu0 %v1703_v15 }
  0xcc   : > { %458 = vst.msk [vmem:[#allocation2 + $0x20] sm:$0xff] %vm453_vm6, %v438_v23  ;;  %1520 = vmatpush3.bf16.msra.mxu1 %v1694_v13  ;;  %1509 = vmatprep.subr.bf16.mxu0 %v1593_v5 }
  0xcd   : > { %360 = vst.msk [vmem:[#allocation2 + $0x28] sm:$0xff] %vm354_vm4, %v341_v24  ;;  %1521 = vmatprep.subr.bf16.mxu1 %v1593_v5  ;;  %1529 = vmatprep.mubr.msk.bf16.mxu1 %vm1600_vm2, %v1593_v5 }
  0xcf   : > { %v487_v25 = vpop.permute.xlu1 %486  ;;  %v391_v26 = vpop.permute.xlu0 %390  ;;  %1510 = vmatpush3.bf16.msra.mxu0 %v1715_v17 }
  0xd0   : > { %507 = vst.msk [vmem:[#allocation2 + $0x20] sm:$0xff] %vm502_vm7, %v487_v25  ;;  %1522 = vmatpush3.bf16.msra.mxu1 %v1703_v15  ;;  %1511 = vmatprep.subr.bf16.mxu0 %v1593_v5 }
  0xd1   : > { %410 = vst.msk [vmem:[#allocation2 + $0x28] sm:$0xff] %vm404_vm5, %v391_v26  ;;  %1523 = vmatprep.subr.bf16.mxu1 %v1593_v5 }
  0xd3   : > { %v537_v27 = vpop.permute.xlu1 %536  ;;  %v440_v28 = vpop.permute.xlu0 %439  ;;  %1512 = vmatpush3.bf16.msra.mxu0 %v1726_v18 }
  0xd4   : > { %557 = vst.msk [vmem:[#allocation2 + $0x20] sm:$0xff] %vm552_vm8, %v537_v27  ;;  %1524 = vmatpush3.bf16.msra.mxu1 %v1715_v17  ;;  %1513 = vmatprep.subr.bf16.mxu0 %v1593_v5 }
  0xd5   : > { %459 = vst.msk [vmem:[#allocation2 + $0x28] sm:$0xff] %vm453_vm6, %v440_v28  ;;  %1525 = vmatprep.subr.bf16.mxu1 %v1593_v5 }
  0xd7   : > { %v586_v29 = vpop.permute.xlu1 %585  ;;  %v489_v30 = vpop.permute.xlu0 %488  ;;  %1514 = vmatpush3.bf16.msra.mxu0 %v1746_v22 }
  0xd8   : > { %606 = vst.msk [vmem:[#allocation2 + $0x20] sm:$0xff] %vm601_vm9, %v586_v29  ;;  %1526 = vmatpush3.bf16.msra.mxu1 %v1726_v18  ;;  %1533 = vmatprep.subr.bf16.mxu0 %v1593_v5 }
  0xd9   : > { %508 = vst.msk [vmem:[#allocation2 + $0x28] sm:$0xff] %vm502_vm7, %v489_v30  ;;  %1527 = vmatprep.subr.bf16.mxu1 %v1593_v5 }
  0xdb   : > { %v635_v31 = vpop.permute.xlu1 %634  ;;  %v539_v32 = vpop.permute.xlu0 %538 }
  0xdc   : > { %655 = vst.msk [vmem:[#allocation2 + $0x20] sm:$0xff] %vm650_vm10, %v635_v31  ;;  %1528 = vmatpush3.bf16.msra.mxu1 %v1746_v22 }
  0xdd   : > { %558 = vst.msk [vmem:[#allocation2 + $0x28] sm:$0xff] %vm552_vm8, %v539_v32  ;;  %1547 = vmatprep.subr.bf16.mxu1 %v1593_v5 }
  0xdf   : > { %v637_v33 = vpop.permute.xlu1 %636  ;;  %v588_v34 = vpop.permute.xlu0 %587 }
  0xe0   : > { %607 = vst.msk [vmem:[#allocation2 + $0x28] sm:$0xff] %vm601_vm9, %v588_v34 }
  0xe1   : > { %656 = vst.msk [vmem:[#allocation2 + $0x28] sm:$0xff] %vm650_vm10, %v637_v33 }
  0xe3   : > { %v343_v35 = vpop.permute.xlu1 %342  ;;  %v294_v36 = vpop.permute.xlu0 %293  ;;  %v963_v37 = vld [vmem:[#allocation2 + $0x20] sm:$0xff] }
  0xe4   : > { %312 = vst.msk [vmem:[#allocation2 + $0x30] sm:$0xff] %vm305_vm3, %v294_v36  ;;  %v964_v38 = vpack.c.bf16 %v963_v37, %v963_v37 }
  0xe5   : > { %361 = vst.msk [vmem:[#allocation2 + $0x30] sm:$0xff] %vm354_vm4, %v343_v35 }
  0xe6   : > { %1516 = vmatmul.mubr.msk.bf16.vlgmr.msra.gmra.mrb[8].mxu0 %vm704_vm11, %v964_v38 }
  0xe7   : > { %v393_v39 = vpop.permute.xlu1 %392  ;;  %v296_v40 = vpop.permute.xlu0 %295  ;;  %1534 = vmatpush3.bf16.msra.mxu0 %v1694_v13  ;;  %1543 = vmatprep.mubr.msk.bf16.mxu0 %vm1600_vm2, %v1593_v5 }
  0xe8   : > { %411 = vst.msk [vmem:[#allocation2 + $0x30] sm:$0xff] %vm404_vm5, %v393_v39  ;;  %v1027_v41 = vld [vmem:[#allocation2 + $0x28] sm:$0xff]  ;;  %1535 = vmatprep.subr.bf16.mxu0 %v1593_v5 }
  0xe9   : > { %313 = vst.msk [vmem:[#allocation2 + $0x38] sm:$0xff] %vm305_vm3, %v296_v40  ;;  %v1028_v42 = vpack.c.bf16 %v1027_v41, %v1027_v41 }
  0xeb   : > { %v442_v43 = vpop.permute.xlu1 %441  ;;  %v345_v44 = vpop.permute.xlu0 %344  ;;  %1530 = vmatmul.mubr.msk.bf16.vlgmr.msra.gmra.mrb[8].mxu1 %vm704_vm11, %v1028_v42  ;;  %1536 = vmatpush3.bf16.msra.mxu0 %v1703_v15 }
  0xec   : > { %460 = vst.msk [vmem:[#allocation2 + $0x30] sm:$0xff] %vm453_vm6, %v442_v43  ;;  %1548 = vmatpush3.bf16.msra.mxu1 %v1694_v13  ;;  %1537 = vmatprep.subr.bf16.mxu0 %v1593_v5 }
  0xed   : > { %362 = vst.msk [vmem:[#allocation2 + $0x38] sm:$0xff] %vm354_vm4, %v345_v44  ;;  %1549 = vmatprep.subr.bf16.mxu1 %v1593_v5  ;;  %1557 = vmatprep.mubr.msk.bf16.mxu1 %vm1600_vm2, %v1593_v5 }
  0xef   : > { %v491_v45 = vpop.permute.xlu1 %490  ;;  %v395_v46 = vpop.permute.xlu0 %394  ;;  %1538 = vmatpush3.bf16.msra.mxu0 %v1715_v17 }
  0xf0   : > { %509 = vst.msk [vmem:[#allocation2 + $0x30] sm:$0xff] %vm502_vm7, %v491_v45  ;;  %1550 = vmatpush3.bf16.msra.mxu1 %v1703_v15  ;;  %1539 = vmatprep.subr.bf16.mxu0 %v1593_v5 }
  0xf1   : > { %412 = vst.msk [vmem:[#allocation2 + $0x38] sm:$0xff] %vm404_vm5, %v395_v46  ;;  %1551 = vmatprep.subr.bf16.mxu1 %v1593_v5 }
  0xf3   : > { %v541_v13 = vpop.permute.xlu1 %540  ;;  %v444_v47 = vpop.permute.xlu0 %443  ;;  %1540 = vmatpush3.bf16.msra.mxu0 %v1726_v18 }
  0xf4   : > { %559 = vst.msk [vmem:[#allocation2 + $0x30] sm:$0xff] %vm552_vm8, %v541_v13  ;;  %1552 = vmatpush3.bf16.msra.mxu1 %v1715_v17  ;;  %1541 = vmatprep.subr.bf16.mxu0 %v1593_v5 }
  0xf5   : > { %461 = vst.msk [vmem:[#allocation2 + $0x38] sm:$0xff] %vm453_vm6, %v444_v47  ;;  %1553 = vmatprep.subr.bf16.mxu1 %v1593_v5 }
  0xf7   : > { %v590_v48 = vpop.permute.xlu1 %589  ;;  %v493_v15 = vpop.permute.xlu0 %492  ;;  %1542 = vmatpush3.bf16.msra.mxu0 %v1746_v22 }
  0xf8   : > { %608 = vst.msk [vmem:[#allocation2 + $0x30] sm:$0xff] %vm601_vm9, %v590_v48  ;;  %1554 = vmatpush3.bf16.msra.mxu1 %v1726_v18 }
  0xf9   : > { %510 = vst.msk [vmem:[#allocation2 + $0x38] sm:$0xff] %vm502_vm7, %v493_v15  ;;  %1555 = vmatprep.subr.bf16.mxu1 %v1593_v5 }
  0xfb   : > { %v639_v49 = vpop.permute.xlu1 %638  ;;  %v543_v17 = vpop.permute.xlu0 %542 }
  0xfc   : > { %657 = vst.msk [vmem:[#allocation2 + $0x30] sm:$0xff] %vm650_vm10, %v639_v49  ;;  %1556 = vmatpush3.bf16.msra.mxu1 %v1746_v22  ;;  %v1976_v22 = vld [vmem:[%s2036_s2] ss:$0 sm:$0xff] }
  0xfd   : > { %560 = vst.msk [vmem:[#allocation2 + $0x38] sm:$0xff] %vm552_vm8, %v543_v17 }
  0xff   : > { %v592_v50 = vpop.permute.xlu0 %591  ;;  %v641_v51 = vpop.permute.xlu1 %640 }
 0x100   : > { %609 = vst.msk [vmem:[#allocation2 + $0x38] sm:$0xff] %vm601_vm9, %v592_v50 }
 0x101   : > { %658 = vst.msk [vmem:[#allocation2 + $0x38] sm:$0xff] %vm650_vm10, %v641_v51 }
 0x103   : > { %v1091_v52 = vld [vmem:[#allocation2 + $0x30] sm:$0xff] }
 0x104   : > { %v1092_v18 = vpack.c.bf16 %v1091_v52, %v1091_v52 }
 0x106   : > { %1544 = vmatmul.mubr.msk.bf16.vlgmr.msra.gmra.mrb[12].mxu0 %vm704_vm11, %v1092_v18 }
 0x108   : > { %v1155_v5 = vld [vmem:[#allocation2 + $0x38] sm:$0xff] }
 0x109   : > { %v1156_v53 = vpack.c.bf16 %v1155_v5, %v1155_v5 }
 0x10b   : > { %1558 = vmatmul.mubr.msk.bf16.vlgmr.msra.gmra.mrb[12].mxu1 %vm704_vm11, %v1156_v53 }
 0x179   : > { %v746_v54 = vpop.f32.mrb[0].mxu0 }
 0x17a   : > { %v747_v55 = vadd.f32 %v1976_v22, %v746_v54  ;;  %v1461_v56 = vpop.f32.mrb[1].mxu0 }
 0x17b   : > { %v749_v57 = vpop.f32.mrb[2].mxu0 }
 0x17c   : > { %v752_v58 = vsel %vm256_vm0, %v747_v55, 0.0  ;;  %v760_v59 = vmul.f32 %v747_v55, %v747_v55  ;;  %769 = vst.msk [vmem:[%s1981_s25] sm:$0xff] %vm256_vm0, %v747_v55  ;;  %v1462_v60 = vpop.f32.mrb[3].mxu0 }
 0x17d   : > { %v753_v61 = vrot.slane %v752_v58, 4 }
 0x17e   : > { %v761_v62 = vsel %vm256_vm0, %v760_v59, 0.0  ;;  %v810_v63 = vpop.f32.mrb[0].mxu1 }
 0x17f   : > { %v754_v0 = vadd.f32 %v753_v61, %v752_v58  ;;  %v762_v1 = vrot.slane %v761_v62, 4  ;;  %v811_v2 = vadd.f32 %v1976_v22, %v810_v63  ;;  %v1475_v3 = vpop.f32.mrb[1].mxu1 }
 0x180   : > { %v813_v4 = vpop.f32.mrb[2].mxu1 }
 0x181   : > { %v755_v6 = vrot.slane %v754_v0, 2  ;;  %v763_v7 = vadd.f32 %v762_v1, %v761_v62  ;;  %v816_v8 = vsel %vm256_vm0, %v811_v2, 0.0  ;;  %v824_v9 = vmul.f32 %v811_v2, %v811_v2  ;;  %833 = vst.msk [vmem:[%s1981_s25 + $0x8] sm:$0xff] %vm256_vm0, %v811_v2  ;;  %v1476_v10 = vpop.f32.mrb[3].mxu1 }
 0x182   : > { %v817_v11 = vrot.slane %v816_v8, 4 }
 0x183   : > { %v764_v12 = vrot.slane %v763_v7, 2  ;;  %v825_v14 = vsel %vm256_vm0, %v824_v9, 0.0  ;;  %v756_v16 = vadd.f32 %v755_v6, %v754_v0 }
 0x184   : > { %v818_v19 = vadd.f32 %v817_v11, %v816_v8  ;;  %v826_v20 = vrot.slane %v825_v14, 4 }
 0x185   : > { %v765_v21 = vadd.f32 %v764_v12, %v763_v7  ;;  %v757_v25 = vrot.slane %v756_v16, 1 }
 0x186   : > { %v819_v23 = vrot.slane %v818_v19, 2  ;;  %v827_v24 = vadd.f32 %v826_v20, %v825_v14 }
 0x187   : > { %v766_v28 = vrot.slane %v765_v21, 1  ;;  %v758_v31 = vadd.f32 %v757_v25, %v756_v16 }
 0x188   : > { %v820_v26 = vadd.f32 %v819_v23, %v818_v19  ;;  %v828_v27 = vrot.slane %v827_v24, 2 }
 0x189   : > { %v767_v34 = vadd.f32 %v766_v28, %v765_v21 }
 0x18a   : > { %v821_v29 = vrot.slane %v820_v26, 1  ;;  %v829_v30 = vadd.f32 %v828_v27, %v827_v24 }
 0x18c   : > { %v822_v32 = vadd.f32 %v821_v29, %v820_v26  ;;  %v830_v33 = vrot.slane %v829_v30, 1 }
 0x18e   : > { %v823_v35 = vadd.f32 %v822_v32, %v758_v31  ;;  %v831_v36 = vadd.f32 %v830_v33, %v829_v30 }
 0x190   : > { %v832_v37 = vadd.f32 %v831_v36, %v767_v34 }
 0x199   : > { %v874_v38 = vpop.f32.mrb[4].mxu0 }
 0x19a   : > { %v875_v39 = vadd.f32 %v1976_v22, %v874_v38  ;;  %v1489_v40 = vpop.f32.mrb[5].mxu0 }
 0x19b   : > { %v877_v41 = vpop.f32.mrb[6].mxu0 }
 0x19c   : > { %v880_v42 = vsel %vm256_vm0, %v875_v39, 0.0  ;;  %v888_v43 = vmul.f32 %v875_v39, %v875_v39  ;;  %897 = vst.msk [vmem:[%s1981_s25 + $0x10] sm:$0xff] %vm256_vm0, %v875_v39  ;;  %v1490_v44 = vpop.f32.mrb[7].mxu0 }
 0x19d   : > { %v881_v45 = vrot.slane %v880_v42, 4 }
 0x19e   : > { %v889_v46 = vsel %vm256_vm0, %v888_v43, 0.0  ;;  %v938_v13 = vpop.f32.mrb[4].mxu1 }
 0x19f   : > { %v882_v47 = vadd.f32 %v881_v45, %v880_v42  ;;  %v890_v48 = vrot.slane %v889_v46, 4  ;;  %v939_v15 = vadd.f32 %v1976_v22, %v938_v13  ;;  %v1503_v49 = vpop.f32.mrb[5].mxu1 }
 0x1a0   : > { %v941_v17 = vpop.f32.mrb[6].mxu1 }
 0x1a1   : > { %v883_v50 = vrot.slane %v882_v47, 2  ;;  %v891_v51 = vadd.f32 %v890_v48, %v889_v46  ;;  %v944_v52 = vsel %vm256_vm0, %v939_v15, 0.0  ;;  %v952_v18 = vmul.f32 %v939_v15, %v939_v15  ;;  %961 = vst.msk [vmem:[%s1981_s25 + $0x18] sm:$0xff] %vm256_vm0, %v939_v15  ;;  %v1504_v5 = vpop.f32.mrb[7].mxu1 }
 0x1a2   : > { %v945_v53 = vrot.slane %v944_v52, 4 }
 0x1a3   : > { %v884_v54 = vadd.f32 %v883_v50, %v882_v47  ;;  %v892_v55 = vrot.slane %v891_v51, 2  ;;  %v953_v56 = vsel %vm256_vm0, %v952_v18, 0.0 }
 0x1a4   : > { %v946_v57 = vadd.f32 %v945_v53, %v944_v52  ;;  %v954_v58 = vrot.slane %v953_v56, 4 }
 0x1a5   : > { %v885_v59 = vrot.slane %v884_v54, 1  ;;  %v893_v60 = vadd.f32 %v892_v55, %v891_v51 }
 0x1a6   : > { %v947_v61 = vrot.slane %v946_v57, 2  ;;  %v955_v62 = vadd.f32 %v954_v58, %v953_v56 }
 0x1a7   : > { %v886_v63 = vadd.f32 %v885_v59, %v884_v54  ;;  %v894_v0 = vrot.slane %v893_v60, 1 }
 0x1a8   : > { %v948_v1 = vadd.f32 %v947_v61, %v946_v57  ;;  %v956_v2 = vrot.slane %v955_v62, 2 }
 0x1a9   : > { %v887_v3 = vadd.f32 %v886_v63, %v823_v35  ;;  %v895_v4 = vadd.f32 %v894_v0, %v893_v60 }
 0x1aa   : > { %v949_v6 = vrot.slane %v948_v1, 1  ;;  %v957_v7 = vadd.f32 %v956_v2, %v955_v62 }
 0x1ab   : > { %v896_v8 = vadd.f32 %v895_v4, %v832_v37 }
 0x1ac   : > { %v950_v9 = vadd.f32 %v949_v6, %v948_v1  ;;  %v958_v10 = vrot.slane %v957_v7, 1 }
 0x1ae   : > { %v951_v11 = vadd.f32 %v950_v9, %v887_v3  ;;  %v959_v12 = vadd.f32 %v958_v10, %v957_v7 }
 0x1b0   : > { %v960_v14 = vadd.f32 %v959_v12, %v896_v8 }
 0x1b9   : > { %v1002_v16 = vpop.f32.mrb[8].mxu0 }
 0x1ba   : > { %v1003_v19 = vadd.f32 %v1976_v22, %v1002_v16  ;;  %v1517_v20 = vpop.f32.mrb[9].mxu0 }
 0x1bb   : > { %v1005_v21 = vpop.f32.mrb[10].mxu0 }
 0x1bc   : > { %v1008_v23 = vsel %vm256_vm0, %v1003_v19, 0.0  ;;  %v1016_v24 = vmul.f32 %v1003_v19, %v1003_v19  ;;  %1025 = vst.msk [vmem:[%s1981_s25 + $0x20] sm:$0xff] %vm256_vm0, %v1003_v19  ;;  %v1518_v25 = vpop.f32.mrb[11].mxu0 }
 0x1bd   : > { %v1009_v26 = vrot.slane %v1008_v23, 4 }
 0x1be   : > { %v1017_v27 = vsel %vm256_vm0, %v1016_v24, 0.0  ;;  %v1066_v28 = vpop.f32.mrb[8].mxu1 }
 0x1bf   : > { %v1010_v29 = vadd.f32 %v1009_v26, %v1008_v23  ;;  %v1018_v30 = vrot.slane %v1017_v27, 4  ;;  %v1067_v31 = vadd.f32 %v1976_v22, %v1066_v28  ;;  %v1531_v32 = vpop.f32.mrb[9].mxu1 }
 0x1c0   : > { %v1069_v33 = vpop.f32.mrb[10].mxu1 }
 0x1c1   : > { %v1011_v34 = vrot.slane %v1010_v29, 2  ;;  %v1019_v35 = vadd.f32 %v1018_v30, %v1017_v27  ;;  %v1072_v36 = vsel %vm256_vm0, %v1067_v31, 0.0  ;;  %v1080_v37 = vmul.f32 %v1067_v31, %v1067_v31  ;;  %1089 = vst.msk [vmem:[%s1981_s25 + $0x28] sm:$0xff] %vm256_vm0, %v1067_v31  ;;  %v1532_v38 = vpop.f32.mrb[11].mxu1 }
 0x1c2   : > { %v1073_v39 = vrot.slane %v1072_v36, 4 }
 0x1c3   : > { %v1012_v40 = vadd.f32 %v1011_v34, %v1010_v29  ;;  %v1020_v41 = vrot.slane %v1019_v35, 2  ;;  %v1081_v42 = vsel %vm256_vm0, %v1080_v37, 0.0 }
 0x1c4   : > { %v1074_v43 = vadd.f32 %v1073_v39, %v1072_v36  ;;  %v1082_v44 = vrot.slane %v1081_v42, 4 }
 0x1c5   : > { %v1013_v45 = vrot.slane %v1012_v40, 1  ;;  %v1021_v46 = vadd.f32 %v1020_v41, %v1019_v35 }
 0x1c6   : > { %v1075_v13 = vrot.slane %v1074_v43, 2  ;;  %v1083_v47 = vadd.f32 %v1082_v44, %v1081_v42 }
 0x1c7   : > { %v1014_v48 = vadd.f32 %v1013_v45, %v1012_v40  ;;  %v1022_v15 = vrot.slane %v1021_v46, 1 }
 0x1c8   : > { %v1076_v49 = vadd.f32 %v1075_v13, %v1074_v43  ;;  %v1084_v17 = vrot.slane %v1083_v47, 2 }
 0x1c9   : > { %v1015_v50 = vadd.f32 %v1014_v48, %v951_v11  ;;  %v1023_v51 = vadd.f32 %v1022_v15, %v1021_v46 }
 0x1ca   : > { %v1077_v52 = vrot.slane %v1076_v49, 1  ;;  %v1085_v18 = vadd.f32 %v1084_v17, %v1083_v47 }
 0x1cb   : > { %v1024_v5 = vadd.f32 %v1023_v51, %v960_v14 }
 0x1cc   : > { %v1078_v53 = vadd.f32 %v1077_v52, %v1076_v49  ;;  %v1086_v54 = vrot.slane %v1085_v18, 1 }
 0x1ce   : > { %v1079_v55 = vadd.f32 %v1078_v53, %v1015_v50  ;;  %v1087_v56 = vadd.f32 %v1086_v54, %v1085_v18 }
 0x1d0   : > { %v1088_v57 = vadd.f32 %v1087_v56, %v1024_v5 }
 0x1d9   : > { %v1130_v58 = vpop.f32.mrb[12].mxu0 }
 0x1da   : > { %v1131_v59 = vadd.f32 %v1976_v22, %v1130_v58  ;;  %v1545_v60 = vpop.f32.mrb[13].mxu0 }
 0x1db   : > { %v1133_v61 = vpop.f32.mrb[14].mxu0 }
 0x1dc   : > { %v1136_v62 = vsel %vm256_vm0, %v1131_v59, 0.0  ;;  %v1144_v63 = vmul.f32 %v1131_v59, %v1131_v59  ;;  %1153 = vst.msk [vmem:[%s1981_s25 + $0x30] sm:$0xff] %vm256_vm0, %v1131_v59  ;;  %v1546_v0 = vpop.f32.mrb[15].mxu0 }
 0x1dd   : > { %v1137_v1 = vrot.slane %v1136_v62, 4 }
 0x1de   : > { %v1145_v2 = vsel %vm256_vm0, %v1144_v63, 0.0  ;;  %v1194_v3 = vpop.f32.mrb[12].mxu1 }
 0x1df   : > { %v1138_v4 = vadd.f32 %v1137_v1, %v1136_v62  ;;  %v1146_v6 = vrot.slane %v1145_v2, 4  ;;  %v1195_v7 = vadd.f32 %v1976_v22, %v1194_v3  ;;  %v1559_v8 = vpop.f32.mrb[13].mxu1 }
 0x1e0   : > { %v1197_v9 = vpop.f32.mrb[14].mxu1 }
 0x1e1   : > { %v1139_v10 = vrot.slane %v1138_v4, 2  ;;  %v1147_v11 = vadd.f32 %v1146_v6, %v1145_v2  ;;  %v1200_v12 = vsel %vm256_vm0, %v1195_v7, 0.0  ;;  %v1208_v14 = vmul.f32 %v1195_v7, %v1195_v7  ;;  %1217 = vst.msk [vmem:[%s1981_s25 + $0x38] sm:$0xff] %vm256_vm0, %v1195_v7  ;;  %v1560_v16 = vpop.f32.mrb[15].mxu1 }
 0x1e2   : > { %v1201_v19 = vrot.slane %v1200_v12, 4 }
 0x1e3   : > { %v1140_v20 = vadd.f32 %v1139_v10, %v1138_v4  ;;  %v1148_v21 = vrot.slane %v1147_v11, 2  ;;  %v1209_v23 = vsel %vm256_vm0, %v1208_v14, 0.0 }
 0x1e4   : > { %v1202_v24 = vadd.f32 %v1201_v19, %v1200_v12  ;;  %v1210_v25 = vrot.slane %v1209_v23, 4 }
 0x1e5   : > { %v1141_v26 = vrot.slane %v1140_v20, 1  ;;  %v1149_v22 = vadd.f32 %v1148_v21, %v1147_v11 }
 0x1e6   : > { %v1203_v27 = vrot.slane %v1202_v24, 2  ;;  %v1211_v28 = vadd.f32 %v1210_v25, %v1209_v23 }
 0x1e7   : > { %v1142_v29 = vadd.f32 %v1141_v26, %v1140_v20  ;;  %v1150_v30 = vrot.slane %v1149_v22, 1 }
 0x1e8   : > { %v1204_v31 = vadd.f32 %v1203_v27, %v1202_v24  ;;  %v1212_v32 = vrot.slane %v1211_v28, 2 }
 0x1e9   : > { %v1143_v33 = vadd.f32 %v1142_v29, %v1079_v55  ;;  %v1151_v34 = vadd.f32 %v1150_v30, %v1149_v22 }
 0x1ea   : > { %v1205_v35 = vrot.slane %v1204_v31, 1  ;;  %v1213_v36 = vadd.f32 %v1212_v32, %v1211_v28 }
 0x1eb   : > { %v1152_v37 = vadd.f32 %v1151_v34, %v1088_v57 }
 0x1ec   : > { %v1206_v38 = vadd.f32 %v1205_v35, %v1204_v31  ;;  %v1214_v39 = vrot.slane %v1213_v36, 1 }
 0x1ee   : > { %v1207_v40 = vadd.f32 %v1206_v38, %v1143_v33  ;;  %v1215_v41 = vadd.f32 %v1214_v39, %v1213_v36 }
 0x1f0   : > { %v1216_v42 = vadd.f32 %v1215_v41, %v1152_v37  ;;  %1219 = vst.msk [vmem:[%s243_s28] sm:$0x1] %vm1218_vm12, %v1207_v40 }
 0x1f2   : > { %1220 = vst.msk [vmem:[%s246_s6] sm:$0x1] %vm1218_vm12, %v1216_v42 }
 0x1f3 PF: > { %s16_s18 = sadd.s32 1, %s1590_s18  }
 0x1f4   : > { %p13_p5 = scmp.ge.s32.totalorder %s16_s18, 4  }
 0x1f6   :  { %15 = sbr.rel (!%p13_p5) target bundleno = 1 (0x1), region = 95 }

// kernel: _lambda_.20
= control target key start
LH: loop header
LB: loop body
LE: loop exit
PB: predicated region body
PF: predicated region fallthrough
CT: control target
= control target key end

     0   :  { %s493_s15 = smov 0   ;;  %s495_s16 = smov 0   ;;  %s528_s0 = inlined_call_operand.vmem [shape: f32[2,4,128], index: 0, kind: input, shape index: {}]   ;;  %s529_s1 = inlined_call_operand.vmem [shape: f32[2,4,128], index: 1, kind: input, shape index: {}]   ;;  %s530_s2 = inlined_call_operand.vmem [shape: f32[2,1,128], index: 2, kind: input, shape index: {}]   ;;  %s531_s3 = inlined_call_operand.vmem [shape: f32[2,1,128], index: 3, kind: input, shape index: {}]   ;;  %s532_s4 = inlined_call_operand.vmem [shape: f32[2,4,128], index: 4, kind: output, shape index: {}]  }
   0x1   :  { %s497_s17 = smov 0  }
   0x2 LB: > { %s26_s18 = sadd.s32 1, %s462_s16  ;;  %p412_p0 = scmp.ge.s32.totalorder %s466_s17, 1  ;;  %s466_s17 = sphi %s497_s17, %s14_s17   ;;  %s462_s16 = sphi %s495_s16, %s534_s16   ;;  %s458_s15 = sphi %s493_s15, %s533_s15  }
   0x3   : > { %p28_p1 = scmp.ge.s32.totalorder %s26_s18, 2  ;;  %p210_p2 = scmp.lt.s32.totalorder %s466_s17, 3 }
   0x5   : > { %s536_s18 = smov (%p28_p1, %s26_s18), 0  ;;  %p211_p3 = pnand %p412_p0, %p210_p2 }
   0x6   : > { %p253_p4 = scmp.lt.s32.totalorder (!%p211_p3), %s458_s15, 1 }
   0x7   : > { %214 = sbr.rel (%p211_p3) target bundleno = 27 (0x1b), region = 36 }
   0xe   : > { %s538_s15 = smov (!%p253_p4, %s458_s15), 1 }
   0xf   : > { %s413_s19 = sshll.u32 %s538_s15, 2  ;;  %s269_s22 = scalar_lea.vmem %s530_s2, %s538_s15 }
  0x10   : > { %s259_s25 = scalar_lea.vmem %s528_s0, %s413_s19  ;;  %s266_s28 = scalar_lea.vmem %s529_s1, %s413_s19  ;;  %v416_v0 = vld [vmem:[%s269_s22] ss:$0 sm:$0xff] }
  0x11   : > { %s272_s5 = scalar_lea.vmem %s531_s3, %s538_s15  ;;  %v280_v1 = vld [vmem:[%s259_s25] sm:$0xf]  ;;  %s279_s8 = scalar_lea.vmem %s532_s4, %s413_s19 }
  0x12   : > { %v288_v2 = vmul.f32 %v416_v0, %v280_v1  ;;  %v417_v3 = vld [vmem:[%s272_s5] ss:$0 sm:$0xff] }
  0x13   : > { %v297_v4 = vld [vmem:[%s266_s28] sm:$0xf] }
  0x14   : > { %v296_v5 = vadd.f32 %v417_v3, %v288_v2 }
  0x16   : > { %v298_v6 = vadd.f32 %v297_v4, %v296_v5 }
  0x18   : > { %v299_v7 = vmax.f32 %v298_v6, 0.0 }
  0x1a   : > { %300 = vst [vmem:[%s279_s8] sm:$0xf] %v299_v7 }
  0x1b PF: > { %s14_s17 = sadd.s32 1, %s466_s17   ;;  %s533_s15 = smov %s462_s16 }
  0x1c   : > { %p11_p5 = scmp.ge.s32.totalorder %s14_s17, 4   ;;  %s534_s16 = smov %s536_s18 }
  0x1e   :  { %13 = sbr.rel (!%p11_p5) target bundleno = 2 (0x2), region = 75 }

// kernel: _lambda_.21
= control target key start
LH: loop header
LB: loop body
LE: loop exit
PB: predicated region body
PF: predicated region fallthrough
CT: control target
= control target key end

     0   :  { %s1047_s18 = smov 0   ;;  %s1280_s0 = inlined_call_operand.vmem [shape: f32[10,2,5,16], index: 0, kind: input, shape index: {}]   ;;  %s1281_s1 = inlined_call_operand.vmem [shape: bf16[72,16], index: 1, kind: input, shape index: {}]   ;;  %s1282_s2 = inlined_call_operand.vmem [shape: f32[1,16], index: 2, kind: input, shape index: {}]   ;;  %s1283_s3 = inlined_call_operand.vmem [shape: f32[2,16,16], index: 3, kind: output, shape index: {0}]   ;;  %s1284_s4 = inlined_call_operand.vmem [shape: f32[2,1,16], index: 4, kind: output, shape index: {1}]   ;;  %s1285_s5 = inlined_call_operand.vmem [shape: f32[2,1,16], index: 5, kind: output, shape index: {2}]  }
   0x1 LB: > { %s1053_s19 = sadd.s32 4294967295, %s1008_s18   ;;  %p859_p0 = scmp.ge.s32.totalorder %s1008_s18, 1  ;;  %s1008_s18 = sphi %s1047_s18, %s16_s18  }
   0x2   : > { %p194_p1 = scmp.lt.s32.totalorder %s1008_s18, 3 }
   0x4   : > { %p195_p2 = pnand %p859_p0, %p194_p1 }
   0x5   : > { %s229_s20 = smul.u32 (!%p195_p2), 5, %s1053_s19  ;;  %v1061_v0 = vld [vmem:[%s1281_s1] sm:$0xff] (!%p195_p2)   ;;  %v1010_v1 = vmov (!%p195_p2), 0.0   ;;  %s1011_s27 = smov (!%p195_p2), 16   ;;  %vm252_vm0 = vcmask (!%p195_p2), 60416   ;;  %vm261_vm1 = vcmask (!%p195_p2), 126016  }
   0x6   : > { %198 = sbr.rel (%p195_p2) target bundleno = 427 (0x1ab), region = 32  ;;  %926 = vmatprep.subr.bf16.mxu0 (!%p195_p2), %v1010_v1  ;;  %940 = vmatprep.subr.bf16.mxu1 (!%p195_p2), %v1010_v1  ;;  %s1012_s28 = smov (!%p195_p2), 24   ;;  %v1096_v14 = vld [vmem:[%s1281_s1 + $0x8] sm:$0xff] (!%p195_p2)   ;;  %v1110_v18 = vld [vmem:[%s1281_s1 + $0x10] sm:$0xff] (!%p195_p2)   ;;  %v1127_v23 = vld [vmem:[%s1281_s1 + $0x18] sm:$0xff] (!%p195_p2)   ;;  %vm492_vm2 = vcmask (!%p195_p2), 1043456  }
   0x7   : > { %p230_p3 = scmp.lt.s32.totalorder (!%p195_p2), %s229_s20, 9  ;;  %927 = vmatpush3.bf16.msra.mxu0 (!%p195_p2), %v1061_v0  ;;  %941 = vmatpush3.bf16.msra.mxu1 (!%p195_p2), %v1061_v0  ;;  %s1013_s29 = smov (!%p195_p2), 40   ;;  %v1001_v25 = vld [vmem:[%s1281_s1 + $0x20] ss:$0 sps:$4 sm:$0xff] (!%p195_p2)   ;;  %vm1015_vm3 = vmmov (!%p195_p2), 0   ;;  %vm286_vm4 = vcmask (!%p195_p2), 191616  }
   0x8   : > { %928 = vmatprep.subr.bf16.mxu0 (!%p195_p2), %v1010_v1  ;;  %942 = vmatprep.subr.bf16.mxu1 (!%p195_p2), %v1010_v1  ;;  %s1014_s7 = smov (!%p195_p2), 48   ;;  %s1016_s14 = smov (!%p195_p2), 64   ;;  %v1149_v28 = vsel (!%p195_p2), %vm492_vm2, %v1001_v25, 0  ;;  %vm312_vm5 = vcmask (!%p195_p2), 257216   ;;  %vm337_vm6 = vcmask (!%p195_p2), 322816   ;;  %vm362_vm7 = vcmask (!%p195_p2), 388416  }
   0x9   : > { %936 = vmatprep.mubr.msk.bf16.mxu0 (!%p195_p2), %vm1015_vm3, %v1010_v1  ;;  %950 = vmatprep.mubr.msk.bf16.mxu1 (!%p195_p2), %vm1015_vm3, %v1010_v1  ;;  %vm388_vm8 = vcmask (!%p195_p2), 454016   ;;  %vm413_vm9 = vcmask (!%p195_p2), 519616   ;;  %vm438_vm10 = vcmask (!%p195_p2), 585216   ;;  %vm488_vm11 = vcmask (!%p195_p2), 588800   ;;  %p236_p4 = scmp.lt.s32.totalorder (!%p195_p2), %s1053_s19, 1 }
   0xa   : > { %vm536_vm12 = vcmask (!%p195_p2), 125952   ;;  %vm747_vm13 = vcmask (!%p195_p2), 122880  }
   0xb   : > { %929 = vmatpush3.bf16.msra.mxu0 (!%p195_p2), %v1096_v14  ;;  %943 = vmatpush3.bf16.msra.mxu1 (!%p195_p2), %v1096_v14 }
   0xc   : > { %930 = vmatprep.subr.bf16.mxu0 (!%p195_p2), %v1010_v1  ;;  %944 = vmatprep.subr.bf16.mxu1 (!%p195_p2), %v1010_v1 }
   0xd   : > { %s1287_s20 = smov (!%p230_p3, %s229_s20), 9  ;;  %s1289_s19 = smov (!%p236_p4, %s1053_s19), 1 }
   0xe   : > { %s900_s23 = sshll.u32 %s1287_s20, 4  ;;  %s901_s15 = sshll.u32 %s1289_s19, 4 }
   0xf   : > { %s1070_s26 = scalar_lea.vmem %s1280_s0, %s900_s23  ;;  %931 = vmatpush3.bf16.msra.mxu0 %v1110_v18  ;;  %945 = vmatpush3.bf16.msra.mxu1 %v1110_v18  ;;  %s1251_s22 = scalar_lea.vmem %s1283_s3, %s901_s15 }
  0x10   : > { %v267_v2 = vld [vmem:[%s1070_s26 + $0x11] sm:$0xf]  ;;  %v266_v3 = vld [vmem:[%s1070_s26 + $0x1] sm:$0xf]  ;;  %v868_v4 = vld [vmem:[%s1070_s26 + $0x8] sm:$0xf]  ;;  %932 = vmatprep.subr.bf16.mxu0 %v1010_v1  ;;  %946 = vmatprep.subr.bf16.mxu1 %v1010_v1  ;;  %s243_s25 = scalar_lea.vmem %s1284_s4, %s1289_s19 }
  0x11   : > { %276 = vrot.lane.b32.xlu1 %v267_v2, %s1011_s27  ;;  %274 = vrot.lane.b32.xlu0 %v266_v3, %s1011_s27  ;;  %v864_v5 = vld [vmem:[%s1070_s26 + $0x8] sm:$0xf]  ;;  %v865_v7 = vld [vmem:[%s1070_s26 + $0x18] sm:$0xf] }
  0x12   : > { %v872_v6 = vld [vmem:[%s1070_s26 + $0x9] sm:$0xf]  ;;  %v876_v8 = vld [vmem:[%s1070_s26 + $0x10] sm:$0xf]  ;;  %v869_v9 = vld [vmem:[%s1070_s26 + $0x18] sm:$0xf] }
  0x13   : > { %v249_v10 = vld [vmem:[%s1070_s26 + $0x10] sm:$0xf]  ;;  %v248_v12 = vld [vmem:[%s1070_s26] sm:$0xf]  ;;  %v873_v17 = vld [vmem:[%s1070_s26 + $0x19] sm:$0xf]  ;;  %933 = vmatpush3.bf16.msra.mxu0 %v1127_v23  ;;  %947 = vmatpush3.bf16.msra.mxu1 %v1127_v23 }
  0x14   : > { %v258_v11 = vld [vmem:[%s1070_s26 + $0x10] sm:$0xf]  ;;  %254 = vst.msk [vmem:[#allocation2 + $0x4] sm:$0xf] %vm252_vm0, %v249_v10  ;;  %v257_v13 = vld [vmem:[%s1070_s26] sm:$0xf]  ;;  %934 = vmatprep.subr.bf16.mxu0 %v1010_v1  ;;  %948 = vmatprep.subr.bf16.mxu1 %v1010_v1 }
  0x15   : > { %325 = vrot.lane.b32.xlu1 %v868_v4, %s1012_s28  ;;  %300 = vrot.lane.b32.xlu0 %v864_v5, %s1012_s28  ;;  %263 = vst.msk [vmem:[#allocation2 + $0x4] sm:$0xf] %vm261_vm1, %v258_v11  ;;  %v880_v15 = vld [vmem:[%s1070_s26 + $0x10] sm:$0xf]  ;;  %v250_v16 = vld [vmem:[%s1070_s26 + $0x20] sm:$0xf] }
  0x16   : > { %253 = vst.msk [vmem:[#allocation2] sm:$0xf] %vm252_vm0, %v248_v12  ;;  %255 = vst.msk [vmem:[#allocation2 + $0x8] sm:$0xf] %vm252_vm0, %v250_v16  ;;  %v259_v19 = vld [vmem:[%s1070_s26 + $0x20] sm:$0xf] }
  0x17   : > { %262 = vst.msk [vmem:[#allocation2] sm:$0xf] %vm261_vm1, %v257_v13  ;;  %264 = vst.msk [vmem:[#allocation2 + $0x8] sm:$0xf] %vm261_vm1, %v259_v19  ;;  %v884_v20 = vld [vmem:[%s1070_s26 + $0x11] sm:$0xf]  ;;  %935 = vmatpush3.bf16.msra.mxu0 %v1149_v28  ;;  %949 = vmatpush3.bf16.msra.mxu1 %v1149_v28 }
  0x18   : > { %v251_v21 = vld [vmem:[%s1070_s26 + $0x30] sm:$0xf]  ;;  %v877_v22 = vld [vmem:[%s1070_s26 + $0x20] sm:$0xf]  ;;  %v866_v29 = vld [vmem:[%s1070_s26 + $0x28] sm:$0xf]  ;;  %954 = vmatprep.subr.bf16.mxu0 %v1010_v1  ;;  %968 = vmatprep.subr.bf16.mxu1 %v1010_v1 }
  0x19   : > { %350 = vrot.lane.b32.xlu1 %v872_v6, %s1013_s29  ;;  %302 = vrot.lane.b32.xlu0 %v865_v7, %s1012_s28  ;;  %256 = vst.msk [vmem:[#allocation2 + $0xc] sm:$0xf] %vm252_vm0, %v251_v21  ;;  %v260_v24 = vld [vmem:[%s1070_s26 + $0x30] sm:$0xf]  ;;  %v885_v26 = vld [vmem:[%s1070_s26 + $0x21] sm:$0xf] }
  0x1a   : > { %265 = vst.msk [vmem:[#allocation2 + $0xc] sm:$0xf] %vm261_vm1, %v260_v24  ;;  %v881_v27 = vld [vmem:[%s1070_s26 + $0x20] sm:$0xf]  ;;  %v870_v31 = vld [vmem:[%s1070_s26 + $0x28] sm:$0xf] }
  0x1b   : > { %v268_v30 = vld [vmem:[%s1070_s26 + $0x21] sm:$0xf]  ;;  %v269_v32 = vld [vmem:[%s1070_s26 + $0x31] sm:$0xf]  ;;  %v874_v33 = vld [vmem:[%s1070_s26 + $0x29] sm:$0xf] }
  0x1c   : > { %v867_v34 = vld [vmem:[%s1070_s26 + $0x38] sm:$0xf]  ;;  %v878_v35 = vld [vmem:[%s1070_s26 + $0x30] sm:$0xf]  ;;  %v879_v40 = vld [vmem:[%s1070_s26 + $0x40] sm:$0xf] }
  0x1d   : > { %376 = vrot.lane.b32.xlu1 %v876_v8, %s1014_s7  ;;  %327 = vrot.lane.b32.xlu0 %v869_v9, %s1012_s28  ;;  %v871_v36 = vld [vmem:[%s1070_s26 + $0x38] sm:$0xf]  ;;  %v882_v37 = vld [vmem:[%s1070_s26 + $0x30] sm:$0xf] }
  0x1e   : > { %v875_v38 = vld [vmem:[%s1070_s26 + $0x39] sm:$0xf]  ;;  %v886_v39 = vld [vmem:[%s1070_s26 + $0x31] sm:$0xf]  ;;  %v883_v41 = vld [vmem:[%s1070_s26 + $0x40] sm:$0xf] }
  0x1f   : > { %v887_v42 = vld [vmem:[%s1070_s26 + $0x41] sm:$0xf] }
  0x21   : > { %401 = vrot.lane.b32.xlu1 %v880_v15, %s1014_s7  ;;  %352 = vrot.lane.b32.xlu0 %v873_v17, %s1013_s29 }
  0x25   : > { %426 = vrot.lane.b32.xlu1 %v884_v20, %s1016_s14  ;;  %378 = vrot.lane.b32.xlu0 %v877_v22, %s1014_s7 }
  0x29   : > { %428 = vrot.lane.b32.xlu1 %v885_v26, %s1016_s14  ;;  %403 = vrot.lane.b32.xlu0 %v881_v27, %s1014_s7 }
  0x2d   : > { %304 = vrot.lane.b32.xlu1 %v866_v29, %s1012_s28  ;;  %278 = vrot.lane.b32.xlu0 %v268_v30, %s1011_s27 }
  0x31   : > { %329 = vrot.lane.b32.xlu1 %v870_v31, %s1012_s28  ;;  %280 = vrot.lane.b32.xlu0 %v269_v32, %s1011_s27 }
  0x35   : > { %354 = vrot.lane.b32.xlu1 %v874_v33, %s1013_s29  ;;  %306 = vrot.lane.b32.xlu0 %v867_v34, %s1012_s28 }
  0x39   : > { %380 = vrot.lane.b32.xlu1 %v878_v35, %s1014_s7  ;;  %331 = vrot.lane.b32.xlu0 %v871_v36, %s1012_s28  ;;  %s246_s28 = scalar_lea.vmem %s1285_s5, %s1289_s19 }
  0x3d   : > { %405 = vrot.lane.b32.xlu1 %v882_v37, %s1014_s7  ;;  %356 = vrot.lane.b32.xlu0 %v875_v38, %s1013_s29 }
  0x41   : > { %430 = vrot.lane.b32.xlu1 %v886_v39, %s1016_s14  ;;  %382 = vrot.lane.b32.xlu0 %v879_v40, %s1014_s7 }
  0x45   : > { %407 = vrot.lane.b32.xlu0 %v883_v41, %s1014_s7  ;;  %432 = vrot.lane.b32.xlu1 %v887_v42, %s1016_s14 }
  0x83   : > { %v277_v43 = vpop.permute.xlu1 %276  ;;  %v275_v44 = vpop.permute.xlu0 %274 }
  0x84   : > { %288 = vst.msk [vmem:[#allocation2 + $0x4] sm:$0xf] %vm286_vm4, %v277_v43  ;;  %287 = vst.msk [vmem:[#allocation2] sm:$0xf] %vm286_vm4, %v275_v44 }
  0x87   : > { %v326_v45 = vpop.permute.xlu1 %325  ;;  %v301_v46 = vpop.permute.xlu0 %300 }
  0x88   : > { %313 = vst.msk [vmem:[#allocation2] sm:$0xf] %vm312_vm5, %v301_v46 }
  0x89   : > { %338 = vst.msk [vmem:[#allocation2] sm:$0xf] %vm337_vm6, %v326_v45 }
  0x8b   : > { %v351_v47 = vpop.permute.xlu1 %350  ;;  %v303_v48 = vpop.permute.xlu0 %302 }
  0x8c   : > { %363 = vst.msk [vmem:[#allocation2] sm:$0xf] %vm362_vm7, %v351_v47 }
  0x8d   : > { %314 = vst.msk [vmem:[#allocation2 + $0x4] sm:$0xf] %vm312_vm5, %v303_v48 }
  0x8f   : > { %v377_v49 = vpop.permute.xlu1 %376  ;;  %v328_v50 = vpop.permute.xlu0 %327 }
  0x90   : > { %389 = vst.msk [vmem:[#allocation2] sm:$0xf] %vm388_vm8, %v377_v49 }
  0x91   : > { %339 = vst.msk [vmem:[#allocation2 + $0x4] sm:$0xf] %vm337_vm6, %v328_v50 }
  0x93   : > { %v402_v51 = vpop.permute.xlu1 %401  ;;  %v353_v52 = vpop.permute.xlu0 %352 }
  0x94   : > { %414 = vst.msk [vmem:[#allocation2] sm:$0xf] %vm413_vm9, %v402_v51 }
  0x95   : > { %364 = vst.msk [vmem:[#allocation2 + $0x4] sm:$0xf] %vm362_vm7, %v353_v52 }
  0x97   : > { %v427_v53 = vpop.permute.xlu1 %426  ;;  %v379_v54 = vpop.permute.xlu0 %378 }
  0x98   : > { %439 = vst.msk [vmem:[#allocation2] sm:$0xf] %vm438_vm10, %v427_v53 }
  0x99   : > { %390 = vst.msk [vmem:[#allocation2 + $0x4] sm:$0xf] %vm388_vm8, %v379_v54 }
  0x9b   : > { %v429_v55 = vpop.permute.xlu1 %428  ;;  %v404_v56 = vpop.permute.xlu0 %403 }
  0x9c   : > { %415 = vst.msk [vmem:[#allocation2 + $0x4] sm:$0xf] %vm413_vm9, %v404_v56 }
  0x9d   : > { %440 = vst.msk [vmem:[#allocation2 + $0x4] sm:$0xf] %vm438_vm10, %v429_v55 }
  0x9f   : > { %v305_v57 = vpop.permute.xlu1 %304  ;;  %v279_v58 = vpop.permute.xlu0 %278  ;;  %v453_v59 = vld [vmem:[#allocation2] sm:$0xf] }
  0xa0   : > { %289 = vst.msk [vmem:[#allocation2 + $0x8] sm:$0xf] %vm286_vm4, %v279_v58  ;;  %v454_v60 = vpack.c.bf16 %v453_v59, %v453_v59 }
  0xa1   : > { %315 = vst.msk [vmem:[#allocation2 + $0x8] sm:$0xf] %vm312_vm5, %v305_v57 }
  0xa2   : > { %937 = vmatmul.mubr.msk.bf16.vlgmr.msra.gmra.mrb[0].mxu0 %vm488_vm11, %v454_v60 }
  0xa3   : > { %v330_v61 = vpop.permute.xlu1 %329  ;;  %v281_v62 = vpop.permute.xlu0 %280  ;;  %955 = vmatpush3.bf16.msra.mxu0 %v1061_v0  ;;  %964 = vmatprep.mubr.msk.bf16.mxu0 %vm1015_vm3, %v1010_v1 }
  0xa4   : > { %340 = vst.msk [vmem:[#allocation2 + $0x8] sm:$0xf] %vm337_vm6, %v330_v61  ;;  %v556_v63 = vld [vmem:[#allocation2 + $0x4] sm:$0xf]  ;;  %956 = vmatprep.subr.bf16.mxu0 %v1010_v1 }
  0xa5   : > { %290 = vst.msk [vmem:[#allocation2 + $0xc] sm:$0xf] %vm286_vm4, %v281_v62  ;;  %v557_v2 = vpack.c.bf16 %v556_v63, %v556_v63 }
  0xa7   : > { %v355_v3 = vpop.permute.xlu1 %354  ;;  %v307_v4 = vpop.permute.xlu0 %306  ;;  %951 = vmatmul.mubr.msk.bf16.vlgmr.msra.gmra.mrb[0].mxu1 %vm488_vm11, %v557_v2  ;;  %957 = vmatpush3.bf16.msra.mxu0 %v1096_v14 }
  0xa8   : > { %365 = vst.msk [vmem:[#allocation2 + $0x8] sm:$0xf] %vm362_vm7, %v355_v3  ;;  %969 = vmatpush3.bf16.msra.mxu1 %v1061_v0  ;;  %958 = vmatprep.subr.bf16.mxu0 %v1010_v1 }
  0xa9   : > { %316 = vst.msk [vmem:[#allocation2 + $0xc] sm:$0xf] %vm312_vm5, %v307_v4  ;;  %970 = vmatprep.subr.bf16.mxu1 %v1010_v1  ;;  %978 = vmatprep.mubr.msk.bf16.mxu1 %vm1015_vm3, %v1010_v1 }
  0xab   : > { %v381_v5 = vpop.permute.xlu1 %380  ;;  %v332_v6 = vpop.permute.xlu0 %331  ;;  %959 = vmatpush3.bf16.msra.mxu0 %v1110_v18 }
  0xac   : > { %391 = vst.msk [vmem:[#allocation2 + $0x8] sm:$0xf] %vm388_vm8, %v381_v5  ;;  %971 = vmatpush3.bf16.msra.mxu1 %v1096_v14  ;;  %960 = vmatprep.subr.bf16.mxu0 %v1010_v1 }
  0xad   : > { %341 = vst.msk [vmem:[#allocation2 + $0xc] sm:$0xf] %vm337_vm6, %v332_v6  ;;  %972 = vmatprep.subr.bf16.mxu1 %v1010_v1 }
  0xaf   : > { %v406_v0 = vpop.permute.xlu1 %405  ;;  %v357_v7 = vpop.permute.xlu0 %356  ;;  %961 = vmatpush3.bf16.msra.mxu0 %v1127_v23 }
  0xb0   : > { %416 = vst.msk [vmem:[#allocation2 + $0x8] sm:$0xf] %vm413_vm9, %v406_v0  ;;  %973 = vmatpush3.bf16.msra.mxu1 %v1110_v18  ;;  %962 = vmatprep.subr.bf16.mxu0 %v1010_v1 }
  0xb1   : > { %366 = vst.msk [vmem:[#allocation2 + $0xc] sm:$0xf] %vm362_vm7, %v357_v7  ;;  %974 = vmatprep.subr.bf16.mxu1 %v1010_v1 }
  0xb3   : > { %v431_v8 = vpop.permute.xlu1 %430  ;;  %v383_v9 = vpop.permute.xlu0 %382  ;;  %963 = vmatpush3.bf16.msra.mxu0 %v1149_v28 }
  0xb4   : > { %441 = vst.msk [vmem:[#allocation2 + $0x8] sm:$0xf] %vm438_vm10, %v431_v8  ;;  %975 = vmatpush3.bf16.msra.mxu1 %v1127_v23 }
  0xb5   : > { %392 = vst.msk [vmem:[#allocation2 + $0xc] sm:$0xf] %vm388_vm8, %v383_v9  ;;  %976 = vmatprep.subr.bf16.mxu1 %v1010_v1  ;;  %v888_v1 = vld [vmem:[%s1282_s2] ss:$0 sm:$0xff] }
  0xb7   : > { %v408_v10 = vpop.permute.xlu0 %407  ;;  %v433_v11 = vpop.permute.xlu1 %432 }
  0xb8   : > { %417 = vst.msk [vmem:[#allocation2 + $0xc] sm:$0xf] %vm413_vm9, %v408_v10  ;;  %977 = vmatpush3.bf16.msra.mxu1 %v1149_v28 }
  0xb9   : > { %442 = vst.msk [vmem:[#allocation2 + $0xc] sm:$0xf] %vm438_vm10, %v433_v11 }
  0xbb   : > { %v620_v12 = vld [vmem:[#allocation2 + $0x8] sm:$0xf] }
  0xbc   : > { %v621_v13 = vpack.c.bf16 %v620_v12, %v620_v12 }
  0xbe   : > { %965 = vmatmul.mubr.msk.bf16.vlgmr.msra.gmra.mrb[4].mxu0 %vm488_vm11, %v621_v13 }
  0xc0   : > { %v684_v14 = vld [vmem:[#allocation2 + $0xc] sm:$0xf] }
  0xc1   : > { %v685_v15 = vpack.c.bf16 %v684_v14, %v684_v14 }
  0xc3   : > { %979 = vmatmul.mubr.msk.bf16.vlgmr.msra.gmra.mrb[4].mxu1 %vm488_vm11, %v685_v15 }
 0x175   : > { %v530_v16 = vpop.f32.mrb[0].mxu0 }
 0x176   : > { %v531_v17 = vadd.f32 %v888_v1, %v530_v16  ;;  %v938_v18 = vpop.f32.mrb[1].mxu0 }
 0x177   : > { %v533_v19 = vpop.f32.mrb[2].mxu0 }
 0x178   : > { %v537_v20 = vsel %vm536_vm12, %v531_v17, 0.0  ;;  %v545_v21 = vmul.f32 %v531_v17, %v531_v17  ;;  %554 = vst.msk [vmem:[%s1251_s22] sm:$0xf] %vm536_vm12, %v531_v17  ;;  %v939_v22 = vpop.f32.mrb[3].mxu0 }
 0x179   : > { %v538_v23 = vrot.slane %v537_v20, 4 }
 0x17a   : > { %v546_v24 = vsel %vm536_vm12, %v545_v21, 0.0  ;;  %v595_v25 = vpop.f32.mrb[0].mxu1 }
 0x17b   : > { %v539_v26 = vadd.f32 %v538_v23, %v537_v20  ;;  %v547_v27 = vrot.slane %v546_v24, 4  ;;  %v596_v28 = vadd.f32 %v888_v1, %v595_v25  ;;  %v952_v29 = vpop.f32.mrb[1].mxu1 }
 0x17c   : > { %v598_v30 = vpop.f32.mrb[2].mxu1 }
 0x17d   : > { %v540_v31 = vrot.slane %v539_v26, 2  ;;  %v548_v32 = vadd.f32 %v547_v27, %v546_v24  ;;  %v601_v33 = vsel %vm536_vm12, %v596_v28, 0.0  ;;  %v609_v34 = vmul.f32 %v596_v28, %v596_v28  ;;  %618 = vst.msk [vmem:[%s1251_s22 + $0x4] sm:$0xf] %vm536_vm12, %v596_v28  ;;  %v953_v35 = vpop.f32.mrb[3].mxu1 }
 0x17e   : > { %v602_v36 = vrot.slane %v601_v33, 4 }
 0x17f   : > { %v549_v37 = vrot.slane %v548_v32, 2  ;;  %v610_v38 = vsel %vm536_vm12, %v609_v34, 0.0  ;;  %v541_v39 = vadd.f32 %v540_v31, %v539_v26 }
 0x180   : > { %v603_v40 = vadd.f32 %v602_v36, %v601_v33  ;;  %v611_v41 = vrot.slane %v610_v38, 4 }
 0x181   : > { %v550_v42 = vadd.f32 %v549_v37, %v548_v32  ;;  %v542_v45 = vrot.slane %v541_v39, 1 }
 0x182   : > { %v604_v43 = vrot.slane %v603_v40, 2  ;;  %v612_v44 = vadd.f32 %v611_v41, %v610_v38 }
 0x183   : > { %v551_v48 = vrot.slane %v550_v42, 1  ;;  %v543_v51 = vadd.f32 %v542_v45, %v541_v39 }
 0x184   : > { %v605_v46 = vadd.f32 %v604_v43, %v603_v40  ;;  %v613_v47 = vrot.slane %v612_v44, 2 }
 0x185   : > { %v552_v54 = vadd.f32 %v551_v48, %v550_v42 }
 0x186   : > { %v606_v49 = vrot.slane %v605_v46, 1  ;;  %v614_v50 = vadd.f32 %v613_v47, %v612_v44 }
 0x188   : > { %v607_v52 = vadd.f32 %v606_v49, %v605_v46  ;;  %v615_v53 = vrot.slane %v614_v50, 1 }
 0x18a   : > { %v608_v55 = vadd.f32 %v607_v52, %v543_v51  ;;  %v616_v56 = vadd.f32 %v615_v53, %v614_v50 }
 0x18c   : > { %v617_v57 = vadd.f32 %v616_v56, %v552_v54 }
 0x191   : > { %v659_v58 = vpop.f32.mrb[4].mxu0 }
 0x192   : > { %v660_v59 = vadd.f32 %v888_v1, %v659_v58  ;;  %v966_v60 = vpop.f32.mrb[5].mxu0 }
 0x193   : > { %v662_v61 = vpop.f32.mrb[6].mxu0 }
 0x194   : > { %v665_v62 = vsel %vm536_vm12, %v660_v59, 0.0  ;;  %v673_v63 = vmul.f32 %v660_v59, %v660_v59  ;;  %682 = vst.msk [vmem:[%s1251_s22 + $0x8] sm:$0xf] %vm536_vm12, %v660_v59  ;;  %v967_v2 = vpop.f32.mrb[7].mxu0 }
 0x195   : > { %v666_v3 = vrot.slane %v665_v62, 4 }
 0x196   : > { %v674_v4 = vsel %vm536_vm12, %v673_v63, 0.0  ;;  %v723_v5 = vpop.f32.mrb[4].mxu1 }
 0x197   : > { %v667_v6 = vadd.f32 %v666_v3, %v665_v62  ;;  %v675_v0 = vrot.slane %v674_v4, 4  ;;  %v724_v7 = vadd.f32 %v888_v1, %v723_v5  ;;  %v980_v8 = vpop.f32.mrb[5].mxu1 }
 0x198   : > { %v726_v9 = vpop.f32.mrb[6].mxu1 }
 0x199   : > { %v668_v10 = vrot.slane %v667_v6, 2  ;;  %v676_v11 = vadd.f32 %v675_v0, %v674_v4  ;;  %v729_v12 = vsel %vm536_vm12, %v724_v7, 0.0  ;;  %v737_v13 = vmul.f32 %v724_v7, %v724_v7  ;;  %746 = vst.msk [vmem:[%s1251_s22 + $0xc] sm:$0xf] %vm536_vm12, %v724_v7  ;;  %v981_v14 = vpop.f32.mrb[7].mxu1 }
 0x19a   : > { %v730_v15 = vrot.slane %v729_v12, 4 }
 0x19b   : > { %v669_v16 = vadd.f32 %v668_v10, %v667_v6  ;;  %v677_v17 = vrot.slane %v676_v11, 2  ;;  %v738_v18 = vsel %vm536_vm12, %v737_v13, 0.0 }
 0x19c   : > { %v731_v19 = vadd.f32 %v730_v15, %v729_v12  ;;  %v739_v20 = vrot.slane %v738_v18, 4 }
 0x19d   : > { %v670_v21 = vrot.slane %v669_v16, 1  ;;  %v678_v1 = vadd.f32 %v677_v17, %v676_v11 }
 0x19e   : > { %v732_v22 = vrot.slane %v731_v19, 2  ;;  %v740_v23 = vadd.f32 %v739_v20, %v738_v18 }
 0x19f   : > { %v671_v24 = vadd.f32 %v670_v21, %v669_v16  ;;  %v679_v25 = vrot.slane %v678_v1, 1 }
 0x1a0   : > { %v733_v26 = vadd.f32 %v732_v22, %v731_v19  ;;  %v741_v27 = vrot.slane %v740_v23, 2 }
 0x1a1   : > { %v672_v28 = vadd.f32 %v671_v24, %v608_v55  ;;  %v680_v29 = vadd.f32 %v679_v25, %v678_v1 }
 0x1a2   : > { %v734_v30 = vrot.slane %v733_v26, 1  ;;  %v742_v31 = vadd.f32 %v741_v27, %v740_v23 }
 0x1a3   : > { %v681_v32 = vadd.f32 %v680_v29, %v617_v57 }
 0x1a4   : > { %v735_v33 = vadd.f32 %v734_v30, %v733_v26  ;;  %v743_v34 = vrot.slane %v742_v31, 1 }
 0x1a6   : > { %v736_v35 = vadd.f32 %v735_v33, %v672_v28  ;;  %v744_v36 = vadd.f32 %v743_v34, %v742_v31 }
 0x1a8   : > { %v745_v37 = vadd.f32 %v744_v36, %v681_v32  ;;  %748 = vst.msk [vmem:[%s243_s25] sm:$0x1] %vm747_vm13, %v736_v35 }
 0x1aa   : > { %749 = vst.msk [vmem:[%s246_s28] sm:$0x1] %vm747_vm13, %v745_v37 }
 0x1ab PF: > { %s16_s18 = sadd.s32 1, %s1008_s18  }
 0x1ac   : > { %p13_p5 = scmp.ge.s32.totalorder %s16_s18, 4  }
 0x1ae   :  { %15 = sbr.rel (!%p13_p5) target bundleno = 1 (0x1), region = 91 }

// kernel: _lambda_.22
= control target key start
LH: loop header
LB: loop body
LE: loop exit
PB: predicated region body
PF: predicated region fallthrough
CT: control target
= control target key end

     0   :  { %v188_v0 = vmov 0.0|0.0   ;;  %vm189_vm0 = vmmov 0   ;;  %v190_v4 = vmov 0.0   ;;  %vm53_vm1 = vcmask 261120   ;;  %s191_s15 = smov 16   ;;  %s192_s16 = smov 112   ;;  %s264_s1 = inlined_call_operand.vmem [shape: f32[32,32], index: 1, kind: input, shape index: {}]   ;;  %s265_s0 = inlined_call_operand.vmem [shape: f32[2,32], index: 0, kind: input, shape index: {}]   ;;  %s266_s3 = inlined_call_operand.vmem [shape: f32[2,1,16], index: 3, kind: input, shape index: {}]   ;;  %s267_s4 = inlined_call_operand.vmem [shape: f32[2,1,16], index: 4, kind: input, shape index: {}]   ;;  %s268_s2 = inlined_call_operand.vmem [shape: f32[1,32], index: 2, kind: input, shape index: {}]   ;;  %s269_s5 = inlined_call_operand.vmem [shape: f32[2,16], index: 5, kind: output, shape index: {0}]   ;;  %s270_s6 = inlined_call_operand.vmem [shape: f32[2,16], index: 6, kind: output, shape index: {1}]  }
   0x1   :  { %175 = vmatprep.subr.bf16.mxu0 %v188_v0  ;;  %v42_v1 = vld [vmem:[%s264_s1] sm:$0xff]  ;;  %v43_v2 = vld [vmem:[%s264_s1 + $0x8] sm:$0xff]  ;;  %v44_v3 = vld [vmem:[%s264_s1 + $0x10] sm:$0xff]  ;;  %172 = vmatprep.mubr.msk.f32.mxu0 %vm189_vm0, %v190_v4  ;;  %vm24_vm2 = vcmask 122880   ;;  %v127_v25 = vlaneseq  ;;  %vm142_vm3 = vcmask 123904  }
   0x2   :  { %v176_v5 = vpack.c.bf16 %v43_v2, %v42_v1  ;;  %v45_v6 = vld [vmem:[%s264_s1 + $0x18] sm:$0xff]  ;;  %v41_v8 = vld [vmem:[%s265_s0] sm:$0x3] }
   0x3   :  { %v179_v7 = vpack.c.bf16 %v45_v6, %v44_v3  ;;  %v22_v9 = vld [vmem:[%s266_s3] sm:$0x1]  ;;  %v23_v10 = vld [vmem:[%s266_s3 + $0x1] sm:$0x1]  ;;  %v128_v26 = vshrl.u32 %v127_v25, 7 }
   0x4   :  { %177 = vmatpush3.bf16.msra.mxu0 %v176_v5  ;;  %v25_v11 = vsel %vm24_vm2, %v22_v9, 0.0  ;;  %v26_v12 = vsel %vm24_vm2, %v23_v10, 0.0  ;;  %v30_v13 = vld [vmem:[%s267_s4] sm:$0x1]  ;;  %v31_v14 = vld [vmem:[%s267_s4 + $0x1] sm:$0x1] }
   0x5   :  { %178 = vmatprep.subr.bf16.mxu0 %v188_v0  ;;  %v27_v15 = vadd.f32 %v26_v12, %v25_v11  ;;  %v32_v16 = vsel %vm24_vm2, %v30_v13, 0.0  ;;  %v33_v17 = vsel %vm24_vm2, %v31_v14, 0.0  ;;  %v129_v27 = vsub.s32 0, %v128_v26  ;;  %v157_v29 = vld [vmem:[%s268_s2] ss:$0 sm:$0xff] }
   0x6   :  { %v34_v19 = vadd.f32 %v33_v17, %v32_v16 }
   0x7   :  { %v29_v18 = vmul.f32 0.03125, %v27_v15 }
   0x8   :  { %180 = vmatpush3.bf16.msra.mxu0 %v179_v7  ;;  %v35_v20 = vmul.f32 0.03125, %v34_v19 }
   0x9   :  { %v36_v21 = vmul.f32 %v29_v18, %v29_v18  ;;  %v135_v34 = vrot.slane %v29_v18, %v129_v27 }
   0xb   :  { %173 = vmatmul.mubr.msk.f32.vlgmr.msra.gmra.mrb[0].mxu0 %vm53_vm1, %v41_v8  ;;  %v37_v22 = vsub.f32 %v35_v20, %v36_v21 }
   0xd   :  { %v38_v23 = vmax.f32 %v37_v22, 0.0 }
   0xf   :  { %v39_v24 = vadd.f32 1e-05, %v38_v23 }
  0x11   :  { %186 = vrsqrt.f32 %v39_v24 }
  0x1b   :  { %v187_v28 = vpop.eup %186 }
  0x1c   :  { %v130_v30 = vrot.slane %v187_v28, %v129_v27 }
  0xde   :  { %v123_v31 = vpop.f32.mrb[0].mxu0 }
  0xdf   :  { %v124_v32 = vadd.f32 %v157_v29, %v123_v31  ;;  %v174_v33 = vpop.f32.mrb[1].mxu0 }
  0xe1   :  { %v131_v35 = vmul.f32 %v130_v30, %v124_v32 }
  0xe3   :  { %v136_v36 = vmul.f32 %v135_v34, %v131_v35  ;;  %143 = vst.msk [vmem:[%s269_s5] sm:$0x3] %vm142_vm3, %v131_v35 }
  0xe5   :  { %138 = vrot.lane.b32.xlu0 %v136_v36, %s191_s15 }
 0x157   :  { %v139_v37 = vpop.permute.xlu0 %138 }
 0x158   :  { %v141_v38 = vsub.f32 %v124_v32, %v139_v37 }
 0x15a   :  { %145 = vrot.lane.b32.xlu0 %v141_v38, %s192_s16 }
 0x1cc   :  { %v146_v39 = vpop.permute.xlu0 %145 }
 0x1cd   :  { %148 = vst.msk [vmem:[%s270_s6] sm:$0x3] %vm142_vm3, %v146_v39 }

// kernel: _lambda_.23
= control target key start
LH: loop header
LB: loop body
LE: loop exit
PB: predicated region body
PF: predicated region fallthrough
CT: control target
= control target key end

     0   :  { %s415_s12 = smov 0   ;;  %s417_s13 = smov 0   ;;  %s442_s0 = inlined_call_operand.vmem [shape: f32[2,2,128], index: 0, kind: input, shape index: {}]   ;;  %s443_s1 = inlined_call_operand.vmem [shape: f32[2,1,128], index: 1, kind: input, shape index: {}]   ;;  %s444_s2 = inlined_call_operand.vmem [shape: f32[2,1,128], index: 2, kind: input, shape index: {}]   ;;  %s445_s3 = inlined_call_operand.vmem [shape: f32[2,2,128], index: 3, kind: output, shape index: {}]  }
   0x1   :  { %s419_s14 = smov 0  }
   0x2 LB: > { %s25_s15 = sadd.s32 1, %s389_s13  ;;  %p340_p0 = scmp.ge.s32.totalorder %s393_s14, 1  ;;  %s393_s14 = sphi %s419_s14, %s13_s14   ;;  %s389_s13 = sphi %s417_s13, %s447_s13   ;;  %s385_s12 = sphi %s415_s12, %s446_s12  }
   0x3   : > { %p27_p1 = scmp.ge.s32.totalorder %s25_s15, 2  ;;  %p171_p2 = scmp.lt.s32.totalorder %s393_s14, 3 }
   0x5   : > { %s449_s15 = smov (%p27_p1, %s25_s15), 0  ;;  %p172_p3 = pnand %p340_p0, %p171_p2 }
   0x6   : > { %p205_p4 = scmp.lt.s32.totalorder (!%p172_p3), %s385_s12, 1 }
   0x7   : > { %175 = sbr.rel (%p172_p3) target bundleno = 25 (0x19), region = 32 }
   0xe   : > { %s451_s12 = smov (!%p205_p4, %s385_s12), 1 }
   0xf   : > { %s341_s16 = sshll.u32 %s451_s12, 1  ;;  %s214_s19 = scalar_lea.vmem %s443_s1, %s451_s12 }
  0x10   : > { %s211_s22 = scalar_lea.vmem %s442_s0, %s341_s16  ;;  %s217_s25 = scalar_lea.vmem %s444_s2, %s451_s12  ;;  %v343_v0 = vld [vmem:[%s214_s19] ss:$0 sm:$0xff] }
  0x11   : > { %v225_v1 = vld [vmem:[%s211_s22] sm:$0x3]  ;;  %s224_s28 = scalar_lea.vmem %s445_s3, %s341_s16 }
  0x12   : > { %v344_v2 = vld [vmem:[%s217_s25] ss:$0 sm:$0xff]  ;;  %v233_v3 = vmul.f32 %v343_v0, %v225_v1 }
  0x14   : > { %v241_v4 = vadd.f32 %v344_v2, %v233_v3 }
  0x16   : > { %v242_v5 = vmax.f32 %v241_v4, 0.0 }
  0x18   : > { %243 = vst [vmem:[%s224_s28] sm:$0x3] %v242_v5 }
  0x19 PF: > { %s13_s14 = sadd.s32 1, %s393_s14   ;;  %s446_s12 = smov %s389_s13 }
  0x1a   : > { %p10_p5 = scmp.ge.s32.totalorder %s13_s14, 4   ;;  %s447_s13 = smov %s449_s15 }
  0x1c   :  { %12 = sbr.rel (!%p10_p5) target bundleno = 2 (0x2), region = 68 }

// kernel: _lambda_.14
= control target key start
LH: loop header
LB: loop body
LE: loop exit
PB: predicated region body
PF: predicated region fallthrough
CT: control target
= control target key end

     0   :  { %11 = vsyncpa [#allocation4], 0  ;;  %s5769_s0 = inlined_call_operand.vmem [shape: f32[22,2,11,8], index: 0, kind: input, shape index: {}]   ;;  %s5770_s1 = inlined_call_operand.vmem [shape: bf16[196,8], index: 1, kind: input, shape index: {}]   ;;  %s5771_s2 = inlined_call_operand.vmem [shape: f32[1,8], index: 2, kind: input, shape index: {}]   ;;  %s5772_s3 = inlined_call_operand.vmem [shape: f32[2,64,8], index: 3, kind: output, shape index: {0}]   ;;  %s5773_s4 = inlined_call_operand.hbm [shape: f32[2,1,8], index: 4, kind: output, shape index: {1}]   ;;  %s5774_s5 = inlined_call_operand.hbm [shape: f32[2,1,8], index: 5, kind: output, shape index: {2}]  }
   0x1   :  { %13 = vsyncpa [#allocation4 + $0x1], 0 }
   0x2   :  { %14 = vsyncpa [#allocation6], 0 }
   0x3   :  { %16 = vsyncpa [#allocation6 + $0x1], 0  ;;  %s3922_s18 = smov 0   ;;  %s3924_s19 = smov 0  }
   0x4   :  { %s3926_s20 = smov 0   ;;  %s3928_s21 = smov 0  }
   0x5 LB: > { %s3943_s22 = sadd.s32 4294967295, %s3866_s21   ;;  %s3309_s23 = sadd.s32 4294967294, %s3866_s21   ;;  %s3866_s21 = sphi %s3928_s21, %s5953_s21   ;;  %s3862_s20 = sphi %s3926_s20, %s5952_s20   ;;  %s3858_s19 = sphi %s3924_s19, %s5951_s19   ;;  %s3854_s18 = sphi %s3922_s18, %s5950_s18  }
   0x6   : > { %s3947_s24 = sadd.s32 1, %s3866_s21   ;;  %s123_s25 = sadd.s32 1, %s3862_s20 }
   0x7   : > { %s120_s26 = ssub.s32 %s3866_s21, %s3947_s24  ;;  %p133_p0 = scmp.ne.s32.totalorder %s3862_s20, %s3858_s19 }
   0x8   : > { %p121_p1 = scmp.eq.s32.totalorder %s120_s26, 0  ;;  %p134_p2 = scmp.eq.s32.totalorder %s3943_s22, 1 }
   0x9   : > { %p139_p3 = scmp.ne.s32.totalorder %s3858_s19, %s3854_s18  ;;  %p140_p4 = scmp.eq.s32.totalorder %s3309_s23, 1 }
   0xa   : > { %s3958_s27 = scalar_select %p121_p1, %s3862_s20, %s123_s25  }
   0xb   : > { %p3960_p5 = por %p134_p2, %p133_p0  ;;  %p3964_p6 = por %p140_p4, %p139_p3 }
   0xc   : > { %p3312_p7 = scmp.ge.s32.totalorder %s3866_s21, 1  ;;  %p200_p8 = scmp.lt.s32.totalorder %s3866_s21, 3 }
   0xe   : > { %p201_p9 = pnand %p3312_p7, %p200_p8 }
   0xf   : > { %s237_s30 = smul.u32 (!%p201_p9), 11, %s3943_s22  ;;  %s5808_s10 = smov (!%p201_p9), 8   ;;  %vm5805_vm0 = vcmask (!%p201_p9), 31744   ;;  %vm5806_vm1 = vcmask (!%p201_p9), 64544   ;;  %vm5789_vm2 = vcmask (!%p201_p9), 97344   ;;  %vm373_vm3 = vcmask (!%p201_p9), 130144  }
  0x10   : > { %204 = sbr.rel (%p201_p9) target bundleno = 1136 (0x470), region = 32  ;;  %s3869_s11 = smov (!%p201_p9), 16   ;;  %vm5791_vm4 = vcmask (!%p201_p9), 162944   ;;  %vm5792_vm5 = vcmask (!%p201_p9), 195744   ;;  %vm520_vm6 = vcmask (!%p201_p9), 228544   ;;  %vm570_vm7 = vcmask (!%p201_p9), 261344  }
  0x11   : > { %p238_p10 = scmp.lt.s32.totalorder (!%p201_p9), %s237_s30, 21  ;;  %s3870_s12 = smov (!%p201_p9), 24   ;;  %vm5812_vm8 = vcmask (!%p201_p9), 294144   ;;  %vm5814_vm9 = vcmask (!%p201_p9), 326944   ;;  %vm5813_vm10 = vcmask (!%p201_p9), 359744   ;;  %vm5802_vm11 = vcmask (!%p201_p9), 392544  }
  0x12   : > { %s5796_s13 = smov (!%p201_p9), 28   ;;  %s5775_s14 = smov (!%p201_p9), 36   ;;  %vm5804_vm12 = vcmask (!%p201_p9), 425344   ;;  %vm864_vm13 = vcmask (!%p201_p9), 458144   ;;  %vm5781_vm14 = vcmask (!%p201_p9), 490944   ;;  %vm5786_vm15 = vcmask (!%p201_p9), 523744  }
  0x13   : > { %s3873_s15 = smov (!%p201_p9), 44   ;;  %s3874_s16 = smov (!%p201_p9), 52  }
  0x14   : > { %s5821_s17 = smov (!%p201_p9), 56   ;;  %s3876_s23 = smov (!%p201_p9), 64  }
  0x15   : > { %s5810_s25 = smov (!%p201_p9), 12   ;;  %s3878_s26 = smov (!%p201_p9), 72  }
  0x16   : > { %s5799_s7 = smov (!%p201_p9), 84   ;;  %s5777_s8 = smov (!%p201_p9), 92  }
  0x17   : > { %s5955_s30 = smov (!%p238_p10, %s237_s30), 21  ;;  %p244_p11 = scmp.lt.s32.totalorder %s3943_s22, 1 }
  0x18   : > { %s3679_s6 = sshll.u32 %s5955_s30, 5  ;;  %s3879_s30 = smov 20  }
  0x19   : > { %s3974_s9 = scalar_lea.vmem %s5769_s0, %s3679_s6  ;;  %s3880_s6 = smov 80  }
  0x1a   : > { %v3977_v0 = vld [vmem:[%s3974_s9 + $0x41] sm:$0xff]  ;;  %v4114_v32 = vld [vmem:[%s3974_s9 + $0x30] sm:$0xff] }
  0x1b   : > { %v284_v1 = vld [vmem:[%s3974_s9 + $0x1] sm:$0xff]  ;;  %304 = vrot.lane.b32.xlu1 %v3977_v0, %s5808_s10  ;;  %v3317_v33 = vld [vmem:[%s3974_s9 + $0x10] sm:$0xff] }
  0x1c   : > { %300 = vrot.lane.b32.xlu0 %v284_v1, %s5808_s10  ;;  %v3984_v2 = vld [vmem:[%s3974_s9 + $0x61] sm:$0xff]  ;;  %v4121_v34 = vld [vmem:[%s3974_s9 + $0x70] sm:$0xff] }
  0x1d   : > { %v3987_v3 = vld [vmem:[%s3974_s9 + $0x21] sm:$0xff]  ;;  %v4124_v35 = vld [vmem:[%s3974_s9 + $0x50] sm:$0xff] }
  0x1e   : > { %v3994_v4 = vld [vmem:[%s3974_s9 + $0xa1] sm:$0xff]  ;;  %v3322_v36 = vld [vmem:[%s3974_s9 + $0xb0] sm:$0xff] }
  0x1f   : > { %306 = vrot.lane.b32.xlu1 %v3984_v2, %s5808_s10  ;;  %v3997_v5 = vld [vmem:[%s3974_s9 + $0x81] sm:$0xff]  ;;  %v3321_v37 = vld [vmem:[%s3974_s9 + $0x90] sm:$0xff] }
  0x20   : > { %302 = vrot.lane.b32.xlu0 %v3987_v3, %s5808_s10  ;;  %v4004_v6 = vld [vmem:[%s3974_s9 + $0xe1] sm:$0xff]  ;;  %v3324_v38 = vld [vmem:[%s3974_s9 + $0xf0] sm:$0xff] }
  0x21   : > { %v4007_v7 = vld [vmem:[%s3974_s9 + $0xc1] sm:$0xff]  ;;  %v3323_v39 = vld [vmem:[%s3974_s9 + $0xd0] sm:$0xff] }
  0x22   : > { %v4010_v8 = vld [vmem:[%s3974_s9 + $0x40] sm:$0xff]  ;;  %v4150_v40 = vld [vmem:[%s3974_s9 + $0x31] sm:$0xff] }
  0x23   : > { %310 = vrot.lane.b32.xlu1 %v3994_v4, %s5808_s10  ;;  %v250_v9 = vld [vmem:[%s3974_s9] sm:$0xff]  ;;  %261 = vst.msk [vmem:[#allocation2 + $0x20] sm:$0xff] %vm5805_vm0, %v4010_v8  ;;  %v3333_v41 = vld [vmem:[%s3974_s9 + $0x11] sm:$0xff] }
  0x24   : > { %308 = vrot.lane.b32.xlu0 %v3997_v5, %s5808_s10  ;;  %259 = vst.msk [vmem:[#allocation2] sm:$0xff] %vm5805_vm0, %v250_v9  ;;  %v4024_v10 = vld [vmem:[%s3974_s9 + $0x60] sm:$0xff]  ;;  %v4157_v42 = vld [vmem:[%s3974_s9 + $0x71] sm:$0xff] }
  0x25   : > { %278 = vst.msk [vmem:[#allocation2 + $0x20] sm:$0xff] %vm5806_vm1, %v4010_v8  ;;  %276 = vst.msk [vmem:[#allocation2] sm:$0xff] %vm5806_vm1, %v250_v9  ;;  %v4027_v11 = vld [vmem:[%s3974_s9 + $0x20] sm:$0xff]  ;;  %v4160_v43 = vld [vmem:[%s3974_s9 + $0x51] sm:$0xff] }
  0x26   : > { %262 = vst.msk [vmem:[#allocation2 + $0x30] sm:$0xff] %vm5805_vm0, %v4024_v10  ;;  %260 = vst.msk [vmem:[#allocation2 + $0x10] sm:$0xff] %vm5805_vm0, %v4027_v11  ;;  %v4034_v12 = vld [vmem:[%s3974_s9 + $0xa0] sm:$0xff]  ;;  %v3338_v46 = vld [vmem:[%s3974_s9 + $0xb1] sm:$0xff] }
  0x27   : > { %314 = vrot.lane.b32.xlu1 %v4004_v6, %s5808_s10  ;;  %v4037_v13 = vld [vmem:[%s3974_s9 + $0x80] sm:$0xff]  ;;  %279 = vst.msk [vmem:[#allocation2 + $0x30] sm:$0xff] %vm5806_vm1, %v4024_v10  ;;  %277 = vst.msk [vmem:[#allocation2 + $0x10] sm:$0xff] %vm5806_vm1, %v4027_v11  ;;  %v3337_v47 = vld [vmem:[%s3974_s9 + $0x91] sm:$0xff] }
  0x28   : > { %312 = vrot.lane.b32.xlu0 %v4007_v7, %s5808_s10  ;;  %264 = vst.msk [vmem:[#allocation2 + $0x50] sm:$0xff] %vm5805_vm0, %v4034_v12  ;;  %263 = vst.msk [vmem:[#allocation2 + $0x40] sm:$0xff] %vm5805_vm0, %v4037_v13  ;;  %v4048_v14 = vld [vmem:[%s3974_s9 + $0xe0] sm:$0xff]  ;;  %v3340_v50 = vld [vmem:[%s3974_s9 + $0xf1] sm:$0xff] }
  0x29   : > { %281 = vst.msk [vmem:[#allocation2 + $0x50] sm:$0xff] %vm5806_vm1, %v4034_v12  ;;  %280 = vst.msk [vmem:[#allocation2 + $0x40] sm:$0xff] %vm5806_vm1, %v4037_v13  ;;  %v4060_v15 = vld [vmem:[%s3974_s9 + $0xc0] sm:$0xff]  ;;  %v3339_v51 = vld [vmem:[%s3974_s9 + $0xd1] sm:$0xff] }
  0x2a   : > { %266 = vst.msk [vmem:[#allocation2 + $0x70] sm:$0xff] %vm5805_vm0, %v4048_v14  ;;  %265 = vst.msk [vmem:[#allocation2 + $0x60] sm:$0xff] %vm5805_vm0, %v4060_v15  ;;  %v4081_v16 = vld [vmem:[%s3974_s9 + $0x22] sm:$0xff]  ;;  %v4200_v62 = vld [vmem:[%s3974_s9 + $0x32] sm:$0xff] }
  0x2b   : > { %351 = vrot.lane.b32.xlu1 %v3987_v3, %s5808_s10  ;;  %283 = vst.msk [vmem:[#allocation2 + $0x70] sm:$0xff] %vm5806_vm1, %v4048_v14  ;;  %282 = vst.msk [vmem:[#allocation2 + $0x60] sm:$0xff] %vm5806_vm1, %v4060_v15  ;;  %v382_v17 = vld [vmem:[%s3974_s9 + $0x2] sm:$0xff]  ;;  %v3349_v63 = vld [vmem:[%s3974_s9 + $0x12] sm:$0xff] }
  0x2c   : > { %349 = vrot.lane.b32.xlu0 %v284_v1, %s5808_s10  ;;  %v385_v18 = vld [vmem:[%s3974_s9 + $0x62] sm:$0xff] }
  0x2d   : > { %v4087_v19 = vld [vmem:[%s3974_s9 + $0x42] sm:$0xff] }
  0x2e   : > { %v387_v20 = vld [vmem:[%s3974_s9 + $0xa2] sm:$0xff] }
  0x2f   : > { %355 = vrot.lane.b32.xlu1 %v3984_v2, %s5808_s10  ;;  %v386_v21 = vld [vmem:[%s3974_s9 + $0x82] sm:$0xff] }
  0x30   : > { %353 = vrot.lane.b32.xlu0 %v3977_v0, %s5808_s10  ;;  %v389_v22 = vld [vmem:[%s3974_s9 + $0xe2] sm:$0xff] }
  0x31   : > { %v388_v23 = vld [vmem:[%s3974_s9 + $0xc2] sm:$0xff] }
  0x32   : > { %v4097_v24 = vld [vmem:[%s3974_s9 + $0x23] sm:$0xff] }
  0x33   : > { %359 = vrot.lane.b32.xlu1 %v3994_v4, %s5808_s10  ;;  %v480_v25 = vld [vmem:[%s3974_s9 + $0x3] sm:$0xff] }
  0x34   : > { %357 = vrot.lane.b32.xlu0 %v3997_v5, %s5808_s10  ;;  %v4102_v26 = vld [vmem:[%s3974_s9 + $0x63] sm:$0xff] }
  0x35   : > { %v4105_v27 = vld [vmem:[%s3974_s9 + $0x43] sm:$0xff] }
  0x36   : > { %v485_v28 = vld [vmem:[%s3974_s9 + $0xa3] sm:$0xff] }
  0x37   : > { %363 = vrot.lane.b32.xlu1 %v4004_v6, %s5808_s10  ;;  %v484_v29 = vld [vmem:[%s3974_s9 + $0x83] sm:$0xff] }
  0x38   : > { %361 = vrot.lane.b32.xlu0 %v4007_v7, %s5808_s10  ;;  %v487_v30 = vld [vmem:[%s3974_s9 + $0xe3] sm:$0xff] }
  0x39   : > { %v486_v31 = vld [vmem:[%s3974_s9 + $0xc3] sm:$0xff] }
  0x3b   : > { %400 = vrot.lane.b32.xlu1 %v4081_v16, %s3869_s11 }
  0x3c   : > { %398 = vrot.lane.b32.xlu0 %v382_v17, %s3869_s11 }
  0x3f   : > { %404 = vrot.lane.b32.xlu1 %v385_v18, %s3869_s11 }
  0x40   : > { %402 = vrot.lane.b32.xlu0 %v4087_v19, %s3869_s11 }
  0x43   : > { %408 = vrot.lane.b32.xlu1 %v387_v20, %s3869_s11 }
  0x44   : > { %406 = vrot.lane.b32.xlu0 %v386_v21, %s3869_s11 }
  0x47   : > { %412 = vrot.lane.b32.xlu1 %v389_v22, %s3869_s11 }
  0x48   : > { %410 = vrot.lane.b32.xlu0 %v388_v23, %s3869_s11 }
  0x4b   : > { %449 = vrot.lane.b32.xlu1 %v4081_v16, %s3869_s11 }
  0x4c   : > { %447 = vrot.lane.b32.xlu0 %v382_v17, %s3869_s11  ;;  %v4209_v17 = vld [vmem:[%s3974_s9 + $0x72] sm:$0xff] }
  0x4f   : > { %453 = vrot.lane.b32.xlu1 %v385_v18, %s3869_s11  ;;  %v4212_v18 = vld [vmem:[%s3974_s9 + $0x52] sm:$0xff] }
  0x50   : > { %451 = vrot.lane.b32.xlu0 %v4087_v19, %s3869_s11 }
  0x53   : > { %457 = vrot.lane.b32.xlu1 %v387_v20, %s3869_s11 }
  0x54   : > { %455 = vrot.lane.b32.xlu0 %v386_v21, %s3869_s11 }
  0x57   : > { %461 = vrot.lane.b32.xlu1 %v389_v22, %s3869_s11  ;;  %v3354_v22 = vld [vmem:[%s3974_s9 + $0xb2] sm:$0xff] }
  0x58   : > { %459 = vrot.lane.b32.xlu0 %v388_v23, %s3869_s11  ;;  %v3353_v23 = vld [vmem:[%s3974_s9 + $0x92] sm:$0xff]  ;;  %s5827_s11 = smov 40  }
  0x5b   : > { %498 = vrot.lane.b32.xlu1 %v4097_v24, %s3870_s12 }
  0x5c   : > { %496 = vrot.lane.b32.xlu0 %v480_v25, %s3870_s12 }
  0x5f   : > { %502 = vrot.lane.b32.xlu1 %v4102_v26, %s3870_s12 }
  0x60   : > { %500 = vrot.lane.b32.xlu0 %v4105_v27, %s3870_s12 }
  0x63   : > { %506 = vrot.lane.b32.xlu1 %v485_v28, %s3870_s12 }
  0x64   : > { %504 = vrot.lane.b32.xlu0 %v484_v29, %s3870_s12  ;;  %v3356_v29 = vld [vmem:[%s3974_s9 + $0xf2] sm:$0xff] }
  0x67   : > { %510 = vrot.lane.b32.xlu1 %v487_v30, %s3870_s12  ;;  %v3355_v30 = vld [vmem:[%s3974_s9 + $0xd2] sm:$0xff] }
  0x68   : > { %508 = vrot.lane.b32.xlu0 %v486_v31, %s3870_s12  ;;  %s5817_s12 = smov 100  }
  0x6b   : > { %548 = vrot.lane.b32.xlu1 %v4114_v32, %s5796_s13 }
  0x6c   : > { %546 = vrot.lane.b32.xlu0 %v3317_v33, %s5796_s13 }
  0x6f   : > { %552 = vrot.lane.b32.xlu1 %v4121_v34, %s5796_s13 }
  0x70   : > { %550 = vrot.lane.b32.xlu0 %v4124_v35, %s5796_s13 }
  0x73   : > { %556 = vrot.lane.b32.xlu1 %v3322_v36, %s5796_s13 }
  0x74   : > { %554 = vrot.lane.b32.xlu0 %v3321_v37, %s5796_s13 }
  0x77   : > { %560 = vrot.lane.b32.xlu1 %v3324_v38, %s5796_s13 }
  0x78   : > { %558 = vrot.lane.b32.xlu0 %v3323_v39, %s5796_s13 }
  0x7b   : > { %597 = vrot.lane.b32.xlu1 %v4114_v32, %s5796_s13 }
  0x7c   : > { %595 = vrot.lane.b32.xlu0 %v3317_v33, %s5796_s13 }
  0x7f   : > { %601 = vrot.lane.b32.xlu1 %v4121_v34, %s5796_s13 }
  0x80   : > { %599 = vrot.lane.b32.xlu0 %v4124_v35, %s5796_s13 }
  0x83   : > { %605 = vrot.lane.b32.xlu1 %v3322_v36, %s5796_s13 }
  0x84   : > { %603 = vrot.lane.b32.xlu0 %v3321_v37, %s5796_s13 }
  0x87   : > { %609 = vrot.lane.b32.xlu1 %v3324_v38, %s5796_s13 }
  0x88   : > { %607 = vrot.lane.b32.xlu0 %v3323_v39, %s5796_s13 }
  0x8b   : > { %646 = vrot.lane.b32.xlu1 %v4150_v40, %s5775_s14 }
  0x8c   : > { %644 = vrot.lane.b32.xlu0 %v3333_v41, %s5775_s14 }
  0x8d   : > { %v305_v44 = vpop.permute.xlu1 %304 }
  0x8e   : > { %v301_v45 = vpop.permute.xlu0 %300  ;;  %327 = vst.msk [vmem:[#allocation2 + $0x20] sm:$0xff] %vm5789_vm2, %v305_v44 }
  0x8f   : > { %325 = vst.msk [vmem:[#allocation2] sm:$0xff] %vm5789_vm2, %v301_v45  ;;  %650 = vrot.lane.b32.xlu1 %v4157_v42, %s5775_s14 }
  0x90   : > { %648 = vrot.lane.b32.xlu0 %v4160_v43, %s5775_s14 }
  0x91   : > { %v307_v48 = vpop.permute.xlu1 %306 }
  0x92   : > { %v303_v49 = vpop.permute.xlu0 %302  ;;  %328 = vst.msk [vmem:[#allocation2 + $0x30] sm:$0xff] %vm5789_vm2, %v307_v48  ;;  %v3365_v48 = vld [vmem:[%s3974_s9 + $0x13] sm:$0xff] }
  0x93   : > { %326 = vst.msk [vmem:[#allocation2 + $0x10] sm:$0xff] %vm5789_vm2, %v303_v49  ;;  %654 = vrot.lane.b32.xlu1 %v3338_v46, %s5775_s14 }
  0x94   : > { %652 = vrot.lane.b32.xlu0 %v3337_v47, %s5775_s14 }
  0x95   : > { %v311_v52 = vpop.permute.xlu1 %310 }
  0x96   : > { %v309_v53 = vpop.permute.xlu0 %308  ;;  %330 = vst.msk [vmem:[#allocation2 + $0x50] sm:$0xff] %vm5789_vm2, %v311_v52  ;;  %v4262_v52 = vld [vmem:[%s3974_s9 + $0x53] sm:$0xff] }
  0x97   : > { %329 = vst.msk [vmem:[#allocation2 + $0x40] sm:$0xff] %vm5789_vm2, %v309_v53  ;;  %658 = vrot.lane.b32.xlu1 %v3340_v50, %s5775_s14 }
  0x98   : > { %656 = vrot.lane.b32.xlu0 %v3339_v51, %s5775_s14 }
  0x99   : > { %v315_v54 = vpop.permute.xlu1 %314 }
  0x9a   : > { %v313_v55 = vpop.permute.xlu0 %312  ;;  %332 = vst.msk [vmem:[#allocation2 + $0x70] sm:$0xff] %vm5789_vm2, %v315_v54 }
  0x9b   : > { %331 = vst.msk [vmem:[#allocation2 + $0x60] sm:$0xff] %vm5789_vm2, %v313_v55  ;;  %695 = vrot.lane.b32.xlu1 %v4150_v40, %s5775_s14  ;;  %v3370_v55 = vld [vmem:[%s3974_s9 + $0xb3] sm:$0xff] }
  0x9c   : > { %693 = vrot.lane.b32.xlu0 %v3333_v41, %s5775_s14 }
  0x9d   : > { %v352_v56 = vpop.permute.xlu1 %351 }
  0x9e   : > { %v350_v57 = vpop.permute.xlu0 %349  ;;  %375 = vst.msk [vmem:[#allocation2 + $0x10] sm:$0xff] %vm373_vm3, %v352_v56  ;;  %v4270_v56 = vld [vmem:[%s3974_s9 + $0x93] sm:$0xff] }
  0x9f   : > { %374 = vst.msk [vmem:[#allocation2] sm:$0xff] %vm373_vm3, %v350_v57  ;;  %699 = vrot.lane.b32.xlu1 %v4157_v42, %s5775_s14 }
  0xa0   : > { %697 = vrot.lane.b32.xlu0 %v4160_v43, %s5775_s14 }
  0xa1   : > { %v356_v58 = vpop.permute.xlu1 %355 }
  0xa2   : > { %v354_v59 = vpop.permute.xlu0 %353  ;;  %377 = vst.msk [vmem:[#allocation2 + $0x30] sm:$0xff] %vm373_vm3, %v356_v58 }
  0xa3   : > { %376 = vst.msk [vmem:[#allocation2 + $0x20] sm:$0xff] %vm373_vm3, %v354_v59  ;;  %703 = vrot.lane.b32.xlu1 %v3338_v46, %s5775_s14  ;;  %v3372_v59 = vld [vmem:[%s3974_s9 + $0xf3] sm:$0xff] }
  0xa4   : > { %701 = vrot.lane.b32.xlu0 %v3337_v47, %s5775_s14  ;;  %v4252_v47 = vld [vmem:[%s3974_s9 + $0x33] sm:$0xff] }
  0xa5   : > { %v360_v60 = vpop.permute.xlu1 %359 }
  0xa6   : > { %v358_v61 = vpop.permute.xlu0 %357  ;;  %379 = vst.msk [vmem:[#allocation2 + $0x50] sm:$0xff] %vm373_vm3, %v360_v60  ;;  %v3371_v60 = vld [vmem:[%s3974_s9 + $0xd3] sm:$0xff] }
  0xa7   : > { %378 = vst.msk [vmem:[#allocation2 + $0x40] sm:$0xff] %vm373_vm3, %v358_v61  ;;  %707 = vrot.lane.b32.xlu1 %v3340_v50, %s5775_s14 }
  0xa8   : > { %705 = vrot.lane.b32.xlu0 %v3339_v51, %s5775_s14  ;;  %v4259_v51 = vld [vmem:[%s3974_s9 + $0x73] sm:$0xff] }
  0xa9   : > { %v364_v1 = vpop.permute.xlu1 %363 }
  0xaa   : > { %v362_v9 = vpop.permute.xlu0 %361  ;;  %381 = vst.msk [vmem:[#allocation2 + $0x70] sm:$0xff] %vm373_vm3, %v364_v1 }
  0xab   : > { %380 = vst.msk [vmem:[#allocation2 + $0x60] sm:$0xff] %vm373_vm3, %v362_v9  ;;  %744 = vrot.lane.b32.xlu1 %v4200_v62, %s3873_s15 }
  0xac   : > { %742 = vrot.lane.b32.xlu0 %v3349_v63, %s3873_s15 }
  0xad   : > { %v401_v20 = vpop.permute.xlu1 %400 }
  0xae   : > { %v399_v21 = vpop.permute.xlu0 %398  ;;  %424 = vst.msk [vmem:[#allocation2 + $0x10] sm:$0xff] %vm5791_vm4, %v401_v20 }
  0xaf   : > { %423 = vst.msk [vmem:[#allocation2] sm:$0xff] %vm5791_vm4, %v399_v21  ;;  %748 = vrot.lane.b32.xlu1 %v4209_v17, %s3873_s15 }
  0xb0   : > { %746 = vrot.lane.b32.xlu0 %v4212_v18, %s3873_s15 }
  0xb1   : > { %v405_v25 = vpop.permute.xlu1 %404 }
  0xb2   : > { %v403_v28 = vpop.permute.xlu0 %402  ;;  %426 = vst.msk [vmem:[#allocation2 + $0x30] sm:$0xff] %vm5791_vm4, %v405_v25  ;;  %v3380_v25 = vld [vmem:[%s3974_s9 + $0x100] sm:$0xff] }
  0xb3   : > { %425 = vst.msk [vmem:[#allocation2 + $0x20] sm:$0xff] %vm5791_vm4, %v403_v28  ;;  %752 = vrot.lane.b32.xlu1 %v3354_v22, %s3873_s15 }
  0xb4   : > { %750 = vrot.lane.b32.xlu0 %v3353_v23, %s3873_s15 }
  0xb5   : > { %v409_v31 = vpop.permute.xlu1 %408 }
  0xb6   : > { %v407_v33 = vpop.permute.xlu0 %406  ;;  %428 = vst.msk [vmem:[#allocation2 + $0x50] sm:$0xff] %vm5791_vm4, %v409_v31 }
  0xb7   : > { %427 = vst.msk [vmem:[#allocation2 + $0x40] sm:$0xff] %vm5791_vm4, %v407_v33  ;;  %756 = vrot.lane.b32.xlu1 %v3356_v29, %s3873_s15 }
  0xb8   : > { %754 = vrot.lane.b32.xlu0 %v3355_v30, %s3873_s15 }
  0xb9   : > { %v413_v36 = vpop.permute.xlu1 %412 }
  0xba   : > { %v411_v37 = vpop.permute.xlu0 %410  ;;  %430 = vst.msk [vmem:[#allocation2 + $0x70] sm:$0xff] %vm5791_vm4, %v413_v36 }
  0xbb   : > { %429 = vst.msk [vmem:[#allocation2 + $0x60] sm:$0xff] %vm5791_vm4, %v411_v37  ;;  %793 = vrot.lane.b32.xlu1 %v4200_v62, %s3873_s15 }
  0xbc   : > { %791 = vrot.lane.b32.xlu0 %v3349_v63, %s3873_s15 }
  0xbd   : > { %v450_v38 = vpop.permute.xlu1 %449 }
  0xbe   : > { %v448_v39 = vpop.permute.xlu0 %447  ;;  %473 = vst.msk [vmem:[#allocation2 + $0x10] sm:$0xff] %vm5792_vm5, %v450_v38 }
  0xbf   : > { %472 = vst.msk [vmem:[#allocation2] sm:$0xff] %vm5792_vm5, %v448_v39  ;;  %797 = vrot.lane.b32.xlu1 %v4209_v17, %s3873_s15 }
  0xc0   : > { %795 = vrot.lane.b32.xlu0 %v4212_v18, %s3873_s15 }
  0xc1   : > { %v454_v41 = vpop.permute.xlu1 %453 }
  0xc2   : > { %v452_v44 = vpop.permute.xlu0 %451  ;;  %475 = vst.msk [vmem:[#allocation2 + $0x30] sm:$0xff] %vm5792_vm5, %v454_v41 }
  0xc3   : > { %474 = vst.msk [vmem:[#allocation2 + $0x20] sm:$0xff] %vm5792_vm5, %v452_v44  ;;  %801 = vrot.lane.b32.xlu1 %v3354_v22, %s3873_s15  ;;  %v4331_v44 = vld [vmem:[%s3974_s9 + $0x82] sm:$0xff] }
  0xc4   : > { %799 = vrot.lane.b32.xlu0 %v3353_v23, %s3873_s15  ;;  %1768 = vst.msk [vmem:[#allocation2 + $0x28] sm:$0xff] %vm5805_vm0, %v4331_v44 }
  0xc5   : > { %v458_v45 = vpop.permute.xlu1 %457  ;;  %1784 = vst.msk [vmem:[#allocation2 + $0x28] sm:$0xff] %vm5806_vm1, %v4331_v44 }
  0xc6   : > { %v456_v46 = vpop.permute.xlu0 %455  ;;  %477 = vst.msk [vmem:[#allocation2 + $0x50] sm:$0xff] %vm5792_vm5, %v458_v45 }
  0xc7   : > { %476 = vst.msk [vmem:[#allocation2 + $0x40] sm:$0xff] %vm5792_vm5, %v456_v46  ;;  %805 = vrot.lane.b32.xlu1 %v3356_v29, %s3873_s15 }
  0xc8   : > { %803 = vrot.lane.b32.xlu0 %v3355_v30, %s3873_s15  ;;  %v4301_v30 = vld [vmem:[%s3974_s9 + $0x62] sm:$0xff]  ;;  %s5779_s15 = smov 40  }
  0xc9   : > { %v462_v49 = vpop.permute.xlu1 %461  ;;  %1767 = vst.msk [vmem:[#allocation2 + $0x18] sm:$0xff] %vm5805_vm0, %v4301_v30 }
  0xca   : > { %v460_v50 = vpop.permute.xlu0 %459  ;;  %479 = vst.msk [vmem:[#allocation2 + $0x70] sm:$0xff] %vm5792_vm5, %v462_v49  ;;  %v3517_v49 = vld [vmem:[%s3974_s9 + $0x42] sm:$0xff] }
  0xcb   : > { %478 = vst.msk [vmem:[#allocation2 + $0x60] sm:$0xff] %vm5792_vm5, %v460_v50  ;;  %842 = vrot.lane.b32.xlu1 %v4252_v47, %s3874_s16  ;;  %v3396_v50 = vld [vmem:[%s3974_s9 + $0x101] sm:$0xff] }
  0xcc   : > { %840 = vrot.lane.b32.xlu0 %v3365_v48, %s3874_s16  ;;  %1783 = vst.msk [vmem:[#allocation2 + $0x18] sm:$0xff] %vm5806_vm1, %v4301_v30 }
  0xcd   : > { %v499_v53 = vpop.permute.xlu1 %498  ;;  %1766 = vst.msk [vmem:[#allocation2 + $0x8] sm:$0xff] %vm5805_vm0, %v3517_v49 }
  0xce   : > { %v497_v54 = vpop.permute.xlu0 %496  ;;  %522 = vst.msk [vmem:[#allocation2 + $0x10] sm:$0xff] %vm520_vm6, %v499_v53 }
  0xcf   : > { %521 = vst.msk [vmem:[#allocation2] sm:$0xff] %vm520_vm6, %v497_v54  ;;  %846 = vrot.lane.b32.xlu1 %v4259_v51, %s3874_s16 }
  0xd0   : > { %844 = vrot.lane.b32.xlu0 %v4262_v52, %s3874_s16  ;;  %1782 = vst.msk [vmem:[#allocation2 + $0x8] sm:$0xff] %vm5806_vm1, %v3517_v49  ;;  %v4558_v49 = vld [vmem:[%s5770_s1 + $0x30] sm:$0xff]  }
  0xd1   : > { %v503_v57 = vpop.permute.xlu1 %502 }
  0xd2   : > { %v501_v58 = vpop.permute.xlu0 %500  ;;  %524 = vst.msk [vmem:[#allocation2 + $0x30] sm:$0xff] %vm520_vm6, %v503_v57 }
  0xd3   : > { %523 = vst.msk [vmem:[#allocation2 + $0x20] sm:$0xff] %vm520_vm6, %v501_v58  ;;  %850 = vrot.lane.b32.xlu1 %v3370_v55, %s3874_s16 }
  0xd4   : > { %848 = vrot.lane.b32.xlu0 %v4270_v56, %s3874_s16 }
  0xd5   : > { %v507_v61 = vpop.permute.xlu1 %506 }
  0xd6   : > { %v505_v63 = vpop.permute.xlu0 %504  ;;  %526 = vst.msk [vmem:[#allocation2 + $0x50] sm:$0xff] %vm520_vm6, %v507_v61 }
  0xd7   : > { %525 = vst.msk [vmem:[#allocation2 + $0x40] sm:$0xff] %vm520_vm6, %v505_v63  ;;  %854 = vrot.lane.b32.xlu1 %v3372_v59, %s3874_s16 }
  0xd8   : > { %852 = vrot.lane.b32.xlu0 %v3371_v60, %s3874_s16  ;;  %s5784_s16 = smov 48  }
  0xd9   : > { %v511_v1 = vpop.permute.xlu1 %510 }
  0xda   : > { %v509_v9 = vpop.permute.xlu0 %508  ;;  %528 = vst.msk [vmem:[#allocation2 + $0x70] sm:$0xff] %vm520_vm6, %v511_v1 }
  0xdb   : > { %527 = vst.msk [vmem:[#allocation2 + $0x60] sm:$0xff] %vm520_vm6, %v509_v9  ;;  %892 = vrot.lane.b32.xlu1 %v4010_v8, %s5821_s17 }
  0xdc   : > { %890 = vrot.lane.b32.xlu0 %v4027_v11, %s5821_s17 }
  0xdd   : > { %v549_v20 = vpop.permute.xlu1 %548 }
  0xde   : > { %v547_v21 = vpop.permute.xlu0 %546  ;;  %572 = vst.msk [vmem:[#allocation2 + $0x10] sm:$0xff] %vm570_vm7, %v549_v20 }
  0xdf   : > { %571 = vst.msk [vmem:[#allocation2] sm:$0xff] %vm570_vm7, %v547_v21  ;;  %896 = vrot.lane.b32.xlu1 %v4037_v13, %s5821_s17 }
  0xe0   : > { %894 = vrot.lane.b32.xlu0 %v4024_v10, %s5821_s17 }
  0xe1   : > { %v553_v22 = vpop.permute.xlu1 %552 }
  0xe2   : > { %v551_v23 = vpop.permute.xlu0 %550  ;;  %574 = vst.msk [vmem:[#allocation2 + $0x30] sm:$0xff] %vm570_vm7, %v553_v22 }
  0xe3   : > { %573 = vst.msk [vmem:[#allocation2 + $0x20] sm:$0xff] %vm570_vm7, %v551_v23  ;;  %900 = vrot.lane.b32.xlu1 %v4060_v15, %s5821_s17 }
  0xe4   : > { %898 = vrot.lane.b32.xlu0 %v4034_v12, %s5821_s17 }
  0xe5   : > { %v557_v28 = vpop.permute.xlu1 %556 }
  0xe6   : > { %v555_v29 = vpop.permute.xlu0 %554  ;;  %576 = vst.msk [vmem:[#allocation2 + $0x50] sm:$0xff] %vm570_vm7, %v557_v28 }
  0xe7   : > { %575 = vst.msk [vmem:[#allocation2 + $0x40] sm:$0xff] %vm570_vm7, %v555_v29  ;;  %904 = vrot.lane.b32.xlu1 %v3380_v25, %s5821_s17  ;;  %v4460_v29 = vld [vmem:[%s5770_s1] sm:$0xff]  }
  0xe8   : > { %902 = vrot.lane.b32.xlu0 %v4048_v14, %s5821_s17 }
  0xe9   : > { %v561_v31 = vpop.permute.xlu1 %560 }
  0xea   : > { %v559_v33 = vpop.permute.xlu0 %558  ;;  %578 = vst.msk [vmem:[#allocation2 + $0x70] sm:$0xff] %vm570_vm7, %v561_v31  ;;  %v3883_v31 = vmov 0  }
  0xeb   : > { %577 = vst.msk [vmem:[#allocation2 + $0x60] sm:$0xff] %vm570_vm7, %v559_v33  ;;  %941 = vrot.lane.b32.xlu1 %v4010_v8, %s5821_s17  ;;  %2631 = vmatprep.subr.bf16.mxu0 %v3883_v31 }
  0xec   : > { %939 = vrot.lane.b32.xlu0 %v4027_v11, %s5821_s17  ;;  %2699 = vmatprep.subr.bf16.mxu1 %v3883_v31 }
  0xed   : > { %v598_v36 = vpop.permute.xlu1 %597  ;;  %2632 = vmatpush1.bf16.msra.mxu0 %v4460_v29  ;;  %2700 = vmatpush1.bf16.msra.mxu1 %v4460_v29 }
  0xee   : > { %v596_v37 = vpop.permute.xlu0 %595  ;;  %621 = vst.msk [vmem:[#allocation2 + $0x10] sm:$0xff] %vm5812_vm8, %v598_v36  ;;  %2633 = vmatprep.subr.bf16.mxu0 %v3883_v31  ;;  %2701 = vmatprep.subr.bf16.mxu1 %v3883_v31 }
  0xef   : > { %620 = vst.msk [vmem:[#allocation2] sm:$0xff] %vm5812_vm8, %v596_v37  ;;  %945 = vrot.lane.b32.xlu1 %v4037_v13, %s5821_s17 }
  0xf0   : > { %943 = vrot.lane.b32.xlu0 %v4024_v10, %s5821_s17 }
  0xf1   : > { %v602_v38 = vpop.permute.xlu1 %601 }
  0xf2   : > { %v600_v39 = vpop.permute.xlu0 %599  ;;  %623 = vst.msk [vmem:[#allocation2 + $0x30] sm:$0xff] %vm5812_vm8, %v602_v38 }
  0xf3   : > { %622 = vst.msk [vmem:[#allocation2 + $0x20] sm:$0xff] %vm5812_vm8, %v600_v39  ;;  %949 = vrot.lane.b32.xlu1 %v4060_v15, %s5821_s17 }
  0xf4   : > { %947 = vrot.lane.b32.xlu0 %v4034_v12, %s5821_s17 }
  0xf5   : > { %v606_v11 = vpop.permute.xlu1 %605 }
  0xf6   : > { %v604_v41 = vpop.permute.xlu0 %603  ;;  %625 = vst.msk [vmem:[#allocation2 + $0x50] sm:$0xff] %vm5812_vm8, %v606_v11  ;;  %v4507_v11 = vld [vmem:[%s5770_s1 + $0x18] sm:$0xff]  }
  0xf7   : > { %624 = vst.msk [vmem:[#allocation2 + $0x40] sm:$0xff] %vm5812_vm8, %v604_v41  ;;  %953 = vrot.lane.b32.xlu1 %v3380_v25, %s5821_s17 }
  0xf8   : > { %951 = vrot.lane.b32.xlu0 %v4048_v14, %s5821_s17 }
  0xf9   : > { %v610_v12 = vpop.permute.xlu1 %609 }
  0xfa   : > { %v608_v15 = vpop.permute.xlu0 %607  ;;  %627 = vst.msk [vmem:[#allocation2 + $0x70] sm:$0xff] %vm5812_vm8, %v610_v12 }
  0xfb   : > { %626 = vst.msk [vmem:[#allocation2 + $0x60] sm:$0xff] %vm5812_vm8, %v608_v15  ;;  %990 = vrot.lane.b32.xlu1 %v3977_v0, %s3876_s23  ;;  %v4525_v15 = vld [vmem:[%s3974_s9 + $0x61] sm:$0xff] }
  0xfc   : > { %988 = vrot.lane.b32.xlu0 %v3987_v3, %s3876_s23 }
  0xfd   : > { %v647_v14 = vpop.permute.xlu1 %646 }
  0xfe   : > { %v645_v45 = vpop.permute.xlu0 %644  ;;  %670 = vst.msk [vmem:[#allocation2 + $0x10] sm:$0xff] %vm5814_vm9, %v647_v14 }
  0xff   : > { %669 = vst.msk [vmem:[#allocation2] sm:$0xff] %vm5814_vm9, %v645_v45  ;;  %994 = vrot.lane.b32.xlu1 %v3997_v5, %s3876_s23 }
 0x100   : > { %992 = vrot.lane.b32.xlu0 %v3984_v2, %s3876_s23 }
 0x101   : > { %v651_v46 = vpop.permute.xlu1 %650 }
 0x102   : > { %v649_v48 = vpop.permute.xlu0 %648  ;;  %672 = vst.msk [vmem:[#allocation2 + $0x30] sm:$0xff] %vm5814_vm9, %v651_v46 }
 0x103   : > { %671 = vst.msk [vmem:[#allocation2 + $0x20] sm:$0xff] %vm5814_vm9, %v649_v48  ;;  %998 = vrot.lane.b32.xlu1 %v4007_v7, %s3876_s23  ;;  %v4547_v48 = vld [vmem:[%s3974_s9 + $0xa2] sm:$0xff] }
 0x104   : > { %996 = vrot.lane.b32.xlu0 %v3994_v4, %s3876_s23  ;;  %1769 = vst.msk [vmem:[#allocation2 + $0x38] sm:$0xff] %vm5805_vm0, %v4547_v48 }
 0x105   : > { %v655_v53 = vpop.permute.xlu1 %654  ;;  %1785 = vst.msk [vmem:[#allocation2 + $0x38] sm:$0xff] %vm5806_vm1, %v4547_v48 }
 0x106   : > { %v653_v54 = vpop.permute.xlu0 %652  ;;  %674 = vst.msk [vmem:[#allocation2 + $0x50] sm:$0xff] %vm5814_vm9, %v655_v53 }
 0x107   : > { %673 = vst.msk [vmem:[#allocation2 + $0x40] sm:$0xff] %vm5814_vm9, %v653_v54  ;;  %1002 = vrot.lane.b32.xlu1 %v3396_v50, %s3876_s23 }
 0x108   : > { %1000 = vrot.lane.b32.xlu0 %v4004_v6, %s3876_s23 }
 0x109   : > { %v659_v7 = vpop.permute.xlu1 %658 }
 0x10a   : > { %v657_v55 = vpop.permute.xlu0 %656  ;;  %676 = vst.msk [vmem:[#allocation2 + $0x70] sm:$0xff] %vm5814_vm9, %v659_v7 }
 0x10b   : > { %675 = vst.msk [vmem:[#allocation2 + $0x60] sm:$0xff] %vm5814_vm9, %v657_v55  ;;  %1039 = vrot.lane.b32.xlu1 %v3977_v0, %s3876_s23  ;;  %v4595_v55 = vld [vmem:[%s3974_s9 + $0x81] sm:$0xff] }
 0x10c   : > { %1037 = vrot.lane.b32.xlu0 %v3987_v3, %s3876_s23 }
 0x10d   : > { %v696_v4 = vpop.permute.xlu1 %695 }
 0x10e   : > { %v694_v57 = vpop.permute.xlu0 %693  ;;  %719 = vst.msk [vmem:[#allocation2 + $0x10] sm:$0xff] %vm5813_vm10, %v696_v4 }
 0x10f   : > { %718 = vst.msk [vmem:[#allocation2] sm:$0xff] %vm5813_vm10, %v694_v57  ;;  %1043 = vrot.lane.b32.xlu1 %v3997_v5, %s3876_s23 }
 0x110   : > { %1041 = vrot.lane.b32.xlu0 %v3984_v2, %s3876_s23 }
 0x111   : > { %v700_v6 = vpop.permute.xlu1 %699 }
 0x112   : > { %v698_v58 = vpop.permute.xlu0 %697  ;;  %721 = vst.msk [vmem:[#allocation2 + $0x30] sm:$0xff] %vm5813_vm10, %v700_v6 }
 0x113   : > { %720 = vst.msk [vmem:[#allocation2 + $0x20] sm:$0xff] %vm5813_vm10, %v698_v58  ;;  %1855 = vrot.lane.b32.xlu1 %v4124_v35, %s5810_s25 }
 0x114   : > { %1806 = vrot.lane.b32.xlu0 %v4105_v27, %s5808_s10 }
 0x115   : > { %v704_v0 = vpop.permute.xlu1 %703 }
 0x116   : > { %v702_v3 = vpop.permute.xlu0 %701  ;;  %723 = vst.msk [vmem:[#allocation2 + $0x50] sm:$0xff] %vm5813_vm10, %v704_v0  ;;  %v4617_v0 = vld [vmem:[%s3974_s9 + $0xc2] sm:$0xff] }
 0x117   : > { %722 = vst.msk [vmem:[#allocation2 + $0x40] sm:$0xff] %vm5813_vm10, %v702_v3  ;;  %1808 = vrot.lane.b32.xlu1 %v4102_v26, %s5808_s10  ;;  %v4628_v3 = vld [vmem:[%s5770_s1 + $0x50] sm:$0xff]  }
 0x118   : > { %1086 = vrot.lane.b32.xlu0 %v4081_v16, %s3878_s26  ;;  %1770 = vst.msk [vmem:[#allocation2 + $0x48] sm:$0xff] %vm5805_vm0, %v4617_v0 }
 0x119   : > { %v708_v2 = vpop.permute.xlu1 %707  ;;  %1786 = vst.msk [vmem:[#allocation2 + $0x48] sm:$0xff] %vm5806_vm1, %v4617_v0 }
 0x11a   : > { %v706_v5 = vpop.permute.xlu0 %705  ;;  %725 = vst.msk [vmem:[#allocation2 + $0x70] sm:$0xff] %vm5813_vm10, %v708_v2 }
 0x11b   : > { %724 = vst.msk [vmem:[#allocation2 + $0x60] sm:$0xff] %vm5813_vm10, %v706_v5  ;;  %1135 = vrot.lane.b32.xlu1 %v4081_v16, %s3878_s26 }
 0x11c   : > { %1903 = vrot.lane.b32.xlu0 %v4124_v35, %s5810_s25 }
 0x11d   : > { %v745_v59 = vpop.permute.xlu1 %744 }
 0x11e   : > { %v743_v60 = vpop.permute.xlu0 %742  ;;  %768 = vst.msk [vmem:[#allocation2 + $0x10] sm:$0xff] %vm5802_vm11, %v745_v59 }
 0x11f   : > { %767 = vst.msk [vmem:[#allocation2] sm:$0xff] %vm5802_vm11, %v743_v60  ;;  %1951 = vrot.lane.b32.xlu1 %v4160_v43, %s3879_s30 }
 0x120   : > { %1857 = vrot.lane.b32.xlu0 %v4121_v34, %s5810_s25 }
 0x121   : > { %v749_v26 = vpop.permute.xlu1 %748 }
 0x122   : > { %v747_v61 = vpop.permute.xlu0 %746  ;;  %770 = vst.msk [vmem:[#allocation2 + $0x30] sm:$0xff] %vm5802_vm11, %v749_v26  ;;  %v3759_v26 = vld [vmem:[%s5770_s1 + $0x60] ss:$0 sps:$4 sm:$0x33]  }
 0x123   : > { %769 = vst.msk [vmem:[#allocation2 + $0x20] sm:$0xff] %vm5802_vm11, %v747_v61  ;;  %1184 = vrot.lane.b32.xlu1 %v4097_v24, %s3880_s6  ;;  %v4663_v61 = vld [vmem:[%s3974_s9 + $0x63] sm:$0xff] }
 0x124   : > { %1088 = vrot.lane.b32.xlu0 %v4087_v19, %s3878_s26 }
 0x125   : > { %v753_v16 = vpop.permute.xlu1 %752 }
 0x126   : > { %v751_v63 = vpop.permute.xlu0 %750  ;;  %772 = vst.msk [vmem:[#allocation2 + $0x50] sm:$0xff] %vm5802_vm11, %v753_v16 }
 0x127   : > { %771 = vst.msk [vmem:[#allocation2 + $0x40] sm:$0xff] %vm5802_vm11, %v751_v63  ;;  %1999 = vrot.lane.b32.xlu1 %v4160_v43, %s3879_s30 }
 0x128   : > { %1905 = vrot.lane.b32.xlu0 %v4121_v34, %s5810_s25 }
 0x129   : > { %v757_v1 = vpop.permute.xlu1 %756 }
 0x12a   : > { %v755_v9 = vpop.permute.xlu0 %754  ;;  %774 = vst.msk [vmem:[#allocation2 + $0x70] sm:$0xff] %vm5802_vm11, %v757_v1 }
 0x12b   : > { %773 = vst.msk [vmem:[#allocation2 + $0x60] sm:$0xff] %vm5802_vm11, %v755_v9  ;;  %1234 = vrot.lane.b32.xlu1 %v4114_v32, %s5799_s7 }
 0x12c   : > { %1137 = vrot.lane.b32.xlu0 %v4087_v19, %s3878_s26 }
 0x12d   : > { %v794_v24 = vpop.permute.xlu1 %793 }
 0x12e   : > { %v792_v20 = vpop.permute.xlu0 %791  ;;  %817 = vst.msk [vmem:[#allocation2 + $0x10] sm:$0xff] %vm5804_vm12, %v794_v24 }
 0x12f   : > { %816 = vst.msk [vmem:[#allocation2] sm:$0xff] %vm5804_vm12, %v792_v20  ;;  %2047 = vrot.lane.b32.xlu1 %v4212_v18, %s5796_s13 }
 0x130   : > { %1953 = vrot.lane.b32.xlu0 %v4157_v42, %s3879_s30 }
 0x131   : > { %v798_v34 = vpop.permute.xlu1 %797 }
 0x132   : > { %v796_v21 = vpop.permute.xlu0 %795  ;;  %819 = vst.msk [vmem:[#allocation2 + $0x30] sm:$0xff] %vm5804_vm12, %v798_v34 }
 0x133   : > { %818 = vst.msk [vmem:[#allocation2 + $0x20] sm:$0xff] %vm5804_vm12, %v796_v21  ;;  %1283 = vrot.lane.b32.xlu1 %v4114_v32, %s5799_s7  ;;  %v4689_v21 = vld [vmem:[%s3974_s9 + $0x83] sm:$0xff] }
 0x134   : > { %1186 = vrot.lane.b32.xlu0 %v4105_v27, %s3880_s6 }
 0x135   : > { %v802_v19 = vpop.permute.xlu1 %801 }
 0x136   : > { %v800_v22 = vpop.permute.xlu0 %799  ;;  %821 = vst.msk [vmem:[#allocation2 + $0x50] sm:$0xff] %vm5804_vm12, %v802_v19 }
 0x137   : > { %820 = vst.msk [vmem:[#allocation2 + $0x40] sm:$0xff] %vm5804_vm12, %v800_v22  ;;  %2095 = vrot.lane.b32.xlu1 %v4212_v18, %s5796_s13 }
 0x138   : > { %2001 = vrot.lane.b32.xlu0 %v4157_v42, %s3879_s30 }
 0x139   : > { %v806_v23 = vpop.permute.xlu1 %805 }
 0x13a   : > { %v804_v25 = vpop.permute.xlu0 %803  ;;  %823 = vst.msk [vmem:[#allocation2 + $0x70] sm:$0xff] %vm5804_vm12, %v806_v23  ;;  %v4698_v23 = vld [vmem:[%s3974_s9 + $0x90] sm:$0xff] }
 0x13b   : > { %822 = vst.msk [vmem:[#allocation2 + $0x60] sm:$0xff] %vm5804_vm12, %v804_v25  ;;  %1332 = vrot.lane.b32.xlu1 %v4150_v40, %s5777_s8 }
 0x13c   : > { %1236 = vrot.lane.b32.xlu0 %v4124_v35, %s5799_s7 }
 0x13d   : > { %v843_v27 = vpop.permute.xlu1 %842 }
 0x13e   : > { %v841_v32 = vpop.permute.xlu0 %840  ;;  %866 = vst.msk [vmem:[#allocation2 + $0x10] sm:$0xff] %vm864_vm13, %v843_v27 }
 0x13f   : > { %865 = vst.msk [vmem:[#allocation2] sm:$0xff] %vm864_vm13, %v841_v32  ;;  %2143 = vrot.lane.b32.xlu1 %v4262_v52, %s5775_s14  ;;  %v4707_v32 = vld [vmem:[%s3974_s9 + $0xa3] sm:$0xff] }
 0x140   : > { %2049 = vrot.lane.b32.xlu0 %v4209_v17, %s5796_s13 }
 0x141   : > { %v847_v42 = vpop.permute.xlu1 %846 }
 0x142   : > { %v845_v28 = vpop.permute.xlu0 %844  ;;  %868 = vst.msk [vmem:[#allocation2 + $0x30] sm:$0xff] %vm864_vm13, %v847_v42 }
 0x143   : > { %867 = vst.msk [vmem:[#allocation2 + $0x20] sm:$0xff] %vm864_vm13, %v845_v28  ;;  %1381 = vrot.lane.b32.xlu1 %v4150_v40, %s5777_s8 }
 0x144   : > { %1285 = vrot.lane.b32.xlu0 %v4124_v35, %s5799_s7  ;;  %v4477_v35 = vld [vmem:[%s5770_s1 + $0x8] sm:$0xff]  }
 0x145   : > { %v851_v33 = vpop.permute.xlu1 %850  ;;  %2634 = vmatpush1.bf16.msra.mxu0 %v4477_v35  ;;  %2702 = vmatpush1.bf16.msra.mxu1 %v4477_v35 }
 0x146   : > { %v849_v36 = vpop.permute.xlu0 %848  ;;  %870 = vst.msk [vmem:[#allocation2 + $0x50] sm:$0xff] %vm864_vm13, %v851_v33  ;;  %2635 = vmatprep.subr.bf16.mxu0 %v3883_v31  ;;  %2703 = vmatprep.subr.bf16.mxu1 %v3883_v31 }
 0x147   : > { %869 = vst.msk [vmem:[#allocation2 + $0x40] sm:$0xff] %vm864_vm13, %v849_v36  ;;  %2192 = vrot.lane.b32.xlu1 %v4024_v10, %s5779_s15 }
 0x148   : > { %2097 = vrot.lane.b32.xlu0 %v4209_v17, %s5796_s13  ;;  %v4492_v17 = vld [vmem:[%s5770_s1 + $0x10] sm:$0xff]  }
 0x149   : > { %v855_v40 = vpop.permute.xlu1 %854  ;;  %2636 = vmatpush1.bf16.msra.mxu0 %v4492_v17  ;;  %2704 = vmatpush1.bf16.msra.mxu1 %v4492_v17 }
 0x14a   : > { %v853_v37 = vpop.permute.xlu0 %852  ;;  %872 = vst.msk [vmem:[#allocation2 + $0x70] sm:$0xff] %vm864_vm13, %v855_v40  ;;  %2637 = vmatprep.subr.bf16.mxu0 %v3883_v31  ;;  %2705 = vmatprep.subr.bf16.mxu1 %v3883_v31  ;;  %v4722_v40 = vld [vmem:[%s3974_s9 + $0x91] sm:$0xff] }
 0x14b   : > { %871 = vst.msk [vmem:[#allocation2 + $0x60] sm:$0xff] %vm864_vm13, %v853_v37  ;;  %1430 = vrot.lane.b32.xlu1 %v4200_v62, %s5817_s12  ;;  %v4725_v37 = vld [vmem:[%s3974_s9 + $0xb0] sm:$0xff] }
 0x14c   : > { %1334 = vrot.lane.b32.xlu0 %v4160_v43, %s5777_s8 }
 0x14d   : > { %v893_v38 = vpop.permute.xlu1 %892  ;;  %2638 = vmatpush1.bf16.msra.mxu0 %v4507_v11  ;;  %2706 = vmatpush1.bf16.msra.mxu1 %v4507_v11 }
 0x14e   : > { %v891_v39 = vpop.permute.xlu0 %890  ;;  %916 = vst.msk [vmem:[#allocation2 + $0x10] sm:$0xff] %vm5781_vm14, %v893_v38  ;;  %2639 = vmatprep.subr.bf16.mxu0 %v3883_v31  ;;  %2707 = vmatprep.subr.bf16.mxu1 %v3883_v31 }
 0x14f   : > { %915 = vst.msk [vmem:[#allocation2] sm:$0xff] %vm5781_vm14, %v891_v39  ;;  %2240 = vrot.lane.b32.xlu1 %v4024_v10, %s5779_s15 }
 0x150   : > { %2145 = vrot.lane.b32.xlu0 %v4259_v51, %s5775_s14  ;;  %v4522_v51 = vld [vmem:[%s5770_s1 + $0x20] sm:$0xff]   ;;  %s5819_s14 = smov 120  }
 0x151   : > { %v897_v41 = vpop.permute.xlu1 %896  ;;  %2640 = vmatpush1.bf16.msra.mxu0 %v4522_v51  ;;  %2708 = vmatpush1.bf16.msra.mxu1 %v4522_v51 }
 0x152   : > { %v895_v12 = vpop.permute.xlu0 %894  ;;  %918 = vst.msk [vmem:[#allocation2 + $0x30] sm:$0xff] %vm5781_vm14, %v897_v41  ;;  %2641 = vmatprep.subr.bf16.mxu0 %v3883_v31  ;;  %2709 = vmatprep.subr.bf16.mxu1 %v3883_v31 }
 0x153   : > { %917 = vst.msk [vmem:[#allocation2 + $0x20] sm:$0xff] %vm5781_vm14, %v895_v12  ;;  %1479 = vrot.lane.b32.xlu1 %v4200_v62, %s5817_s12 }
 0x154   : > { %1383 = vrot.lane.b32.xlu0 %v4160_v43, %s5777_s8  ;;  %v4540_v43 = vld [vmem:[%s5770_s1 + $0x28] sm:$0xff]   ;;  %s5782_s8 = smov 108  }
 0x155   : > { %v901_v14 = vpop.permute.xlu1 %900  ;;  %2642 = vmatpush1.bf16.msra.mxu0 %v4540_v43  ;;  %2710 = vmatpush1.bf16.msra.mxu1 %v4540_v43 }
 0x156   : > { %v899_v45 = vpop.permute.xlu0 %898  ;;  %920 = vst.msk [vmem:[#allocation2 + $0x50] sm:$0xff] %vm5781_vm14, %v901_v14  ;;  %2643 = vmatprep.subr.bf16.mxu0 %v3883_v31  ;;  %2711 = vmatprep.subr.bf16.mxu1 %v3883_v31  ;;  %v3431_v14 = vld [vmem:[%s3974_s9 + $0x70] sm:$0xff] }
 0x157   : > { %919 = vst.msk [vmem:[#allocation2 + $0x40] sm:$0xff] %vm5781_vm14, %v899_v45  ;;  %2288 = vrot.lane.b32.xlu1 %v4525_v15, %s5784_s16 }
 0x158   : > { %2194 = vrot.lane.b32.xlu0 %v4037_v13, %s5779_s15 }
 0x159   : > { %v905_v62 = vpop.permute.xlu1 %904  ;;  %2644 = vmatpush1.bf16.msra.mxu0 %v4558_v49  ;;  %2712 = vmatpush1.bf16.msra.mxu1 %v4558_v49 }
 0x15a   : > { %v903_v46 = vpop.permute.xlu0 %902  ;;  %922 = vst.msk [vmem:[#allocation2 + $0x70] sm:$0xff] %vm5781_vm14, %v905_v62  ;;  %2645 = vmatprep.subr.bf16.mxu0 %v3883_v31  ;;  %2713 = vmatprep.subr.bf16.mxu1 %v3883_v31 }
 0x15b   : > { %921 = vst.msk [vmem:[#allocation2 + $0x60] sm:$0xff] %vm5781_vm14, %v903_v46  ;;  %1528 = vrot.lane.b32.xlu1 %v4252_v47, %s5782_s8  ;;  %v4577_v47 = vld [vmem:[%s5770_s1 + $0x38] sm:$0xff]   ;;  %vm5788_vm14 = vcmask 556544  }
 0x15c   : > { %1432 = vrot.lane.b32.xlu0 %v4212_v18, %s5817_s12  ;;  %v4752_v46 = vld [vmem:[%s3974_s9 + $0x92] sm:$0xff] }
 0x15d   : > { %v942_v50 = vpop.permute.xlu1 %941  ;;  %2646 = vmatpush1.bf16.msra.mxu0 %v4577_v47  ;;  %2714 = vmatpush1.bf16.msra.mxu1 %v4577_v47 }
 0x15e   : > { %v940_v53 = vpop.permute.xlu0 %939  ;;  %965 = vst.msk [vmem:[#allocation2 + $0x10] sm:$0xff] %vm5786_vm15, %v942_v50  ;;  %2647 = vmatprep.subr.bf16.mxu0 %v3883_v31  ;;  %2715 = vmatprep.subr.bf16.mxu1 %v3883_v31  ;;  %v4755_v50 = vld [vmem:[%s3974_s9 + $0xb1] sm:$0xff] }
 0x15f   : > { %964 = vst.msk [vmem:[#allocation2] sm:$0xff] %vm5786_vm15, %v940_v53  ;;  %2336 = vrot.lane.b32.xlu1 %v4525_v15, %s5784_s16 }
 0x160   : > { %2242 = vrot.lane.b32.xlu0 %v4037_v13, %s5779_s15  ;;  %s5815_s15 = smov 112   ;;  %v4592_v13 = vld [vmem:[%s5770_s1 + $0x40] sm:$0xff]  }
 0x161   : > { %v946_v54 = vpop.permute.xlu1 %945  ;;  %2648 = vmatpush1.bf16.msra.mxu0 %v4592_v13  ;;  %2716 = vmatpush1.bf16.msra.mxu1 %v4592_v13 }
 0x162   : > { %v944_v7 = vpop.permute.xlu0 %943  ;;  %967 = vst.msk [vmem:[#allocation2 + $0x30] sm:$0xff] %vm5786_vm15, %v946_v54  ;;  %2649 = vmatprep.subr.bf16.mxu0 %v3883_v31  ;;  %2717 = vmatprep.subr.bf16.mxu1 %v3883_v31 }
 0x163   : > { %966 = vst.msk [vmem:[#allocation2 + $0x20] sm:$0xff] %vm5786_vm15, %v944_v7  ;;  %1578 = vrot.lane.b32.xlu1 %v4010_v8, %s5815_s15 }
 0x164   : > { %1481 = vrot.lane.b32.xlu0 %v4212_v18, %s5817_s12  ;;  %v4610_v18 = vld [vmem:[%s5770_s1 + $0x48] sm:$0xff]  }
 0x165   : > { %v950_v4 = vpop.permute.xlu1 %949  ;;  %2650 = vmatpush1.bf16.msra.mxu0 %v4610_v18  ;;  %2718 = vmatpush1.bf16.msra.mxu1 %v4610_v18 }
 0x166   : > { %v948_v57 = vpop.permute.xlu0 %947  ;;  %969 = vst.msk [vmem:[#allocation2 + $0x50] sm:$0xff] %vm5786_vm15, %v950_v4  ;;  %2651 = vmatprep.subr.bf16.mxu0 %v3883_v31  ;;  %2719 = vmatprep.subr.bf16.mxu1 %v3883_v31 }
 0x167   : > { %968 = vst.msk [vmem:[#allocation2 + $0x40] sm:$0xff] %vm5786_vm15, %v948_v57  ;;  %2384 = vrot.lane.b32.xlu1 %v4301_v30, %s5821_s17 }
 0x168   : > { %2290 = vrot.lane.b32.xlu0 %v4595_v55, %s5784_s16 }
 0x169   : > { %v954_v6 = vpop.permute.xlu1 %953  ;;  %2652 = vmatpush1.bf16.msra.mxu0 %v4628_v3  ;;  %2720 = vmatpush1.bf16.msra.mxu1 %v4628_v3 }
 0x16a   : > { %v952_v58 = vpop.permute.xlu0 %951  ;;  %971 = vst.msk [vmem:[#allocation2 + $0x70] sm:$0xff] %vm5786_vm15, %v954_v6  ;;  %2653 = vmatprep.subr.bf16.mxu0 %v3883_v31  ;;  %2721 = vmatprep.subr.bf16.mxu1 %v3883_v31  ;;  %v3447_v6 = vld [vmem:[%s3974_s9 + $0x71] sm:$0xff] }
 0x16b   : > { %970 = vst.msk [vmem:[#allocation2 + $0x60] sm:$0xff] %vm5786_vm15, %v952_v58  ;;  %1627 = vrot.lane.b32.xlu1 %v4010_v8, %s5815_s15  ;;  %v4647_v8 = vld [vmem:[%s5770_s1 + $0x58] sm:$0xff]   ;;  %vm2627_vm15 = vcmask 1041408  }
 0x16c   : > { %1530 = vrot.lane.b32.xlu0 %v4262_v52, %s5782_s8  ;;  %v3501_v52 = vld [vmem:[%s3974_s9 + $0x41] sm:$0xff]  ;;  %v4665_v16 = vsel %vm2627_vm15, %v3759_v26, 0  ;;  %vm5787_vm15 = vcmask 589344   ;;  %s5825_s8 = smov 92  }
 0x16d   : > { %v991_v2 = vpop.permute.xlu1 %990  ;;  %2654 = vmatpush1.bf16.msra.mxu0 %v4647_v8  ;;  %2722 = vmatpush1.bf16.msra.mxu1 %v4647_v8 }
 0x16e   : > { %v989_v5 = vpop.permute.xlu0 %988  ;;  %1014 = vst.msk [vmem:[#allocation2 + $0x10] sm:$0xff] %vm5788_vm14, %v991_v2  ;;  %2655 = vmatprep.subr.bf16.mxu0 %v3883_v31  ;;  %2723 = vmatprep.subr.bf16.mxu1 %v3883_v31 }
 0x16f   : > { %1013 = vst.msk [vmem:[#allocation2] sm:$0xff] %vm5788_vm14, %v989_v5  ;;  %2432 = vrot.lane.b32.xlu1 %v4301_v30, %s5821_s17  ;;  %v4781_v5 = vld [vmem:[%s3974_s9 + $0xb2] sm:$0xff] }
 0x170   : > { %2338 = vrot.lane.b32.xlu0 %v4595_v55, %s5784_s16  ;;  %s5826_s16 = smov 36  }
 0x171   : > { %v995_v59 = vpop.permute.xlu1 %994  ;;  %2656 = vmatpush1.bf16.msra.mxu0 %v4665_v16  ;;  %2724 = vmatpush1.bf16.msra.mxu1 %v4665_v16 }
 0x172   : > { %v993_v60 = vpop.permute.xlu0 %992  ;;  %1016 = vst.msk [vmem:[#allocation2 + $0x30] sm:$0xff] %vm5788_vm14, %v995_v59  ;;  %2766 = vmatprep.subr.bf16.mxu0 %v3883_v31  ;;  %2833 = vmatprep.subr.bf16.mxu1 %v3883_v31 }
 0x173   : > { %1015 = vst.msk [vmem:[#allocation2 + $0x20] sm:$0xff] %vm5788_vm14, %v993_v60  ;;  %1676 = vrot.lane.b32.xlu1 %v3501_v52, %s5819_s14 }
 0x174   : > { %1580 = vrot.lane.b32.xlu0 %v4024_v10, %s5815_s15  ;;  %v3494_v10 = vld [vmem:[%s3974_s9 + $0x60] sm:$0xff] }
 0x175   : > { %v999_v63 = vpop.permute.xlu1 %998 }
 0x176   : > { %v997_v1 = vpop.permute.xlu0 %996  ;;  %1018 = vst.msk [vmem:[#allocation2 + $0x50] sm:$0xff] %vm5788_vm14, %v999_v63 }
 0x177   : > { %1017 = vst.msk [vmem:[#allocation2 + $0x40] sm:$0xff] %vm5788_vm14, %v997_v1  ;;  %2480 = vrot.lane.b32.xlu1 %v4663_v61, %s3876_s23  ;;  %v3463_v1 = vld [vmem:[%s3974_s9 + $0x72] sm:$0xff] }
 0x178   : > { %2386 = vrot.lane.b32.xlu0 %v4331_v44, %s5821_s17 }
 0x179   : > { %v1003_v9 = vpop.permute.xlu1 %1002 }
 0x17a   : > { %v1001_v24 = vpop.permute.xlu0 %1000  ;;  %1020 = vst.msk [vmem:[#allocation2 + $0x70] sm:$0xff] %vm5788_vm14, %v1003_v9 }
 0x17b   : > { %1019 = vst.msk [vmem:[#allocation2 + $0x60] sm:$0xff] %vm5788_vm14, %v1001_v24  ;;  %1725 = vrot.lane.b32.xlu1 %v3501_v52, %s5819_s14  ;;  %vm1159_vm14 = vcmask 654944   ;;  %v4810_v24 = vld [vmem:[%s3974_s9 + $0xb3] sm:$0xff] }
 0x17c   : > { %1629 = vrot.lane.b32.xlu0 %v3494_v10, %s5815_s15 }
 0x17d   : > { %v1040_v20 = vpop.permute.xlu1 %1039 }
 0x17e   : > { %v1038_v34 = vpop.permute.xlu0 %1037  ;;  %1063 = vst.msk [vmem:[#allocation2 + $0x10] sm:$0xff] %vm5787_vm15, %v1040_v20 }
 0x17f   : > { %1062 = vst.msk [vmem:[#allocation2] sm:$0xff] %vm5787_vm15, %v1038_v34  ;;  %1678 = vrot.lane.b32.xlu1 %v4525_v15, %s5819_s14 }
 0x180   : > { %2434 = vrot.lane.b32.xlu0 %v4331_v44, %s5821_s17 }
 0x181   : > { %v1044_v19 = vpop.permute.xlu1 %1043 }
 0x182   : > { %v1042_v22 = vpop.permute.xlu0 %1041  ;;  %1065 = vst.msk [vmem:[#allocation2 + $0x30] sm:$0xff] %vm5787_vm15, %v1044_v19 }
 0x183   : > { %1064 = vst.msk [vmem:[#allocation2 + $0x20] sm:$0xff] %vm5787_vm15, %v1042_v22  ;;  %1727 = vrot.lane.b32.xlu1 %v4525_v15, %s5819_s14  ;;  %vm5790_vm15 = vcmask 622144   ;;  %v4824_v22 = vld [vmem:[%s3974_s9 + $0xa1] sm:$0xff] }
 0x184   : > { %2482 = vrot.lane.b32.xlu0 %v4689_v21, %s3876_s23 }
 0x185   : > { %v1856_v25 = vpop.permute.xlu1 %1855 }
 0x186   : > { %v1807_v27 = vpop.permute.xlu0 %1806 }
 0x187   : > { %1830 = vst.msk [vmem:[#allocation2 + $0x8] sm:$0xff] %vm5789_vm2, %v1807_v27  ;;  %1859 = vrot.lane.b32.xlu1 %v4698_v23, %s5810_s25 }
 0x188   : > { %1879 = vst.msk [vmem:[#allocation2 + $0x8] sm:$0xff] %vm373_vm3, %v1856_v25  ;;  %1810 = vrot.lane.b32.xlu0 %v4689_v21, %s5808_s10 }
 0x189   : > { %v1809_v42 = vpop.permute.xlu1 %1808 }
 0x18a   : > { %v1087_v28 = vpop.permute.xlu0 %1086  ;;  %1831 = vst.msk [vmem:[#allocation2 + $0x18] sm:$0xff] %vm5789_vm2, %v1809_v42  ;;  %vm1208_vm2 = vcmask 687744   ;;  %v3479_v42 = vld [vmem:[%s3974_s9 + $0x73] sm:$0xff] }
 0x18b   : > { %1111 = vst.msk [vmem:[#allocation2] sm:$0xff] %vm5790_vm15, %v1087_v28  ;;  %1812 = vrot.lane.b32.xlu1 %v4707_v32, %s5808_s10 }
 0x18c   : > { %1090 = vrot.lane.b32.xlu0 %v4301_v30, %s3878_s26 }
 0x18d   : > { %v1136_v33 = vpop.permute.xlu1 %1135 }
 0x18e   : > { %v1904_v36 = vpop.permute.xlu0 %1903  ;;  %1160 = vst.msk [vmem:[#allocation2] sm:$0xff] %vm1159_vm14, %v1136_v33 }
 0x18f   : > { %1927 = vst.msk [vmem:[#allocation2 + $0x8] sm:$0xff] %vm5791_vm4, %v1904_v36  ;;  %1139 = vrot.lane.b32.xlu1 %v4301_v30, %s3878_s26 }
 0x190   : > { %1907 = vrot.lane.b32.xlu0 %v4698_v23, %s5810_s25 }
 0x191   : > { %v1952_v38 = vpop.permute.xlu1 %1951 }
 0x192   : > { %v1858_v39 = vpop.permute.xlu0 %1857  ;;  %1975 = vst.msk [vmem:[#allocation2 + $0x8] sm:$0xff] %vm5792_vm5, %v1952_v38  ;;  %v4844_v38 = vld [vmem:[%s3974_s9 + $0xe2] sm:$0xff] }
 0x193   : > { %1880 = vst.msk [vmem:[#allocation2 + $0x18] sm:$0xff] %vm373_vm3, %v1858_v39  ;;  %1955 = vrot.lane.b32.xlu1 %v4722_v40, %s3879_s30  ;;  %v3487_v39 = vld [vmem:[%s3974_s9 + $0x80] sm:$0xff] }
 0x194   : > { %1861 = vrot.lane.b32.xlu0 %v4725_v37, %s5810_s25  ;;  %1771 = vst.msk [vmem:[#allocation2 + $0x58] sm:$0xff] %vm5805_vm0, %v4844_v38 }
 0x195   : > { %v1185_v30 = vpop.permute.xlu1 %1184  ;;  %1787 = vst.msk [vmem:[#allocation2 + $0x58] sm:$0xff] %vm5806_vm1, %v4844_v38 }
 0x196   : > { %v1089_v41 = vpop.permute.xlu0 %1088  ;;  %1209 = vst.msk [vmem:[#allocation2] sm:$0xff] %vm1208_vm2, %v1185_v30 }
 0x197   : > { %1112 = vst.msk [vmem:[#allocation2 + $0x10] sm:$0xff] %vm5790_vm15, %v1089_v41  ;;  %1188 = vrot.lane.b32.xlu1 %v4663_v61, %s3880_s6  ;;  %vm5793_vm15 = vcmask 720544   ;;  %v4795_v61 = vld [vmem:[%s3974_s9 + $0xa0] sm:$0xff] }
 0x198   : > { %1092 = vrot.lane.b32.xlu0 %v4331_v44, %s3878_s26 }
 0x199   : > { %v2000_v12 = vpop.permute.xlu1 %1999 }
 0x19a   : > { %v1906_v15 = vpop.permute.xlu0 %1905  ;;  %2023 = vst.msk [vmem:[#allocation2 + $0x8] sm:$0xff] %vm520_vm6, %v2000_v12  ;;  %v4861_v12 = vld [vmem:[%s3974_s9 + $0xc1] sm:$0xff] }
 0x19b   : > { %1928 = vst.msk [vmem:[#allocation2 + $0x18] sm:$0xff] %vm5791_vm4, %v1906_v15  ;;  %2003 = vrot.lane.b32.xlu1 %v4722_v40, %s3879_s30  ;;  %vm5794_vm4 = vcmask 753344  }
 0x19c   : > { %1909 = vrot.lane.b32.xlu0 %v4725_v37, %s5810_s25 }
 0x19d   : > { %v1235_v45 = vpop.permute.xlu1 %1234 }
 0x19e   : > { %v1138_v62 = vpop.permute.xlu0 %1137  ;;  %1259 = vst.msk [vmem:[#allocation2] sm:$0xff] %vm5793_vm15, %v1235_v45  ;;  %v3480_v45 = vld [vmem:[%s3974_s9 + $0x93] sm:$0xff] }
 0x19f   : > { %1161 = vst.msk [vmem:[#allocation2 + $0x10] sm:$0xff] %vm1159_vm14, %v1138_v62  ;;  %1238 = vrot.lane.b32.xlu1 %v3431_v14, %s5799_s7 }
 0x1a0   : > { %1141 = vrot.lane.b32.xlu0 %v4331_v44, %s3878_s26 }
 0x1a1   : > { %v2048_v53 = vpop.permute.xlu1 %2047 }
 0x1a2   : > { %v1954_v54 = vpop.permute.xlu0 %1953  ;;  %2071 = vst.msk [vmem:[#allocation2 + $0x8] sm:$0xff] %vm570_vm7, %v2048_v53 }
 0x1a3   : > { %1976 = vst.msk [vmem:[#allocation2 + $0x18] sm:$0xff] %vm5792_vm5, %v1954_v54  ;;  %2051 = vrot.lane.b32.xlu1 %v4752_v46, %s5796_s13  ;;  %vm5795_vm5 = vcmask 786144  }
 0x1a4   : > { %1957 = vrot.lane.b32.xlu0 %v4755_v50, %s3879_s30 }
 0x1a5   : > { %v1284_v7 = vpop.permute.xlu1 %1283 }
 0x1a6   : > { %v1187_v44 = vpop.permute.xlu0 %1186  ;;  %1308 = vst.msk [vmem:[#allocation2] sm:$0xff] %vm5794_vm4, %v1284_v7  ;;  %v4877_v7 = vld [vmem:[%s3974_s9 + $0x102] sm:$0xff] }
 0x1a7   : > { %1210 = vst.msk [vmem:[#allocation2 + $0x10] sm:$0xff] %vm1208_vm2, %v1187_v44  ;;  %1287 = vrot.lane.b32.xlu1 %v3431_v14, %s5799_s7 }
 0x1a8   : > { %1190 = vrot.lane.b32.xlu0 %v4689_v21, %s3880_s6  ;;  %1772 = vst.msk [vmem:[#allocation2 + $0x68] sm:$0xff] %vm5805_vm0, %v4877_v7  ;;  %vm5833_vm0 = vcmask 490944  }
 0x1a9   : > { %v2096_v4 = vpop.permute.xlu1 %2095  ;;  %1788 = vst.msk [vmem:[#allocation2 + $0x68] sm:$0xff] %vm5806_vm1, %v4877_v7  ;;  %vm1749_vm1 = vcmask 1048544  }
 0x1aa   : > { %v2002_v57 = vpop.permute.xlu0 %2001  ;;  %2119 = vst.msk [vmem:[#allocation2 + $0x8] sm:$0xff] %vm5812_vm8, %v2096_v4 }
 0x1ab   : > { %2024 = vst.msk [vmem:[#allocation2 + $0x18] sm:$0xff] %vm520_vm6, %v2002_v57  ;;  %2099 = vrot.lane.b32.xlu1 %v4752_v46, %s5796_s13 }
 0x1ac   : > { %2005 = vrot.lane.b32.xlu0 %v4755_v50, %s3879_s30 }
 0x1ad   : > { %v1333_v58 = vpop.permute.xlu1 %1332 }
 0x1ae   : > { %v1237_v2 = vpop.permute.xlu0 %1236  ;;  %1357 = vst.msk [vmem:[#allocation2] sm:$0xff] %vm5795_vm5, %v1333_v58 }
 0x1af   : > { %1260 = vst.msk [vmem:[#allocation2 + $0x10] sm:$0xff] %vm5793_vm15, %v1237_v2  ;;  %1336 = vrot.lane.b32.xlu1 %v3447_v6, %s5825_s8  ;;  %vm5798_vm15 = vcmask 818944  }
 0x1b0   : > { %1240 = vrot.lane.b32.xlu0 %v4698_v23, %s5799_s7 }
 0x1b1   : > { %v2144_v52 = vpop.permute.xlu1 %2143 }
 0x1b2   : > { %v2050_v59 = vpop.permute.xlu0 %2049  ;;  %2167 = vst.msk [vmem:[#allocation2 + $0x8] sm:$0xff] %vm5814_vm9, %v2144_v52 }
 0x1b3   : > { %2072 = vst.msk [vmem:[#allocation2 + $0x18] sm:$0xff] %vm570_vm7, %v2050_v59  ;;  %2147 = vrot.lane.b32.xlu1 %v4270_v56, %s5826_s16 }
 0x1b4   : > { %2053 = vrot.lane.b32.xlu0 %v4781_v5, %s5796_s13 }
 0x1b5   : > { %v1382_v60 = vpop.permute.xlu1 %1381 }
 0x1b6   : > { %v1286_v26 = vpop.permute.xlu0 %1285  ;;  %1406 = vst.msk [vmem:[#allocation2] sm:$0xff] %vm5798_vm15, %v1382_v60 }
 0x1b7   : > { %1309 = vst.msk [vmem:[#allocation2 + $0x10] sm:$0xff] %vm5794_vm4, %v1286_v26  ;;  %1385 = vrot.lane.b32.xlu1 %v3447_v6, %s5825_s8  ;;  %vm5801_vm4 = vcmask 851744  }
 0x1b8   : > { %1289 = vrot.lane.b32.xlu0 %v4698_v23, %s5799_s7  ;;  %v4827_v23 = vld [vmem:[%s3974_s9 + $0xc0] sm:$0xff]  ;;  %s5829_s7 = smov 108  }
 0x1b9   : > { %v2193_v56 = vpop.permute.xlu1 %2192 }
 0x1ba   : > { %v2098_v63 = vpop.permute.xlu0 %2097  ;;  %2216 = vst.msk [vmem:[#allocation2 + $0x8] sm:$0xff] %vm5813_vm10, %v2193_v56 }
 0x1bb   : > { %2120 = vst.msk [vmem:[#allocation2 + $0x18] sm:$0xff] %vm5812_vm8, %v2098_v63  ;;  %2196 = vrot.lane.b32.xlu1 %v4795_v61, %s5827_s11 }
 0x1bc   : > { %2101 = vrot.lane.b32.xlu0 %v4781_v5, %s5796_s13  ;;  %s5828_s13 = smov 48  }
 0x1bd   : > { %v1431_v10 = vpop.permute.xlu1 %1430 }
 0x1be   : > { %v1335_v9 = vpop.permute.xlu0 %1334  ;;  %1455 = vst.msk [vmem:[#allocation2] sm:$0xff] %vm5801_vm4, %v1431_v10 }
 0x1bf   : > { %1358 = vst.msk [vmem:[#allocation2 + $0x10] sm:$0xff] %vm5795_vm5, %v1335_v9  ;;  %1434 = vrot.lane.b32.xlu1 %v3463_v1, %s5817_s12  ;;  %vm5803_vm5 = vcmask 884544  }
 0x1c0   : > { %1338 = vrot.lane.b32.xlu0 %v4722_v40, %s5825_s8 }
 0x1c1   : > { %v2241_v20 = vpop.permute.xlu1 %2240 }
 0x1c2   : > { %v2146_v34 = vpop.permute.xlu0 %2145  ;;  %2264 = vst.msk [vmem:[#allocation2 + $0x8] sm:$0xff] %vm5802_vm11, %v2241_v20  ;;  %v4930_v20 = vld [vmem:[%s3974_s9 + $0xd0] sm:$0xff] }
 0x1c3   : > { %2168 = vst.msk [vmem:[#allocation2 + $0x18] sm:$0xff] %vm5814_vm9, %v2146_v34  ;;  %2244 = vrot.lane.b32.xlu1 %v4795_v61, %s5827_s11 }
 0x1c4   : > { %2149 = vrot.lane.b32.xlu0 %v4810_v24, %s5826_s16 }
 0x1c5   : > { %v1480_v21 = vpop.permute.xlu1 %1479 }
 0x1c6   : > { %v1384_v19 = vpop.permute.xlu0 %1383  ;;  %1504 = vst.msk [vmem:[#allocation2] sm:$0xff] %vm5803_vm5, %v1480_v21 }
 0x1c7   : > { %1407 = vst.msk [vmem:[#allocation2 + $0x10] sm:$0xff] %vm5798_vm15, %v1384_v19  ;;  %1483 = vrot.lane.b32.xlu1 %v3463_v1, %s5817_s12  ;;  %vm1552_vm15 = vcmask 917344  }
 0x1c8   : > { %1387 = vrot.lane.b32.xlu0 %v4722_v40, %s5825_s8 }
 0x1c9   : > { %v2289_v25 = vpop.permute.xlu1 %2288 }
 0x1ca   : > { %v2195_v27 = vpop.permute.xlu0 %2194  ;;  %2312 = vst.msk [vmem:[#allocation2 + $0x8] sm:$0xff] %vm5804_vm12, %v2289_v25 }
 0x1cb   : > { %2217 = vst.msk [vmem:[#allocation2 + $0x18] sm:$0xff] %vm5813_vm10, %v2195_v27  ;;  %2292 = vrot.lane.b32.xlu1 %v4824_v22, %s5828_s13 }
 0x1cc   : > { %2198 = vrot.lane.b32.xlu0 %v4827_v23, %s5827_s11 }
 0x1cd   : > { %v1529_v28 = vpop.permute.xlu1 %1528 }
 0x1ce   : > { %v1433_v33 = vpop.permute.xlu0 %1432  ;;  %1553 = vst.msk [vmem:[#allocation2] sm:$0xff] %vm1552_vm15, %v1529_v28 }
 0x1cf   : > { %1456 = vst.msk [vmem:[#allocation2 + $0x10] sm:$0xff] %vm5801_vm4, %v1433_v33  ;;  %1532 = vrot.lane.b32.xlu1 %v3479_v42, %s5829_s7  ;;  %vm1602_vm4 = vcmask 950144  }
 0x1d0   : > { %1436 = vrot.lane.b32.xlu0 %v4752_v46, %s5817_s12 }
 0x1d1   : > { %v2337_v36 = vpop.permute.xlu1 %2336 }
 0x1d2   : > { %v2243_v40 = vpop.permute.xlu0 %2242  ;;  %2360 = vst.msk [vmem:[#allocation2 + $0x8] sm:$0xff] %vm864_vm13, %v2337_v36 }
 0x1d3   : > { %2265 = vst.msk [vmem:[#allocation2 + $0x18] sm:$0xff] %vm5802_vm11, %v2243_v40  ;;  %2340 = vrot.lane.b32.xlu1 %v4824_v22, %s5828_s13  ;;  %vm5830_vm11 = vcmask 490944  }
 0x1d4   : > { %2246 = vrot.lane.b32.xlu0 %v4827_v23, %s5827_s11 }
 0x1d5   : > { %v1579_v30 = vpop.permute.xlu1 %1578 }
 0x1d6   : > { %v1482_v41 = vpop.permute.xlu0 %1481  ;;  %1603 = vst.msk [vmem:[#allocation2] sm:$0xff] %vm1602_vm4, %v1579_v30 }
 0x1d7   : > { %1505 = vst.msk [vmem:[#allocation2 + $0x10] sm:$0xff] %vm5803_vm5, %v1482_v41  ;;  %1582 = vrot.lane.b32.xlu1 %v3487_v39, %s5815_s15  ;;  %vm1651_vm5 = vcmask 982944  }
 0x1d8   : > { %1485 = vrot.lane.b32.xlu0 %v4752_v46, %s5817_s12 }
 0x1d9   : > { %v2385_v15 = vpop.permute.xlu1 %2384 }
 0x1da   : > { %v2291_v14 = vpop.permute.xlu0 %2290  ;;  %2408 = vst.msk [vmem:[#allocation2 + $0x8] sm:$0xff] %vm5830_vm11, %v2385_v15  ;;  %vm5831_vm11 = vcmask 523744  }
 0x1db   : > { %2313 = vst.msk [vmem:[#allocation2 + $0x18] sm:$0xff] %vm5804_vm12, %v2291_v14  ;;  %2388 = vrot.lane.b32.xlu1 %v4547_v48, %s5821_s17  ;;  %vm5807_vm12 = vcmask 1015744   ;;  %v5013_v14 = vld [vmem:[%s3974_s9 + $0xf1] sm:$0xff] }
 0x1dc   : > { %2294 = vrot.lane.b32.xlu0 %v4861_v12, %s5828_s13 }
 0x1dd   : > { %v1628_v62 = vpop.permute.xlu1 %1627 }
 0x1de   : > { %v1531_v53 = vpop.permute.xlu0 %1530  ;;  %1652 = vst.msk [vmem:[#allocation2] sm:$0xff] %vm1651_vm5, %v1628_v62 }
 0x1df   : > { %1554 = vst.msk [vmem:[#allocation2 + $0x10] sm:$0xff] %vm1552_vm15, %v1531_v53  ;;  %1631 = vrot.lane.b32.xlu1 %v3487_v39, %s5815_s15  ;;  %v4967_v39 = vld [vmem:[%s3974_s9 + $0xf0] sm:$0xff] }
 0x1e0   : > { %1534 = vrot.lane.b32.xlu0 %v3480_v45, %s5829_s7 }
 0x1e1   : > { %v2433_v46 = vpop.permute.xlu1 %2432 }
 0x1e2   : > { %v2339_v54 = vpop.permute.xlu0 %2338  ;;  %2456 = vst.msk [vmem:[#allocation2 + $0x8] sm:$0xff] %vm5831_vm11, %v2433_v46  ;;  %vm5832_vm11 = vcmask 556544   ;;  %v5059_v46 = vld [vmem:[%s3974_s9 + $0xf2] sm:$0xff] }
 0x1e3   : > { %2361 = vst.msk [vmem:[#allocation2 + $0x18] sm:$0xff] %vm864_vm13, %v2339_v54  ;;  %2436 = vrot.lane.b32.xlu1 %v4547_v48, %s5821_s17 }
 0x1e4   : > { %2342 = vrot.lane.b32.xlu0 %v4861_v12, %s5828_s13 }
 0x1e5   : > { %v1677_v44 = vpop.permute.xlu1 %1676 }
 0x1e6   : > { %v1581_v4 = vpop.permute.xlu0 %1580  ;;  %1701 = vst.msk [vmem:[#allocation2] sm:$0xff] %vm5807_vm12, %v1677_v44 }
 0x1e7   : > { %1604 = vst.msk [vmem:[#allocation2 + $0x10] sm:$0xff] %vm1602_vm4, %v1581_v4  ;;  %1680 = vrot.lane.b32.xlu1 %v4595_v55, %s5819_s14 }
 0x1e8   : > { %1584 = vrot.lane.b32.xlu0 %v4795_v61, %s5815_s15 }
 0x1e9   : > { %v2481_v57 = vpop.permute.xlu1 %2480 }
 0x1ea   : > { %v2387_v6 = vpop.permute.xlu0 %2386  ;;  %2504 = vst.msk [vmem:[#allocation2 + $0x8] sm:$0xff] %vm5832_vm11, %v2481_v57  ;;  %vm5834_vm11 = vcmask 523744  }
 0x1eb   : > { %2409 = vst.msk [vmem:[#allocation2 + $0x18] sm:$0xff] %vm5833_vm0, %v2387_v6  ;;  %2484 = vrot.lane.b32.xlu1 %v4707_v32, %s3876_s23  ;;  %vm2623_vm0 = vcmask 556032  }
 0x1ec   : > { %2390 = vrot.lane.b32.xlu0 %v4617_v0, %s5821_s17 }
 0x1ed   : > { %v1726_v58 = vpop.permute.xlu1 %1725 }
 0x1ee   : > { %v1630_v2 = vpop.permute.xlu0 %1629  ;;  %1750 = vst.msk [vmem:[#allocation2] sm:$0xff] %vm1749_vm1, %v1726_v58  ;;  %v5098_v58 = vld [vmem:[%s3974_s9 + $0xf3] sm:$0xff] }
 0x1ef   : > { %1653 = vst.msk [vmem:[#allocation2 + $0x10] sm:$0xff] %vm1651_vm5, %v1630_v2  ;;  %1729 = vrot.lane.b32.xlu1 %v4595_v55, %s5819_s14  ;;  %v4913_v55 = vld [vmem:[%s3974_s9 + $0xc3] sm:$0xff] }
 0x1f0   : > { %1633 = vrot.lane.b32.xlu0 %v4795_v61, %s5815_s15 }
 0x1f1   : > { %v1679_v52 = vpop.permute.xlu1 %1678  ;;  %v2539_v60 = vld [vmem:[#allocation2 + $0x8] sm:$0xff] }
 0x1f2   : > { %v2435_v59 = vpop.permute.xlu0 %2434  ;;  %1702 = vst.msk [vmem:[#allocation2 + $0x10] sm:$0xff] %vm5807_vm12, %v1679_v52  ;;  %v2541_v26 = vpack.c.bf16 %v2539_v60, %v2539_v60  ;;  %vm5835_vm12 = vcmask 556544  }
 0x1f3   : > { %2457 = vst.msk [vmem:[#allocation2 + $0x18] sm:$0xff] %vm5834_vm11, %v2435_v59  ;;  %1682 = vrot.lane.b32.xlu1 %v4824_v22, %s5819_s14  ;;  %vm5836_vm11 = vcmask 97344  }
 0x1f4   : > { %2438 = vrot.lane.b32.xlu0 %v4617_v0, %s5821_s17  ;;  %3667 = vmatprep.mubr.msk.bf16.mxu0 %vm2623_vm0, %v2541_v26  ;;  %v5113_v26 = vld [vmem:[%s3974_s9 + $0xe1] sm:$0xff] }
 0x1f5   : > { %v1728_v61 = vpop.permute.xlu1 %1727  ;;  %v2538_v63 = vld [vmem:[#allocation2] sm:$0xff] }
 0x1f6   : > { %v2483_v56 = vpop.permute.xlu0 %2482  ;;  %1751 = vst.msk [vmem:[#allocation2 + $0x10] sm:$0xff] %vm1749_vm1, %v1728_v61  ;;  %v2540_v1 = vpack.c.bf16 %v2538_v63, %v2538_v63 }
 0x1f7   : > { %2505 = vst.msk [vmem:[#allocation2 + $0x18] sm:$0xff] %vm5835_vm12, %v2483_v56  ;;  %1731 = vrot.lane.b32.xlu1 %v4824_v22, %s5819_s14  ;;  %vm5837_vm12 = vmmov %vm5836_vm11 }
 0x1f8   : > { %2486 = vrot.lane.b32.xlu0 %v4913_v55, %s3876_s23  ;;  %2664 = vmatmul.mubr.bf16.vlgmr.msra.gmra.mrb[0].mxu0 %v2540_v1 }
 0x1f9   : > { %v1860_v10 = vpop.permute.xlu1 %1859  ;;  %2767 = vmatpush1.bf16.msra.mxu0 %v4460_v29 }
 0x1fa   : > { %v1811_v9 = vpop.permute.xlu0 %1810  ;;  %2768 = vmatprep.subr.bf16.mxu0 %v3883_v31 }
 0x1fb   : > { %1832 = vst.msk [vmem:[#allocation2 + $0x28] sm:$0xff] %vm5836_vm11, %v1811_v9  ;;  %1045 = vrot.lane.b32.xlu1 %v4824_v22, %s3876_s23  ;;  %vm5838_vm11 = vcmask 622144   ;;  %v4942_v22 = vld [vmem:[%s3974_s9 + $0xe3] sm:$0xff] }
 0x1fc   : > { %1881 = vst.msk [vmem:[#allocation2 + $0x28] sm:$0xff] %vm373_vm3, %v1860_v10  ;;  %1814 = vrot.lane.b32.xlu0 %v4913_v55, %s5808_s10  ;;  %v5133_v9 = vld [vmem:[%s3974_s9 + $0x122] sm:$0xff] }
 0x1fd   : > { %v1813_v34 = vpop.permute.xlu1 %1812  ;;  %v2692_v25 = vld [vmem:[#allocation2 + $0x10] sm:$0xff]  ;;  %2769 = vmatpush1.bf16.msra.mxu0 %v4477_v35 }
 0x1fe   : > { %v1091_v21 = vpop.permute.xlu0 %1090  ;;  %v2693_v19 = vld [vmem:[#allocation2 + $0x18] sm:$0xff]  ;;  %1833 = vst.msk [vmem:[#allocation2 + $0x38] sm:$0xff] %vm5837_vm12, %v1813_v34  ;;  %v2694_v42 = vpack.c.bf16 %v2692_v25, %v2692_v25  ;;  %2770 = vmatprep.subr.bf16.mxu0 %v3883_v31  ;;  %vm5839_vm12 = vcmask 162944   ;;  %v5150_v34 = vld [vmem:[%s3974_s9 + $0x101] sm:$0xff] }
 0x1ff   : > { %1113 = vst.msk [vmem:[#allocation2 + $0x20] sm:$0xff] %vm5838_vm11, %v1091_v21  ;;  %v2695_v27 = vpack.c.bf16 %v2693_v19, %v2693_v19  ;;  %1094 = vrot.lane.b32.xlu1 %v4547_v48, %s3878_s26  ;;  %vm5840_vm11 = vcmask 195744  }
 0x200   : > { %1863 = vrot.lane.b32.xlu0 %v4930_v20, %s5810_s25 }
 0x201   : > { %3668 = vmatprep.mubr.msk.bf16.mxu1 %vm2623_vm0, %v2695_v27  ;;  %v1140_v28 = vpop.permute.xlu1 %1139  ;;  %2771 = vmatpush1.bf16.msra.mxu0 %v4492_v17 }
 0x202   : > { %v1908_v33 = vpop.permute.xlu0 %1907  ;;  %2732 = vmatmul.mubr.bf16.vlgmr.msra.gmra.mrb[0].mxu1 %v2694_v42  ;;  %1162 = vst.msk [vmem:[#allocation2 + $0x20] sm:$0xff] %vm1159_vm14, %v1140_v28  ;;  %2772 = vmatprep.subr.bf16.mxu0 %v3883_v31 }
 0x203   : > { %1929 = vst.msk [vmem:[#allocation2 + $0x28] sm:$0xff] %vm5839_vm12, %v1908_v33  ;;  %2834 = vmatpush1.bf16.msra.mxu1 %v4460_v29  ;;  %1911 = vrot.lane.b32.xlu1 %v4930_v20, %s5810_s25  ;;  %v4964_v29 = vld [vmem:[%s3974_s9 + $0xd1] sm:$0xff]  ;;  %vm5841_vm12 = vcmask 622144  }
 0x204   : > { %1816 = vrot.lane.b32.xlu0 %v4942_v22, %s5808_s10  ;;  %2835 = vmatprep.subr.bf16.mxu1 %v3883_v31  ;;  %s5845_s10 = smov 84  }
 0x205   : > { %v1956_v36 = vpop.permute.xlu1 %1955  ;;  %2773 = vmatpush1.bf16.msra.mxu0 %v4507_v11 }
 0x206   : > { %v1862_v40 = vpop.permute.xlu0 %1861  ;;  %1977 = vst.msk [vmem:[#allocation2 + $0x28] sm:$0xff] %vm5840_vm11, %v1956_v36  ;;  %2774 = vmatprep.subr.bf16.mxu0 %v3883_v31  ;;  %vm5842_vm11 = vcmask 162944  }
 0x207   : > { %1882 = vst.msk [vmem:[#allocation2 + $0x38] sm:$0xff] %vm373_vm3, %v1862_v40  ;;  %2836 = vmatpush1.bf16.msra.mxu1 %v4477_v35  ;;  %1143 = vrot.lane.b32.xlu1 %v4547_v48, %s3878_s26 }
 0x208   : > { %1047 = vrot.lane.b32.xlu0 %v4861_v12, %s3876_s23  ;;  %2837 = vmatprep.subr.bf16.mxu1 %v3883_v31 }
 0x209   : > { %v1189_v30 = vpop.permute.xlu1 %1188  ;;  %2775 = vmatpush1.bf16.msra.mxu0 %v4522_v51 }
 0x20a   : > { %v1093_v41 = vpop.permute.xlu0 %1092  ;;  %1211 = vst.msk [vmem:[#allocation2 + $0x20] sm:$0xff] %vm1208_vm2, %v1189_v30  ;;  %2776 = vmatprep.subr.bf16.mxu0 %v3883_v31 }
 0x20b   : > { %1114 = vst.msk [vmem:[#allocation2 + $0x30] sm:$0xff] %vm5841_vm12, %v1093_v41  ;;  %2838 = vmatpush1.bf16.msra.mxu1 %v4492_v17  ;;  %1959 = vrot.lane.b32.xlu1 %v4964_v29, %s3879_s30  ;;  %vm5843_vm12 = vcmask 720544  }
 0x20c   : > { %1865 = vrot.lane.b32.xlu0 %v4967_v39, %s5810_s25  ;;  %2839 = vmatprep.subr.bf16.mxu1 %v3883_v31 }
 0x20d   : > { %v2004_v35 = vpop.permute.xlu1 %2003  ;;  %2777 = vmatpush1.bf16.msra.mxu0 %v4540_v43 }
 0x20e   : > { %v1910_v48 = vpop.permute.xlu0 %1909  ;;  %2025 = vst.msk [vmem:[#allocation2 + $0x28] sm:$0xff] %vm520_vm6, %v2004_v35  ;;  %2778 = vmatprep.subr.bf16.mxu0 %v3883_v31 }
 0x20f   : > { %1930 = vst.msk [vmem:[#allocation2 + $0x38] sm:$0xff] %vm5842_vm11, %v1910_v48  ;;  %2840 = vmatpush1.bf16.msra.mxu1 %v4507_v11  ;;  %1192 = vrot.lane.b32.xlu1 %v4707_v32, %s3880_s6  ;;  %vm5844_vm11 = vcmask 195744  }
 0x210   : > { %1096 = vrot.lane.b32.xlu0 %v4617_v0, %s3878_s26  ;;  %2841 = vmatprep.subr.bf16.mxu1 %v3883_v31 }
 0x211   : > { %v1239_v17 = vpop.permute.xlu1 %1238  ;;  %2779 = vmatpush1.bf16.msra.mxu0 %v4558_v49 }
 0x212   : > { %v1142_v15 = vpop.permute.xlu0 %1141  ;;  %1261 = vst.msk [vmem:[#allocation2 + $0x20] sm:$0xff] %vm5843_vm12, %v1239_v17  ;;  %2780 = vmatprep.subr.bf16.mxu0 %v3883_v31  ;;  %vm5846_vm12 = vcmask 753344  }
 0x213   : > { %1163 = vst.msk [vmem:[#allocation2 + $0x30] sm:$0xff] %vm1159_vm14, %v1142_v15  ;;  %2842 = vmatpush1.bf16.msra.mxu1 %v4522_v51  ;;  %2007 = vrot.lane.b32.xlu1 %v4964_v29, %s3879_s30  ;;  %v5010_v51 = vld [vmem:[%s3974_s9 + $0xd2] sm:$0xff] }
 0x214   : > { %1913 = vrot.lane.b32.xlu0 %v4967_v39, %s5810_s25  ;;  %2843 = vmatprep.subr.bf16.mxu1 %v3883_v31  ;;  %s5847_s25 = smov 28  }
 0x215   : > { %v2052_v11 = vpop.permute.xlu1 %2051  ;;  %2781 = vmatpush1.bf16.msra.mxu0 %v4577_v47 }
 0x216   : > { %v1958_v32 = vpop.permute.xlu0 %1957  ;;  %2073 = vst.msk [vmem:[#allocation2 + $0x28] sm:$0xff] %vm570_vm7, %v2052_v11  ;;  %2782 = vmatprep.subr.bf16.mxu0 %v3883_v31 }
 0x217   : > { %1978 = vst.msk [vmem:[#allocation2 + $0x38] sm:$0xff] %vm5844_vm11, %v1958_v32  ;;  %2844 = vmatpush1.bf16.msra.mxu1 %v4540_v43  ;;  %1242 = vrot.lane.b32.xlu1 %v4725_v37, %s5845_s10  ;;  %vm5848_vm11 = vcmask 786144  }
 0x218   : > { %1145 = vrot.lane.b32.xlu0 %v4617_v0, %s3878_s26  ;;  %2845 = vmatprep.subr.bf16.mxu1 %v3883_v31 }
 0x219   : > { %v1288_v45 = vpop.permute.xlu1 %1287  ;;  %2783 = vmatpush1.bf16.msra.mxu0 %v4592_v13 }
 0x21a   : > { %v1191_v62 = vpop.permute.xlu0 %1190  ;;  %1310 = vst.msk [vmem:[#allocation2 + $0x20] sm:$0xff] %vm5846_vm12, %v1288_v45  ;;  %2784 = vmatprep.subr.bf16.mxu0 %v3883_v31  ;;  %vm5849_vm12 = vcmask 720544   ;;  %v5201_v45 = vld [vmem:[%s5770_s1] sm:$0xff]  }
 0x21b   : > { %1212 = vst.msk [vmem:[#allocation2 + $0x30] sm:$0xff] %vm1208_vm2, %v1191_v62  ;;  %2846 = vmatpush1.bf16.msra.mxu1 %v4558_v49  ;;  %2055 = vrot.lane.b32.xlu1 %v5010_v51, %s5847_s25 }
 0x21c   : > { %1961 = vrot.lane.b32.xlu0 %v5013_v14, %s3879_s30  ;;  %2847 = vmatprep.subr.bf16.mxu1 %v3883_v31 }
 0x21d   : > { %v2100_v43 = vpop.permute.xlu1 %2099  ;;  %2785 = vmatpush1.bf16.msra.mxu0 %v4610_v18 }
 0x21e   : > { %v2006_v0 = vpop.permute.xlu0 %2005  ;;  %2121 = vst.msk [vmem:[#allocation2 + $0x28] sm:$0xff] %vm5812_vm8, %v2100_v43  ;;  %2786 = vmatprep.subr.bf16.mxu0 %v3883_v31 }
 0x21f   : > { %2026 = vst.msk [vmem:[#allocation2 + $0x38] sm:$0xff] %vm520_vm6, %v2006_v0  ;;  %2848 = vmatpush1.bf16.msra.mxu1 %v4577_v47  ;;  %1291 = vrot.lane.b32.xlu1 %v4725_v37, %s5845_s10 }
 0x220   : > { %1194 = vrot.lane.b32.xlu0 %v4913_v55, %s3880_s6  ;;  %2849 = vmatprep.subr.bf16.mxu1 %v3883_v31  ;;  %v5116_v55 = vld [vmem:[%s3974_s9 + $0x100] sm:$0xff] }
 0x221   : > { %v1337_v49 = vpop.permute.xlu1 %1336  ;;  %2787 = vmatpush1.bf16.msra.mxu0 %v4628_v3 }
 0x222   : > { %v1241_v53 = vpop.permute.xlu0 %1240  ;;  %1359 = vst.msk [vmem:[#allocation2 + $0x20] sm:$0xff] %vm5848_vm11, %v1337_v49  ;;  %2788 = vmatprep.subr.bf16.mxu0 %v3883_v31  ;;  %vm5850_vm11 = vcmask 818944  }
 0x223   : > { %1262 = vst.msk [vmem:[#allocation2 + $0x30] sm:$0xff] %vm5849_vm12, %v1241_v53  ;;  %2850 = vmatpush1.bf16.msra.mxu1 %v4592_v13  ;;  %2103 = vrot.lane.b32.xlu1 %v5010_v51, %s5847_s25  ;;  %v5056_v13 = vld [vmem:[%s3974_s9 + $0xd3] sm:$0xff]  ;;  %vm5851_vm12 = vcmask 753344   ;;  %v5214_v53 = vld [vmem:[%s5770_s1 + $0x8] sm:$0xff]  }
 0x224   : > { %2009 = vrot.lane.b32.xlu0 %v5013_v14, %s3879_s30  ;;  %2851 = vmatprep.subr.bf16.mxu1 %v3883_v31 }
 0x225   : > { %v2148_v47 = vpop.permute.xlu1 %2147  ;;  %2789 = vmatpush1.bf16.msra.mxu0 %v4647_v8 }
 0x226   : > { %v2054_v37 = vpop.permute.xlu0 %2053  ;;  %2169 = vst.msk [vmem:[#allocation2 + $0x28] sm:$0xff] %vm5814_vm9, %v2148_v47  ;;  %2790 = vmatprep.subr.bf16.mxu0 %v3883_v31 }
 0x227   : > { %2074 = vst.msk [vmem:[#allocation2 + $0x38] sm:$0xff] %vm570_vm7, %v2054_v37  ;;  %2852 = vmatpush1.bf16.msra.mxu1 %v4610_v18  ;;  %1340 = vrot.lane.b32.xlu1 %v4755_v50, %s5825_s8 }
 0x228   : > { %1244 = vrot.lane.b32.xlu0 %v4930_v20, %s5845_s10  ;;  %2853 = vmatprep.subr.bf16.mxu1 %v3883_v31 }
 0x229   : > { %v1386_v54 = vpop.permute.xlu1 %1385  ;;  %2791 = vmatpush1.bf16.msra.mxu0 %v4665_v16 }
 0x22a   : > { %v1290_v44 = vpop.permute.xlu0 %1289  ;;  %1408 = vst.msk [vmem:[#allocation2 + $0x20] sm:$0xff] %vm5850_vm11, %v1386_v54  ;;  %2900 = vmatprep.subr.bf16.mxu0 %v3883_v31  ;;  %vm5852_vm11 = vcmask 851744  }
 0x22b   : > { %1311 = vst.msk [vmem:[#allocation2 + $0x30] sm:$0xff] %vm5851_vm12, %v1290_v44  ;;  %2854 = vmatpush1.bf16.msra.mxu1 %v4628_v3  ;;  %2151 = vrot.lane.b32.xlu1 %v5056_v13, %s5826_s16  ;;  %v5080_v3 = vld [vmem:[%s3974_s9 + $0xe0] sm:$0xff]  ;;  %vm5853_vm12 = vcmask 786144  }
 0x22c   : > { %2057 = vrot.lane.b32.xlu0 %v5059_v46, %s5847_s25  ;;  %2855 = vmatprep.subr.bf16.mxu1 %v3883_v31 }
 0x22d   : > { %v2197_v18 = vpop.permute.xlu1 %2196 }
 0x22e   : > { %v2102_v4 = vpop.permute.xlu0 %2101  ;;  %2218 = vst.msk [vmem:[#allocation2 + $0x28] sm:$0xff] %vm5813_vm10, %v2197_v18  ;;  %v5231_v18 = vld [vmem:[%s5770_s1 + $0x10] sm:$0xff]  }
 0x22f   : > { %2122 = vst.msk [vmem:[#allocation2 + $0x38] sm:$0xff] %vm5812_vm8, %v2102_v4  ;;  %2856 = vmatpush1.bf16.msra.mxu1 %v4647_v8  ;;  %1389 = vrot.lane.b32.xlu1 %v4755_v50, %s5825_s8  ;;  %vm5854_vm8 = vcmask 392544   ;;  %v5243_v4 = vld [vmem:[%s3974_s9 + $0x123] sm:$0xff] }
 0x230   : > { %1293 = vrot.lane.b32.xlu0 %v4930_v20, %s5845_s10  ;;  %2857 = vmatprep.subr.bf16.mxu1 %v3883_v31 }
 0x231   : > { %v1435_v57 = vpop.permute.xlu1 %1434 }
 0x232   : > { %v1339_v6 = vpop.permute.xlu0 %1338  ;;  %1457 = vst.msk [vmem:[#allocation2 + $0x20] sm:$0xff] %vm5852_vm11, %v1435_v57  ;;  %vm5855_vm11 = vcmask 884544  }
 0x233   : > { %1360 = vst.msk [vmem:[#allocation2 + $0x30] sm:$0xff] %vm5853_vm12, %v1339_v6  ;;  %2858 = vmatpush1.bf16.msra.mxu1 %v4665_v16  ;;  %2200 = vrot.lane.b32.xlu1 %v5080_v3, %s5827_s11  ;;  %vm5856_vm12 = vcmask 818944   ;;  %v5249_v6 = vld [vmem:[%s5770_s1 + $0x18] sm:$0xff]  }
 0x234   : > { %2105 = vrot.lane.b32.xlu0 %v5059_v46, %s5847_s25  ;;  %2967 = vmatprep.subr.bf16.mxu1 %v3883_v31 }
 0x235   : > { %v2245_v8 = vpop.permute.xlu1 %2244 }
 0x236   : > { %v2150_v50 = vpop.permute.xlu0 %2149  ;;  %2266 = vst.msk [vmem:[#allocation2 + $0x28] sm:$0xff] %vm5854_vm8, %v2245_v8  ;;  %vm5857_vm8 = vcmask 425344  }
 0x237   : > { %2170 = vst.msk [vmem:[#allocation2 + $0x38] sm:$0xff] %vm5814_vm9, %v2150_v50  ;;  %1438 = vrot.lane.b32.xlu1 %v4781_v5, %s5817_s12  ;;  %vm5864_vm9 = vcmask 425344  }
 0x238   : > { %1342 = vrot.lane.b32.xlu0 %v4964_v29, %s5825_s8 }
 0x239   : > { %v1484_v2 = vpop.permute.xlu1 %1483 }
 0x23a   : > { %v1388_v52 = vpop.permute.xlu0 %1387  ;;  %1506 = vst.msk [vmem:[#allocation2 + $0x20] sm:$0xff] %vm5855_vm11, %v1484_v2  ;;  %vm5858_vm11 = vcmask 851744   ;;  %v5264_v2 = vld [vmem:[%s5770_s1 + $0x20] sm:$0xff]  }
 0x23b   : > { %1409 = vst.msk [vmem:[#allocation2 + $0x30] sm:$0xff] %vm5856_vm12, %v1388_v52  ;;  %2248 = vrot.lane.b32.xlu1 %v5080_v3, %s5827_s11  ;;  %vm5859_vm12 = vcmask 392544   ;;  %v5276_v52 = vld [vmem:[%s3974_s9 + $0x111] sm:$0xff] }
 0x23c   : > { %2153 = vrot.lane.b32.xlu0 %v5098_v58, %s5826_s16 }
 0x23d   : > { %v2293_v59 = vpop.permute.xlu1 %2292 }
 0x23e   : > { %v2199_v60 = vpop.permute.xlu0 %2198  ;;  %2314 = vst.msk [vmem:[#allocation2 + $0x28] sm:$0xff] %vm5857_vm8, %v2293_v59  ;;  %vm5860_vm8 = vcmask 884544   ;;  %v3548_v59 = vld [vmem:[%s3974_s9 + $0x130] sm:$0xff] }
 0x23f   : > { %2219 = vst.msk [vmem:[#allocation2 + $0x38] sm:$0xff] %vm5813_vm10, %v2199_v60  ;;  %1487 = vrot.lane.b32.xlu1 %v4781_v5, %s5817_s12  ;;  %vm5863_vm10 = vcmask 490944  }
 0x240   : > { %1391 = vrot.lane.b32.xlu0 %v4964_v29, %s5825_s8 }
 0x241   : > { %v1533_v61 = vpop.permute.xlu1 %1532 }
 0x242   : > { %v1437_v56 = vpop.permute.xlu0 %1436  ;;  %1555 = vst.msk [vmem:[#allocation2 + $0x20] sm:$0xff] %vm1552_vm15, %v1533_v61  ;;  %v5283_v61 = vld [vmem:[%s5770_s1 + $0x28] sm:$0xff]  }
 0x243   : > { %1458 = vst.msk [vmem:[#allocation2 + $0x30] sm:$0xff] %vm5858_vm11, %v1437_v56  ;;  %2296 = vrot.lane.b32.xlu1 %v5113_v26, %s5828_s13  ;;  %vm5861_vm11 = vcmask 31744  }
 0x244   : > { %2202 = vrot.lane.b32.xlu0 %v5116_v55, %s5827_s11  ;;  %1773 = vst.msk [vmem:[#allocation2 + $0x78] sm:$0xff] %vm5861_vm11, %v5133_v9  ;;  %vm5868_vm11 = vcmask 490944  }
 0x245   : > { %v2341_v5 = vpop.permute.xlu1 %2340 }
 0x246   : > { %v2247_v63 = vpop.permute.xlu0 %2246  ;;  %2362 = vst.msk [vmem:[#allocation2 + $0x28] sm:$0xff] %vm864_vm13, %v2341_v5  ;;  %v5297_v5 = vld [vmem:[%s5770_s1 + $0x30] sm:$0xff]  }
 0x247   : > { %2267 = vst.msk [vmem:[#allocation2 + $0x38] sm:$0xff] %vm5859_vm12, %v2247_v63  ;;  %1536 = vrot.lane.b32.xlu1 %v4810_v24, %s5829_s7  ;;  %vm5862_vm12 = vcmask 64544  }
 0x248   : > { %1440 = vrot.lane.b32.xlu0 %v5010_v51, %s5817_s12  ;;  %1789 = vst.msk [vmem:[#allocation2 + $0x78] sm:$0xff] %vm5862_vm12, %v5133_v9 }
 0x249   : > { %v1583_v1 = vpop.permute.xlu1 %1582 }
 0x24a   : > { %v1486_v10 = vpop.permute.xlu0 %1485  ;;  %1605 = vst.msk [vmem:[#allocation2 + $0x20] sm:$0xff] %vm1602_vm4, %v1583_v1 }
 0x24b   : > { %1507 = vst.msk [vmem:[#allocation2 + $0x30] sm:$0xff] %vm5860_vm8, %v1486_v10  ;;  %2344 = vrot.lane.b32.xlu1 %v5113_v26, %s5828_s13  ;;  %vm5867_vm8 = vcmask 556544   ;;  %v5312_v10 = vld [vmem:[%s5770_s1 + $0x38] sm:$0xff]  }
 0x24c   : > { %2250 = vrot.lane.b32.xlu0 %v5116_v55, %s5827_s11 }
 0x24d   : > { %v2389_v24 = vpop.permute.xlu1 %2388 }
 0x24e   : > { %v2295_v20 = vpop.permute.xlu0 %2294  ;;  %2410 = vst.msk [vmem:[#allocation2 + $0x28] sm:$0xff] %vm5863_vm10, %v2389_v24  ;;  %vm5866_vm10 = vcmask 1015744  }
 0x24f   : > { %2315 = vst.msk [vmem:[#allocation2 + $0x38] sm:$0xff] %vm5864_vm9, %v2295_v20  ;;  %1586 = vrot.lane.b32.xlu1 %v4827_v23, %s5815_s15  ;;  %vm5865_vm9 = vcmask 523744   ;;  %vm5869_vm12 = vmmov %vm5866_vm10  ;;  %v5326_v20 = vld [vmem:[%s5770_s1 + $0x40] sm:$0xff]  }
 0x250   : > { %1489 = vrot.lane.b32.xlu0 %v5010_v51, %s5817_s12 }
 0x251   : > { %v1632_v21 = vpop.permute.xlu1 %1631 }
 0x252   : > { %v1535_v19 = vpop.permute.xlu0 %1534  ;;  %1654 = vst.msk [vmem:[#allocation2 + $0x20] sm:$0xff] %vm1651_vm5, %v1632_v21  ;;  %v5338_v21 = vld [vmem:[%s3974_s9 + $0x112] sm:$0xff] }
 0x253   : > { %1556 = vst.msk [vmem:[#allocation2 + $0x30] sm:$0xff] %vm1552_vm15, %v1535_v19  ;;  %2392 = vrot.lane.b32.xlu1 %v4844_v38, %s5821_s17  ;;  %v3564_v19 = vld [vmem:[%s3974_s9 + $0x131] sm:$0xff] }
 0x254   : > { %2298 = vrot.lane.b32.xlu0 %v5150_v34, %s5828_s13 }
 0x255   : > { %v2437_v25 = vpop.permute.xlu1 %2436 }
 0x256   : > { %v2343_v27 = vpop.permute.xlu0 %2342  ;;  %2458 = vst.msk [vmem:[#allocation2 + $0x28] sm:$0xff] %vm5865_vm9, %v2437_v25 }
 0x257   : > { %2363 = vst.msk [vmem:[#allocation2 + $0x38] sm:$0xff] %vm864_vm13, %v2343_v27  ;;  %1635 = vrot.lane.b32.xlu1 %v4827_v23, %s5815_s15 }
 0x258   : > { %1538 = vrot.lane.b32.xlu0 %v5056_v13, %s5829_s7  ;;  %v5226_v13 = vld [vmem:[%s3974_s9 + $0x110] sm:$0xff] }
 0x259   : > { %v1681_v42 = vpop.permute.xlu1 %1680 }
 0x25a   : > { %v1585_v28 = vpop.permute.xlu0 %1584  ;;  %1703 = vst.msk [vmem:[#allocation2 + $0x20] sm:$0xff] %vm5866_vm10, %v1681_v42  ;;  %vm5870_vm10 = vmmov %vm5867_vm8  ;;  %v5345_v42 = vld [vmem:[%s5770_s1 + $0x48] sm:$0xff]  }
 0x25b   : > { %1606 = vst.msk [vmem:[#allocation2 + $0x30] sm:$0xff] %vm1602_vm4, %v1585_v28  ;;  %2440 = vrot.lane.b32.xlu1 %v4844_v38, %s5821_s17 }
 0x25c   : > { %2346 = vrot.lane.b32.xlu0 %v5150_v34, %s5828_s13 }
 0x25d   : > { %v2485_v33 = vpop.permute.xlu1 %2484 }
 0x25e   : > { %v2391_v36 = vpop.permute.xlu0 %2390  ;;  %2506 = vst.msk [vmem:[#allocation2 + $0x28] sm:$0xff] %vm5867_vm8, %v2485_v33  ;;  %vm5871_vm8 = vcmask 589344   ;;  %v5359_v33 = vld [vmem:[%s5770_s1 + $0x50] sm:$0xff]  }
 0x25f   : > { %2411 = vst.msk [vmem:[#allocation2 + $0x38] sm:$0xff] %vm5868_vm11, %v2391_v36  ;;  %1684 = vrot.lane.b32.xlu1 %v4861_v12, %s5819_s14  ;;  %vm5872_vm11 = vcmask 97344  }
 0x260   : > { %1588 = vrot.lane.b32.xlu0 %v5080_v3, %s5815_s15 }
 0x261   : > { %v1730_v23 = vpop.permute.xlu1 %1729 }
 0x262   : > { %v1634_v40 = vpop.permute.xlu0 %1633  ;;  %1752 = vst.msk [vmem:[#allocation2 + $0x20] sm:$0xff] %vm1749_vm1, %v1730_v23 }
 0x263   : > { %1655 = vst.msk [vmem:[#allocation2 + $0x30] sm:$0xff] %vm1651_vm5, %v1634_v40  ;;  %2488 = vrot.lane.b32.xlu1 %v4942_v22, %s3876_s23  ;;  %v5374_v40 = vld [vmem:[%s5770_s1 + $0x58] sm:$0xff]  }
 0x264   : > { %2394 = vrot.lane.b32.xlu0 %v4877_v7, %s5821_s17 }
 0x265   : > { %v1683_v29 = vpop.permute.xlu1 %1682  ;;  %v2760_v41 = vld [vmem:[#allocation2 + $0x28] sm:$0xff] }
 0x266   : > { %v2439_v30 = vpop.permute.xlu0 %2438  ;;  %1704 = vst.msk [vmem:[#allocation2 + $0x30] sm:$0xff] %vm5869_vm12, %v1683_v29  ;;  %v2762_v35 = vpack.c.bf16 %v2760_v41, %v2760_v41  ;;  %vm5873_vm12 = vcmask 622144   ;;  %v3580_v41 = vld [vmem:[%s3974_s9 + $0x132] sm:$0xff] }
 0x267   : > { %2459 = vst.msk [vmem:[#allocation2 + $0x38] sm:$0xff] %vm5865_vm9, %v2439_v30  ;;  %1733 = vrot.lane.b32.xlu1 %v4861_v12, %s5819_s14  ;;  %v5196_v12 = vld [vmem:[%s3974_s9 + $0x103] sm:$0xff]  ;;  %vm5875_vm9 = vcmask 162944   ;;  %v5395_v30 = vld [vmem:[%s3974_s9 + $0x113] sm:$0xff] }
 0x268   : > { %1637 = vrot.lane.b32.xlu0 %v5080_v3, %s5815_s15  ;;  %3669 = vmatprep.mubr.msk.bf16.mxu0 %vm2623_vm0, %v2762_v35 }
 0x269   : > { %v1732_v48 = vpop.permute.xlu1 %1731  ;;  %v2759_v15 = vld [vmem:[#allocation2 + $0x20] sm:$0xff] }
 0x26a   : > { %v2487_v17 = vpop.permute.xlu0 %2486  ;;  %1753 = vst.msk [vmem:[#allocation2 + $0x30] sm:$0xff] %vm1749_vm1, %v1732_v48  ;;  %v2761_v11 = vpack.c.bf16 %v2759_v15, %v2759_v15 }
 0x26b   : > { %2507 = vst.msk [vmem:[#allocation2 + $0x38] sm:$0xff] %vm5870_vm10, %v2487_v17  ;;  %1686 = vrot.lane.b32.xlu1 %v5113_v26, %s5819_s14  ;;  %vm5876_vm10 = vmmov %vm5872_vm11 }
 0x26c   : > { %2442 = vrot.lane.b32.xlu0 %v4877_v7, %s5821_s17  ;;  %2799 = vmatmul.mubr.bf16.vlgmr.msra.gmra.mrb[4].mxu0 %v2761_v11  ;;  %s5877_s17 = smov 12   ;;  %v5414_v11 = vld [vmem:[%s3974_s9 + $0x120] sm:$0xff] }
 0x26d   : > { %v1046_v32 = vpop.permute.xlu1 %1045  ;;  %2901 = vmatpush1.bf16.msra.mxu0 %v5201_v45 }
 0x26e   : > { %v1815_v51 = vpop.permute.xlu0 %1814  ;;  %1066 = vst.msk [vmem:[#allocation2 + $0x40] sm:$0xff] %vm5871_vm8, %v1046_v32  ;;  %2902 = vmatprep.subr.bf16.mxu0 %v3883_v31 }
 0x26f   : > { %1834 = vst.msk [vmem:[#allocation2 + $0x48] sm:$0xff] %vm5872_vm11, %v1815_v51  ;;  %1735 = vrot.lane.b32.xlu1 %v5113_v26, %s5819_s14  ;;  %s5874_s14 = smov 8   ;;  %vm5878_vm11 = vcmask 195744  }
 0x270   : > { %2490 = vrot.lane.b32.xlu0 %v5196_v12, %s3876_s23 }
 0x271   : > { %v1095_v62 = vpop.permute.xlu1 %1094  ;;  %v2826_v49 = vld [vmem:[#allocation2 + $0x30] sm:$0xff]  ;;  %2903 = vmatpush1.bf16.msra.mxu0 %v5214_v53 }
 0x272   : > { %v1864_v43 = vpop.permute.xlu0 %1863  ;;  %v2827_v0 = vld [vmem:[#allocation2 + $0x38] sm:$0xff]  ;;  %1115 = vst.msk [vmem:[#allocation2 + $0x40] sm:$0xff] %vm5873_vm12, %v1095_v62  ;;  %v2828_v37 = vpack.c.bf16 %v2826_v49, %v2826_v49  ;;  %2904 = vmatprep.subr.bf16.mxu0 %v3883_v31 }
 0x273   : > { %1883 = vst.msk [vmem:[#allocation2 + $0x48] sm:$0xff] %vm373_vm3, %v1864_v43  ;;  %v2829_v47 = vpack.c.bf16 %v2827_v0, %v2827_v0  ;;  %1049 = vrot.lane.b32.xlu1 %v5113_v26, %s3876_s23  ;;  %v3596_v62 = vld [vmem:[%s3974_s9 + $0x133] sm:$0xff] }
 0x274   : > { %1818 = vrot.lane.b32.xlu0 %v5196_v12, %s5874_s14 }
 0x275   : > { %3670 = vmatprep.mubr.msk.bf16.mxu1 %vm2623_vm0, %v2829_v47  ;;  %v1912_v54 = vpop.permute.xlu1 %1911  ;;  %2905 = vmatpush1.bf16.msra.mxu0 %v5231_v18 }
 0x276   : > { %v1817_v44 = vpop.permute.xlu0 %1816  ;;  %2866 = vmatmul.mubr.bf16.vlgmr.msra.gmra.mrb[4].mxu1 %v2828_v37  ;;  %1931 = vst.msk [vmem:[#allocation2 + $0x48] sm:$0xff] %vm5875_vm9, %v1912_v54  ;;  %2906 = vmatprep.subr.bf16.mxu0 %v3883_v31  ;;  %v5441_v37 = vld [vmem:[%s3974_s9 + $0x121] sm:$0xff] }
 0x277   : > { %1835 = vst.msk [vmem:[#allocation2 + $0x58] sm:$0xff] %vm5876_vm10, %v1817_v44  ;;  %2968 = vmatpush1.bf16.msra.mxu1 %v5201_v45  ;;  %1098 = vrot.lane.b32.xlu1 %v4844_v38, %s3878_s26  ;;  %vm5879_vm10 = vcmask 720544  }
 0x278   : > { %1867 = vrot.lane.b32.xlu0 %v5226_v13, %s5877_s17  ;;  %2969 = vmatprep.subr.bf16.mxu1 %v3883_v31 }
 0x279   : > { %v1144_v3 = vpop.permute.xlu1 %1143  ;;  %2907 = vmatpush1.bf16.msra.mxu0 %v5249_v6 }
 0x27a   : > { %v1048_v57 = vpop.permute.xlu0 %1047  ;;  %1164 = vst.msk [vmem:[#allocation2 + $0x40] sm:$0xff] %vm1159_vm14, %v1144_v3  ;;  %2908 = vmatprep.subr.bf16.mxu0 %v3883_v31 }
 0x27b   : > { %1067 = vst.msk [vmem:[#allocation2 + $0x50] sm:$0xff] %vm5871_vm8, %v1048_v57  ;;  %2970 = vmatpush1.bf16.msra.mxu1 %v5214_v53  ;;  %1915 = vrot.lane.b32.xlu1 %v5226_v13, %s5877_s17  ;;  %vm5880_vm8 = vmmov %vm5878_vm11 }
 0x27c   : > { %1820 = vrot.lane.b32.xlu0 %v5243_v4, %s5874_s14  ;;  %2971 = vmatprep.subr.bf16.mxu1 %v3883_v31 }
 0x27d   : > { %v1960_v8 = vpop.permute.xlu1 %1959  ;;  %2909 = vmatpush1.bf16.msra.mxu0 %v5264_v2 }
 0x27e   : > { %v1866_v50 = vpop.permute.xlu0 %1865  ;;  %1979 = vst.msk [vmem:[#allocation2 + $0x48] sm:$0xff] %vm5878_vm11, %v1960_v8  ;;  %2910 = vmatprep.subr.bf16.mxu0 %v3883_v31  ;;  %vm5881_vm11 = vcmask 753344  }
 0x27f   : > { %1884 = vst.msk [vmem:[#allocation2 + $0x58] sm:$0xff] %vm373_vm3, %v1866_v50  ;;  %2972 = vmatpush1.bf16.msra.mxu1 %v5231_v18  ;;  %1147 = vrot.lane.b32.xlu1 %v4844_v38, %s3878_s26 }
 0x280   : > { %1051 = vrot.lane.b32.xlu0 %v5150_v34, %s3876_s23  ;;  %2973 = vmatprep.subr.bf16.mxu1 %v3883_v31 }
 0x281   : > { %v1193_v60 = vpop.permute.xlu1 %1192  ;;  %2911 = vmatpush1.bf16.msra.mxu0 %v5283_v61 }
 0x282   : > { %v1097_v26 = vpop.permute.xlu0 %1096  ;;  %1213 = vst.msk [vmem:[#allocation2 + $0x40] sm:$0xff] %vm1208_vm2, %v1193_v60  ;;  %2912 = vmatprep.subr.bf16.mxu0 %v3883_v31 }
 0x283   : > { %1116 = vst.msk [vmem:[#allocation2 + $0x50] sm:$0xff] %vm5873_vm12, %v1097_v26  ;;  %2974 = vmatpush1.bf16.msra.mxu1 %v5249_v6  ;;  %1963 = vrot.lane.b32.xlu1 %v5276_v52, %s3879_s30  ;;  %vm5882_vm12 = vcmask 294144   ;;  %v5472_v26 = vld [vmem:[%s5771_s2] ss:$0 sm:$0xff] }
 0x284   : > { %1869 = vrot.lane.b32.xlu0 %v3548_v59, %s5877_s17  ;;  %2975 = vmatprep.subr.bf16.mxu1 %v3883_v31 }
 0x285   : > { %v2008_v38 = vpop.permute.xlu1 %2007  ;;  %2913 = vmatpush1.bf16.msra.mxu0 %v5297_v5 }
 0x286   : > { %v1914_v56 = vpop.permute.xlu0 %1913  ;;  %2027 = vst.msk [vmem:[#allocation2 + $0x48] sm:$0xff] %vm520_vm6, %v2008_v38  ;;  %2914 = vmatprep.subr.bf16.mxu0 %v3883_v31 }
 0x287   : > { %1932 = vst.msk [vmem:[#allocation2 + $0x58] sm:$0xff] %vm5875_vm9, %v1914_v56  ;;  %2976 = vmatpush1.bf16.msra.mxu1 %v5264_v2  ;;  %1196 = vrot.lane.b32.xlu1 %v4942_v22, %s3880_s6  ;;  %vm5883_vm9 = vcmask 786144  }
 0x288   : > { %1100 = vrot.lane.b32.xlu0 %v4877_v7, %s3878_s26  ;;  %2977 = vmatprep.subr.bf16.mxu1 %v3883_v31 }
 0x289   : > { %v1243_v63 = vpop.permute.xlu1 %1242  ;;  %2915 = vmatpush1.bf16.msra.mxu0 %v5312_v10 }
 0x28a   : > { %v1146_v1 = vpop.permute.xlu0 %1145  ;;  %1263 = vst.msk [vmem:[#allocation2 + $0x40] sm:$0xff] %vm5879_vm10, %v1243_v63  ;;  %2916 = vmatprep.subr.bf16.mxu0 %v3883_v31 }
 0x28b   : > { %1165 = vst.msk [vmem:[#allocation2 + $0x50] sm:$0xff] %vm1159_vm14, %v1146_v1  ;;  %2978 = vmatpush1.bf16.msra.mxu1 %v5283_v61  ;;  %2011 = vrot.lane.b32.xlu1 %v5276_v52, %s3879_s30 }
 0x28c   : > { %1917 = vrot.lane.b32.xlu0 %v3548_v59, %s5877_s17  ;;  %2979 = vmatprep.subr.bf16.mxu1 %v3883_v31 }
 0x28d   : > { %v2056_v22 = vpop.permute.xlu1 %2055  ;;  %2917 = vmatpush1.bf16.msra.mxu0 %v5326_v20 }
 0x28e   : > { %v1962_v24 = vpop.permute.xlu0 %1961  ;;  %2075 = vst.msk [vmem:[#allocation2 + $0x48] sm:$0xff] %vm570_vm7, %v2056_v22  ;;  %2918 = vmatprep.subr.bf16.mxu0 %v3883_v31 }
 0x28f   : > { %1980 = vst.msk [vmem:[#allocation2 + $0x58] sm:$0xff] %vm5880_vm8, %v1962_v24  ;;  %2980 = vmatpush1.bf16.msra.mxu1 %v5297_v5  ;;  %1246 = vrot.lane.b32.xlu1 %v4967_v39, %s5845_s10  ;;  %vm5884_vm8 = vcmask 326944  }
 0x290   : > { %1149 = vrot.lane.b32.xlu0 %v4877_v7, %s3878_s26  ;;  %2981 = vmatprep.subr.bf16.mxu1 %v3883_v31  ;;  %s3890_s26 = smov [#allocation3]  }
 0x291   : > { %v1292_v25 = vpop.permute.xlu1 %1291  ;;  %2919 = vmatpush1.bf16.msra.mxu0 %v5345_v42 }
 0x292   : > { %v1195_v27 = vpop.permute.xlu0 %1194  ;;  %1312 = vst.msk [vmem:[#allocation2 + $0x40] sm:$0xff] %vm5881_vm11, %v1292_v25  ;;  %2920 = vmatprep.subr.bf16.mxu0 %v3883_v31  ;;  %vm5885_vm11 = vcmask 818944  }
 0x293   : > { %1214 = vst.msk [vmem:[#allocation2 + $0x50] sm:$0xff] %vm1208_vm2, %v1195_v27  ;;  %2982 = vmatpush1.bf16.msra.mxu1 %v5312_v10  ;;  %2059 = vrot.lane.b32.xlu1 %v5338_v21, %s5847_s25 }
 0x294   : > { %1965 = vrot.lane.b32.xlu0 %v3564_v19, %s3879_s30  ;;  %2983 = vmatprep.subr.bf16.mxu1 %v3883_v31 }
 0x295   : > { %v2104_v7 = vpop.permute.xlu1 %2103  ;;  %2921 = vmatpush1.bf16.msra.mxu0 %v5359_v33 }
 0x296   : > { %v2010_v28 = vpop.permute.xlu0 %2009  ;;  %2123 = vst.msk [vmem:[#allocation2 + $0x48] sm:$0xff] %vm5882_vm12, %v2104_v7  ;;  %2922 = vmatprep.subr.bf16.mxu0 %v3883_v31  ;;  %vm5886_vm12 = vcmask 753344  }
 0x297   : > { %2028 = vst.msk [vmem:[#allocation2 + $0x58] sm:$0xff] %vm520_vm6, %v2010_v28  ;;  %2984 = vmatpush1.bf16.msra.mxu1 %v5326_v20  ;;  %1295 = vrot.lane.b32.xlu1 %v4967_v39, %s5845_s10 }
 0x298   : > { %1198 = vrot.lane.b32.xlu0 %v5196_v12, %s3880_s6  ;;  %2985 = vmatprep.subr.bf16.mxu1 %v3883_v31 }
 0x299   : > { %v1341_v36 = vpop.permute.xlu1 %1340  ;;  %2923 = vmatpush1.bf16.msra.mxu0 %v5374_v40 }
 0x29a   : > { %v1245_v23 = vpop.permute.xlu0 %1244  ;;  %1361 = vst.msk [vmem:[#allocation2 + $0x40] sm:$0xff] %vm5883_vm9, %v1341_v36  ;;  %2924 = vmatprep.subr.bf16.mxu0 %v3883_v31  ;;  %vm5887_vm9 = vcmask 359744  }
 0x29b   : > { %1264 = vst.msk [vmem:[#allocation2 + $0x50] sm:$0xff] %vm5879_vm10, %v1245_v23  ;;  %2986 = vmatpush1.bf16.msra.mxu1 %v5345_v42  ;;  %2107 = vrot.lane.b32.xlu1 %v5338_v21, %s5847_s25  ;;  %vm5888_vm10 = vcmask 294144  }
 0x29c   : > { %2013 = vrot.lane.b32.xlu0 %v3564_v19, %s3879_s30  ;;  %2987 = vmatprep.subr.bf16.mxu1 %v3883_v31  ;;  %s5903_s30 = smov 112  }
 0x29d   : > { %v2152_v39 = vpop.permute.xlu1 %2151  ;;  %2925 = vmatpush1.bf16.msra.mxu0 %v4665_v16 }
 0x29e   : > { %v2058_v29 = vpop.permute.xlu0 %2057  ;;  %2171 = vst.msk [vmem:[#allocation2 + $0x48] sm:$0xff] %vm5884_vm8, %v2152_v39  ;;  %3034 = vmatprep.subr.bf16.mxu0 %v3883_v31  ;;  %vm5889_vm8 = vcmask 851744  }
 0x29f   : > { %2076 = vst.msk [vmem:[#allocation2 + $0x58] sm:$0xff] %vm570_vm7, %v2058_v29  ;;  %2988 = vmatpush1.bf16.msra.mxu1 %v5359_v33  ;;  %1344 = vrot.lane.b32.xlu1 %v5013_v14, %s5825_s8 }
 0x2a0   : > { %1248 = vrot.lane.b32.xlu0 %v5226_v13, %s5845_s10  ;;  %2989 = vmatprep.subr.bf16.mxu1 %v3883_v31 }
 0x2a1   : > { %v1390_v35 = vpop.permute.xlu1 %1389 }
 0x2a2   : > { %v1294_v48 = vpop.permute.xlu0 %1293  ;;  %1410 = vst.msk [vmem:[#allocation2 + $0x40] sm:$0xff] %vm5885_vm11, %v1390_v35  ;;  %vm5890_vm11 = vcmask 786144  }
 0x2a3   : > { %1313 = vst.msk [vmem:[#allocation2 + $0x50] sm:$0xff] %vm5886_vm12, %v1294_v48  ;;  %2990 = vmatpush1.bf16.msra.mxu1 %v5374_v40  ;;  %2155 = vrot.lane.b32.xlu1 %v5395_v30, %s5826_s16  ;;  %vm5891_vm12 = vcmask 392544  }
 0x2a4   : > { %2061 = vrot.lane.b32.xlu0 %v3580_v41, %s5847_s25  ;;  %2991 = vmatprep.subr.bf16.mxu1 %v3883_v31 }
 0x2a5   : > { %v2201_v17 = vpop.permute.xlu1 %2200 }
 0x2a6   : > { %v2106_v15 = vpop.permute.xlu0 %2105  ;;  %2220 = vst.msk [vmem:[#allocation2 + $0x48] sm:$0xff] %vm5887_vm9, %v2201_v17  ;;  %vm5892_vm9 = vcmask 326944  }
 0x2a7   : > { %2124 = vst.msk [vmem:[#allocation2 + $0x58] sm:$0xff] %vm5888_vm10, %v2106_v15  ;;  %2992 = vmatpush1.bf16.msra.mxu1 %v4665_v16  ;;  %1393 = vrot.lane.b32.xlu1 %v5013_v14, %s5825_s8  ;;  %vm5894_vm10 = vcmask 884544  }
 0x2a8   : > { %1297 = vrot.lane.b32.xlu0 %v5226_v13, %s5845_s10  ;;  %3101 = vmatprep.subr.bf16.mxu1 %v3883_v31  ;;  %s5893_s10 = smov 100   ;;  %v3604_v13 = vld [vmem:[%s3974_s9 + $0x140] sm:$0xff] }
 0x2a9   : > { %v1439_v12 = vpop.permute.xlu1 %1438 }
 0x2aa   : > { %v1343_v32 = vpop.permute.xlu0 %1342  ;;  %1459 = vst.msk [vmem:[#allocation2 + $0x40] sm:$0xff] %vm5889_vm8, %v1439_v12  ;;  %vm5895_vm8 = vcmask 818944  }
 0x2ab   : > { %1362 = vst.msk [vmem:[#allocation2 + $0x50] sm:$0xff] %vm5890_vm11, %v1343_v32  ;;  %2204 = vrot.lane.b32.xlu1 %v5414_v11, %s5827_s11  ;;  %vm5896_vm11 = vcmask 425344  }
 0x2ac   : > { %2109 = vrot.lane.b32.xlu0 %v3580_v41, %s5847_s25  ;;  %s245_s25 = scalar_select %p244_p11, %s3943_s22, 1 }
 0x2ad   : > { %v2249_v14 = vpop.permute.xlu1 %2248 }
 0x2ae   : > { %v2154_v51 = vpop.permute.xlu0 %2153  ;;  %2268 = vst.msk [vmem:[#allocation2 + $0x48] sm:$0xff] %vm5891_vm12, %v2249_v14  ;;  %vm5897_vm12 = vcmask 359744  }
 0x2af   : > { %2172 = vst.msk [vmem:[#allocation2 + $0x58] sm:$0xff] %vm5892_vm9, %v2154_v51  ;;  %1442 = vrot.lane.b32.xlu1 %v5059_v46, %s5893_s10  ;;  %vm5898_vm9 = vcmask 851744  }
 0x2b0   : > { %1346 = vrot.lane.b32.xlu0 %v5276_v52, %s5825_s8 }
 0x2b1   : > { %v1488_v43 = vpop.permute.xlu1 %1487 }
 0x2b2   : > { %v1392_v0 = vpop.permute.xlu0 %1391  ;;  %1508 = vst.msk [vmem:[#allocation2 + $0x40] sm:$0xff] %vm5894_vm10, %v1488_v43  ;;  %vm5899_vm10 = vcmask 392544  }
 0x2b3   : > { %1411 = vst.msk [vmem:[#allocation2 + $0x50] sm:$0xff] %vm5895_vm8, %v1392_v0  ;;  %2252 = vrot.lane.b32.xlu1 %v5414_v11, %s5827_s11  ;;  %vm5900_vm8 = vcmask 884544   ;;  %v3636_v0 = vld [vmem:[%s3974_s9 + $0x142] sm:$0xff] }
 0x2b4   : > { %2157 = vrot.lane.b32.xlu0 %v3596_v62, %s5826_s16  ;;  %s3680_s16 = sshll.u32 %s245_s25, 6 }
 0x2b5   : > { %v2297_v49 = vpop.permute.xlu1 %2296  ;;  %s5483_s14 = scalar_lea.vmem %s5772_s3, %s3680_s16 }
 0x2b6   : > { %v2203_v47 = vpop.permute.xlu0 %2202  ;;  %2316 = vst.msk [vmem:[#allocation2 + $0x48] sm:$0xff] %vm5896_vm11, %v2297_v49  ;;  %vm5901_vm11 = vcmask 490944  }
 0x2b7   : > { %2221 = vst.msk [vmem:[#allocation2 + $0x58] sm:$0xff] %vm5897_vm12, %v2203_v47  ;;  %1491 = vrot.lane.b32.xlu1 %v5059_v46, %s5893_s10  ;;  %vm5902_vm12 = vcmask 425344  }
 0x2b8   : > { %1395 = vrot.lane.b32.xlu0 %v5276_v52, %s5825_s8 }
 0x2b9   : > { %v1537_v54 = vpop.permute.xlu1 %1536 }
 0x2ba   : > { %v1441_v44 = vpop.permute.xlu0 %1440  ;;  %1557 = vst.msk [vmem:[#allocation2 + $0x40] sm:$0xff] %vm1552_vm15, %v1537_v54 }
 0x2bb   : > { %1460 = vst.msk [vmem:[#allocation2 + $0x50] sm:$0xff] %vm5898_vm9, %v1441_v44  ;;  %2300 = vrot.lane.b32.xlu1 %v5441_v37, %s5828_s13  ;;  %vm2671_vm9 = vcmask 64512  }
 0x2bc   : > { %2206 = vrot.lane.b32.xlu0 %v3604_v13, %s5827_s11 }
 0x2bd   : > { %v2345_v3 = vpop.permute.xlu1 %2344 }
 0x2be   : > { %v2251_v46 = vpop.permute.xlu0 %2250  ;;  %2364 = vst.msk [vmem:[#allocation2 + $0x48] sm:$0xff] %vm864_vm13, %v2345_v3 }
 0x2bf   : > { %2269 = vst.msk [vmem:[#allocation2 + $0x58] sm:$0xff] %vm5899_vm10, %v2251_v46  ;;  %1540 = vrot.lane.b32.xlu1 %v5098_v58, %s5829_s7  ;;  %v3620_v58 = vld [vmem:[%s3974_s9 + $0x141] sm:$0xff]  ;;  %vm5905_vm10 = vcmask 523744  }
 0x2c0   : > { %1444 = vrot.lane.b32.xlu0 %v5338_v21, %s5893_s10 }
 0x2c1   : > { %v1587_v57 = vpop.permute.xlu1 %1586 }
 0x2c2   : > { %v1490_v8 = vpop.permute.xlu0 %1489  ;;  %1607 = vst.msk [vmem:[#allocation2 + $0x40] sm:$0xff] %vm1602_vm4, %v1587_v57 }
 0x2c3   : > { %1509 = vst.msk [vmem:[#allocation2 + $0x50] sm:$0xff] %vm5900_vm8, %v1490_v8  ;;  %2348 = vrot.lane.b32.xlu1 %v5441_v37, %s5828_s13  ;;  %vm5906_vm8 = vcmask 1015744  }
 0x2c4   : > { %2254 = vrot.lane.b32.xlu0 %v3604_v13, %s5827_s11  ;;  %s5904_s11 = smov 56  }
 0x2c5   : > { %v2393_v50 = vpop.permute.xlu1 %2392 }
 0x2c6   : > { %v2299_v52 = vpop.permute.xlu0 %2298  ;;  %2412 = vst.msk [vmem:[#allocation2 + $0x48] sm:$0xff] %vm5901_vm11, %v2393_v50  ;;  %vm5907_vm11 = vcmask 556544  }
 0x2c7   : > { %2317 = vst.msk [vmem:[#allocation2 + $0x58] sm:$0xff] %vm5902_vm12, %v2299_v52  ;;  %1590 = vrot.lane.b32.xlu1 %v5116_v55, %s5903_s30  ;;  %vm5908_vm12 = vcmask 490944  }
 0x2c8   : > { %1493 = vrot.lane.b32.xlu0 %v5338_v21, %s5893_s10 }
 0x2c9   : > { %v1636_v59 = vpop.permute.xlu1 %1635 }
 0x2ca   : > { %v1539_v60 = vpop.permute.xlu0 %1538  ;;  %1656 = vst.msk [vmem:[#allocation2 + $0x40] sm:$0xff] %vm1651_vm5, %v1636_v59 }
 0x2cb   : > { %1558 = vst.msk [vmem:[#allocation2 + $0x50] sm:$0xff] %vm1552_vm15, %v1539_v60  ;;  %2396 = vrot.lane.b32.xlu1 %v5133_v9, %s5904_s11  ;;  %v2665_v38 = vpop.f32.mrb[0].mxu0 }
 0x2cc   : > { %2302 = vrot.lane.b32.xlu0 %v3620_v58, %s5828_s13  ;;  %v2666_v56 = vadd.f32 %v5472_v26, %v2665_v38  ;;  %v2667_v63 = vpop.f32.mrb[1].mxu0 }
 0x2cd   : > { %v2441_v1 = vpop.permute.xlu1 %2440  ;;  %v2668_v25 = vpop.f32.mrb[2].mxu0 }
 0x2ce   : > { %v2347_v22 = vpop.permute.xlu0 %2346  ;;  %v2672_v24 = vsel %vm2671_vm9, %v2666_v56, 0.0  ;;  %v2680_v21 = vmul.f32 %v2666_v56, %v2666_v56  ;;  %v2689_v19 = vmax.f32 %v2666_v56, 0.0  ;;  %2460 = vst.msk [vmem:[#allocation2 + $0x48] sm:$0xff] %vm5905_vm10, %v2441_v1  ;;  %v2669_v7 = vpop.f32.mrb[3].mxu0  ;;  %vm5910_vm10 = vmmov %vm5906_vm8 }
 0x2cf   : > { %2365 = vst.msk [vmem:[#allocation2 + $0x58] sm:$0xff] %vm864_vm13, %v2347_v22  ;;  %v2673_v27 = vrot.slane %v2672_v24, 4  ;;  %1639 = vrot.lane.b32.xlu1 %v5116_v55, %s5903_s30 }
 0x2d0   : > { %1542 = vrot.lane.b32.xlu0 %v5395_v30, %s5829_s7  ;;  %v2681_v28 = vsel %vm2671_vm9, %v2680_v21, 0.0  ;;  %2690 = vst.msk [vmem:[%s5483_s14] sm:$0xff] %vm2671_vm9, %v2689_v19  ;;  %s5909_s7 = smov 120  }
 0x2d1   : > { %v2682_v36 = vrot.slane %v2681_v28, 4  ;;  %v1685_v23 = vpop.permute.xlu1 %1684  ;;  %v2674_v29 = vadd.f32 %v2673_v27, %v2672_v24 }
 0x2d2   : > { %v1589_v39 = vpop.permute.xlu0 %1588  ;;  %1705 = vst.msk [vmem:[#allocation2 + $0x40] sm:$0xff] %vm5906_vm8, %v1685_v23  ;;  %vm5911_vm8 = vcmask 523744  }
 0x2d3   : > { %1608 = vst.msk [vmem:[#allocation2 + $0x50] sm:$0xff] %vm1602_vm4, %v1589_v39  ;;  %2444 = vrot.lane.b32.xlu1 %v5133_v9, %s5904_s11  ;;  %v2683_v55 = vadd.f32 %v2682_v36, %v2681_v28  ;;  %v2675_v17 = vrot.slane %v2674_v29, 2  ;;  %v3652_v36 = vld [vmem:[%s3974_s9 + $0x143] sm:$0xff]  ;;  %s5683_s9 = sand.u32 1, %s3858_s19  }
 0x2d4   : > { %2350 = vrot.lane.b32.xlu0 %v3620_v58, %s5828_s13  ;;  %s3675_s13 = sshll.u32 %s3943_s22, 4  ;;  %s236_s17 = scalar_lea.vmem [#allocation5], %s5683_s9 }
 0x2d5   : > { %v2733_v41 = vpop.f32.mrb[0].mxu1  ;;  %v2489_v35 = vpop.permute.xlu1 %2488  ;;  %v2684_v14 = vrot.slane %v2683_v55, 2  ;;  %v2676_v54 = vadd.f32 %v2675_v17, %v2674_v29  ;;  %s3201_s10 = sshll.u32 %s236_s17, 4  ;;  %s5693_s6 = scalar_lea.hbm %s5773_s4, %s3675_s13  ;;  %s5703_s10 = int_to_ptr.vmem [resolvable:$true] %s3201_s10 }
 0x2d6   : > { %v2734_v30 = vadd.f32 %v5472_v26, %v2733_v41  ;;  %v2395_v48 = vpop.permute.xlu0 %2394  ;;  %2508 = vst.msk [vmem:[#allocation2 + $0x48] sm:$0xff] %vm5907_vm11, %v2489_v35  ;;  %v2735_v15 = vpop.f32.mrb[1].mxu1  ;;  %s5701_s16 = scalar_lea.hbm %s5774_s5, %s3675_s13 }
 0x2d7   : > { %2413 = vst.msk [vmem:[#allocation2 + $0x58] sm:$0xff] %vm5908_vm12, %v2395_v48  ;;  %v2736_v9 = vpop.f32.mrb[2].mxu1  ;;  %1688 = vrot.lane.b32.xlu1 %v5150_v34, %s5909_s7  ;;  %v2685_v46 = vadd.f32 %v2684_v14, %v2683_v55  ;;  %v2677_v59 = vrot.slane %v2676_v54, 1  ;;  %vm5912_vm12 = vcmask 589344  }
 0x2d8   : > { %v2739_v12 = vsel %vm2671_vm9, %v2734_v30, 0.0  ;;  %v2747_v32 = vmul.f32 %v2734_v30, %v2734_v30  ;;  %1592 = vrot.lane.b32.xlu0 %v5414_v11, %s5903_s30  ;;  %v2756_v62 = vmax.f32 %v2734_v30, 0.0  ;;  %v2737_v43 = vpop.f32.mrb[3].mxu1 }
 0x2d9   : > { %v2740_v51 = vrot.slane %v2739_v12, 4  ;;  %v1734_v47 = vpop.permute.xlu1 %1733  ;;  %v2678_v19 = vadd.f32 %v2677_v59, %v2676_v54 }
 0x2da   : > { %v2748_v49 = vsel %vm2671_vm9, %v2747_v32, 0.0  ;;  %v1638_v13 = vpop.permute.xlu0 %1637  ;;  %2757 = vst.msk [vmem:[%s5483_s14 + $0x8] sm:$0xff] %vm2671_vm9, %v2756_v62 }
 0x2db   : > { %v2741_v44 = vadd.f32 %v2740_v51, %v2739_v12  ;;  %v2749_v3 = vrot.slane %v2748_v49, 4  ;;  %1754 = vst.msk [vmem:[#allocation2 + $0x40] sm:$0xff] %vm1749_vm1, %v1734_v47  ;;  %2492 = vrot.lane.b32.xlu1 %v5243_v4, %s3876_s23  ;;  %v2686_v4 = vrot.slane %v2685_v46, 1 }
 0x2dc   : > { %1657 = vst.msk [vmem:[#allocation2 + $0x50] sm:$0xff] %vm1651_vm5, %v1638_v13  ;;  %2398 = vrot.lane.b32.xlu0 %v3636_v0, %s5904_s11 }
 0x2dd   : > { %v2742_v57 = vrot.slane %v2741_v44, 2  ;;  %v2750_v8 = vadd.f32 %v2749_v3, %v2748_v49  ;;  %v1687_v50 = vpop.permute.xlu1 %1686  ;;  %v2894_v58 = vld [vmem:[#allocation2 + $0x48] sm:$0xff] }
 0x2de   : > { %v2443_v52 = vpop.permute.xlu0 %2442  ;;  %1706 = vst.msk [vmem:[#allocation2 + $0x50] sm:$0xff] %vm5910_vm10, %v1687_v50  ;;  %v2896_v56 = vpack.c.bf16 %v2894_v58, %v2894_v58  ;;  %vm5913_vm10 = vcmask 97344  }
 0x2df   : > { %v2743_v60 = vadd.f32 %v2742_v57, %v2741_v44  ;;  %v2751_v38 = vrot.slane %v2750_v8, 2  ;;  %2461 = vst.msk [vmem:[#allocation2 + $0x58] sm:$0xff] %vm5911_vm8, %v2443_v52  ;;  %1737 = vrot.lane.b32.xlu1 %v5150_v34, %s5909_s7  ;;  %vm5914_vm8 = vcmask 622144  }
 0x2e0   : > { %1641 = vrot.lane.b32.xlu0 %v5414_v11, %s5903_s30  ;;  %3671 = vmatprep.mubr.msk.bf16.mxu0 %vm2623_vm0, %v2896_v56  ;;  %v2687_v11 = vadd.f32 %v2686_v4, %v2685_v46 }
 0x2e1   : > { %v2744_v63 = vrot.slane %v2743_v60, 1  ;;  %v2752_v1 = vadd.f32 %v2751_v38, %v2750_v8  ;;  %v1736_v22 = vpop.permute.xlu1 %1735 }
 0x2e2   : > { %v2491_v24 = vpop.permute.xlu0 %2490  ;;  %v2893_v21 = vld [vmem:[#allocation2 + $0x40] sm:$0xff]  ;;  %1755 = vst.msk [vmem:[#allocation2 + $0x50] sm:$0xff] %vm1749_vm1, %v1736_v22 }
 0x2e3   : > { %v2745_v25 = vadd.f32 %v2744_v63, %v2743_v60  ;;  %v2753_v27 = vrot.slane %v2752_v1, 1  ;;  %2509 = vst.msk [vmem:[#allocation2 + $0x58] sm:$0xff] %vm5907_vm11, %v2491_v24  ;;  %v2895_v34 = vpack.c.bf16 %v2893_v21, %v2893_v21  ;;  %1690 = vrot.lane.b32.xlu1 %v5441_v37, %s5909_s7  ;;  %vm5915_vm11 = vcmask 162944  }
 0x2e4   : > { %2446 = vrot.lane.b32.xlu0 %v3636_v0, %s5904_s11  ;;  %s3169_s11 = scalar_lea.sflag [#allocation4], %s5683_s9 }
 0x2e5   : > { %v5529_v7 = vadd.f32 %v2745_v25, %v2678_v19  ;;  %v2754_v28 = vadd.f32 %v2753_v27, %v2752_v1  ;;  %2933 = vmatmul.mubr.bf16.vlgmr.msra.gmra.mrb[8].mxu0 %v2895_v34  ;;  %v1050_v23 = vpop.permute.xlu1 %1049 }
 0x2e6   : > { %v1819_v39 = vpop.permute.xlu0 %1818  ;;  %3035 = vmatpush1.bf16.msra.mxu0 %v5201_v45  ;;  %1068 = vst.msk [vmem:[#allocation2 + $0x60] sm:$0xff] %vm5912_vm12, %v1050_v23  ;;  %vm5916_vm12 = vmmov %vm5913_vm10 }
 0x2e7   : > { %v5533_v29 = vadd.f32 %v2754_v28, %v2687_v11  ;;  %1836 = vst.msk [vmem:[#allocation2 + $0x68] sm:$0xff] %vm5913_vm10, %v1819_v39  ;;  %3036 = vmatprep.subr.bf16.mxu0 %v3883_v31  ;;  %1739 = vrot.lane.b32.xlu1 %v5441_v37, %s5909_s7  ;;  %vm5917_vm10 = vcmask 589344  }
 0x2e8   : > { %2494 = vrot.lane.b32.xlu0 %v3652_v36, %s3876_s23  ;;  %s230_s23 = scalar_lea.vmem [#allocation3], %s5683_s9 }
 0x2e9   : > { %v1099_v55 = vpop.permute.xlu1 %1098  ;;  %v2960_v35 = vld [vmem:[#allocation2 + $0x50] sm:$0xff]  ;;  %s3188_s15 = sshll.u32 %s230_s23, 4  ;;  %s5695_s15 = int_to_ptr.vmem [resolvable:$true] %s3188_s15 }
 0x2ea   : > { %v1868_v41 = vpop.permute.xlu0 %1867  ;;  %v2961_v30 = vld [vmem:[#allocation2 + $0x58] sm:$0xff]  ;;  %3037 = vmatpush1.bf16.msra.mxu0 %v5214_v53  ;;  %1117 = vst.msk [vmem:[#allocation2 + $0x60] sm:$0xff] %vm5914_vm8, %v1099_v55  ;;  %v2962_v17 = vpack.c.bf16 %v2960_v35, %v2960_v35  ;;  %vm5918_vm8 = vcmask 195744   ;;  %s3772_s12 = scalar_lea.vmem %s5695_s15, 16 }
 0x2eb   : > { %1885 = vst.msk [vmem:[#allocation2 + $0x68] sm:$0xff] %vm373_vm3, %v1868_v41  ;;  %v2963_v48 = vpack.c.bf16 %v2961_v30, %v2961_v30  ;;  %3038 = vmatprep.subr.bf16.mxu0 %v3883_v31  ;;  %p3773_p12 = scmp.ne.s32.totalorder %s5695_s15, %s3772_s12 }
 0x2ed   : > { %3672 = vmatprep.mubr.msk.bf16.mxu1 %vm2623_vm0, %v2963_v48  ;;  %v1916_v15 = vpop.permute.xlu1 %1915  ;;  %p3774_p13 = pnand %p3773_p12, %p3960_p5 }
 0x2ee   : > { %v1821_v12 = vpop.permute.xlu0 %1820  ;;  %3000 = vmatmul.mubr.bf16.vlgmr.msra.gmra.mrb[8].mxu1 %v2962_v17  ;;  %3039 = vmatpush1.bf16.msra.mxu0 %v5231_v18  ;;  %1933 = vst.msk [vmem:[#allocation2 + $0x68] sm:$0xff] %vm5915_vm11, %v1916_v15  ;;  %vm5919_vm11 = vcmask 622144  }
 0x2ef   : > { %1837 = vst.msk [vmem:[#allocation2 + $0x78] sm:$0xff] %vm5916_vm12, %v1821_v12  ;;  %3102 = vmatpush1.bf16.msra.mxu1 %v5201_v45  ;;  %3040 = vmatprep.subr.bf16.mxu0 %v3883_v31  ;;  %vm5921_vm12 = vcmask 720544   ;;  %p3775_p0 = pneg %p3774_p13 }
 0x2f0   : > { %3103 = vmatprep.subr.bf16.mxu1 %v3883_v31 }
 0x2f1   : > { %v1148_v37 = vpop.permute.xlu1 %1147 }
 0x2f2   : > { %v1052_v32 = vpop.permute.xlu0 %1051  ;;  %3041 = vmatpush1.bf16.msra.mxu0 %v5249_v6  ;;  %1166 = vst.msk [vmem:[#allocation2 + $0x60] sm:$0xff] %vm1159_vm14, %v1148_v37 }
 0x2f3   : > { %1069 = vst.msk [vmem:[#allocation2 + $0x70] sm:$0xff] %vm5917_vm10, %v1052_v32  ;;  %3104 = vmatpush1.bf16.msra.mxu1 %v5214_v53  ;;  %3042 = vmatprep.subr.bf16.mxu0 %v3883_v31  ;;  %vm5922_vm10 = vmmov %vm5918_vm8 }
 0x2f4   : > { %3105 = vmatprep.subr.bf16.mxu1 %v3883_v31 }
 0x2f5   : > { %v1964_v9 = vpop.permute.xlu1 %1963 }
 0x2f6   : > { %v1870_v45 = vpop.permute.xlu0 %1869  ;;  %3043 = vmatpush1.bf16.msra.mxu0 %v5264_v2  ;;  %1981 = vst.msk [vmem:[#allocation2 + $0x68] sm:$0xff] %vm5918_vm8, %v1964_v9  ;;  %vm5924_vm8 = vcmask 294144  }
 0x2f7   : > { %1886 = vst.msk [vmem:[#allocation2 + $0x78] sm:$0xff] %vm373_vm3, %v1870_v45  ;;  %3106 = vmatpush1.bf16.msra.mxu1 %v5231_v18  ;;  %3044 = vmatprep.subr.bf16.mxu0 %v3883_v31  ;;  %vm5920_vm3 = vcmask 162944  }
 0x2f8   : > { %3107 = vmatprep.subr.bf16.mxu1 %v3883_v31 }
 0x2f9   : > { %v1197_v14 = vpop.permute.xlu1 %1196 }
 0x2fa   : > { %v1101_v53 = vpop.permute.xlu0 %1100  ;;  %3045 = vmatpush1.bf16.msra.mxu0 %v5283_v61  ;;  %1215 = vst.msk [vmem:[#allocation2 + $0x60] sm:$0xff] %vm1208_vm2, %v1197_v14 }
 0x2fb   : > { %1118 = vst.msk [vmem:[#allocation2 + $0x70] sm:$0xff] %vm5919_vm11, %v1101_v53  ;;  %3108 = vmatpush1.bf16.msra.mxu1 %v5249_v6  ;;  %3046 = vmatprep.subr.bf16.mxu0 %v3883_v31  ;;  %vm5926_vm11 = vmmov %vm5921_vm12 }
 0x2fc   : > { %3109 = vmatprep.subr.bf16.mxu1 %v3883_v31 }
 0x2fd   : > { %v2012_v51 = vpop.permute.xlu1 %2011 }
 0x2fe   : > { %v1918_v18 = vpop.permute.xlu0 %1917  ;;  %3047 = vmatpush1.bf16.msra.mxu0 %v5297_v5  ;;  %2029 = vst.msk [vmem:[#allocation2 + $0x68] sm:$0xff] %vm520_vm6, %v2012_v51 }
 0x2ff   : > { %1934 = vst.msk [vmem:[#allocation2 + $0x78] sm:$0xff] %vm5920_vm3, %v1918_v18  ;;  %3110 = vmatpush1.bf16.msra.mxu1 %v5264_v2  ;;  %3048 = vmatprep.subr.bf16.mxu0 %v3883_v31  ;;  %vm5928_vm3 = vcmask 818944  }
 0x300   : > { %3111 = vmatprep.subr.bf16.mxu1 %v3883_v31 }
 0x301   : > { %v1247_v62 = vpop.permute.xlu1 %1246 }
 0x302   : > { %v1150_v6 = vpop.permute.xlu0 %1149  ;;  %3049 = vmatpush1.bf16.msra.mxu0 %v5312_v10  ;;  %1265 = vst.msk [vmem:[#allocation2 + $0x60] sm:$0xff] %vm5921_vm12, %v1247_v62 }
 0x303   : > { %1167 = vst.msk [vmem:[#allocation2 + $0x70] sm:$0xff] %vm1159_vm14, %v1150_v6  ;;  %3112 = vmatpush1.bf16.msra.mxu1 %v5283_v61  ;;  %3050 = vmatprep.subr.bf16.mxu0 %v3883_v31  ;;  %vm5923_vm14 = vcmask 753344  }
 0x304   : > { %3113 = vmatprep.subr.bf16.mxu1 %v3883_v31  ;;  %vm5929_vm12 = vmmov %vm5923_vm14 }
 0x305   : > { %v2060_v43 = vpop.permute.xlu1 %2059 }
 0x306   : > { %v1966_v2 = vpop.permute.xlu0 %1965  ;;  %3051 = vmatpush1.bf16.msra.mxu0 %v5326_v20  ;;  %2077 = vst.msk [vmem:[#allocation2 + $0x68] sm:$0xff] %vm570_vm7, %v2060_v43 }
 0x307   : > { %1982 = vst.msk [vmem:[#allocation2 + $0x78] sm:$0xff] %vm5922_vm10, %v1966_v2  ;;  %3114 = vmatpush1.bf16.msra.mxu1 %v5297_v5  ;;  %3052 = vmatprep.subr.bf16.mxu0 %v3883_v31  ;;  %vm5930_vm10 = vcmask 359744  }
 0x308   : > { %3115 = vmatprep.subr.bf16.mxu1 %v3883_v31 }
 0x309   : > { %v1296_v0 = vpop.permute.xlu1 %1295 }
 0x30a   : > { %v1199_v61 = vpop.permute.xlu0 %1198  ;;  %3053 = vmatpush1.bf16.msra.mxu0 %v5345_v42  ;;  %1314 = vst.msk [vmem:[#allocation2 + $0x60] sm:$0xff] %vm5923_vm14, %v1296_v0  ;;  %vm5931_vm14 = vmmov %vm5924_vm8 }
 0x30b   : > { %1216 = vst.msk [vmem:[#allocation2 + $0x70] sm:$0xff] %vm1208_vm2, %v1199_v61  ;;  %3116 = vmatpush1.bf16.msra.mxu1 %v5312_v10  ;;  %3054 = vmatprep.subr.bf16.mxu0 %v3883_v31  ;;  %vm5925_vm2 = vcmask 786144  }
 0x30c   : > { %3117 = vmatprep.subr.bf16.mxu1 %v3883_v31 }
 0x30d   : > { %v2108_v49 = vpop.permute.xlu1 %2107 }
 0x30e   : > { %v2014_v5 = vpop.permute.xlu0 %2013  ;;  %3055 = vmatpush1.bf16.msra.mxu0 %v5359_v33  ;;  %2125 = vst.msk [vmem:[#allocation2 + $0x68] sm:$0xff] %vm5924_vm8, %v2108_v49  ;;  %vm5933_vm8 = vmmov %vm5925_vm2 }
 0x30f   : > { %2030 = vst.msk [vmem:[#allocation2 + $0x78] sm:$0xff] %vm520_vm6, %v2014_v5  ;;  %3118 = vmatpush1.bf16.msra.mxu1 %v5326_v20  ;;  %3056 = vmatprep.subr.bf16.mxu0 %v3883_v31  ;;  %vm5927_vm6 = vcmask 326944  }
 0x310   : > { %3119 = vmatprep.subr.bf16.mxu1 %v3883_v31 }
 0x311   : > { %v1345_v47 = vpop.permute.xlu1 %1344 }
 0x312   : > { %v1249_v10 = vpop.permute.xlu0 %1248  ;;  %3057 = vmatpush1.bf16.msra.mxu0 %v5374_v40  ;;  %1363 = vst.msk [vmem:[#allocation2 + $0x60] sm:$0xff] %vm5925_vm2, %v1345_v47  ;;  %vm5934_vm2 = vcmask 392544  }
 0x313   : > { %1266 = vst.msk [vmem:[#allocation2 + $0x70] sm:$0xff] %vm5926_vm11, %v1249_v10  ;;  %3120 = vmatpush1.bf16.msra.mxu1 %v5345_v42  ;;  %3058 = vmatprep.subr.bf16.mxu0 %v3883_v31  ;;  %vm5935_vm11 = vmmov %vm5927_vm6 }
 0x314   : > { %3121 = vmatprep.subr.bf16.mxu1 %v3883_v31 }
 0x315   : > { %v2156_v13 = vpop.permute.xlu1 %2155 }
 0x316   : > { %v2062_v20 = vpop.permute.xlu0 %2061  ;;  %3059 = vmatpush1.bf16.msra.mxu0 %v4665_v16  ;;  %2173 = vst.msk [vmem:[#allocation2 + $0x68] sm:$0xff] %vm5927_vm6, %v2156_v13  ;;  %vm5936_vm6 = vcmask 884544  }
 0x317   : > { %2078 = vst.msk [vmem:[#allocation2 + $0x78] sm:$0xff] %vm570_vm7, %v2062_v20  ;;  %3122 = vmatpush1.bf16.msra.mxu1 %v5359_v33  ;;  %vm5932_vm7 = vcmask 851744  }
 0x318   : > { %3123 = vmatprep.subr.bf16.mxu1 %v3883_v31 }
 0x319   : > { %v1394_v54 = vpop.permute.xlu1 %1393 }
 0x31a   : > { %v1298_v44 = vpop.permute.xlu0 %1297  ;;  %1412 = vst.msk [vmem:[#allocation2 + $0x60] sm:$0xff] %vm5928_vm3, %v1394_v54 }
 0x31b   : > { %1315 = vst.msk [vmem:[#allocation2 + $0x70] sm:$0xff] %vm5929_vm12, %v1298_v44  ;;  %3124 = vmatpush1.bf16.msra.mxu1 %v5374_v40  ;;  %vm5937_vm12 = vcmask 425344  }
 0x31c   : > { %3125 = vmatprep.subr.bf16.mxu1 %v3883_v31 }
 0x31d   : > { %v2205_v42 = vpop.permute.xlu1 %2204 }
 0x31e   : > { %v2110_v3 = vpop.permute.xlu0 %2109  ;;  %2222 = vst.msk [vmem:[#allocation2 + $0x68] sm:$0xff] %vm5930_vm10, %v2205_v42 }
 0x31f   : > { %2126 = vst.msk [vmem:[#allocation2 + $0x78] sm:$0xff] %vm5931_vm14, %v2110_v3  ;;  %3126 = vmatpush1.bf16.msra.mxu1 %v4665_v16  ;;  %vm5938_vm14 = vmmov %vm5932_vm7 }
 0x321   : > { %v1443_v33 = vpop.permute.xlu1 %1442 }
 0x322   : > { %v1347_v46 = vpop.permute.xlu0 %1346  ;;  %1461 = vst.msk [vmem:[#allocation2 + $0x60] sm:$0xff] %vm5932_vm7, %v1443_v33  ;;  %vm5939_vm7 = vmmov %vm5934_vm2 }
 0x323   : > { %1364 = vst.msk [vmem:[#allocation2 + $0x70] sm:$0xff] %vm5933_vm8, %v1347_v46  ;;  %vm5940_vm8 = vmmov %vm5936_vm6 }
 0x325   : > { %v2253_v57 = vpop.permute.xlu1 %2252 }
 0x326   : > { %v2158_v8 = vpop.permute.xlu0 %2157  ;;  %2270 = vst.msk [vmem:[#allocation2 + $0x68] sm:$0xff] %vm5934_vm2, %v2253_v57  ;;  %vm5941_vm2 = vcmask 490944  }
 0x327   : > { %2174 = vst.msk [vmem:[#allocation2 + $0x78] sm:$0xff] %vm5935_vm11, %v2158_v8  ;;  %vm5942_vm11 = vmmov %vm5937_vm12 }
 0x329   : > { %v1492_v31 = vpop.permute.xlu1 %1491 }
 0x32a   : > { %v1396_v40 = vpop.permute.xlu0 %1395  ;;  %1510 = vst.msk [vmem:[#allocation2 + $0x60] sm:$0xff] %vm5936_vm6, %v1492_v31  ;;  %vm5943_vm6 = vcmask 523744  }
 0x32b   : > { %1413 = vst.msk [vmem:[#allocation2 + $0x70] sm:$0xff] %vm5928_vm3, %v1396_v40  ;;  %vm5947_vm3 = vmmov %vm5943_vm6 }
 0x32d   : > { %v2301_v50 = vpop.permute.xlu1 %2300 }
 0x32e   : > { %v2207_v16 = vpop.permute.xlu0 %2206  ;;  %2318 = vst.msk [vmem:[#allocation2 + $0x68] sm:$0xff] %vm5937_vm12, %v2301_v50 }
 0x32f   : > { %2223 = vst.msk [vmem:[#allocation2 + $0x78] sm:$0xff] %vm5930_vm10, %v2207_v16 }
 0x331   : > { %v1541_v52 = vpop.permute.xlu1 %1540 }
 0x332   : > { %v1445_v58 = vpop.permute.xlu0 %1444  ;;  %1559 = vst.msk [vmem:[#allocation2 + $0x60] sm:$0xff] %vm1552_vm15, %v1541_v52 }
 0x333   : > { %1462 = vst.msk [vmem:[#allocation2 + $0x70] sm:$0xff] %vm5938_vm14, %v1445_v58 }
 0x335   : > { %v2349_v59 = vpop.permute.xlu1 %2348 }
 0x336   : > { %v2255_v60 = vpop.permute.xlu0 %2254  ;;  %2366 = vst.msk [vmem:[#allocation2 + $0x68] sm:$0xff] %vm864_vm13, %v2349_v59 }
 0x337   : > { %2271 = vst.msk [vmem:[#allocation2 + $0x78] sm:$0xff] %vm5939_vm7, %v2255_v60 }
 0x339   : > { %v1591_v38 = vpop.permute.xlu1 %1590 }
 0x33a   : > { %v1494_v56 = vpop.permute.xlu0 %1493  ;;  %1609 = vst.msk [vmem:[#allocation2 + $0x60] sm:$0xff] %vm1602_vm4, %v1591_v38 }
 0x33b   : > { %1511 = vst.msk [vmem:[#allocation2 + $0x70] sm:$0xff] %vm5940_vm8, %v1494_v56 }
 0x33d   : > { %v2397_v4 = vpop.permute.xlu1 %2396 }
 0x33e   : > { %v2303_v63 = vpop.permute.xlu0 %2302  ;;  %2414 = vst.msk [vmem:[#allocation2 + $0x68] sm:$0xff] %vm5941_vm2, %v2397_v4 }
 0x33f   : > { %2319 = vst.msk [vmem:[#allocation2 + $0x78] sm:$0xff] %vm5942_vm11, %v2303_v63  ;;  %v2800_v1 = vpop.f32.mrb[4].mxu0 }
 0x340   : > { %v2801_v22 = vadd.f32 %v5472_v26, %v2800_v1  ;;  %v2802_v24 = vpop.f32.mrb[5].mxu0 }
 0x341   : > { %v1640_v21 = vpop.permute.xlu1 %1639  ;;  %v2803_v11 = vpop.f32.mrb[6].mxu0 }
 0x342   : > { %v1543_v19 = vpop.permute.xlu0 %1542  ;;  %v2806_v25 = vsel %vm2671_vm9, %v2801_v22, 0.0  ;;  %v2814_v27 = vmul.f32 %v2801_v22, %v2801_v22  ;;  %v2823_v34 = vmax.f32 %v2801_v22, 0.0  ;;  %1658 = vst.msk [vmem:[#allocation2 + $0x60] sm:$0xff] %vm1651_vm5, %v1640_v21  ;;  %v2804_v36 = vpop.f32.mrb[7].mxu0 }
 0x343   : > { %1560 = vst.msk [vmem:[#allocation2 + $0x70] sm:$0xff] %vm1552_vm15, %v1543_v19  ;;  %v2807_v28 = vrot.slane %v2806_v25, 4  ;;  %vm5944_vm15 = vcmask 1015744  }
 0x344   : > { %v2815_v23 = vsel %vm2671_vm9, %v2814_v27, 0.0  ;;  %2824 = vst.msk [vmem:[%s5483_s14 + $0x10] sm:$0xff] %vm2671_vm9, %v2823_v34  ;;  %vm5948_vm12 = vmmov %vm5944_vm15 }
 0x345   : > { %v2808_v39 = vadd.f32 %v2807_v28, %v2806_v25  ;;  %v2816_v55 = vrot.slane %v2815_v23, 4  ;;  %v2445_v41 = vpop.permute.xlu1 %2444 }
 0x346   : > { %v2351_v30 = vpop.permute.xlu0 %2350  ;;  %2462 = vst.msk [vmem:[#allocation2 + $0x68] sm:$0xff] %vm5943_vm6, %v2445_v41 }
 0x347   : > { %2367 = vst.msk [vmem:[#allocation2 + $0x78] sm:$0xff] %vm864_vm13, %v2351_v30  ;;  %v2809_v35 = vrot.slane %v2808_v39, 2  ;;  %v2817_v48 = vadd.f32 %v2816_v55, %v2815_v23  ;;  %vm5946_vm13 = vmmov %vm5941_vm2 }
 0x349   : > { %v2867_v17 = vpop.f32.mrb[4].mxu1  ;;  %v2810_v15 = vadd.f32 %v2809_v35, %v2808_v39  ;;  %v2818_v12 = vrot.slane %v2817_v48, 2  ;;  %v1689_v32 = vpop.permute.xlu1 %1688 }
 0x34a   : > { %v2868_v37 = vadd.f32 %v5472_v26, %v2867_v17  ;;  %v1593_v9 = vpop.permute.xlu0 %1592  ;;  %1707 = vst.msk [vmem:[#allocation2 + $0x60] sm:$0xff] %vm5944_vm15, %v1689_v32  ;;  %v2869_v45 = vpop.f32.mrb[5].mxu1 }
 0x34b   : > { %1610 = vst.msk [vmem:[#allocation2 + $0x70] sm:$0xff] %vm1602_vm4, %v1593_v9  ;;  %v2811_v14 = vrot.slane %v2810_v15, 1  ;;  %v2819_v53 = vadd.f32 %v2818_v12, %v2817_v48  ;;  %v2870_v62 = vpop.f32.mrb[6].mxu1  ;;  %vm5945_vm4 = vcmask 556544  }
 0x34c   : > { %v2873_v51 = vsel %vm2671_vm9, %v2868_v37, 0.0  ;;  %v2881_v18 = vmul.f32 %v2868_v37, %v2868_v37  ;;  %v2890_v43 = vmax.f32 %v2868_v37, 0.0  ;;  %v2871_v2 = vpop.f32.mrb[7].mxu1 }
 0x34d   : > { %v2874_v6 = vrot.slane %v2873_v51, 4  ;;  %v2812_v0 = vadd.f32 %v2811_v14, %v2810_v15  ;;  %v2820_v61 = vrot.slane %v2819_v53, 1  ;;  %v2493_v5 = vpop.permute.xlu1 %2492 }
 0x34e   : > { %v2882_v49 = vsel %vm2671_vm9, %v2881_v18, 0.0  ;;  %v2399_v47 = vpop.permute.xlu0 %2398  ;;  %2891 = vst.msk [vmem:[%s5483_s14 + $0x18] sm:$0xff] %vm2671_vm9, %v2890_v43 }
 0x34f   : > { %v2875_v10 = vadd.f32 %v2874_v6, %v2873_v51  ;;  %v2883_v13 = vrot.slane %v2882_v49, 4  ;;  %2510 = vst.msk [vmem:[#allocation2 + $0x68] sm:$0xff] %vm5945_vm4, %v2493_v5  ;;  %v2813_v20 = vadd.f32 %v2812_v0, %v5529_v7  ;;  %v2821_v54 = vadd.f32 %v2820_v61, %v2819_v53 }
 0x350   : > { %2415 = vst.msk [vmem:[#allocation2 + $0x78] sm:$0xff] %vm5946_vm13, %v2399_v47 }
 0x351   : > { %v2876_v44 = vrot.slane %v2875_v10, 2  ;;  %v2884_v42 = vadd.f32 %v2883_v13, %v2882_v49  ;;  %v2822_v3 = vadd.f32 %v2821_v54, %v5533_v29  ;;  %v1738_v33 = vpop.permute.xlu1 %1737 }
 0x352   : > { %v1642_v46 = vpop.permute.xlu0 %1641  ;;  %1756 = vst.msk [vmem:[#allocation2 + $0x60] sm:$0xff] %vm1749_vm1, %v1738_v33 }
 0x353   : > { %v2877_v57 = vadd.f32 %v2876_v44, %v2875_v10  ;;  %v2885_v8 = vrot.slane %v2884_v42, 2  ;;  %1659 = vst.msk [vmem:[#allocation2 + $0x70] sm:$0xff] %vm1651_vm5, %v1642_v46  ;;  %vm5949_vm5 = vmmov %vm5945_vm4 }
 0x355   : > { %v2878_v31 = vrot.slane %v2877_v57, 1  ;;  %v2886_v40 = vadd.f32 %v2885_v8, %v2884_v42  ;;  %v1691_v16 = vpop.permute.xlu1 %1690 }
 0x356   : > { %v2447_v50 = vpop.permute.xlu0 %2446  ;;  %v3028_v52 = vld [vmem:[#allocation2 + $0x68] sm:$0xff]  ;;  %1708 = vst.msk [vmem:[#allocation2 + $0x70] sm:$0xff] %vm5948_vm12, %v1691_v16 }
 0x357   : > { %v2879_v58 = vadd.f32 %v2878_v31, %v2877_v57  ;;  %v2887_v7 = vrot.slane %v2886_v40, 1  ;;  %2463 = vst.msk [vmem:[#allocation2 + $0x78] sm:$0xff] %vm5947_vm3, %v2447_v50  ;;  %v3030_v29 = vpack.c.bf16 %v3028_v52, %v3028_v52 }
 0x359   : > { %v2880_v59 = vadd.f32 %v2879_v58, %v2813_v20  ;;  %v2888_v60 = vadd.f32 %v2887_v7, %v2886_v40  ;;  %3673 = vmatprep.mubr.msk.bf16.mxu0 %vm2623_vm0, %v3030_v29  ;;  %v1740_v56 = vpop.permute.xlu1 %1739  ;;  %v3027_v4 = vld [vmem:[#allocation2 + $0x60] sm:$0xff] }
 0x35a   : > { %v2495_v38 = vpop.permute.xlu0 %2494  ;;  %1757 = vst.msk [vmem:[#allocation2 + $0x70] sm:$0xff] %vm1749_vm1, %v1740_v56  ;;  %v3029_v1 = vpack.c.bf16 %v3027_v4, %v3027_v4  ;;  %vm3160_vm1 = vcmask 57344  }
 0x35b   : > { %v2889_v63 = vadd.f32 %v2888_v60, %v2822_v3  ;;  %2511 = vst.msk [vmem:[#allocation2 + $0x78] sm:$0xff] %vm5949_vm5, %v2495_v38 }
 0x35c   : > { %3067 = vmatmul.mubr.bf16.vlgmr.msra.gmra.mrb[12].mxu0 %v3029_v1 }
 0x361   : > { %v3094_v24 = vld [vmem:[#allocation2 + $0x70] sm:$0xff] }
 0x362   : > { %v3095_v22 = vld [vmem:[#allocation2 + $0x78] sm:$0xff]  ;;  %v3096_v19 = vpack.c.bf16 %v3094_v24, %v3094_v24 }
 0x363   : > { %v3097_v21 = vpack.c.bf16 %v3095_v22, %v3095_v22 }
 0x365   : > { %3674 = vmatprep.mubr.msk.bf16.mxu1 %vm2623_vm0, %v3097_v21 }
 0x366   : > { %3134 = vmatmul.mubr.bf16.vlgmr.msra.gmra.mrb[12].mxu1 %v3096_v19 }
 0x3b8   : > { %v2934_v25 = vpop.f32.mrb[8].mxu0 }
 0x3b9   : > { %v2935_v27 = vadd.f32 %v5472_v26, %v2934_v25  ;;  %v2936_v34 = vpop.f32.mrb[9].mxu0 }
 0x3ba   : > { %v2937_v11 = vpop.f32.mrb[10].mxu0 }
 0x3bb   : > { %v2940_v28 = vsel %vm2671_vm9, %v2935_v27, 0.0  ;;  %v2948_v36 = vmul.f32 %v2935_v27, %v2935_v27  ;;  %v2957_v23 = vmax.f32 %v2935_v27, 0.0  ;;  %v2938_v39 = vpop.f32.mrb[11].mxu0 }
 0x3bc   : > { %v2941_v55 = vrot.slane %v2940_v28, 4 }
 0x3bd   : > { %v2949_v41 = vsel %vm2671_vm9, %v2948_v36, 0.0  ;;  %2958 = vst.msk [vmem:[%s5483_s14 + $0x20] sm:$0xff] %vm2671_vm9, %v2957_v23 }
 0x3be   : > { %v2942_v30 = vadd.f32 %v2941_v55, %v2940_v28  ;;  %v2950_v35 = vrot.slane %v2949_v41, 4 }
 0x3c0   : > { %v2943_v48 = vrot.slane %v2942_v30, 2  ;;  %v2951_v17 = vadd.f32 %v2950_v35, %v2949_v41 }
 0x3c1   : > { %v3001_v15 = vpop.f32.mrb[8].mxu1 }
 0x3c2   : > { %v2944_v12 = vadd.f32 %v2943_v48, %v2942_v30  ;;  %v2952_v37 = vrot.slane %v2951_v17, 2  ;;  %v3002_v32 = vadd.f32 %v5472_v26, %v3001_v15  ;;  %v3003_v9 = vpop.f32.mrb[9].mxu1 }
 0x3c3   : > { %v3004_v45 = vpop.f32.mrb[10].mxu1 }
 0x3c4   : > { %v2945_v14 = vrot.slane %v2944_v12, 1  ;;  %v2953_v53 = vadd.f32 %v2952_v37, %v2951_v17  ;;  %v3007_v51 = vsel %vm2671_vm9, %v3002_v32, 0.0  ;;  %v3015_v18 = vmul.f32 %v3002_v32, %v3002_v32  ;;  %v3005_v62 = vpop.f32.mrb[11].mxu1 }
 0x3c5   : > { %v3008_v6 = vrot.slane %v3007_v51, 4  ;;  %v3024_v43 = vmax.f32 %v3002_v32, 0.0 }
 0x3c6   : > { %v2946_v2 = vadd.f32 %v2945_v14, %v2944_v12  ;;  %v2954_v0 = vrot.slane %v2953_v53, 1  ;;  %v3016_v61 = vsel %vm2671_vm9, %v3015_v18, 0.0 }
 0x3c7   : > { %v3009_v49 = vadd.f32 %v3008_v6, %v3007_v51  ;;  %v3017_v5 = vrot.slane %v3016_v61, 4  ;;  %3025 = vst.msk [vmem:[%s5483_s14 + $0x28] sm:$0xff] %vm2671_vm9, %v3024_v43 }
 0x3c8   : > { %v2947_v47 = vadd.f32 %v2946_v2, %v2880_v59  ;;  %v2955_v10 = vadd.f32 %v2954_v0, %v2953_v53 }
 0x3c9   : > { %v3010_v13 = vrot.slane %v3009_v49, 2  ;;  %v3018_v20 = vadd.f32 %v3017_v5, %v3016_v61 }
 0x3ca   : > { %v2956_v54 = vadd.f32 %v2955_v10, %v2889_v63 }
 0x3cb   : > { %v3011_v44 = vadd.f32 %v3010_v13, %v3009_v49  ;;  %v3019_v42 = vrot.slane %v3018_v20, 2 }
 0x3cd   : > { %v3012_v3 = vrot.slane %v3011_v44, 1  ;;  %v3020_v33 = vadd.f32 %v3019_v42, %v3018_v20 }
 0x3cf   : > { %v3013_v46 = vadd.f32 %v3012_v3, %v3011_v44  ;;  %v3021_v57 = vrot.slane %v3020_v33, 1 }
 0x3d1   : > { %v3022_v8 = vadd.f32 %v3021_v57, %v3020_v33  ;;  %v3014_v31 = vadd.f32 %v3013_v46, %v2947_v47 }
 0x3d3   : > { %v3023_v40 = vadd.f32 %v3022_v8, %v2956_v54 }
 0x42f   : > { %v3068_v50 = vpop.f32.mrb[12].mxu0 }
 0x430   : > { %v3069_v16 = vadd.f32 %v5472_v26, %v3068_v50  ;;  %v3070_v52 = vpop.f32.mrb[13].mxu0 }
 0x431   : > { %v3071_v58 = vpop.f32.mrb[14].mxu0 }
 0x432   : > { %v3074_v7 = vsel %vm2671_vm9, %v3069_v16, 0.0  ;;  %v3082_v29 = vmul.f32 %v3069_v16, %v3069_v16  ;;  %v3091_v59 = vmax.f32 %v3069_v16, 0.0  ;;  %v3072_v60 = vpop.f32.mrb[15].mxu0 }
 0x433   : > { %v3075_v38 = vrot.slane %v3074_v7, 4 }
 0x434   : > { %v3083_v56 = vsel %vm2671_vm9, %v3082_v29, 0.0  ;;  %3092 = vst.msk [vmem:[%s5483_s14 + $0x30] sm:$0xff] %vm2671_vm9, %v3091_v59 }
 0x435   : > { %v3076_v4 = vadd.f32 %v3075_v38, %v3074_v7  ;;  %v3084_v63 = vrot.slane %v3083_v56, 4 }
 0x437   : > { %v3077_v1 = vrot.slane %v3076_v4, 2  ;;  %v3085_v22 = vadd.f32 %v3084_v63, %v3083_v56 }
 0x439   : > { %v3135_v24 = vpop.f32.mrb[12].mxu1  ;;  %v3078_v21 = vadd.f32 %v3077_v1, %v3076_v4  ;;  %v3086_v19 = vrot.slane %v3085_v22, 2 }
 0x43a   : > { %v3136_v25 = vadd.f32 %v5472_v26, %v3135_v24  ;;  %v3137_v27 = vpop.f32.mrb[13].mxu1 }
 0x43b   : > { %v3138_v34 = vpop.f32.mrb[14].mxu1  ;;  %v3079_v11 = vrot.slane %v3078_v21, 1  ;;  %v3087_v28 = vadd.f32 %v3086_v19, %v3085_v22 }
 0x43c   : > { %v3141_v36 = vsel %vm2671_vm9, %v3136_v25, 0.0  ;;  %v3149_v23 = vmul.f32 %v3136_v25, %v3136_v25  ;;  %v3139_v39 = vpop.f32.mrb[15].mxu1  ;;  %v3158_v41 = vmax.f32 %v3136_v25, 0.0 }
 0x43d   : > { %v3142_v55 = vrot.slane %v3141_v36, 4  ;;  %v3080_v30 = vadd.f32 %v3079_v11, %v3078_v21  ;;  %v3088_v35 = vrot.slane %v3087_v28, 1 }
 0x43e   : > { %v3150_v48 = vsel %vm2671_vm9, %v3149_v23, 0.0  ;;  %3159 = vst.msk [vmem:[%s5483_s14 + $0x38] sm:$0xff] %vm2671_vm9, %v3158_v41  ;;  %s3776_s14 = sshll.u32 %s3890_s26, 4  ;;  %s3777_s14 = int_to_ptr.vmem [resolvable:$false] %s3776_s14 }
 0x43f   : > { %v3143_v17 = vadd.f32 %v3142_v55, %v3141_v36  ;;  %v3151_v15 = vrot.slane %v3150_v48, 4  ;;  %v3081_v26 = vadd.f32 %v3080_v30, %v3014_v31  ;;  %v3089_v12 = vadd.f32 %v3088_v35, %v3087_v28  ;;  %s3778_s7 = scalar_lea.vmem %s3777_s14, 32  ;;  %p3779_p1 = scmp.lt.s32.totalorder %s5695_s15, %s3777_s14 }
 0x440   : > { %p3780_p2 = scmp.lt.s32.totalorder %s3778_s7, %s3772_s12 }
 0x441   : > { %v3144_v37 = vrot.slane %v3143_v17, 2  ;;  %v3152_v32 = vadd.f32 %v3151_v15, %v3150_v48  ;;  %v3090_v9 = vadd.f32 %v3089_v12, %v3023_v40 }
 0x442   : > { %p3781_p3 = por %p3780_p2, %p3779_p1 }
 0x443   : > { %v3145_v45 = vadd.f32 %v3144_v37, %v3143_v17  ;;  %v3153_v14 = vrot.slane %v3152_v32, 2 }
 0x444   : > { %p3782_p4 = pnand %p3781_p3, %p3775_p0 }
 0x445   : > { %v3146_v53 = vrot.slane %v3145_v45, 1  ;;  %v3154_v51 = vadd.f32 %v3153_v14, %v3152_v32 }
 0x447   : > { %v3147_v18 = vadd.f32 %v3146_v53, %v3145_v45  ;;  %v3155_v62 = vrot.slane %v3154_v51, 1 }
 0x449   : > { %v3148_v6 = vadd.f32 %v3147_v18, %v3081_v26  ;;  %v3156_v43 = vadd.f32 %v3155_v62, %v3154_v51 }
 0x44b   : > { %3161 = vst.msk [vmem:[%s230_s23] sm:$0x1] %vm3160_vm1, %v3148_v6  ;;  %v3157_v2 = vadd.f32 %v3156_v43, %v3090_v9 }
 0x44c   : > { %3785 = shalt.err (!%p3782_p4)
}
 0x44d   : > { %s3786_s13 = scalar_lea.hbm %s5693_s6, 16  ;;  %s3790_s30 = scalar_lea.hbm %s5773_s4, 32 }
 0x44e   : > { %p3787_p7 = scmp.ne.s32.totalorder %s5693_s6, %s3786_s13  ;;  %p3791_p10 = scmp.lt.u32.totalorder %s5693_s6, %s5773_s4 }
 0x44f   : > { %p3792_p11 = scmp.lt.u32.totalorder %s3790_s30, %s3786_s13  ;;  %p3794_p13 = scmp.lt.u32.totalorder %s3786_s13, %s5693_s6 }
 0x450   : > { %p3788_p8 = pnand %p3787_p7, %p3960_p5 }
 0x451   : > { %p3793_p12 = por %p3792_p11, %p3791_p10 }
 0x452   : > { %p3789_p9 = pneg %p3788_p8 }
 0x453   : > { %p3795_p0 = por %p3794_p13, %p3793_p12 }
 0x455   : > { %p3796_p1 = pnand %p3795_p0, %p3789_p9 }
 0x457   : > { %3799 = shalt.err (!%p3796_p1)
}
 0x458   : > { %3681 = dma.vmem_to_hbm [thread:$0]  (%p3960_p5), %s5695_s15, 16, %s5693_s6, %s3169_s11   ;;  %3162 = vst.msk [vmem:[%s236_s17] sm:$0x1] %vm3160_vm1, %v3157_v2 }
 0x459   : > { %s3173_s12 = scalar_lea.sflag [#allocation6], %s5683_s9  ;;  %s3800_s26 = scalar_lea.vmem %s5703_s10, 16 }
 0x45a   : > { %p3801_p2 = scmp.ne.s32.totalorder %s5703_s10, %s3800_s26  ;;  %s3891_s14 = smov [#allocation5]  }
 0x45b   : > { %s3804_s7 = sshll.u32 %s3891_s14, 4  ;;  %s3805_s7 = int_to_ptr.vmem [resolvable:$false] %s3804_s7 }
 0x45c   : > { %p3802_p3 = pnand %p3801_p2, %p3960_p5  ;;  %s3806_s13 = scalar_lea.vmem %s3805_s7, 32 }
 0x45d   : > { %p3807_p7 = scmp.lt.s32.totalorder %s5703_s10, %s3805_s7  ;;  %p3808_p8 = scmp.lt.s32.totalorder %s3806_s13, %s3800_s26 }
 0x45e   : > { %p3803_p4 = pneg %p3802_p3 }
 0x45f   : > { %p3809_p9 = por %p3808_p8, %p3807_p7 }
 0x461   : > { %p3810_p10 = pnand %p3809_p9, %p3803_p4 }
 0x463   : > { %3813 = shalt.err (!%p3810_p10)
}
 0x464   : > { %s3814_s9 = scalar_lea.hbm %s5701_s16, 16  ;;  %s3818_s6 = scalar_lea.hbm %s5774_s5, 32 }
 0x465   : > { %p3815_p11 = scmp.ne.s32.totalorder %s5701_s16, %s3814_s9  ;;  %p3819_p0 = scmp.lt.u32.totalorder %s5701_s16, %s5774_s5 }
 0x466   : > { %p3820_p1 = scmp.lt.u32.totalorder %s3818_s6, %s3814_s9  ;;  %p3822_p3 = scmp.lt.u32.totalorder %s3814_s9, %s5701_s16 }
 0x467   : > { %p3816_p12 = pnand %p3815_p11, %p3960_p5 }
 0x468   : > { %p3821_p2 = por %p3820_p1, %p3819_p0 }
 0x469   : > { %p3817_p13 = pneg %p3816_p12 }
 0x46a   : > { %p3823_p4 = por %p3822_p3, %p3821_p2 }
 0x46c   : > { %p3824_p7 = pnand %p3823_p4, %p3817_p13 }
 0x46e   : > { %3827 = shalt.err (!%p3824_p7)
}
 0x46f   : > { %3682 = dma.vmem_to_hbm [thread:$0]  (%p3960_p5), %s5703_s10, 16, %s5701_s16, %s3173_s12  }
 0x470 PF: > { %p3692_p8 = scmp.ge.s32.totalorder %s3866_s21, 2  ;;  %s3221_s25 = sand.u32 1, %s3854_s18  }
 0x471   : > { %s3222_s30 = scalar_lea.sflag [#allocation4], %s3221_s25 }
 0x472   : > { %p3686_p9 = pnand %p3692_p8, %p3964_p6 }
 0x474   : > { %3845 = dma.done.wait (!%p3686_p9), %s3222_s30, 16  }
 0x475   : > { %3847 = vsyncadd (!%p3686_p9), %s3222_s30, 4294967280  ;;  %s3230_s22 = scalar_lea.sflag [#allocation6], %s3221_s25 }
 0x476   : > { %3849 = dma.done.wait (!%p3686_p9), %s3230_s22, 16  }
 0x477   : > { %3851 = vsyncadd (!%p3686_p9), %s3230_s22, 4294967280  ;;  %p19_p5 = scmp.ge.s32.totalorder %s3947_s24, 4   ;;  %s5950_s18 = smov %s3858_s19 }
 0x478   : > { %s5951_s19 = smov %s3862_s20  ;;  %s5952_s20 = smov %s3958_s27 }
 0x479   : > { %s5953_s21 = smov %s3947_s24  ;;  %21 = sbr.rel (!%p19_p5) target bundleno = 5 (0x5), region = 109 }
 0x480   :  { %3234 = vsyncpa [#allocation4], 1 }
 0x481   :  { %3236 = vsyncpa [#allocation4 + $0x1], 1 }
 0x482   :  { %3237 = vsyncpa [#allocation6], 1 }
 0x483   :  { %3239 = vsyncpa [#allocation6 + $0x1], 1 }

// kernel: _lambda_.25
= control target key start
LH: loop header
LB: loop body
LE: loop exit
PB: predicated region body
PF: predicated region fallthrough
CT: control target
= control target key end

     0   :  { %11 = vsyncpa [#allocation4], 0  ;;  %s1077_s0 = inlined_call_operand.vmem [shape: f32[8,2,4,16], index: 0, kind: input, shape index: {}]   ;;  %s1078_s1 = inlined_call_operand.vmem [shape: bf16[8,16], index: 1, kind: input, shape index: {}]   ;;  %s1079_s2 = inlined_call_operand.vmem [shape: f32[1,16], index: 2, kind: input, shape index: {}]   ;;  %s1080_s3 = inlined_call_operand.vmem [shape: f32[2,16,16], index: 3, kind: output, shape index: {0}]   ;;  %s1081_s4 = inlined_call_operand.hbm [shape: f32[2,1,16], index: 4, kind: output, shape index: {1}]   ;;  %s1082_s5 = inlined_call_operand.hbm [shape: f32[2,1,16], index: 5, kind: output, shape index: {2}]  }
   0x1   :  { %13 = vsyncpa [#allocation4 + $0x1], 0 }
   0x2   :  { %14 = vsyncpa [#allocation6], 0 }
   0x3   :  { %16 = vsyncpa [#allocation6 + $0x1], 0  ;;  %s905_s18 = smov 0   ;;  %s907_s19 = smov 0  }
   0x4   :  { %s909_s20 = smov 0   ;;  %s911_s21 = smov 0  }
   0x5 LB: > { %s926_s22 = sadd.s32 4294967295, %s869_s21   ;;  %s677_s23 = sadd.s32 4294967294, %s869_s21   ;;  %s869_s21 = sphi %s911_s21, %s1088_s21   ;;  %s865_s20 = sphi %s909_s20, %s1087_s20   ;;  %s861_s19 = sphi %s907_s19, %s1086_s19   ;;  %s857_s18 = sphi %s905_s18, %s1085_s18  }
   0x6   : > { %s930_s24 = sadd.s32 1, %s869_s21   ;;  %s123_s25 = sadd.s32 1, %s865_s20 }
   0x7   : > { %s120_s26 = ssub.s32 %s869_s21, %s930_s24  ;;  %p133_p0 = scmp.ne.s32.totalorder %s865_s20, %s861_s19 }
   0x8   : > { %p121_p1 = scmp.eq.s32.totalorder %s120_s26, 0  ;;  %p134_p2 = scmp.eq.s32.totalorder %s926_s22, 1 }
   0x9   : > { %p139_p3 = scmp.ne.s32.totalorder %s861_s19, %s857_s18  ;;  %p140_p4 = scmp.eq.s32.totalorder %s677_s23, 1 }
   0xa   : > { %s941_s27 = scalar_select %p121_p1, %s865_s20, %s123_s25  }
   0xb   : > { %p943_p5 = por %p134_p2, %p133_p0  ;;  %p947_p6 = por %p140_p4, %p139_p3 }
   0xc   : > { %p680_p7 = scmp.ge.s32.totalorder %s869_s21, 1  ;;  %p200_p8 = scmp.lt.s32.totalorder %s869_s21, 3 }
   0xe   : > { %p201_p9 = pnand %p680_p7, %p200_p8 }
   0xf   : > { %v259_v0 = vld [vmem:[%s1078_s1] sm:$0xf] (!%p201_p9)  ;;  %vm273_vm0 = vcmask (!%p201_p9), 1043456   ;;  %s681_s7 = sshll.u32 (!%p201_p9), %s926_s22, 2  ;;  %v871_v1 = vmov (!%p201_p9), 0.0   ;;  %vm872_vm1 = vmmov (!%p201_p9), 0  }
  0x10   : > { %204 = sbr.rel (%p201_p9) target bundleno = 314 (0x13a), region = 32  ;;  %705 = vmatprep.subr.bf16.mxu0 (!%p201_p9), %v871_v1  ;;  %v275_v2 = vsel (!%p201_p9), %vm273_vm0, %v259_v0, 0  ;;  %711 = vmatprep.subr.bf16.mxu1 (!%p201_p9), %v871_v1  ;;  %p238_p10 = scmp.lt.s32.totalorder (!%p201_p9), %s681_s7, 7  ;;  %vm254_vm2 = vcmask (!%p201_p9), 60416   ;;  %vm269_vm3 = vcmask (!%p201_p9), 64512   ;;  %vm317_vm4 = vcmask (!%p201_p9), 125952  }
  0x11   : > { %706 = vmatpush3.bf16.msra.mxu0 (!%p201_p9), %v275_v2  ;;  %712 = vmatpush3.bf16.msra.mxu1 (!%p201_p9), %v275_v2  ;;  %p244_p11 = scmp.lt.s32.totalorder (!%p201_p9), %s926_s22, 1  ;;  %v686_v15 = vld [vmem:[%s1079_s2] ss:$0 sm:$0xff] (!%p201_p9)  ;;  %s991_s25 = sand.u32 (!%p201_p9), 1, %s861_s19   ;;  %vm528_vm5 = vcmask (!%p201_p9), 122880  }
  0x12   : > { %707 = vmatprep.mubr.msk.bf16.mxu0 (!%p201_p9), %vm872_vm1, %v871_v1  ;;  %713 = vmatprep.mubr.msk.bf16.mxu1 (!%p201_p9), %vm872_vm1, %v871_v1  ;;  %s691_s26 = sshll.u32 (!%p201_p9), %s926_s22, 4  ;;  %s230_s30 = scalar_lea.vmem (!%p201_p9), [#allocation3], %s991_s25 }
  0x13   : > { %717 = vmatprep.subr.bf16.mxu0 (!%p201_p9), %v871_v1  ;;  %723 = vmatprep.subr.bf16.mxu1 (!%p201_p9), %v871_v1  ;;  %s556_s6 = sshll.u32 (!%p201_p9), %s230_s30, 4  ;;  %s537_s14 = scalar_lea.sflag (!%p201_p9), [#allocation4], %s991_s25  ;;  %s1003_s6 = int_to_ptr.vmem [resolvable:$true] %s556_s6 }
  0x14   : > { %s775_s15 = scalar_lea.vmem (!%p201_p9), %s1003_s6, 16  ;;  %s873_s16 = smov (!%p201_p9), [#allocation3]  }
  0x15   : > { %p776_p12 = scmp.ne.s32.totalorder (!%p201_p9), %s1003_s6, %s775_s15  ;;  %s779_s17 = sshll.u32 (!%p201_p9), %s873_s16, 4  ;;  %s780_s17 = int_to_ptr.vmem [resolvable:$false] %s779_s17 }
  0x16   : > { %p782_p1 = scmp.lt.s32.totalorder (!%p201_p9), %s1003_s6, %s780_s17 }
  0x17   : > { %s1090_s7 = smov (!%p238_p10, %s681_s7), 7  ;;  %p777_p13 = pnand %p776_p12, %p943_p5 }
  0x18   : > { %s695_s8 = sshll.u32 %s1090_s7, 3  ;;  %s236_s7 = scalar_lea.vmem [#allocation5], %s991_s25 }
  0x19   : > { %s242_s11 = scalar_lea.vmem %s1077_s0, %s695_s8  ;;  %s569_s8 = sshll.u32 %s236_s7, 4  ;;  %s1011_s8 = int_to_ptr.vmem [resolvable:$true] %s569_s8 }
  0x1a   : > { %v250_v3 = vld [vmem:[%s242_s11] sm:$0xf]  ;;  %v251_v4 = vld [vmem:[%s242_s11 + $0x8] sm:$0xf]  ;;  %v252_v5 = vld [vmem:[%s242_s11 + $0x10] sm:$0xf]  ;;  %p778_p0 = pneg %p777_p13 }
  0x1b   : > { %255 = vst.msk [vmem:[#allocation2] sm:$0xf] %vm254_vm2, %v250_v3  ;;  %256 = vst.msk [vmem:[#allocation2 + $0x4] sm:$0xf] %vm254_vm2, %v251_v4  ;;  %v253_v6 = vld [vmem:[%s242_s11 + $0x18] sm:$0xf]  ;;  %s1001_s11 = scalar_lea.hbm %s1081_s4, %s691_s26 }
  0x1c   : > { %257 = vst.msk [vmem:[#allocation2 + $0x8] sm:$0xf] %vm254_vm2, %v252_v5  ;;  %258 = vst.msk [vmem:[#allocation2 + $0xc] sm:$0xf] %vm254_vm2, %v253_v6  ;;  %s245_s12 = scalar_select %p244_p11, %s926_s22, 1 }
  0x1e   : > { %s696_s13 = sshll.u32 %s245_s12, 4 }
  0x1f   : > { %s972_s23 = scalar_lea.vmem %s1080_s3, %s696_s13  ;;  %s1009_s13 = scalar_lea.hbm %s1082_s5, %s691_s26 }
  0x22   : > { %v261_v7 = vld [vmem:[#allocation2] sm:$0xf]  ;;  %v337_v8 = vld [vmem:[#allocation2 + $0x4] sm:$0xf] }
  0x23   : > { %v262_v9 = vpack.c.bf16 %v261_v7, %v261_v7  ;;  %v338_v10 = vpack.c.bf16 %v337_v8, %v337_v8  ;;  %v401_v11 = vld [vmem:[#allocation2 + $0x8] sm:$0xf]  ;;  %v465_v12 = vld [vmem:[#allocation2 + $0xc] sm:$0xf] }
  0x24   : > { %v402_v13 = vpack.c.bf16 %v401_v11, %v401_v11  ;;  %v466_v14 = vpack.c.bf16 %v465_v12, %v465_v12 }
  0x25   : > { %708 = vmatmul.mubr.msk.bf16.vlgmr.msra.gmra.mrb[0].mxu0 %vm269_vm3, %v262_v9  ;;  %714 = vmatmul.mubr.msk.bf16.vlgmr.msra.gmra.mrb[0].mxu1 %vm269_vm3, %v338_v10 }
  0x26   : > { %718 = vmatpush3.bf16.msra.mxu0 %v275_v2  ;;  %724 = vmatpush3.bf16.msra.mxu1 %v275_v2 }
  0x27   : > { %719 = vmatprep.mubr.msk.bf16.mxu0 %vm872_vm1, %v871_v1  ;;  %725 = vmatprep.mubr.msk.bf16.mxu1 %vm872_vm1, %v871_v1 }
  0x2d   : > { %720 = vmatmul.mubr.msk.bf16.vlgmr.msra.gmra.mrb[4].mxu0 %vm269_vm3, %v402_v13  ;;  %726 = vmatmul.mubr.msk.bf16.vlgmr.msra.gmra.mrb[4].mxu1 %vm269_vm3, %v466_v14 }
  0xf8   : > { %v311_v16 = vpop.f32.mrb[0].mxu0  ;;  %v376_v17 = vpop.f32.mrb[0].mxu1 }
  0xf9   : > { %v312_v18 = vadd.f32 %v686_v15, %v311_v16  ;;  %v377_v19 = vadd.f32 %v686_v15, %v376_v17  ;;  %v709_v20 = vpop.f32.mrb[1].mxu0  ;;  %v715_v21 = vpop.f32.mrb[1].mxu1 }
  0xfa   : > { %v314_v22 = vpop.f32.mrb[2].mxu0  ;;  %v379_v23 = vpop.f32.mrb[2].mxu1 }
  0xfb   : > { %v318_v24 = vsel %vm317_vm4, %v312_v18, 0.0  ;;  %v326_v25 = vmul.f32 %v312_v18, %v312_v18  ;;  %335 = vst.msk [vmem:[%s972_s23] sm:$0xf] %vm317_vm4, %v312_v18  ;;  %v382_v26 = vsel %vm317_vm4, %v377_v19, 0.0  ;;  %v390_v27 = vmul.f32 %v377_v19, %v377_v19  ;;  %399 = vst.msk [vmem:[%s972_s23 + $0x4] sm:$0xf] %vm317_vm4, %v377_v19 }
  0xfc   : > { %v710_v28 = vpop.f32.mrb[3].mxu0  ;;  %v716_v29 = vpop.f32.mrb[3].mxu1  ;;  %v319_v30 = vrot.slane %v318_v24, 4  ;;  %v383_v31 = vrot.slane %v382_v26, 4 }
  0xfd   : > { %v327_v32 = vsel %vm317_vm4, %v326_v25, 0.0  ;;  %v391_v33 = vsel %vm317_vm4, %v390_v27, 0.0 }
  0xfe   : > { %v320_v34 = vadd.f32 %v319_v30, %v318_v24  ;;  %v328_v35 = vrot.slane %v327_v32, 4  ;;  %v384_v36 = vadd.f32 %v383_v31, %v382_v26  ;;  %v392_v37 = vrot.slane %v391_v33, 4 }
 0x100   : > { %v321_v38 = vrot.slane %v320_v34, 2  ;;  %v329_v39 = vadd.f32 %v328_v35, %v327_v32  ;;  %v385_v40 = vrot.slane %v384_v36, 2  ;;  %v393_v41 = vadd.f32 %v392_v37, %v391_v33  ;;  %v440_v42 = vpop.f32.mrb[4].mxu0  ;;  %v504_v43 = vpop.f32.mrb[4].mxu1 }
 0x101   : > { %v441_v44 = vadd.f32 %v686_v15, %v440_v42  ;;  %v505_v45 = vadd.f32 %v686_v15, %v504_v43  ;;  %v721_v46 = vpop.f32.mrb[5].mxu0  ;;  %v727_v47 = vpop.f32.mrb[5].mxu1 }
 0x102   : > { %v322_v48 = vadd.f32 %v321_v38, %v320_v34  ;;  %v330_v49 = vrot.slane %v329_v39, 2  ;;  %v386_v50 = vadd.f32 %v385_v40, %v384_v36  ;;  %v394_v51 = vrot.slane %v393_v41, 2  ;;  %v443_v52 = vpop.f32.mrb[6].mxu0  ;;  %v507_v53 = vpop.f32.mrb[6].mxu1 }
 0x103   : > { %v446_v54 = vsel %vm317_vm4, %v441_v44, 0.0  ;;  %v454_v55 = vmul.f32 %v441_v44, %v441_v44  ;;  %463 = vst.msk [vmem:[%s972_s23 + $0x8] sm:$0xf] %vm317_vm4, %v441_v44  ;;  %v510_v56 = vsel %vm317_vm4, %v505_v45, 0.0  ;;  %v518_v57 = vmul.f32 %v505_v45, %v505_v45  ;;  %527 = vst.msk [vmem:[%s972_s23 + $0xc] sm:$0xf] %vm317_vm4, %v505_v45 }
 0x104   : > { %v722_v58 = vpop.f32.mrb[7].mxu0  ;;  %v728_v59 = vpop.f32.mrb[7].mxu1  ;;  %v323_v60 = vrot.slane %v322_v48, 1  ;;  %v331_v61 = vadd.f32 %v330_v49, %v329_v39  ;;  %v387_v62 = vrot.slane %v386_v50, 1  ;;  %v395_v63 = vadd.f32 %v394_v51, %v393_v41  ;;  %s781_s23 = scalar_lea.vmem %s780_s17, 32 }
 0x105   : > { %v447_v0 = vrot.slane %v446_v54, 4  ;;  %v455_v1 = vsel %vm317_vm4, %v454_v55, 0.0  ;;  %v511_v2 = vrot.slane %v510_v56, 4  ;;  %v519_v3 = vsel %vm317_vm4, %v518_v57, 0.0  ;;  %p783_p2 = scmp.lt.s32.totalorder %s781_s23, %s775_s15 }
 0x106   : > { %v324_v4 = vadd.f32 %v323_v60, %v322_v48  ;;  %v332_v5 = vrot.slane %v331_v61, 1  ;;  %v388_v6 = vadd.f32 %v387_v62, %v386_v50  ;;  %v396_v7 = vrot.slane %v395_v63, 1 }
 0x107   : > { %v448_v8 = vadd.f32 %v447_v0, %v446_v54  ;;  %v456_v9 = vrot.slane %v455_v1, 4  ;;  %v512_v10 = vadd.f32 %v511_v2, %v510_v56  ;;  %v520_v11 = vrot.slane %v519_v3, 4  ;;  %p784_p3 = por %p783_p2, %p782_p1 }
 0x108   : > { %v333_v12 = vadd.f32 %v332_v5, %v331_v61  ;;  %v397_v13 = vadd.f32 %v396_v7, %v395_v63  ;;  %v389_v14 = vadd.f32 %v388_v6, %v324_v4 }
 0x109   : > { %v449_v15 = vrot.slane %v448_v8, 2  ;;  %v457_v16 = vadd.f32 %v456_v9, %v455_v1  ;;  %v513_v17 = vrot.slane %v512_v10, 2  ;;  %v521_v18 = vadd.f32 %v520_v11, %v519_v3  ;;  %p785_p4 = pnand %p784_p3, %p778_p0 }
 0x10a   : > { %v398_v19 = vadd.f32 %v397_v13, %v333_v12 }
 0x10b   : > { %v450_v20 = vadd.f32 %v449_v15, %v448_v8  ;;  %v458_v21 = vrot.slane %v457_v16, 2  ;;  %v514_v22 = vadd.f32 %v513_v17, %v512_v10  ;;  %v522_v23 = vrot.slane %v521_v18, 2 }
 0x10d   : > { %v451_v24 = vrot.slane %v450_v20, 1  ;;  %v459_v25 = vadd.f32 %v458_v21, %v457_v16  ;;  %v515_v26 = vrot.slane %v514_v22, 1  ;;  %v523_v27 = vadd.f32 %v522_v23, %v521_v18 }
 0x10f   : > { %v452_v28 = vadd.f32 %v451_v24, %v450_v20  ;;  %v460_v29 = vrot.slane %v459_v25, 1  ;;  %v524_v30 = vrot.slane %v523_v27, 1  ;;  %v516_v32 = vadd.f32 %v515_v26, %v514_v22 }
 0x111   : > { %v453_v31 = vadd.f32 %v452_v28, %v389_v14  ;;  %v461_v33 = vadd.f32 %v460_v29, %v459_v25  ;;  %v525_v36 = vadd.f32 %v524_v30, %v523_v27 }
 0x113   : > { %v517_v34 = vadd.f32 %v516_v32, %v453_v31  ;;  %v462_v35 = vadd.f32 %v461_v33, %v398_v19 }
 0x115   : > { %529 = vst.msk [vmem:[%s230_s30] sm:$0x1] %vm528_vm5, %v517_v34  ;;  %v526_v37 = vadd.f32 %v525_v36, %v462_v35 }
 0x116   : > { %788 = shalt.err (!%p785_p4)
}
 0x117   : > { %s789_s26 = scalar_lea.hbm %s1001_s11, 16  ;;  %s793_s10 = scalar_lea.hbm %s1081_s4, 32 }
 0x118   : > { %p790_p7 = scmp.ne.s32.totalorder %s1001_s11, %s789_s26  ;;  %p794_p10 = scmp.lt.u32.totalorder %s1001_s11, %s1081_s4 }
 0x119   : > { %p795_p11 = scmp.lt.u32.totalorder %s793_s10, %s789_s26  ;;  %p797_p13 = scmp.lt.u32.totalorder %s789_s26, %s1001_s11 }
 0x11a   : > { %p791_p8 = pnand %p790_p7, %p943_p5 }
 0x11b   : > { %p796_p12 = por %p795_p11, %p794_p10 }
 0x11c   : > { %p792_p9 = pneg %p791_p8 }
 0x11d   : > { %p798_p0 = por %p797_p13, %p796_p12 }
 0x11f   : > { %p799_p1 = pnand %p798_p0, %p792_p9 }
 0x121   : > { %802 = shalt.err (!%p799_p1)
}
 0x122   : > { %729 = dma.vmem_to_hbm [thread:$0]  (%p943_p5), %s1003_s6, 16, %s1001_s11, %s537_s14   ;;  %530 = vst.msk [vmem:[%s236_s7] sm:$0x1] %vm528_vm5, %v526_v37 }
 0x123   : > { %s541_s15 = scalar_lea.sflag [#allocation6], %s991_s25  ;;  %s803_s16 = scalar_lea.vmem %s1011_s8, 16 }
 0x124   : > { %p804_p2 = scmp.ne.s32.totalorder %s1011_s8, %s803_s16  ;;  %s874_s17 = smov [#allocation5]  }
 0x125   : > { %s807_s23 = sshll.u32 %s874_s17, 4  ;;  %s808_s23 = int_to_ptr.vmem [resolvable:$false] %s807_s23 }
 0x126   : > { %p805_p3 = pnand %p804_p2, %p943_p5  ;;  %s809_s26 = scalar_lea.vmem %s808_s23, 32 }
 0x127   : > { %p810_p7 = scmp.lt.s32.totalorder %s1011_s8, %s808_s23  ;;  %p811_p8 = scmp.lt.s32.totalorder %s809_s26, %s803_s16 }
 0x128   : > { %p806_p4 = pneg %p805_p3 }
 0x129   : > { %p812_p9 = por %p811_p8, %p810_p7 }
 0x12b   : > { %p813_p10 = pnand %p812_p9, %p806_p4 }
 0x12d   : > { %816 = shalt.err (!%p813_p10)
}
 0x12e   : > { %s817_s25 = scalar_lea.hbm %s1009_s13, 16  ;;  %s821_s11 = scalar_lea.hbm %s1082_s5, 32 }
 0x12f   : > { %p818_p11 = scmp.ne.s32.totalorder %s1009_s13, %s817_s25  ;;  %p822_p0 = scmp.lt.u32.totalorder %s1009_s13, %s1082_s5 }
 0x130   : > { %p823_p1 = scmp.lt.u32.totalorder %s821_s11, %s817_s25  ;;  %p825_p3 = scmp.lt.u32.totalorder %s817_s25, %s1009_s13 }
 0x131   : > { %p819_p12 = pnand %p818_p11, %p943_p5 }
 0x132   : > { %p824_p2 = por %p823_p1, %p822_p0 }
 0x133   : > { %p820_p13 = pneg %p819_p12 }
 0x134   : > { %p826_p4 = por %p825_p3, %p824_p2 }
 0x136   : > { %p827_p7 = pnand %p826_p4, %p820_p13 }
 0x138   : > { %830 = shalt.err (!%p827_p7)
}
 0x139   : > { %730 = dma.vmem_to_hbm [thread:$0]  (%p943_p5), %s1011_s8, 16, %s1009_s13, %s541_s15  }
 0x13a PF: > { %p740_p8 = scmp.ge.s32.totalorder %s869_s21, 2  ;;  %s589_s9 = sand.u32 1, %s857_s18  }
 0x13b   : > { %s590_s10 = scalar_lea.sflag [#allocation4], %s589_s9 }
 0x13c   : > { %p734_p9 = pnand %p740_p8, %p947_p6 }
 0x13e   : > { %848 = dma.done.wait (!%p734_p9), %s590_s10, 16  }
 0x13f   : > { %850 = vsyncadd (!%p734_p9), %s590_s10, 4294967280  ;;  %s598_s22 = scalar_lea.sflag [#allocation6], %s589_s9 }
 0x140   : > { %852 = dma.done.wait (!%p734_p9), %s598_s22, 16  }
 0x141   : > { %854 = vsyncadd (!%p734_p9), %s598_s22, 4294967280  ;;  %p19_p5 = scmp.ge.s32.totalorder %s930_s24, 4   ;;  %s1085_s18 = smov %s861_s19 }
 0x142   : > { %s1086_s19 = smov %s865_s20  ;;  %s1087_s20 = smov %s941_s27 }
 0x143   : > { %s1088_s21 = smov %s930_s24  ;;  %21 = sbr.rel (!%p19_p5) target bundleno = 5 (0x5), region = 99 }
 0x14a   :  { %602 = vsyncpa [#allocation4], 1 }
 0x14b   :  { %604 = vsyncpa [#allocation4 + $0x1], 1 }
 0x14c   :  { %605 = vsyncpa [#allocation6], 1 }
 0x14d   :  { %607 = vsyncpa [#allocation6 + $0x1], 1 }

// kernel: _lambda_.27
= control target key start
LH: loop header
LB: loop body
LE: loop exit
PB: predicated region body
PF: predicated region fallthrough
CT: control target
= control target key end

     0   :  { %s493_s15 = smov 0   ;;  %s495_s16 = smov 0   ;;  %s528_s0 = inlined_call_operand.vmem [shape: f32[2,2,128], index: 0, kind: input, shape index: {}]   ;;  %s529_s1 = inlined_call_operand.vmem [shape: f32[2,2,128], index: 1, kind: input, shape index: {}]   ;;  %s530_s2 = inlined_call_operand.vmem [shape: f32[2,1,128], index: 2, kind: input, shape index: {}]   ;;  %s531_s3 = inlined_call_operand.vmem [shape: f32[2,1,128], index: 3, kind: input, shape index: {}]   ;;  %s532_s4 = inlined_call_operand.vmem [shape: f32[2,2,128], index: 4, kind: output, shape index: {}]  }
   0x1   :  { %s497_s17 = smov 0  }
   0x2 LB: > { %s26_s18 = sadd.s32 1, %s462_s16  ;;  %p412_p0 = scmp.ge.s32.totalorder %s466_s17, 1  ;;  %s466_s17 = sphi %s497_s17, %s14_s17   ;;  %s462_s16 = sphi %s495_s16, %s534_s16   ;;  %s458_s15 = sphi %s493_s15, %s533_s15  }
   0x3   : > { %p28_p1 = scmp.ge.s32.totalorder %s26_s18, 2  ;;  %p210_p2 = scmp.lt.s32.totalorder %s466_s17, 3 }
   0x5   : > { %s536_s18 = smov (%p28_p1, %s26_s18), 0  ;;  %p211_p3 = pnand %p412_p0, %p210_p2 }
   0x6   : > { %p253_p4 = scmp.lt.s32.totalorder (!%p211_p3), %s458_s15, 1 }
   0x7   : > { %214 = sbr.rel (%p211_p3) target bundleno = 27 (0x1b), region = 36 }
   0xe   : > { %s538_s15 = smov (!%p253_p4, %s458_s15), 1 }
   0xf   : > { %s413_s19 = sshll.u32 %s538_s15, 1  ;;  %s269_s22 = scalar_lea.vmem %s530_s2, %s538_s15 }
  0x10   : > { %s259_s25 = scalar_lea.vmem %s528_s0, %s413_s19  ;;  %s266_s28 = scalar_lea.vmem %s529_s1, %s413_s19  ;;  %v416_v0 = vld [vmem:[%s269_s22] ss:$0 sm:$0xff] }
  0x11   : > { %s272_s5 = scalar_lea.vmem %s531_s3, %s538_s15  ;;  %v280_v1 = vld [vmem:[%s259_s25] sm:$0x3]  ;;  %s279_s8 = scalar_lea.vmem %s532_s4, %s413_s19 }
  0x12   : > { %v288_v2 = vmul.f32 %v416_v0, %v280_v1  ;;  %v417_v3 = vld [vmem:[%s272_s5] ss:$0 sm:$0xff] }
  0x13   : > { %v297_v4 = vld [vmem:[%s266_s28] sm:$0x3] }
  0x14   : > { %v296_v5 = vadd.f32 %v417_v3, %v288_v2 }
  0x16   : > { %v298_v6 = vadd.f32 %v297_v4, %v296_v5 }
  0x18   : > { %v299_v7 = vmax.f32 %v298_v6, 0.0 }
  0x1a   : > { %300 = vst [vmem:[%s279_s8] sm:$0x3] %v299_v7 }
  0x1b PF: > { %s14_s17 = sadd.s32 1, %s466_s17   ;;  %s533_s15 = smov %s462_s16 }
  0x1c   : > { %p11_p5 = scmp.ge.s32.totalorder %s14_s17, 4   ;;  %s534_s16 = smov %s536_s18 }
  0x1e   :  { %13 = sbr.rel (!%p11_p5) target bundleno = 2 (0x2), region = 75 }

// kernel: _lambda_.24
= control target key start
LH: loop header
LB: loop body
LE: loop exit
PB: predicated region body
PF: predicated region fallthrough
CT: control target
= control target key end

     0   :  { %s1022_s18 = smov 0   ;;  %s1299_s0 = inlined_call_operand.vmem [shape: f32[12,1,6,16], index: 0, kind: input, shape index: {}]   ;;  %s1300_s1 = inlined_call_operand.vmem [shape: bf16[144,16], index: 1, kind: input, shape index: {}]   ;;  %s1301_s2 = inlined_call_operand.vmem [shape: f32[1,16], index: 2, kind: input, shape index: {}]   ;;  %s1302_s3 = inlined_call_operand.vmem [shape: f32[2,16,16], index: 3, kind: output, shape index: {0}]   ;;  %s1303_s4 = inlined_call_operand.vmem [shape: f32[2,1,16], index: 4, kind: output, shape index: {1}]   ;;  %s1304_s5 = inlined_call_operand.vmem [shape: f32[2,1,16], index: 5, kind: output, shape index: {2}]  }
   0x1 LB: > { %s1028_s19 = sadd.s32 4294967295, %s982_s18   ;;  %p902_p0 = scmp.ge.s32.totalorder %s982_s18, 1  ;;  %s982_s18 = sphi %s1022_s18, %s16_s18  }
   0x2   : > { %p193_p1 = scmp.lt.s32.totalorder %s982_s18, 3 }
   0x4   : > { %p194_p2 = pnand %p902_p0, %p193_p1 }
   0x5   : > { %s227_s20 = smul.u32 (!%p194_p2), 6, %s1028_s19  ;;  %v1036_v0 = vld [vmem:[%s1300_s1] sm:$0xff] (!%p194_p2)   ;;  %v984_v1 = vmov (!%p194_p2), 0   ;;  %v1046_v2 = vld [vmem:[%s1300_s1 + $0x8] sm:$0xff] (!%p194_p2)   ;;  %v1053_v3 = vld [vmem:[%s1300_s1 + $0x10] sm:$0xff] (!%p194_p2)   ;;  %s985_s6 = smov (!%p194_p2), 16  }
   0x6   : > { %197 = sbr.rel (%p194_p2) target bundleno = 438 (0x1b6), region = 32  ;;  %528 = vmatprep.subr.bf16.mxu0 (!%p194_p2), %v984_v1  ;;  %596 = vmatprep.subr.bf16.mxu1 (!%p194_p2), %v984_v1  ;;  %v1073_v8 = vld [vmem:[%s1300_s1 + $0x18] sm:$0xff] (!%p194_p2)   ;;  %s986_s9 = smov (!%p194_p2), 48   ;;  %v1086_v11 = vld [vmem:[%s1300_s1 + $0x20] sm:$0xff] (!%p194_p2)   ;;  %vm249_vm0 = vcmask (!%p194_p2), 125952   ;;  %v1105_v16 = vld [vmem:[%s1300_s1 + $0x28] sm:$0xff] (!%p194_p2)  }
   0x7   : > { %p228_p3 = scmp.lt.s32.totalorder (!%p194_p2), %s227_s20, 11  ;;  %529 = vmatpush1.bf16.msra.mxu0 (!%p194_p2), %v1036_v0  ;;  %597 = vmatpush1.bf16.msra.mxu1 (!%p194_p2), %v1036_v0  ;;  %s987_s10 = smov (!%p194_p2), 32   ;;  %v1116_v19 = vld [vmem:[%s1300_s1 + $0x30] sm:$0xff] (!%p194_p2)   ;;  %v1133_v24 = vld [vmem:[%s1300_s1 + $0x38] sm:$0xff] (!%p194_p2)   ;;  %v1146_v27 = vld [vmem:[%s1300_s1 + $0x40] sm:$0xff] (!%p194_p2)   ;;  %vm274_vm1 = vcmask (!%p194_p2), 257152  }
   0x8   : > { %530 = vmatprep.subr.bf16.mxu0 (!%p194_p2), %v984_v1  ;;  %598 = vmatprep.subr.bf16.mxu1 (!%p194_p2), %v984_v1  ;;  %s988_s13 = smov (!%p194_p2), 64   ;;  %s989_s16 = smov (!%p194_p2), 80   ;;  %vm299_vm2 = vcmask (!%p194_p2), 388352   ;;  %vm325_vm3 = vcmask (!%p194_p2), 519552   ;;  %vm350_vm4 = vcmask (!%p194_p2), 650752   ;;  %vm375_vm5 = vcmask (!%p194_p2), 781952  }
   0x9   : > { %s990_s21 = smov (!%p194_p2), 96   ;;  %s991_s24 = smov (!%p194_p2), 112   ;;  %vm401_vm6 = vcmask (!%p194_p2), 913152   ;;  %vm426_vm7 = vcmask (!%p194_p2), 1044352   ;;  %vm524_vm8 = vcmask (!%p194_p2), 130048   ;;  %vm790_vm9 = vcmask (!%p194_p2), 122880  }
   0xa   : > { %p233_p4 = scmp.lt.s32.totalorder (!%p194_p2), %s1028_s19, 1 }
   0xb   : > { %531 = vmatpush1.bf16.msra.mxu0 (!%p194_p2), %v1046_v2  ;;  %599 = vmatpush1.bf16.msra.mxu1 (!%p194_p2), %v1046_v2 }
   0xc   : > { %532 = vmatprep.subr.bf16.mxu0 (!%p194_p2), %v984_v1  ;;  %600 = vmatprep.subr.bf16.mxu1 (!%p194_p2), %v984_v1 }
   0xd   : > { %s1306_s20 = smov (!%p228_p3, %s227_s20), 11  ;;  %s1308_s19 = smov (!%p233_p4, %s1028_s19), 1 }
   0xe   : > { %s903_s25 = sshll.u32 %s1306_s20, 3  ;;  %s946_s27 = sshll.u32 %s1308_s19, 4 }
   0xf   : > { %s1059_s30 = scalar_lea.vmem %s1299_s0, %s903_s25  ;;  %533 = vmatpush1.bf16.msra.mxu0 %v1053_v3  ;;  %601 = vmatpush1.bf16.msra.mxu1 %v1053_v3  ;;  %s1270_s7 = scalar_lea.vmem %s1302_s3, %s946_s27 }
  0x10   : > { %v255_v4 = vld [vmem:[%s1059_s30 + $0x9] sm:$0xf]  ;;  %v254_v5 = vld [vmem:[%s1059_s30 + $0x1] sm:$0xf]  ;;  %534 = vmatprep.subr.bf16.mxu0 %v984_v1  ;;  %602 = vmatprep.subr.bf16.mxu1 %v984_v1  ;;  %v907_v13 = vld [vmem:[%s1059_s30 + $0x10] sm:$0xf] }
  0x11   : > { %264 = vrot.lane.b32.xlu1 %v255_v4, %s985_s6  ;;  %262 = vrot.lane.b32.xlu0 %v254_v5, %s985_s6  ;;  %v906_v6 = vld [vmem:[%s1059_s30 + $0x8] sm:$0xf]  ;;  %v279_v7 = vld [vmem:[%s1059_s30 + $0x2] sm:$0xf] }
  0x12   : > { %v910_v9 = vld [vmem:[%s1059_s30 + $0x9] sm:$0xf]  ;;  %v245_v15 = vld [vmem:[%s1059_s30] sm:$0xf]  ;;  %v918_v17 = vld [vmem:[%s1059_s30 + $0x10] sm:$0xf] }
  0x13   : > { %v280_v10 = vld [vmem:[%s1059_s30 + $0xa] sm:$0xf]  ;;  %535 = vmatpush1.bf16.msra.mxu0 %v1073_v8  ;;  %603 = vmatpush1.bf16.msra.mxu1 %v1073_v8  ;;  %250 = vst.msk [vmem:[#allocation2] sm:$0xf] %vm249_vm0, %v245_v15  ;;  %v911_v18 = vld [vmem:[%s1059_s30 + $0x11] sm:$0xf] }
  0x14   : > { %536 = vmatprep.subr.bf16.mxu0 %v984_v1  ;;  %604 = vmatprep.subr.bf16.mxu1 %v984_v1  ;;  %v914_v12 = vld [vmem:[%s1059_s30 + $0xa] sm:$0xf]  ;;  %v926_v20 = vld [vmem:[%s1059_s30 + $0x12] sm:$0xf]  ;;  %v927_v21 = vld [vmem:[%s1059_s30 + $0x1a] sm:$0xf] }
  0x15   : > { %313 = vrot.lane.b32.xlu1 %v906_v6, %s986_s9  ;;  %287 = vrot.lane.b32.xlu0 %v279_v7, %s987_s10  ;;  %v246_v14 = vld [vmem:[%s1059_s30 + $0x8] sm:$0xf]  ;;  %435 = vst.msk [vmem:[#allocation2 + $0x4] sm:$0xf] %vm249_vm0, %v926_v20  ;;  %436 = vst.msk [vmem:[#allocation2 + $0xc] sm:$0xf] %vm249_vm0, %v927_v21 }
  0x16   : > { %251 = vst.msk [vmem:[#allocation2 + $0x8] sm:$0xf] %vm249_vm0, %v246_v14  ;;  %v922_v22 = vld [vmem:[%s1059_s30 + $0x11] sm:$0xf]  ;;  %v919_v25 = vld [vmem:[%s1059_s30 + $0x18] sm:$0xf] }
  0x17   : > { %537 = vmatpush1.bf16.msra.mxu0 %v1086_v11  ;;  %605 = vmatpush1.bf16.msra.mxu1 %v1086_v11  ;;  %v915_v23 = vld [vmem:[%s1059_s30 + $0x12] sm:$0xf]  ;;  %v923_v26 = vld [vmem:[%s1059_s30 + $0x19] sm:$0xf]  ;;  %v909_v37 = vld [vmem:[%s1059_s30 + $0x20] sm:$0xf] }
  0x18   : > { %538 = vmatprep.subr.bf16.mxu0 %v984_v1  ;;  %606 = vmatprep.subr.bf16.mxu1 %v984_v1  ;;  %v247_v28 = vld [vmem:[%s1059_s30 + $0x10] sm:$0xf]  ;;  %v248_v31 = vld [vmem:[%s1059_s30 + $0x18] sm:$0xf]  ;;  %v920_v38 = vld [vmem:[%s1059_s30 + $0x20] sm:$0xf] }
  0x19   : > { %338 = vrot.lane.b32.xlu1 %v910_v9, %s988_s13  ;;  %289 = vrot.lane.b32.xlu0 %v280_v10, %s987_s10  ;;  %252 = vst.msk [vmem:[#allocation2 + $0x10] sm:$0xf] %vm249_vm0, %v247_v28  ;;  %v281_v29 = vld [vmem:[%s1059_s30 + $0x12] sm:$0xf]  ;;  %253 = vst.msk [vmem:[#allocation2 + $0x18] sm:$0xf] %vm249_vm0, %v248_v31 }
  0x1a   : > { %v256_v30 = vld [vmem:[%s1059_s30 + $0x11] sm:$0xf]  ;;  %v908_v32 = vld [vmem:[%s1059_s30 + $0x18] sm:$0xf]  ;;  %v913_v39 = vld [vmem:[%s1059_s30 + $0x21] sm:$0xf] }
  0x1b   : > { %539 = vmatpush1.bf16.msra.mxu0 %v1105_v16  ;;  %607 = vmatpush1.bf16.msra.mxu1 %v1105_v16  ;;  %v257_v33 = vld [vmem:[%s1059_s30 + $0x19] sm:$0xf]  ;;  %v928_v40 = vld [vmem:[%s1059_s30 + $0x22] sm:$0xf]  ;;  %v929_v43 = vld [vmem:[%s1059_s30 + $0x2a] sm:$0xf] }
  0x1c   : > { %540 = vmatprep.subr.bf16.mxu0 %v984_v1  ;;  %608 = vmatprep.subr.bf16.mxu1 %v984_v1  ;;  %v912_v34 = vld [vmem:[%s1059_s30 + $0x19] sm:$0xf]  ;;  %437 = vst.msk [vmem:[#allocation2 + $0x14] sm:$0xf] %vm249_vm0, %v928_v40  ;;  %v924_v41 = vld [vmem:[%s1059_s30 + $0x21] sm:$0xf] }
  0x1d   : > { %363 = vrot.lane.b32.xlu1 %v914_v12, %s989_s16  ;;  %315 = vrot.lane.b32.xlu0 %v907_v13, %s986_s9  ;;  %v282_v35 = vld [vmem:[%s1059_s30 + $0x1a] sm:$0xf]  ;;  %v917_v42 = vld [vmem:[%s1059_s30 + $0x22] sm:$0xf]  ;;  %438 = vst.msk [vmem:[#allocation2 + $0x1c] sm:$0xf] %vm249_vm0, %v929_v43 }
  0x1e   : > { %v916_v36 = vld [vmem:[%s1059_s30 + $0x1a] sm:$0xf]  ;;  %v921_v44 = vld [vmem:[%s1059_s30 + $0x28] sm:$0xf] }
  0x1f   : > { %541 = vmatpush1.bf16.msra.mxu0 %v1116_v19  ;;  %609 = vmatpush1.bf16.msra.mxu1 %v1116_v19  ;;  %v925_v45 = vld [vmem:[%s1059_s30 + $0x29] sm:$0xf] }
  0x20   : > { %542 = vmatprep.subr.bf16.mxu0 %v984_v1  ;;  %610 = vmatprep.subr.bf16.mxu1 %v984_v1 }
  0x21   : > { %389 = vrot.lane.b32.xlu1 %v918_v17, %s990_s21  ;;  %340 = vrot.lane.b32.xlu0 %v911_v18, %s988_s13 }
  0x23   : > { %543 = vmatpush1.bf16.msra.mxu0 %v1133_v24  ;;  %611 = vmatpush1.bf16.msra.mxu1 %v1133_v24 }
  0x24   : > { %544 = vmatprep.subr.bf16.mxu0 %v984_v1  ;;  %612 = vmatprep.subr.bf16.mxu1 %v984_v1 }
  0x25   : > { %414 = vrot.lane.b32.xlu1 %v922_v22, %s991_s24  ;;  %365 = vrot.lane.b32.xlu0 %v915_v23, %s989_s16 }
  0x27   : > { %545 = vmatpush1.bf16.msra.mxu0 %v1146_v27  ;;  %613 = vmatpush1.bf16.msra.mxu1 %v1146_v27 }
  0x28   : > { %664 = vmatprep.subr.bf16.mxu0 %v984_v1  ;;  %732 = vmatprep.subr.bf16.mxu1 %v984_v1 }
  0x29   : > { %391 = vrot.lane.b32.xlu0 %v919_v25, %s990_s21  ;;  %416 = vrot.lane.b32.xlu1 %v923_v26, %s991_s24 }
  0x2d   : > { %291 = vrot.lane.b32.xlu1 %v281_v29, %s987_s10  ;;  %266 = vrot.lane.b32.xlu0 %v256_v30, %s985_s6 }
  0x31   : > { %317 = vrot.lane.b32.xlu1 %v908_v32, %s986_s9  ;;  %268 = vrot.lane.b32.xlu0 %v257_v33, %s985_s6 }
  0x35   : > { %342 = vrot.lane.b32.xlu1 %v912_v34, %s988_s13  ;;  %293 = vrot.lane.b32.xlu0 %v282_v35, %s987_s10  ;;  %s240_s10 = scalar_lea.vmem %s1303_s4, %s1308_s19 }
  0x39   : > { %367 = vrot.lane.b32.xlu1 %v916_v36, %s989_s16  ;;  %319 = vrot.lane.b32.xlu0 %v909_v37, %s986_s9 }
  0x3d   : > { %393 = vrot.lane.b32.xlu1 %v920_v38, %s990_s21  ;;  %344 = vrot.lane.b32.xlu0 %v913_v39, %s988_s13  ;;  %s243_s13 = scalar_lea.vmem %s1304_s5, %s1308_s19 }
  0x41   : > { %418 = vrot.lane.b32.xlu1 %v924_v41, %s991_s24  ;;  %369 = vrot.lane.b32.xlu0 %v917_v42, %s989_s16 }
  0x45   : > { %395 = vrot.lane.b32.xlu0 %v921_v44, %s990_s21  ;;  %420 = vrot.lane.b32.xlu1 %v925_v45, %s991_s24 }
  0x83   : > { %v265_v46 = vpop.permute.xlu1 %264  ;;  %v263_v47 = vpop.permute.xlu0 %262 }
  0x84   : > { %276 = vst.msk [vmem:[#allocation2 + $0x8] sm:$0xf] %vm274_vm1, %v265_v46  ;;  %275 = vst.msk [vmem:[#allocation2] sm:$0xf] %vm274_vm1, %v263_v47 }
  0x87   : > { %v314_v48 = vpop.permute.xlu1 %313  ;;  %v288_v49 = vpop.permute.xlu0 %287 }
  0x88   : > { %300 = vst.msk [vmem:[#allocation2] sm:$0xf] %vm299_vm2, %v288_v49 }
  0x89   : > { %326 = vst.msk [vmem:[#allocation2] sm:$0xf] %vm325_vm3, %v314_v48 }
  0x8b   : > { %v339_v50 = vpop.permute.xlu1 %338  ;;  %v290_v51 = vpop.permute.xlu0 %289 }
  0x8c   : > { %351 = vst.msk [vmem:[#allocation2] sm:$0xf] %vm350_vm4, %v339_v50 }
  0x8d   : > { %301 = vst.msk [vmem:[#allocation2 + $0x8] sm:$0xf] %vm299_vm2, %v290_v51 }
  0x8f   : > { %v364_v52 = vpop.permute.xlu1 %363  ;;  %v316_v53 = vpop.permute.xlu0 %315 }
  0x90   : > { %376 = vst.msk [vmem:[#allocation2] sm:$0xf] %vm375_vm5, %v364_v52 }
  0x91   : > { %327 = vst.msk [vmem:[#allocation2 + $0x8] sm:$0xf] %vm325_vm3, %v316_v53 }
  0x93   : > { %v390_v54 = vpop.permute.xlu1 %389  ;;  %v341_v55 = vpop.permute.xlu0 %340 }
  0x94   : > { %402 = vst.msk [vmem:[#allocation2] sm:$0xf] %vm401_vm6, %v390_v54 }
  0x95   : > { %352 = vst.msk [vmem:[#allocation2 + $0x8] sm:$0xf] %vm350_vm4, %v341_v55 }
  0x97   : > { %v415_v56 = vpop.permute.xlu1 %414  ;;  %v366_v57 = vpop.permute.xlu0 %365 }
  0x98   : > { %427 = vst.msk [vmem:[#allocation2] sm:$0xf] %vm426_vm7, %v415_v56 }
  0x99   : > { %377 = vst.msk [vmem:[#allocation2 + $0x8] sm:$0xf] %vm375_vm5, %v366_v57 }
  0x9b   : > { %v392_v58 = vpop.permute.xlu0 %391  ;;  %v417_v59 = vpop.permute.xlu1 %416 }
  0x9c   : > { %403 = vst.msk [vmem:[#allocation2 + $0x8] sm:$0xf] %vm401_vm6, %v392_v58 }
  0x9d   : > { %428 = vst.msk [vmem:[#allocation2 + $0x8] sm:$0xf] %vm426_vm7, %v417_v59 }
  0x9f   : > { %v458_v60 = vld [vmem:[#allocation2] sm:$0xff]  ;;  %v292_v61 = vpop.permute.xlu1 %291  ;;  %v267_v62 = vpop.permute.xlu0 %266 }
  0xa0   : > { %v460_v63 = vcombine.high %v458_v60, %v458_v60  ;;  %277 = vst.msk [vmem:[#allocation2 + $0x10] sm:$0xf] %vm274_vm1, %v267_v62  ;;  %v462_v5 = vpack.c.bf16 %v458_v60, %v458_v60 }
  0xa1   : > { %302 = vst.msk [vmem:[#allocation2 + $0x10] sm:$0xf] %vm299_vm2, %v292_v61 }
  0xa2   : > { %v463_v4 = vpack.c.bf16 %v460_v63, %v460_v63 }
  0xa3   : > { %v318_v6 = vpop.permute.xlu1 %317  ;;  %v269_v7 = vpop.permute.xlu0 %268 }
  0xa4   : > { %940 = vmatprep.mubr.msk.bf16.mxu0 %vm524_vm8, %v463_v4  ;;  %v587_v9 = vld [vmem:[#allocation2 + $0x8] sm:$0xff]  ;;  %328 = vst.msk [vmem:[#allocation2 + $0x10] sm:$0xf] %vm325_vm3, %v318_v6 }
  0xa5   : > { %278 = vst.msk [vmem:[#allocation2 + $0x18] sm:$0xf] %vm274_vm1, %v269_v7  ;;  %561 = vmatmul.mubr.bf16.vlgmr.msra.gmra.mrb[0].mxu0 %v462_v5  ;;  %v589_v10 = vcombine.high %v587_v9, %v587_v9  ;;  %v591_v15 = vpack.c.bf16 %v587_v9, %v587_v9 }
  0xa6   : > { %665 = vmatpush1.bf16.msra.mxu0 %v1036_v0 }
  0xa7   : > { %666 = vmatprep.subr.bf16.mxu0 %v984_v1  ;;  %v592_v12 = vpack.c.bf16 %v589_v10, %v589_v10  ;;  %v343_v13 = vpop.permute.xlu1 %342  ;;  %v294_v14 = vpop.permute.xlu0 %293 }
  0xa8   : > { %353 = vst.msk [vmem:[#allocation2 + $0x10] sm:$0xf] %vm350_vm4, %v343_v13 }
  0xa9   : > { %303 = vst.msk [vmem:[#allocation2 + $0x18] sm:$0xf] %vm299_vm2, %v294_v14  ;;  %941 = vmatprep.mubr.msk.bf16.mxu1 %vm524_vm8, %v592_v12 }
  0xaa   : > { %667 = vmatpush1.bf16.msra.mxu0 %v1046_v2  ;;  %629 = vmatmul.mubr.bf16.vlgmr.msra.gmra.mrb[0].mxu1 %v591_v15 }
  0xab   : > { %733 = vmatpush1.bf16.msra.mxu1 %v1036_v0  ;;  %668 = vmatprep.subr.bf16.mxu0 %v984_v1  ;;  %v368_v17 = vpop.permute.xlu1 %367  ;;  %v320_v18 = vpop.permute.xlu0 %319 }
  0xac   : > { %734 = vmatprep.subr.bf16.mxu1 %v984_v1  ;;  %378 = vst.msk [vmem:[#allocation2 + $0x10] sm:$0xf] %vm375_vm5, %v368_v17 }
  0xad   : > { %329 = vst.msk [vmem:[#allocation2 + $0x18] sm:$0xf] %vm325_vm3, %v320_v18 }
  0xae   : > { %669 = vmatpush1.bf16.msra.mxu0 %v1053_v3 }
  0xaf   : > { %735 = vmatpush1.bf16.msra.mxu1 %v1046_v2  ;;  %670 = vmatprep.subr.bf16.mxu0 %v984_v1  ;;  %v394_v20 = vpop.permute.xlu1 %393  ;;  %v345_v21 = vpop.permute.xlu0 %344 }
  0xb0   : > { %736 = vmatprep.subr.bf16.mxu1 %v984_v1  ;;  %404 = vst.msk [vmem:[#allocation2 + $0x10] sm:$0xf] %vm401_vm6, %v394_v20 }
  0xb1   : > { %354 = vst.msk [vmem:[#allocation2 + $0x18] sm:$0xf] %vm350_vm4, %v345_v21 }
  0xb2   : > { %671 = vmatpush1.bf16.msra.mxu0 %v1073_v8 }
  0xb3   : > { %737 = vmatpush1.bf16.msra.mxu1 %v1053_v3  ;;  %672 = vmatprep.subr.bf16.mxu0 %v984_v1  ;;  %v419_v0 = vpop.permute.xlu1 %418  ;;  %v370_v22 = vpop.permute.xlu0 %369 }
  0xb4   : > { %738 = vmatprep.subr.bf16.mxu1 %v984_v1  ;;  %429 = vst.msk [vmem:[#allocation2 + $0x10] sm:$0xf] %vm426_vm7, %v419_v0 }
  0xb5   : > { %379 = vst.msk [vmem:[#allocation2 + $0x18] sm:$0xf] %vm375_vm5, %v370_v22 }
  0xb6   : > { %673 = vmatpush1.bf16.msra.mxu0 %v1086_v11 }
  0xb7   : > { %739 = vmatpush1.bf16.msra.mxu1 %v1073_v8  ;;  %674 = vmatprep.subr.bf16.mxu0 %v984_v1  ;;  %v396_v2 = vpop.permute.xlu0 %395  ;;  %v421_v23 = vpop.permute.xlu1 %420 }
  0xb8   : > { %740 = vmatprep.subr.bf16.mxu1 %v984_v1  ;;  %405 = vst.msk [vmem:[#allocation2 + $0x18] sm:$0xf] %vm401_vm6, %v396_v2 }
  0xb9   : > { %430 = vst.msk [vmem:[#allocation2 + $0x18] sm:$0xf] %vm426_vm7, %v421_v23 }
  0xba   : > { %675 = vmatpush1.bf16.msra.mxu0 %v1105_v16 }
  0xbb   : > { %741 = vmatpush1.bf16.msra.mxu1 %v1086_v11  ;;  %676 = vmatprep.subr.bf16.mxu0 %v984_v1  ;;  %v655_v3 = vld [vmem:[#allocation2 + $0x10] sm:$0xff] }
  0xbc   : > { %742 = vmatprep.subr.bf16.mxu1 %v984_v1  ;;  %v657_v8 = vcombine.high %v655_v3, %v655_v3 }
  0xbe   : > { %677 = vmatpush1.bf16.msra.mxu0 %v1116_v19  ;;  %v660_v25 = vpack.c.bf16 %v657_v8, %v657_v8 }
  0xbf   : > { %743 = vmatpush1.bf16.msra.mxu1 %v1105_v16  ;;  %678 = vmatprep.subr.bf16.mxu0 %v984_v1  ;;  %v659_v16 = vpack.c.bf16 %v655_v3, %v655_v3 }
  0xc0   : > { %744 = vmatprep.subr.bf16.mxu1 %v984_v1  ;;  %942 = vmatprep.mubr.msk.bf16.mxu0 %vm524_vm8, %v660_v25  ;;  %v723_v26 = vld [vmem:[#allocation2 + $0x18] sm:$0xff] }
  0xc1   : > { %v725_v11 = vcombine.high %v723_v26, %v723_v26  ;;  %v727_v29 = vpack.c.bf16 %v723_v26, %v723_v26 }
  0xc2   : > { %679 = vmatpush1.bf16.msra.mxu0 %v1133_v24 }
  0xc3   : > { %745 = vmatpush1.bf16.msra.mxu1 %v1116_v19  ;;  %680 = vmatprep.subr.bf16.mxu0 %v984_v1  ;;  %v728_v28 = vpack.c.bf16 %v725_v11, %v725_v11  ;;  %v930_v19 = vld [vmem:[%s1301_s2] ss:$0 sm:$0xff] }
  0xc4   : > { %746 = vmatprep.subr.bf16.mxu1 %v984_v1 }
  0xc5   : > { %943 = vmatprep.mubr.msk.bf16.mxu1 %vm524_vm8, %v728_v28 }
  0xc6   : > { %681 = vmatpush1.bf16.msra.mxu0 %v1146_v27 }
  0xc7   : > { %747 = vmatpush1.bf16.msra.mxu1 %v1133_v24 }
  0xc8   : > { %748 = vmatprep.subr.bf16.mxu1 %v984_v1 }
  0xc9   : > { %697 = vmatmul.mubr.bf16.vlgmr.msra.gmra.mrb[4].mxu0 %v659_v16 }
  0xcb   : > { %749 = vmatpush1.bf16.msra.mxu1 %v1146_v27 }
  0xce   : > { %765 = vmatmul.mubr.bf16.vlgmr.msra.gmra.mrb[4].mxu1 %v727_v29 }
 0x178   : > { %v562_v1 = vpop.f32.mrb[0].mxu0 }
 0x179   : > { %v563_v24 = vadd.f32 %v930_v19, %v562_v1  ;;  %v564_v27 = vpop.f32.mrb[1].mxu0 }
 0x17a   : > { %v565_v30 = vpop.f32.mrb[2].mxu0 }
 0x17b   : > { %v568_v31 = vsel %vm249_vm0, %v563_v24, 0.0  ;;  %v576_v32 = vmul.f32 %v563_v24, %v563_v24  ;;  %585 = vst.msk [vmem:[%s1270_s7] sm:$0xf] %vm249_vm0, %v563_v24  ;;  %v566_v33 = vpop.f32.mrb[3].mxu0 }
 0x17c   : > { %v569_v34 = vrot.slane %v568_v31, 4 }
 0x17d   : > { %v577_v35 = vsel %vm249_vm0, %v576_v32, 0.0  ;;  %v630_v36 = vpop.f32.mrb[0].mxu1 }
 0x17e   : > { %v570_v37 = vadd.f32 %v569_v34, %v568_v31  ;;  %v578_v38 = vrot.slane %v577_v35, 4  ;;  %v631_v39 = vadd.f32 %v930_v19, %v630_v36  ;;  %v632_v40 = vpop.f32.mrb[1].mxu1 }
 0x17f   : > { %v633_v41 = vpop.f32.mrb[2].mxu1 }
 0x180   : > { %v571_v42 = vrot.slane %v570_v37, 2  ;;  %v579_v43 = vadd.f32 %v578_v38, %v577_v35  ;;  %v636_v44 = vsel %vm249_vm0, %v631_v39, 0.0  ;;  %v644_v45 = vmul.f32 %v631_v39, %v631_v39  ;;  %653 = vst.msk [vmem:[%s1270_s7 + $0x4] sm:$0xf] %vm249_vm0, %v631_v39  ;;  %v634_v46 = vpop.f32.mrb[3].mxu1 }
 0x181   : > { %v637_v47 = vrot.slane %v636_v44, 4 }
 0x182   : > { %v580_v48 = vrot.slane %v579_v43, 2  ;;  %v645_v49 = vsel %vm249_vm0, %v644_v45, 0.0  ;;  %v572_v50 = vadd.f32 %v571_v42, %v570_v37 }
 0x183   : > { %v638_v51 = vadd.f32 %v637_v47, %v636_v44  ;;  %v646_v52 = vrot.slane %v645_v49, 4 }
 0x184   : > { %v581_v53 = vadd.f32 %v580_v48, %v579_v43  ;;  %v573_v56 = vrot.slane %v572_v50, 1 }
 0x185   : > { %v639_v54 = vrot.slane %v638_v51, 2  ;;  %v647_v55 = vadd.f32 %v646_v52, %v645_v49 }
 0x186   : > { %v582_v59 = vrot.slane %v581_v53, 1  ;;  %v574_v62 = vadd.f32 %v573_v56, %v572_v50 }
 0x187   : > { %v640_v57 = vadd.f32 %v639_v54, %v638_v51  ;;  %v648_v58 = vrot.slane %v647_v55, 2 }
 0x188   : > { %v583_v5 = vadd.f32 %v582_v59, %v581_v53 }
 0x189   : > { %v641_v60 = vrot.slane %v640_v57, 1  ;;  %v649_v61 = vadd.f32 %v648_v58, %v647_v55 }
 0x18b   : > { %v642_v63 = vadd.f32 %v641_v60, %v640_v57  ;;  %v650_v4 = vrot.slane %v649_v61, 1 }
 0x18d   : > { %v643_v6 = vadd.f32 %v642_v63, %v574_v62  ;;  %v651_v7 = vadd.f32 %v650_v4, %v649_v61 }
 0x18f   : > { %v652_v9 = vadd.f32 %v651_v7, %v583_v5 }
 0x19c   : > { %v698_v10 = vpop.f32.mrb[4].mxu0 }
 0x19d   : > { %v699_v12 = vadd.f32 %v930_v19, %v698_v10  ;;  %v700_v13 = vpop.f32.mrb[5].mxu0 }
 0x19e   : > { %v701_v14 = vpop.f32.mrb[6].mxu0 }
 0x19f   : > { %v704_v15 = vsel %vm249_vm0, %v699_v12, 0.0  ;;  %v712_v17 = vmul.f32 %v699_v12, %v699_v12  ;;  %721 = vst.msk [vmem:[%s1270_s7 + $0x8] sm:$0xf] %vm249_vm0, %v699_v12  ;;  %v702_v18 = vpop.f32.mrb[7].mxu0 }
 0x1a0   : > { %v705_v20 = vrot.slane %v704_v15, 4 }
 0x1a1   : > { %v713_v21 = vsel %vm249_vm0, %v712_v17, 0.0  ;;  %v766_v0 = vpop.f32.mrb[4].mxu1 }
 0x1a2   : > { %v706_v22 = vadd.f32 %v705_v20, %v704_v15  ;;  %v714_v2 = vrot.slane %v713_v21, 4  ;;  %v767_v23 = vadd.f32 %v930_v19, %v766_v0  ;;  %v768_v3 = vpop.f32.mrb[5].mxu1 }
 0x1a3   : > { %v769_v8 = vpop.f32.mrb[6].mxu1 }
 0x1a4   : > { %v707_v25 = vrot.slane %v706_v22, 2  ;;  %v715_v26 = vadd.f32 %v714_v2, %v713_v21  ;;  %v772_v11 = vsel %vm249_vm0, %v767_v23, 0.0  ;;  %v780_v28 = vmul.f32 %v767_v23, %v767_v23  ;;  %789 = vst.msk [vmem:[%s1270_s7 + $0xc] sm:$0xf] %vm249_vm0, %v767_v23  ;;  %v770_v16 = vpop.f32.mrb[7].mxu1 }
 0x1a5   : > { %v773_v29 = vrot.slane %v772_v11, 4 }
 0x1a6   : > { %v708_v1 = vadd.f32 %v707_v25, %v706_v22  ;;  %v716_v24 = vrot.slane %v715_v26, 2  ;;  %v781_v27 = vsel %vm249_vm0, %v780_v28, 0.0 }
 0x1a7   : > { %v774_v30 = vadd.f32 %v773_v29, %v772_v11  ;;  %v782_v31 = vrot.slane %v781_v27, 4 }
 0x1a8   : > { %v709_v32 = vrot.slane %v708_v1, 1  ;;  %v717_v19 = vadd.f32 %v716_v24, %v715_v26 }
 0x1a9   : > { %v775_v33 = vrot.slane %v774_v30, 2  ;;  %v783_v34 = vadd.f32 %v782_v31, %v781_v27 }
 0x1aa   : > { %v710_v35 = vadd.f32 %v709_v32, %v708_v1  ;;  %v718_v36 = vrot.slane %v717_v19, 1 }
 0x1ab   : > { %v776_v37 = vadd.f32 %v775_v33, %v774_v30  ;;  %v784_v38 = vrot.slane %v783_v34, 2 }
 0x1ac   : > { %v711_v39 = vadd.f32 %v710_v35, %v643_v6  ;;  %v719_v40 = vadd.f32 %v718_v36, %v717_v19 }
 0x1ad   : > { %v777_v41 = vrot.slane %v776_v37, 1  ;;  %v785_v42 = vadd.f32 %v784_v38, %v783_v34 }
 0x1ae   : > { %v720_v43 = vadd.f32 %v719_v40, %v652_v9 }
 0x1af   : > { %v778_v44 = vadd.f32 %v777_v41, %v776_v37  ;;  %v786_v45 = vrot.slane %v785_v42, 1 }
 0x1b1   : > { %v779_v46 = vadd.f32 %v778_v44, %v711_v39  ;;  %v787_v47 = vadd.f32 %v786_v45, %v785_v42 }
 0x1b3   : > { %v788_v48 = vadd.f32 %v787_v47, %v720_v43  ;;  %791 = vst.msk [vmem:[%s240_s10] sm:$0x1] %vm790_vm9, %v779_v46 }
 0x1b5   : > { %792 = vst.msk [vmem:[%s243_s13] sm:$0x1] %vm790_vm9, %v788_v48 }
 0x1b6 PF: > { %s16_s18 = sadd.s32 1, %s982_s18  }
 0x1b7   : > { %p13_p5 = scmp.ge.s32.totalorder %s16_s18, 4  }
 0x1b9   :  { %15 = sbr.rel (!%p13_p5) target bundleno = 1 (0x1), region = 91 }

</bundles_post_ra>
